<compile_context>
chip_gen: v7x
topology: tpu7x:2x2x1
jax: 0.10.0
libtpu: 0.0.40
codegen_flags: <defaults>
</compile_context>

<pallas_src>
import functools
import math

import jax
import jax.numpy as jnp
from jax.experimental import pallas as pl
from jax.experimental.pallas import tpu as pltpu

LANE = 128     # channel dim is padded to a multiple of the lane width
W_LPAD = 8     # left spatial pad -> the staged conv2 interior starts sublane-aligned

_COMPILER = dict(
    dimension_semantics=("parallel",),       # batch axis is independent (2 TCs on v7x)
    vmem_limit_bytes=32 * 1024 * 1024,       # explicit budget; <= half of v7x's 64 MiB
)


def _silu(v):
    # v * sigmoid(v): exp/logistic stay on the EUP slot (no explicit VPU divide).
    return v * jax.nn.sigmoid(v)


def _round_up(v, m):
    return (v + m - 1) // m * m


def _pad_last(a, target):
    pad = target - a.shape[-1]
    if pad == 0:
        return a
    return jnp.pad(a, [(0, 0)] * (a.ndim - 1) + [(0, pad)])


# --------------------------------------------------------------------------------------
# Pass 1: conv1 (3x3 SAME) + per-sample channel sum / sum-of-squares (for global BN1).
# --------------------------------------------------------------------------------------
def _conv1_kernel(x_ref, w_ref, b_ref, h_ref, sum_ref, sq_ref, *, H, W):
    """x_ref: (1,H+2,Wp,Cin) bf16 pre-padded; w_ref: (9,Cin,Cp) bf16; b_ref: (1,Cp) f32
    h_ref: (1,H*W,Cp) f32 pre-BN output; sum_ref/sq_ref: (1,1,Cp) f32 per-sample stats."""
    Cin = x_ref.shape[-1]
    Cp = h_ref.shape[-1]
    acc = jnp.zeros((H * W, Cp), jnp.float32)
    # K = 9*Cin is tiny here, so keep the 9 shifted-tap MXU matmuls (the folded
    # im2col contraction is used for conv2 where K = 9*Cp is lane-aligned).
    for k in range(9):
        dy, dx = k // 3, k % 3
        c0 = W_LPAD - 1 + dx
        xs = x_ref[:, dy:dy + H, c0:c0 + W, :].reshape(H * W, Cin)
        acc = acc + jnp.dot(xs, w_ref[k], preferred_element_type=jnp.float32)
    acc = acc + b_ref[...]
    h_ref[...] = acc.reshape(1, H * W, Cp)
    sum_ref[...] = jnp.sum(acc, axis=0, keepdims=True).reshape(1, 1, Cp)
    sq_ref[...] = jnp.sum(acc * acc, axis=0, keepdims=True).reshape(1, 1, Cp)


# --------------------------------------------------------------------------------------
# Pass 2: BN1 affine + SiLU + time add, conv2 (im2col, one K=9*Cp matmul) + stats.
# --------------------------------------------------------------------------------------
def _bn1_time_conv2_kernel(h1_ref, sc_ref, sh_ref, te_ref, w_ref, b_ref,
                           h2_ref, sum_ref, sq_ref, hpad_ref, patch_ref, *, H, W, cdt):
    """h1_ref: (1,H*W,Cp) f32; sc/sh: (1,Cp) BN1 scale/shift (global stats from wrapper);
    te_ref: (1,1,Cp) per-sample time embedding; w_ref: (9*Cp,Cp) bf16; b_ref: (1,Cp).
    hpad_ref: VMEM (H+2,Wp,Cp) bf16 halo-padded conv2 input (interior at [1:H+1, 8:8+W]);
    patch_ref: VMEM (H*W,9*Cp) bf16 im2col buffer."""
    Cp = h2_ref.shape[-1]
    Wp = hpad_ref.shape[1]

    h = h1_ref[...] * sc_ref[...] + sh_ref[...]
    h = _silu(h) + te_ref[...]

    # Zero ONLY the 1-pixel halo that the taps read (rows 0 / H+1, cols 7 / W+8);
    # the interior is fully overwritten every grid step, so no full-scratch zero-fill.
    hpad_ref[0:1, :, :] = jnp.zeros((1, Wp, Cp), cdt)
    hpad_ref[H + 1:H + 2, :, :] = jnp.zeros((1, Wp, Cp), cdt)
    hpad_ref[1:H + 1, W_LPAD - 1:W_LPAD, :] = jnp.zeros((H, 1, Cp), cdt)
    hpad_ref[1:H + 1, W_LPAD + W:W_LPAD + W + 1, :] = jnp.zeros((H, 1, Cp), cdt)
    # Sublane-aligned interior store (starts at column W_LPAD = 8).
    hpad_ref[1:H + 1, W_LPAD:W_LPAD + W, :] = h.reshape(H, W, Cp).astype(cdt)

    # im2col: fold the 9 taps into a single K = 9*Cp contraction (one MXU matmul).
    for k in range(9):
        dy, dx = k // 3, k % 3
        c0 = W_LPAD - 1 + dx
        tap = hpad_ref[dy:dy + H, c0:c0 + W, :]
        patch_ref[:, k * Cp:(k + 1) * Cp] = tap.reshape(H * W, Cp)

    acc = jnp.dot(patch_ref[...], w_ref[...], preferred_element_type=jnp.float32)
    acc = acc + b_ref[...]
    h2_ref[...] = acc.reshape(1, H * W, Cp)
    sum_ref[...] = jnp.sum(acc, axis=0, keepdims=True).reshape(1, 1, Cp)
    sq_ref[...] = jnp.sum(acc * acc, axis=0, keepdims=True).reshape(1, 1, Cp)


# --------------------------------------------------------------------------------------
# Pass 3: BN2 affine + SiLU (lane-dense elementwise finalize).
# --------------------------------------------------------------------------------------
def _bn2_silu_kernel(h2_ref, sc_ref, sh_ref, out_ref):
    out_ref[...] = _silu(h2_ref[...] * sc_ref[...] + sh_ref[...])


# --------------------------------------------------------------------------------------
# Wrapper
# --------------------------------------------------------------------------------------
def block_forward(x, t_emb, params, *, eps=1e-5):
    """Block.forward with NHWC activations (training-mode BatchNorm), float32 output."""
    N, H, W, Cin = x.shape
    Cout = params["w1"].shape[-1]
    Cp = _round_up(Cout, LANE)                 # lane-dense channel dim (sliced at the end)
    Wp = W_LPAD + _round_up(W + 1, 8)          # padded width; interior sublane-aligned
    cdt = jnp.bfloat16                         # MXU operand dtype (f32 accumulation)
    f32 = jnp.float32
    cnt = float(N * H * W)

    # ---- trace-time prep (XLA ops; weight re-layout, channel padding, spatial pad) ----
    x_pad = jnp.pad(x.astype(cdt),
                    ((0, 0), (1, 1), (W_LPAD, Wp - W_LPAD - W), (0, 0)))
    w1 = _pad_last(params["w1"].reshape(9, Cin, Cout).astype(f32), Cp).astype(cdt)
    w2 = jnp.pad(params["w2"].astype(f32),
                 ((0, 0), (0, 0), (0, Cp - Cout), (0, Cp - Cout)))
    w2 = w2.reshape(9 * Cp, Cp).astype(cdt)
    b1 = _pad_last(params["b1"].reshape(1, Cout).astype(f32), Cp)
    b2 = _pad_last(params["b2"].reshape(1, Cout).astype(f32), Cp)
    g1 = _pad_last(params["g1"].reshape(1, Cout).astype(f32), Cp)
    be1 = _pad_last(params["be1"].reshape(1, Cout).astype(f32), Cp)
    g2 = _pad_last(params["g2"].reshape(1, Cout).astype(f32), Cp)
    be2 = _pad_last(params["be2"].reshape(1, Cout).astype(f32), Cp)

    # Time MLP is grid-invariant and tiny: hoisted out of the kernels entirely.
    te = jnp.dot(jax.nn.silu(t_emb.astype(f32)), params["wm"].astype(f32),
                 precision=jax.lax.Precision.HIGHEST) + params["bm"].astype(f32)
    te = _pad_last(te, Cp).reshape(N, 1, Cp)

    cparams = pltpu.CompilerParams(**_COMPILER)

    # ---- pass 1: conv1, gridded over N (pipelined, parallel) + per-sample stats ----
    h1, s1, q1 = pl.pallas_call(
        functools.partial(_conv1_kernel, H=H, W=W),
        grid=(N,),
        in_specs=[
            pl.BlockSpec((1, H + 2, Wp, Cin), lambda i: (i, 0, 0, 0)),
            pl.BlockSpec((9, Cin, Cp), lambda i: (0, 0, 0)),
            pl.BlockSpec((1, Cp), lambda i: (0, 0)),
        ],
        out_specs=(
            pl.BlockSpec((1, H * W, Cp), lambda i: (i, 0, 0)),
            pl.BlockSpec((1, 1, Cp), lambda i: (i, 0, 0)),
            pl.BlockSpec((1, 1, Cp), lambda i: (i, 0, 0)),
        ),
        out_shape=(
            jax.ShapeDtypeStruct((N, H * W, Cp), f32),
            jax.ShapeDtypeStruct((N, 1, Cp), f32),
            jax.ShapeDtypeStruct((N, 1, Cp), f32),
        ),
        compiler_params=cparams,
    )(x_pad, w1, b1)

    # BN1 global batch statistics finalized from per-sample partial sums (tiny XLA op).
    mean1 = jnp.sum(s1, axis=(0, 1)) / cnt
    var1 = jnp.maximum(jnp.sum(q1, axis=(0, 1)) / cnt - mean1 * mean1, 0.0)
    scale1 = (g1[0] * jax.lax.rsqrt(var1 + eps)).reshape(1, Cp)
    shift1 = (be1[0] - mean1 * scale1[0]).reshape(1, Cp)

    # ---- pass 2: BN1 affine + SiLU + time add + conv2 + per-sample stats ----
    h2, s2, q2 = pl.pallas_call(
        functools.partial(_bn1_time_conv2_kernel, H=H, W=W, cdt=cdt),
        grid=(N,),
        in_specs=[
            pl.BlockSpec((1, H * W, Cp), lambda i: (i, 0, 0)),
            pl.BlockSpec((1, Cp), lambda i: (0, 0)),
            pl.BlockSpec((1, Cp), lambda i: (0, 0)),
            pl.BlockSpec((1, 1, Cp), lambda i: (i, 0, 0)),
            pl.BlockSpec((9 * Cp, Cp), lambda i: (0, 0)),
            pl.BlockSpec((1, Cp), lambda i: (0, 0)),
        ],
        out_specs=(
            pl.BlockSpec((1, H * W, Cp), lambda i: (i, 0, 0)),
            pl.BlockSpec((1, 1, Cp), lambda i: (i, 0, 0)),
            pl.BlockSpec((1, 1, Cp), lambda i: (i, 0, 0)),
        ),
        out_shape=(
            jax.ShapeDtypeStruct((N, H * W, Cp), f32),
            jax.ShapeDtypeStruct((N, 1, Cp), f32),
            jax.ShapeDtypeStruct((N, 1, Cp), f32),
        ),
        scratch_shapes=[
            pltpu.VMEM((H + 2, Wp, Cp), cdt),       # halo-padded conv2 input
            pltpu.VMEM((H * W, 9 * Cp), cdt),       # im2col patch buffer
        ],
        compiler_params=cparams,
    )(h1, scale1, shift1, te, w2, b2)

    mean2 = jnp.sum(s2, axis=(0, 1)) / cnt
    var2 = jnp.maximum(jnp.sum(q2, axis=(0, 1)) / cnt - mean2 * mean2, 0.0)
    scale2 = (g2[0] * jax.lax.rsqrt(var2 + eps)).reshape(1, Cp)
    shift2 = (be2[0] - mean2 * scale2[0]).reshape(1, Cp)

    # ---- pass 3: BN2 affine + SiLU (lane-dense elementwise) ----
    out = pl.pallas_call(
        _bn2_silu_kernel,
        grid=(N,),
        in_specs=[
            pl.BlockSpec((1, H * W, Cp), lambda i: (i, 0, 0)),
            pl.BlockSpec((1, Cp), lambda i: (0, 0)),
            pl.BlockSpec((1, Cp), lambda i: (0, 0)),
        ],
        out_specs=pl.BlockSpec((1, H * W, Cp), lambda i: (i, 0, 0)),
        out_shape=jax.ShapeDtypeStruct((N, H * W, Cp), f32),
        compiler_params=cparams,
    )(h2, scale2, shift2)

    return out.reshape(N, H, W, Cp)[..., :Cout]


# --------------------------------------------------------------------------------------
# Pure-JAX f32 reference (per-op HIGHEST precision; no global config mutation).
# --------------------------------------------------------------------------------------
def _reference(x, t_emb, p, *, eps=1e-5):
    hi = jax.lax.Precision.HIGHEST

    def conv(h, w, b):
        out = jax.lax.conv_general_dilated(
            h, w, window_strides=(1, 1), padding="SAME",
            dimension_numbers=("NHWC", "HWIO", "NHWC"), precision=hi)
        return out + b[None, None, None, :]

    def bn(h, g, be):
        mean = jnp.mean(h, axis=(0, 1, 2), keepdims=True)
        var = jnp.mean(jnp.square(h - mean), axis=(0, 1, 2), keepdims=True)
        return ((h - mean) * jax.lax.rsqrt(var + eps)
                * g[None, None, None, :] + be[None, None, None, :])

    h = jax.nn.silu(bn(conv(x, p["w1"], p["b1"]), p["g1"], p["be1"]))
    te = jnp.dot(jax.nn.silu(t_emb), p["wm"], precision=hi) + p["bm"]
    h = h + te[:, None, None, :]
    return jax.nn.silu(bn(conv(h, p["w2"], p["b2"]), p["g2"], p["be2"]))


if __name__ == "__main__":
    N, H, W = 2, 16, 16
    CIN, COUT, TDIM = 4, 8, 32

    key = jax.random.PRNGKey(0)
    ks = jax.random.split(key, 12)
    x = jax.random.normal(ks[0], (N, H, W, CIN), jnp.float32)
    t_emb = jax.random.normal(ks[1], (N, TDIM), jnp.float32)
    params = {
        "w1": jax.random.normal(ks[2], (3, 3, CIN, COUT), jnp.float32) / math.sqrt(9 * CIN),
        "b1": 0.1 * jax.random.normal(ks[3], (COUT,), jnp.float32),
        "g1": 1.0 + 0.1 * jax.random.normal(ks[4], (COUT,), jnp.float32),
        "be1": 0.1 * jax.random.normal(ks[5], (COUT,), jnp.float32),
        "wm": jax.random.normal(ks[6], (TDIM, COUT), jnp.float32) / math.sqrt(TDIM),
        "bm": 0.1 * jax.random.normal(ks[7], (COUT,), jnp.float32),
        "w2": jax.random.normal(ks[8], (3, 3, COUT, COUT), jnp.float32) / math.sqrt(9 * COUT),
        "b2": 0.1 * jax.random.normal(ks[9], (COUT,), jnp.float32),
        "g2": 1.0 + 0.1 * jax.random.normal(ks[10], (COUT,), jnp.float32),
        "be2": 0.1 * jax.random.normal(ks[11], (COUT,), jnp.float32),
    }

    out = jax.jit(block_forward)(x, t_emb, params)
    out = jax.block_until_ready(out)

    ref = _reference(x, t_emb, params)
    assert out.shape == (N, H, W, COUT) and out.dtype == jnp.float32
    # Tolerance accounts for bf16 MXU operands (per perf review) vs the f32 reference;
    # BatchNorm re-normalizes, so the error stays small.
    max_diff = float(jnp.max(jnp.abs(out - ref)))
    assert jnp.allclose(out, ref, atol=3e-2, rtol=3e-2), (
        "mismatch vs reference: max abs diff = %e" % max_diff)

    print("KERNEL_OK")
</pallas_src>

<mosaic_0001>
module attributes {stable_mosaic.version = 11 : i64} {
  func.func @_conv1_kernel(%arg0: i32, %arg1: memref<1x18x32x4xbf16, #tpu.memory_space<vmem>>, %arg2: memref<9x4x128xbf16, #tpu.memory_space<vmem>>, %arg3: memref<1x128xf32, #tpu.memory_space<vmem>>, %arg4: memref<1x256x128xf32, #tpu.memory_space<vmem>>, %arg5: memref<1x1x128xf32, #tpu.memory_space<vmem>>, %arg6: memref<1x1x128xf32, #tpu.memory_space<vmem>>) attributes {dimension_semantics = [#tpu.dimension_semantics<parallel>], iteration_bounds = array<i64: 2>, scalar_prefetch = 0 : i64, scratch_operands = 0 : i64, tpu.core_type = #tpu.core_type<tc>, window_params = [{transform_indices = @transform_0, window_bounds = array<i64: 1, 18, 32, 4>}, {pipeline_mode = #tpu.pipeline_mode<synchronous>, transform_indices = @transform_1, window_bounds = array<i64: 9, 4, 128>}, {pipeline_mode = #tpu.pipeline_mode<synchronous>, transform_indices = @transform_2, window_bounds = array<i64: 1, 128>}, {transform_indices = @transform_3, window_bounds = array<i64: 1, 256, 128>}, {transform_indices = @transform_4, window_bounds = array<i64: 1, 1, 128>}, {transform_indices = @transform_5, window_bounds = array<i64: 1, 1, 128>}]} {
    %cst = arith.constant 0.000000e+00 : f32
    %0 = vector.broadcast %cst : f32 to vector<256x128xf32>
    %c0 = arith.constant 0 : index
    %c0_0 = arith.constant 0 : index
    %c7 = arith.constant 7 : index
    %c0_1 = arith.constant 0 : index
    %1 = vector.load %arg1[%c0, %c0_0, %c7, %c0_1] : memref<1x18x32x4xbf16, #tpu.memory_space<vmem>>, vector<1x16x16x4xbf16>
    %2 = vector.shape_cast %1 : vector<1x16x16x4xbf16> to vector<256x4xbf16>
    %c0_2 = arith.constant 0 : index
    %c0_3 = arith.constant 0 : index
    %c0_4 = arith.constant 0 : index
    %3 = vector.load %arg2[%c0_2, %c0_3, %c0_4] : memref<9x4x128xbf16, #tpu.memory_space<vmem>>, vector<1x4x128xbf16>
    %4 = vector.shape_cast %3 : vector<1x4x128xbf16> to vector<4x128xbf16>
    %cst_5 = arith.constant dense<0.000000e+00> : vector<256x128xf32>
    %5 = tpu.matmul %2, %4, %cst_5 {dimension_numbers = #tpu.dot_dimension_numbers<[1], [0], [0], [1], [0, 0, 1, 1], [], []>} : vector<256x4xbf16>, vector<4x128xbf16>, vector<256x128xf32> -> vector<256x128xf32>
    %6 = arith.addf %0, %5 : vector<256x128xf32>
    %c0_6 = arith.constant 0 : index
    %c0_7 = arith.constant 0 : index
    %c8 = arith.constant 8 : index
    %c0_8 = arith.constant 0 : index
    %7 = vector.load %arg1[%c0_6, %c0_7, %c8, %c0_8] : memref<1x18x32x4xbf16, #tpu.memory_space<vmem>>, vector<1x16x16x4xbf16>
    %8 = vector.shape_cast %7 : vector<1x16x16x4xbf16> to vector<256x4xbf16>
    %c1 = arith.constant 1 : index
    %c0_9 = arith.constant 0 : index
    %c0_10 = arith.constant 0 : index
    %9 = vector.load %arg2[%c1, %c0_9, %c0_10] : memref<9x4x128xbf16, #tpu.memory_space<vmem>>, vector<1x4x128xbf16>
    %10 = vector.shape_cast %9 : vector<1x4x128xbf16> to vector<4x128xbf16>
    %cst_11 = arith.constant dense<0.000000e+00> : vector<256x128xf32>
    %11 = tpu.matmul %8, %10, %cst_11 {dimension_numbers = #tpu.dot_dimension_numbers<[1], [0], [0], [1], [0, 0, 1, 1], [], []>} : vector<256x4xbf16>, vector<4x128xbf16>, vector<256x128xf32> -> vector<256x128xf32>
    %12 = arith.addf %6, %11 : vector<256x128xf32>
    %c0_12 = arith.constant 0 : index
    %c0_13 = arith.constant 0 : index
    %c9 = arith.constant 9 : index
    %c0_14 = arith.constant 0 : index
    %13 = vector.load %arg1[%c0_12, %c0_13, %c9, %c0_14] : memref<1x18x32x4xbf16, #tpu.memory_space<vmem>>, vector<1x16x16x4xbf16>
    %14 = vector.shape_cast %13 : vector<1x16x16x4xbf16> to vector<256x4xbf16>
    %c2 = arith.constant 2 : index
    %c0_15 = arith.constant 0 : index
    %c0_16 = arith.constant 0 : index
    %15 = vector.load %arg2[%c2, %c0_15, %c0_16] : memref<9x4x128xbf16, #tpu.memory_space<vmem>>, vector<1x4x128xbf16>
    %16 = vector.shape_cast %15 : vector<1x4x128xbf16> to vector<4x128xbf16>
    %cst_17 = arith.constant dense<0.000000e+00> : vector<256x128xf32>
    %17 = tpu.matmul %14, %16, %cst_17 {dimension_numbers = #tpu.dot_dimension_numbers<[1], [0], [0], [1], [0, 0, 1, 1], [], []>} : vector<256x4xbf16>, vector<4x128xbf16>, vector<256x128xf32> -> vector<256x128xf32>
    %18 = arith.addf %12, %17 : vector<256x128xf32>
    %c0_18 = arith.constant 0 : index
    %c1_19 = arith.constant 1 : index
    %c7_20 = arith.constant 7 : index
    %c0_21 = arith.constant 0 : index
    %19 = vector.load %arg1[%c0_18, %c1_19, %c7_20, %c0_21] : memref<1x18x32x4xbf16, #tpu.memory_space<vmem>>, vector<1x16x16x4xbf16>
    %20 = vector.shape_cast %19 : vector<1x16x16x4xbf16> to vector<256x4xbf16>
    %c3 = arith.constant 3 : index
    %c0_22 = arith.constant 0 : index
    %c0_23 = arith.constant 0 : index
    %21 = vector.load %arg2[%c3, %c0_22, %c0_23] : memref<9x4x128xbf16, #tpu.memory_space<vmem>>, vector<1x4x128xbf16>
    %22 = vector.shape_cast %21 : vector<1x4x128xbf16> to vector<4x128xbf16>
    %cst_24 = arith.constant dense<0.000000e+00> : vector<256x128xf32>
    %23 = tpu.matmul %20, %22, %cst_24 {dimension_numbers = #tpu.dot_dimension_numbers<[1], [0], [0], [1], [0, 0, 1, 1], [], []>} : vector<256x4xbf16>, vector<4x128xbf16>, vector<256x128xf32> -> vector<256x128xf32>
    %24 = arith.addf %18, %23 : vector<256x128xf32>
    %c0_25 = arith.constant 0 : index
    %c1_26 = arith.constant 1 : index
    %c8_27 = arith.constant 8 : index
    %c0_28 = arith.constant 0 : index
    %25 = vector.load %arg1[%c0_25, %c1_26, %c8_27, %c0_28] : memref<1x18x32x4xbf16, #tpu.memory_space<vmem>>, vector<1x16x16x4xbf16>
    %26 = vector.shape_cast %25 : vector<1x16x16x4xbf16> to vector<256x4xbf16>
    %c4 = arith.constant 4 : index
    %c0_29 = arith.constant 0 : index
    %c0_30 = arith.constant 0 : index
    %27 = vector.load %arg2[%c4, %c0_29, %c0_30] : memref<9x4x128xbf16, #tpu.memory_space<vmem>>, vector<1x4x128xbf16>
    %28 = vector.shape_cast %27 : vector<1x4x128xbf16> to vector<4x128xbf16>
    %cst_31 = arith.constant dense<0.000000e+00> : vector<256x128xf32>
    %29 = tpu.matmul %26, %28, %cst_31 {dimension_numbers = #tpu.dot_dimension_numbers<[1], [0], [0], [1], [0, 0, 1, 1], [], []>} : vector<256x4xbf16>, vector<4x128xbf16>, vector<256x128xf32> -> vector<256x128xf32>
    %30 = arith.addf %24, %29 : vector<256x128xf32>
    %c0_32 = arith.constant 0 : index
    %c1_33 = arith.constant 1 : index
    %c9_34 = arith.constant 9 : index
    %c0_35 = arith.constant 0 : index
    %31 = vector.load %arg1[%c0_32, %c1_33, %c9_34, %c0_35] : memref<1x18x32x4xbf16, #tpu.memory_space<vmem>>, vector<1x16x16x4xbf16>
    %32 = vector.shape_cast %31 : vector<1x16x16x4xbf16> to vector<256x4xbf16>
    %c5 = arith.constant 5 : index
    %c0_36 = arith.constant 0 : index
    %c0_37 = arith.constant 0 : index
    %33 = vector.load %arg2[%c5, %c0_36, %c0_37] : memref<9x4x128xbf16, #tpu.memory_space<vmem>>, vector<1x4x128xbf16>
    %34 = vector.shape_cast %33 : vector<1x4x128xbf16> to vector<4x128xbf16>
    %cst_38 = arith.constant dense<0.000000e+00> : vector<256x128xf32>
    %35 = tpu.matmul %32, %34, %cst_38 {dimension_numbers = #tpu.dot_dimension_numbers<[1], [0], [0], [1], [0, 0, 1, 1], [], []>} : vector<256x4xbf16>, vector<4x128xbf16>, vector<256x128xf32> -> vector<256x128xf32>
    %36 = arith.addf %30, %35 : vector<256x128xf32>
    %c0_39 = arith.constant 0 : index
    %c2_40 = arith.constant 2 : index
    %c7_41 = arith.constant 7 : index
    %c0_42 = arith.constant 0 : index
    %37 = vector.load %arg1[%c0_39, %c2_40, %c7_41, %c0_42] : memref<1x18x32x4xbf16, #tpu.memory_space<vmem>>, vector<1x16x16x4xbf16>
    %38 = vector.shape_cast %37 : vector<1x16x16x4xbf16> to vector<256x4xbf16>
    %c6 = arith.constant 6 : index
    %c0_43 = arith.constant 0 : index
    %c0_44 = arith.constant 0 : index
    %39 = vector.load %arg2[%c6, %c0_43, %c0_44] : memref<9x4x128xbf16, #tpu.memory_space<vmem>>, vector<1x4x128xbf16>
    %40 = vector.shape_cast %39 : vector<1x4x128xbf16> to vector<4x128xbf16>
    %cst_45 = arith.constant dense<0.000000e+00> : vector<256x128xf32>
    %41 = tpu.matmul %38, %40, %cst_45 {dimension_numbers = #tpu.dot_dimension_numbers<[1], [0], [0], [1], [0, 0, 1, 1], [], []>} : vector<256x4xbf16>, vector<4x128xbf16>, vector<256x128xf32> -> vector<256x128xf32>
    %42 = arith.addf %36, %41 : vector<256x128xf32>
    %c0_46 = arith.constant 0 : index
    %c2_47 = arith.constant 2 : index
    %c8_48 = arith.constant 8 : index
    %c0_49 = arith.constant 0 : index
    %43 = vector.load %arg1[%c0_46, %c2_47, %c8_48, %c0_49] : memref<1x18x32x4xbf16, #tpu.memory_space<vmem>>, vector<1x16x16x4xbf16>
    %44 = vector.shape_cast %43 : vector<1x16x16x4xbf16> to vector<256x4xbf16>
    %c7_50 = arith.constant 7 : index
    %c0_51 = arith.constant 0 : index
    %c0_52 = arith.constant 0 : index
    %45 = vector.load %arg2[%c7_50, %c0_51, %c0_52] : memref<9x4x128xbf16, #tpu.memory_space<vmem>>, vector<1x4x128xbf16>
    %46 = vector.shape_cast %45 : vector<1x4x128xbf16> to vector<4x128xbf16>
    %cst_53 = arith.constant dense<0.000000e+00> : vector<256x128xf32>
    %47 = tpu.matmul %44, %46, %cst_53 {dimension_numbers = #tpu.dot_dimension_numbers<[1], [0], [0], [1], [0, 0, 1, 1], [], []>} : vector<256x4xbf16>, vector<4x128xbf16>, vector<256x128xf32> -> vector<256x128xf32>
    %48 = arith.addf %42, %47 : vector<256x128xf32>
    %c0_54 = arith.constant 0 : index
    %c2_55 = arith.constant 2 : index
    %c9_56 = arith.constant 9 : index
    %c0_57 = arith.constant 0 : index
    %49 = vector.load %arg1[%c0_54, %c2_55, %c9_56, %c0_57] : memref<1x18x32x4xbf16, #tpu.memory_space<vmem>>, vector<1x16x16x4xbf16>
    %50 = vector.shape_cast %49 : vector<1x16x16x4xbf16> to vector<256x4xbf16>
    %c8_58 = arith.constant 8 : index
    %c0_59 = arith.constant 0 : index
    %c0_60 = arith.constant 0 : index
    %51 = vector.load %arg2[%c8_58, %c0_59, %c0_60] : memref<9x4x128xbf16, #tpu.memory_space<vmem>>, vector<1x4x128xbf16>
    %52 = vector.shape_cast %51 : vector<1x4x128xbf16> to vector<4x128xbf16>
    %cst_61 = arith.constant dense<0.000000e+00> : vector<256x128xf32>
    %53 = tpu.matmul %50, %52, %cst_61 {dimension_numbers = #tpu.dot_dimension_numbers<[1], [0], [0], [1], [0, 0, 1, 1], [], []>} : vector<256x4xbf16>, vector<4x128xbf16>, vector<256x128xf32> -> vector<256x128xf32>
    %54 = arith.addf %48, %53 : vector<256x128xf32>
    %c0_62 = arith.constant 0 : index
    %c0_63 = arith.constant 0 : index
    %55 = vector.load %arg3[%c0_62, %c0_63] : memref<1x128xf32, #tpu.memory_space<vmem>>, vector<1x128xf32>
    %56 = vector.broadcast %55 : vector<1x128xf32> to vector<256x128xf32>
    %57 = arith.addf %54, %56 : vector<256x128xf32>
    %58 = vector.shape_cast %57 : vector<256x128xf32> to vector<1x256x128xf32>
    %c0_64 = arith.constant 0 : index
    %c0_65 = arith.constant 0 : index
    %c0_66 = arith.constant 0 : index
    %59 = vector.load %arg4[%c0_64, %c0_65, %c0_66] : memref<1x256x128xf32, #tpu.memory_space<vmem>>, vector<1x256x128xf32>
    tpu.vector_store %arg4[%c0_64, %c0_65, %c0_66], %58 {strides = array<i32>} : memref<1x256x128xf32, #tpu.memory_space<vmem>>, vector<1x256x128xf32>,
    %cst_67 = arith.constant dense<0.000000e+00> : vector<128xf32>
    %60 = vector.multi_reduction <add>, %57, %cst_67 [0] : vector<256x128xf32> to vector<128xf32>
    %61 = vector.shape_cast %60 : vector<128xf32> to vector<1x128xf32>
    %62 = vector.shape_cast %61 : vector<1x128xf32> to vector<1x1x128xf32>
    %c0_68 = arith.constant 0 : index
    %c0_69 = arith.constant 0 : index
    %c0_70 = arith.constant 0 : index
    %63 = vector.load %arg5[%c0_68, %c0_69, %c0_70] : memref<1x1x128xf32, #tpu.memory_space<vmem>>, vector<1x1x128xf32>
    tpu.vector_store %arg5[%c0_68, %c0_69, %c0_70], %62 {strides = array<i32>} : memref<1x1x128xf32, #tpu.memory_space<vmem>>, vector<1x1x128xf32>,
    %64 = arith.mulf %57, %57 : vector<256x128xf32>
    %cst_71 = arith.constant dense<0.000000e+00> : vector<128xf32>
    %65 = vector.multi_reduction <add>, %64, %cst_71 [0] : vector<256x128xf32> to vector<128xf32>
    %66 = vector.shape_cast %65 : vector<128xf32> to vector<1x128xf32>
    %67 = vector.shape_cast %66 : vector<1x128xf32> to vector<1x1x128xf32>
    %c0_72 = arith.constant 0 : index
    %c0_73 = arith.constant 0 : index
    %c0_74 = arith.constant 0 : index
    %68 = vector.load %arg6[%c0_72, %c0_73, %c0_74] : memref<1x1x128xf32, #tpu.memory_space<vmem>>, vector<1x1x128xf32>
    tpu.vector_store %arg6[%c0_72, %c0_73, %c0_74], %67 {strides = array<i32>} : memref<1x1x128xf32, #tpu.memory_space<vmem>>, vector<1x1x128xf32>,
    return
  }
  func.func @transform_0(%arg0: i32) -> (i32, i32, i32, i32) {
    %c0_i32 = arith.constant 0 : i32
    %c0_i32_0 = arith.constant 0 : i32
    %c0_i32_1 = arith.constant 0 : i32
    %c0_i32_2 = arith.constant 0 : i32
    return %arg0, %c0_i32, %c0_i32_0, %c0_i32_1 : i32, i32, i32, i32
  }
  func.func @transform_1(%arg0: i32) -> (i32, i32, i32) {
    %c0_i32 = arith.constant 0 : i32
    %c0_i32_0 = arith.constant 0 : i32
    %c0_i32_1 = arith.constant 0 : i32
    %c0_i32_2 = arith.constant 0 : i32
    return %c0_i32, %c0_i32_0, %c0_i32_1 : i32, i32, i32
  }
  func.func @transform_2(%arg0: i32) -> (i32, i32) {
    %c0_i32 = arith.constant 0 : i32
    %c0_i32_0 = arith.constant 0 : i32
    %c0_i32_1 = arith.constant 0 : i32
    return %c0_i32, %c0_i32_0 : i32, i32
  }
  func.func @transform_3(%arg0: i32) -> (i32, i32, i32) {
    %c0_i32 = arith.constant 0 : i32
    %c0_i32_0 = arith.constant 0 : i32
    %c0_i32_1 = arith.constant 0 : i32
    return %arg0, %c0_i32, %c0_i32_0 : i32, i32, i32
  }
  func.func @transform_4(%arg0: i32) -> (i32, i32, i32) {
    %c0_i32 = arith.constant 0 : i32
    %c0_i32_0 = arith.constant 0 : i32
    %c0_i32_1 = arith.constant 0 : i32
    return %arg0, %c0_i32, %c0_i32_0 : i32, i32, i32
  }
  func.func @transform_5(%arg0: i32) -> (i32, i32, i32) {
    %c0_i32 = arith.constant 0 : i32
    %c0_i32_0 = arith.constant 0 : i32
    %c0_i32_1 = arith.constant 0 : i32
    return %arg0, %c0_i32, %c0_i32_0 : i32, i32, i32
  }
}

module attributes {stable_mosaic.version = 11 : i64} {
  func.func @_bn1_time_conv2_kernel(%arg0: i32, %arg1: memref<1x256x128xf32, #tpu.memory_space<vmem>>, %arg2: memref<1x128xf32, #tpu.memory_space<vmem>>, %arg3: memref<1x128xf32, #tpu.memory_space<vmem>>, %arg4: memref<1x1x128xf32, #tpu.memory_space<vmem>>, %arg5: memref<1152x128xbf16, #tpu.memory_space<vmem>>, %arg6: memref<1x128xf32, #tpu.memory_space<vmem>>, %arg7: memref<1x256x128xf32, #tpu.memory_space<vmem>>, %arg8: memref<1x1x128xf32, #tpu.memory_space<vmem>>, %arg9: memref<1x1x128xf32, #tpu.memory_space<vmem>>, %arg10: memref<18x32x128xbf16, #tpu.memory_space<vmem>>, %arg11: memref<256x1152xbf16, #tpu.memory_space<vmem>>) attributes {dimension_semantics = [#tpu.dimension_semantics<parallel>], iteration_bounds = array<i64: 2>, scalar_prefetch = 0 : i64, scratch_operands = 2 : i64, tpu.core_type = #tpu.core_type<tc>, window_params = [{transform_indices = @transform_0, window_bounds = array<i64: 1, 256, 128>}, {pipeline_mode = #tpu.pipeline_mode<synchronous>, transform_indices = @transform_1, window_bounds = array<i64: 1, 128>}, {pipeline_mode = #tpu.pipeline_mode<synchronous>, transform_indices = @transform_2, window_bounds = array<i64: 1, 128>}, {transform_indices = @transform_3, window_bounds = array<i64: 1, 1, 128>}, {pipeline_mode = #tpu.pipeline_mode<synchronous>, transform_indices = @transform_4, window_bounds = array<i64: 1152, 128>}, {pipeline_mode = #tpu.pipeline_mode<synchronous>, transform_indices = @transform_5, window_bounds = array<i64: 1, 128>}, {transform_indices = @transform_6, window_bounds = array<i64: 1, 256, 128>}, {transform_indices = @transform_7, window_bounds = array<i64: 1, 1, 128>}, {transform_indices = @transform_8, window_bounds = array<i64: 1, 1, 128>}]} {
    %c0 = arith.constant 0 : index
    %c0_0 = arith.constant 0 : index
    %c0_1 = arith.constant 0 : index
    %0 = vector.load %arg1[%c0, %c0_0, %c0_1] : memref<1x256x128xf32, #tpu.memory_space<vmem>>, vector<1x256x128xf32>
    %c0_2 = arith.constant 0 : index
    %c0_3 = arith.constant 0 : index
    %1 = vector.load %arg2[%c0_2, %c0_3] : memref<1x128xf32, #tpu.memory_space<vmem>>, vector<1x128xf32>
    %2 = vector.shape_cast %1 : vector<1x128xf32> to vector<1x1x128xf32>
    %3 = vector.broadcast %2 : vector<1x1x128xf32> to vector<1x256x128xf32>
    %4 = arith.mulf %0, %3 : vector<1x256x128xf32>
    %c0_4 = arith.constant 0 : index
    %c0_5 = arith.constant 0 : index
    %5 = vector.load %arg3[%c0_4, %c0_5] : memref<1x128xf32, #tpu.memory_space<vmem>>, vector<1x128xf32>
    %6 = vector.shape_cast %5 : vector<1x128xf32> to vector<1x1x128xf32>
    %7 = vector.broadcast %6 : vector<1x1x128xf32> to vector<1x256x128xf32>
    %8 = arith.addf %4, %7 : vector<1x256x128xf32>
    %9 = arith.negf %8 : vector<1x256x128xf32>
    %10 = math.exp %9 : vector<1x256x128xf32>
    %cst = arith.constant 1.000000e+00 : f32
    %11 = vector.broadcast %cst : f32 to vector<1x256x128xf32>
    %12 = arith.addf %11, %10 : vector<1x256x128xf32>
    %13 = arith.divf %11, %12 : vector<1x256x128xf32>
    %14 = arith.mulf %8, %13 : vector<1x256x128xf32>
    %c0_6 = arith.constant 0 : index
    %c0_7 = arith.constant 0 : index
    %c0_8 = arith.constant 0 : index
    %15 = vector.load %arg4[%c0_6, %c0_7, %c0_8] : memref<1x1x128xf32, #tpu.memory_space<vmem>>, vector<1x1x128xf32>
    %16 = vector.broadcast %15 : vector<1x1x128xf32> to vector<1x256x128xf32>
    %17 = arith.addf %14, %16 : vector<1x256x128xf32>
    %cst_9 = arith.constant 0.000000e+00 : bf16
    %18 = vector.broadcast %cst_9 : bf16 to vector<1x32x128xbf16>
    %c0_10 = arith.constant 0 : index
    %c0_11 = arith.constant 0 : index
    %c0_12 = arith.constant 0 : index
    %19 = vector.load %arg10[%c0_10, %c0_11, %c0_12] : memref<18x32x128xbf16, #tpu.memory_space<vmem>>, vector<1x32x128xbf16>
    tpu.vector_store %arg10[%c0_10, %c0_11, %c0_12], %18 {strides = array<i32>} : memref<18x32x128xbf16, #tpu.memory_space<vmem>>, vector<1x32x128xbf16>,
    %cst_13 = arith.constant 0.000000e+00 : bf16
    %20 = vector.broadcast %cst_13 : bf16 to vector<1x32x128xbf16>
    %c17 = arith.constant 17 : index
    %c0_14 = arith.constant 0 : index
    %c0_15 = arith.constant 0 : index
    %21 = vector.load %arg10[%c17, %c0_14, %c0_15] : memref<18x32x128xbf16, #tpu.memory_space<vmem>>, vector<1x32x128xbf16>
    tpu.vector_store %arg10[%c17, %c0_14, %c0_15], %20 {strides = array<i32>} : memref<18x32x128xbf16, #tpu.memory_space<vmem>>, vector<1x32x128xbf16>,
    %cst_16 = arith.constant 0.000000e+00 : bf16
    %22 = vector.broadcast %cst_16 : bf16 to vector<16x1x128xbf16>
    %c1 = arith.constant 1 : index
    %c7 = arith.constant 7 : index
    %c0_17 = arith.constant 0 : index
    %23 = vector.load %arg10[%c1, %c7, %c0_17] : memref<18x32x128xbf16, #tpu.memory_space<vmem>>, vector<16x1x128xbf16>
    tpu.vector_store %arg10[%c1, %c7, %c0_17], %22 {strides = array<i32>} : memref<18x32x128xbf16, #tpu.memory_space<vmem>>, vector<16x1x128xbf16>,
    %cst_18 = arith.constant 0.000000e+00 : bf16
    %24 = vector.broadcast %cst_18 : bf16 to vector<16x1x128xbf16>
    %c1_19 = arith.constant 1 : index
    %c24 = arith.constant 24 : index
    %c0_20 = arith.constant 0 : index
    %25 = vector.load %arg10[%c1_19, %c24, %c0_20] : memref<18x32x128xbf16, #tpu.memory_space<vmem>>, vector<16x1x128xbf16>
    tpu.vector_store %arg10[%c1_19, %c24, %c0_20], %24 {strides = array<i32>} : memref<18x32x128xbf16, #tpu.memory_space<vmem>>, vector<16x1x128xbf16>,
    %26 = vector.shape_cast %17 : vector<1x256x128xf32> to vector<16x16x128xf32>
    %27 = arith.truncf %26 : vector<16x16x128xf32> to vector<16x16x128xbf16>
    %c1_21 = arith.constant 1 : index
    %c8 = arith.constant 8 : index
    %c0_22 = arith.constant 0 : index
    %28 = vector.load %arg10[%c1_21, %c8, %c0_22] : memref<18x32x128xbf16, #tpu.memory_space<vmem>>, vector<16x16x128xbf16>
    tpu.vector_store %arg10[%c1_21, %c8, %c0_22], %27 {strides = array<i32>} : memref<18x32x128xbf16, #tpu.memory_space<vmem>>, vector<16x16x128xbf16>,
    %c0_23 = arith.constant 0 : index
    %c7_24 = arith.constant 7 : index
    %c0_25 = arith.constant 0 : index
    %29 = vector.load %arg10[%c0_23, %c7_24, %c0_25] : memref<18x32x128xbf16, #tpu.memory_space<vmem>>, vector<16x16x128xbf16>
    %30 = vector.shape_cast %29 : vector<16x16x128xbf16> to vector<256x128xbf16>
    %c0_26 = arith.constant 0 : index
    %c0_27 = arith.constant 0 : index
    %31 = vector.load %arg11[%c0_26, %c0_27] : memref<256x1152xbf16, #tpu.memory_space<vmem>>, vector<256x128xbf16>
    tpu.vector_store %arg11[%c0_26, %c0_27], %30 {strides = array<i32>} : memref<256x1152xbf16, #tpu.memory_space<vmem>>, vector<256x128xbf16>,
    %c0_28 = arith.constant 0 : index
    %c8_29 = arith.constant 8 : index
    %c0_30 = arith.constant 0 : index
    %32 = vector.load %arg10[%c0_28, %c8_29, %c0_30] : memref<18x32x128xbf16, #tpu.memory_space<vmem>>, vector<16x16x128xbf16>
    %33 = vector.shape_cast %32 : vector<16x16x128xbf16> to vector<256x128xbf16>
    %c0_31 = arith.constant 0 : index
    %c128 = arith.constant 128 : index
    %34 = vector.load %arg11[%c0_31, %c128] : memref<256x1152xbf16, #tpu.memory_space<vmem>>, vector<256x128xbf16>
    tpu.vector_store %arg11[%c0_31, %c128], %33 {strides = array<i32>} : memref<256x1152xbf16, #tpu.memory_space<vmem>>, vector<256x128xbf16>,
    %c0_32 = arith.constant 0 : index
    %c9 = arith.constant 9 : index
    %c0_33 = arith.constant 0 : index
    %35 = vector.load %arg10[%c0_32, %c9, %c0_33] : memref<18x32x128xbf16, #tpu.memory_space<vmem>>, vector<16x16x128xbf16>
    %36 = vector.shape_cast %35 : vector<16x16x128xbf16> to vector<256x128xbf16>
    %c0_34 = arith.constant 0 : index
    %c256 = arith.constant 256 : index
    %37 = vector.load %arg11[%c0_34, %c256] : memref<256x1152xbf16, #tpu.memory_space<vmem>>, vector<256x128xbf16>
    tpu.vector_store %arg11[%c0_34, %c256], %36 {strides = array<i32>} : memref<256x1152xbf16, #tpu.memory_space<vmem>>, vector<256x128xbf16>,
    %c1_35 = arith.constant 1 : index
    %c7_36 = arith.constant 7 : index
    %c0_37 = arith.constant 0 : index
    %38 = vector.load %arg10[%c1_35, %c7_36, %c0_37] : memref<18x32x128xbf16, #tpu.memory_space<vmem>>, vector<16x16x128xbf16>
    %39 = vector.shape_cast %38 : vector<16x16x128xbf16> to vector<256x128xbf16>
    %c0_38 = arith.constant 0 : index
    %c384 = arith.constant 384 : index
    %40 = vector.load %arg11[%c0_38, %c384] : memref<256x1152xbf16, #tpu.memory_space<vmem>>, vector<256x128xbf16>
    tpu.vector_store %arg11[%c0_38, %c384], %39 {strides = array<i32>} : memref<256x1152xbf16, #tpu.memory_space<vmem>>, vector<256x128xbf16>,
    %c1_39 = arith.constant 1 : index
    %c8_40 = arith.constant 8 : index
    %c0_41 = arith.constant 0 : index
    %41 = vector.load %arg10[%c1_39, %c8_40, %c0_41] : memref<18x32x128xbf16, #tpu.memory_space<vmem>>, vector<16x16x128xbf16>
    %42 = vector.shape_cast %41 : vector<16x16x128xbf16> to vector<256x128xbf16>
    %c0_42 = arith.constant 0 : index
    %c512 = arith.constant 512 : index
    %43 = vector.load %arg11[%c0_42, %c512] : memref<256x1152xbf16, #tpu.memory_space<vmem>>, vector<256x128xbf16>
    tpu.vector_store %arg11[%c0_42, %c512], %42 {strides = array<i32>} : memref<256x1152xbf16, #tpu.memory_space<vmem>>, vector<256x128xbf16>,
    %c1_43 = arith.constant 1 : index
    %c9_44 = arith.constant 9 : index
    %c0_45 = arith.constant 0 : index
    %44 = vector.load %arg10[%c1_43, %c9_44, %c0_45] : memref<18x32x128xbf16, #tpu.memory_space<vmem>>, vector<16x16x128xbf16>
    %45 = vector.shape_cast %44 : vector<16x16x128xbf16> to vector<256x128xbf16>
    %c0_46 = arith.constant 0 : index
    %c640 = arith.constant 640 : index
    %46 = vector.load %arg11[%c0_46, %c640] : memref<256x1152xbf16, #tpu.memory_space<vmem>>, vector<256x128xbf16>
    tpu.vector_store %arg11[%c0_46, %c640], %45 {strides = array<i32>} : memref<256x1152xbf16, #tpu.memory_space<vmem>>, vector<256x128xbf16>,
    %c2 = arith.constant 2 : index
    %c7_47 = arith.constant 7 : index
    %c0_48 = arith.constant 0 : index
    %47 = vector.load %arg10[%c2, %c7_47, %c0_48] : memref<18x32x128xbf16, #tpu.memory_space<vmem>>, vector<16x16x128xbf16>
    %48 = vector.shape_cast %47 : vector<16x16x128xbf16> to vector<256x128xbf16>
    %c0_49 = arith.constant 0 : index
    %c768 = arith.constant 768 : index
    %49 = vector.load %arg11[%c0_49, %c768] : memref<256x1152xbf16, #tpu.memory_space<vmem>>, vector<256x128xbf16>
    tpu.vector_store %arg11[%c0_49, %c768], %48 {strides = array<i32>} : memref<256x1152xbf16, #tpu.memory_space<vmem>>, vector<256x128xbf16>,
    %c2_50 = arith.constant 2 : index
    %c8_51 = arith.constant 8 : index
    %c0_52 = arith.constant 0 : index
    %50 = vector.load %arg10[%c2_50, %c8_51, %c0_52] : memref<18x32x128xbf16, #tpu.memory_space<vmem>>, vector<16x16x128xbf16>
    %51 = vector.shape_cast %50 : vector<16x16x128xbf16> to vector<256x128xbf16>
    %c0_53 = arith.constant 0 : index
    %c896 = arith.constant 896 : index
    %52 = vector.load %arg11[%c0_53, %c896] : memref<256x1152xbf16, #tpu.memory_space<vmem>>, vector<256x128xbf16>
    tpu.vector_store %arg11[%c0_53, %c896], %51 {strides = array<i32>} : memref<256x1152xbf16, #tpu.memory_space<vmem>>, vector<256x128xbf16>,
    %c2_54 = arith.constant 2 : index
    %c9_55 = arith.constant 9 : index
    %c0_56 = arith.constant 0 : index
    %53 = vector.load %arg10[%c2_54, %c9_55, %c0_56] : memref<18x32x128xbf16, #tpu.memory_space<vmem>>, vector<16x16x128xbf16>
    %54 = vector.shape_cast %53 : vector<16x16x128xbf16> to vector<256x128xbf16>
    %c0_57 = arith.constant 0 : index
    %c1024 = arith.constant 1024 : index
    %55 = vector.load %arg11[%c0_57, %c1024] : memref<256x1152xbf16, #tpu.memory_space<vmem>>, vector<256x128xbf16>
    tpu.vector_store %arg11[%c0_57, %c1024], %54 {strides = array<i32>} : memref<256x1152xbf16, #tpu.memory_space<vmem>>, vector<256x128xbf16>,
    %c0_58 = arith.constant 0 : index
    %c0_59 = arith.constant 0 : index
    %56 = vector.load %arg11[%c0_58, %c0_59] : memref<256x1152xbf16, #tpu.memory_space<vmem>>, vector<256x1152xbf16>
    %c0_60 = arith.constant 0 : index
    %c0_61 = arith.constant 0 : index
    %57 = vector.load %arg5[%c0_60, %c0_61] : memref<1152x128xbf16, #tpu.memory_space<vmem>>, vector<1152x128xbf16>
    %cst_62 = arith.constant dense<0.000000e+00> : vector<256x128xf32>
    %58 = tpu.matmul %56, %57, %cst_62 {dimension_numbers = #tpu.dot_dimension_numbers<[1], [0], [0], [1], [0, 0, 1, 1], [], []>} : vector<256x1152xbf16>, vector<1152x128xbf16>, vector<256x128xf32> -> vector<256x128xf32>
    %c0_63 = arith.constant 0 : index
    %c0_64 = arith.constant 0 : index
    %59 = vector.load %arg6[%c0_63, %c0_64] : memref<1x128xf32, #tpu.memory_space<vmem>>, vector<1x128xf32>
    %60 = vector.broadcast %59 : vector<1x128xf32> to vector<256x128xf32>
    %61 = arith.addf %58, %60 : vector<256x128xf32>
    %62 = vector.shape_cast %61 : vector<256x128xf32> to vector<1x256x128xf32>
    %c0_65 = arith.constant 0 : index
    %c0_66 = arith.constant 0 : index
    %c0_67 = arith.constant 0 : index
    %63 = vector.load %arg7[%c0_65, %c0_66, %c0_67] : memref<1x256x128xf32, #tpu.memory_space<vmem>>, vector<1x256x128xf32>
    tpu.vector_store %arg7[%c0_65, %c0_66, %c0_67], %62 {strides = array<i32>} : memref<1x256x128xf32, #tpu.memory_space<vmem>>, vector<1x256x128xf32>,
    %cst_68 = arith.constant dense<0.000000e+00> : vector<128xf32>
    %64 = vector.multi_reduction <add>, %61, %cst_68 [0] : vector<256x128xf32> to vector<128xf32>
    %65 = vector.shape_cast %64 : vector<128xf32> to vector<1x128xf32>
    %66 = vector.shape_cast %65 : vector<1x128xf32> to vector<1x1x128xf32>
    %c0_69 = arith.constant 0 : index
    %c0_70 = arith.constant 0 : index
    %c0_71 = arith.constant 0 : index
    %67 = vector.load %arg8[%c0_69, %c0_70, %c0_71] : memref<1x1x128xf32, #tpu.memory_space<vmem>>, vector<1x1x128xf32>
    tpu.vector_store %arg8[%c0_69, %c0_70, %c0_71], %66 {strides = array<i32>} : memref<1x1x128xf32, #tpu.memory_space<vmem>>, vector<1x1x128xf32>,
    %68 = arith.mulf %61, %61 : vector<256x128xf32>
    %cst_72 = arith.constant dense<0.000000e+00> : vector<128xf32>
    %69 = vector.multi_reduction <add>, %68, %cst_72 [0] : vector<256x128xf32> to vector<128xf32>
    %70 = vector.shape_cast %69 : vector<128xf32> to vector<1x128xf32>
    %71 = vector.shape_cast %70 : vector<1x128xf32> to vector<1x1x128xf32>
    %c0_73 = arith.constant 0 : index
    %c0_74 = arith.constant 0 : index
    %c0_75 = arith.constant 0 : index
    %72 = vector.load %arg9[%c0_73, %c0_74, %c0_75] : memref<1x1x128xf32, #tpu.memory_space<vmem>>, vector<1x1x128xf32>
    tpu.vector_store %arg9[%c0_73, %c0_74, %c0_75], %71 {strides = array<i32>} : memref<1x1x128xf32, #tpu.memory_space<vmem>>, vector<1x1x128xf32>,
    return
  }
  func.func @transform_0(%arg0: i32) -> (i32, i32, i32) {
    %c0_i32 = arith.constant 0 : i32
    %c0_i32_0 = arith.constant 0 : i32
    %c0_i32_1 = arith.constant 0 : i32
    return %arg0, %c0_i32, %c0_i32_0 : i32, i32, i32
  }
  func.func @transform_1(%arg0: i32) -> (i32, i32) {
    %c0_i32 = arith.constant 0 : i32
    %c0_i32_0 = arith.constant 0 : i32
    %c0_i32_1 = arith.constant 0 : i32
    return %c0_i32, %c0_i32_0 : i32, i32
  }
  func.func @transform_2(%arg0: i32) -> (i32, i32) {
    %c0_i32 = arith.constant 0 : i32
    %c0_i32_0 = arith.constant 0 : i32
    %c0_i32_1 = arith.constant 0 : i32
    return %c0_i32, %c0_i32_0 : i32, i32
  }
  func.func @transform_3(%arg0: i32) -> (i32, i32, i32) {
    %c0_i32 = arith.constant 0 : i32
    %c0_i32_0 = arith.constant 0 : i32
    %c0_i32_1 = arith.constant 0 : i32
    return %arg0, %c0_i32, %c0_i32_0 : i32, i32, i32
  }
  func.func @transform_4(%arg0: i32) -> (i32, i32) {
    %c0_i32 = arith.constant 0 : i32
    %c0_i32_0 = arith.constant 0 : i32
    %c0_i32_1 = arith.constant 0 : i32
    return %c0_i32, %c0_i32_0 : i32, i32
  }
  func.func @transform_5(%arg0: i32) -> (i32, i32) {
    %c0_i32 = arith.constant 0 : i32
    %c0_i32_0 = arith.constant 0 : i32
    %c0_i32_1 = arith.constant 0 : i32
    return %c0_i32, %c0_i32_0 : i32, i32
  }
  func.func @transform_6(%arg0: i32) -> (i32, i32, i32) {
    %c0_i32 = arith.constant 0 : i32
    %c0_i32_0 = arith.constant 0 : i32
    %c0_i32_1 = arith.constant 0 : i32
    return %arg0, %c0_i32, %c0_i32_0 : i32, i32, i32
  }
  func.func @transform_7(%arg0: i32) -> (i32, i32, i32) {
    %c0_i32 = arith.constant 0 : i32
    %c0_i32_0 = arith.constant 0 : i32
    %c0_i32_1 = arith.constant 0 : i32
    return %arg0, %c0_i32, %c0_i32_0 : i32, i32, i32
  }
  func.func @transform_8(%arg0: i32) -> (i32, i32, i32) {
    %c0_i32 = arith.constant 0 : i32
    %c0_i32_0 = arith.constant 0 : i32
    %c0_i32_1 = arith.constant 0 : i32
    return %arg0, %c0_i32, %c0_i32_0 : i32, i32, i32
  }
}

module attributes {stable_mosaic.version = 11 : i64} {
  func.func @_bn2_silu_kernel(%arg0: i32, %arg1: memref<1x256x128xf32, #tpu.memory_space<vmem>>, %arg2: memref<1x128xf32, #tpu.memory_space<vmem>>, %arg3: memref<1x128xf32, #tpu.memory_space<vmem>>, %arg4: memref<1x256x128xf32, #tpu.memory_space<vmem>>) attributes {dimension_semantics = [#tpu.dimension_semantics<parallel>], iteration_bounds = array<i64: 2>, scalar_prefetch = 0 : i64, scratch_operands = 0 : i64, tpu.core_type = #tpu.core_type<tc>, window_params = [{transform_indices = @transform_0, window_bounds = array<i64: 1, 256, 128>}, {pipeline_mode = #tpu.pipeline_mode<synchronous>, transform_indices = @transform_1, window_bounds = array<i64: 1, 128>}, {pipeline_mode = #tpu.pipeline_mode<synchronous>, transform_indices = @transform_2, window_bounds = array<i64: 1, 128>}, {transform_indices = @transform_3, window_bounds = array<i64: 1, 256, 128>}]} {
    %c0 = arith.constant 0 : index
    %c0_0 = arith.constant 0 : index
    %c0_1 = arith.constant 0 : index
    %0 = vector.load %arg1[%c0, %c0_0, %c0_1] : memref<1x256x128xf32, #tpu.memory_space<vmem>>, vector<1x256x128xf32>
    %c0_2 = arith.constant 0 : index
    %c0_3 = arith.constant 0 : index
    %1 = vector.load %arg2[%c0_2, %c0_3] : memref<1x128xf32, #tpu.memory_space<vmem>>, vector<1x128xf32>
    %2 = vector.shape_cast %1 : vector<1x128xf32> to vector<1x1x128xf32>
    %3 = vector.broadcast %2 : vector<1x1x128xf32> to vector<1x256x128xf32>
    %4 = arith.mulf %0, %3 : vector<1x256x128xf32>
    %c0_4 = arith.constant 0 : index
    %c0_5 = arith.constant 0 : index
    %5 = vector.load %arg3[%c0_4, %c0_5] : memref<1x128xf32, #tpu.memory_space<vmem>>, vector<1x128xf32>
    %6 = vector.shape_cast %5 : vector<1x128xf32> to vector<1x1x128xf32>
    %7 = vector.broadcast %6 : vector<1x1x128xf32> to vector<1x256x128xf32>
    %8 = arith.addf %4, %7 : vector<1x256x128xf32>
    %9 = arith.negf %8 : vector<1x256x128xf32>
    %10 = math.exp %9 : vector<1x256x128xf32>
    %cst = arith.constant 1.000000e+00 : f32
    %11 = vector.broadcast %cst : f32 to vector<1x256x128xf32>
    %12 = arith.addf %11, %10 : vector<1x256x128xf32>
    %13 = arith.divf %11, %12 : vector<1x256x128xf32>
    %14 = arith.mulf %8, %13 : vector<1x256x128xf32>
    %c0_6 = arith.constant 0 : index
    %c0_7 = arith.constant 0 : index
    %c0_8 = arith.constant 0 : index
    %15 = vector.load %arg4[%c0_6, %c0_7, %c0_8] : memref<1x256x128xf32, #tpu.memory_space<vmem>>, vector<1x256x128xf32>
    tpu.vector_store %arg4[%c0_6, %c0_7, %c0_8], %14 {strides = array<i32>} : memref<1x256x128xf32, #tpu.memory_space<vmem>>, vector<1x256x128xf32>,
    return
  }
  func.func @transform_0(%arg0: i32) -> (i32, i32, i32) {
    %c0_i32 = arith.constant 0 : i32
    %c0_i32_0 = arith.constant 0 : i32
    %c0_i32_1 = arith.constant 0 : i32
    return %arg0, %c0_i32, %c0_i32_0 : i32, i32, i32
  }
  func.func @transform_1(%arg0: i32) -> (i32, i32) {
    %c0_i32 = arith.constant 0 : i32
    %c0_i32_0 = arith.constant 0 : i32
    %c0_i32_1 = arith.constant 0 : i32
    return %c0_i32, %c0_i32_0 : i32, i32
  }
  func.func @transform_2(%arg0: i32) -> (i32, i32) {
    %c0_i32 = arith.constant 0 : i32
    %c0_i32_0 = arith.constant 0 : i32
    %c0_i32_1 = arith.constant 0 : i32
    return %c0_i32, %c0_i32_0 : i32, i32
  }
  func.func @transform_3(%arg0: i32) -> (i32, i32, i32) {
    %c0_i32 = arith.constant 0 : i32
    %c0_i32_0 = arith.constant 0 : i32
    %c0_i32_1 = arith.constant 0 : i32
    return %arg0, %c0_i32, %c0_i32_0 : i32, i32, i32
  }
}

</mosaic_0001>

<bundles_post_ra>
// kernel: block_forward.5
= control target key start
LH: loop header
LB: loop body
LE: loop exit
PB: predicated region body
PF: predicated region fallthrough
CT: control target
= control target key end

     0   :  { %s803_s12 = smov 0   ;;  %s1097_s0 = inlined_call_operand.vmem [shape: f32[2,256,128], index: 0, kind: input, shape index: {}]   ;;  %s1098_s1 = inlined_call_operand.vmem [shape: f32[1,128], index: 1, kind: input, shape index: {}]   ;;  %s1099_s2 = inlined_call_operand.vmem [shape: f32[1,128], index: 2, kind: input, shape index: {}]   ;;  %s1100_s3 = inlined_call_operand.vmem [shape: f32[2,256,128], index: 3, kind: output, shape index: {}]  }
   0x1 LB: > { %s592_s13 = sadd.s32 4294967295, %s781_s12   ;;  %p596_p0 = scmp.ge.s32.totalorder %s781_s12, 1  ;;  %s781_s12 = sphi %s803_s12, %s13_s12  }
   0x2   : > { %p137_p1 = scmp.lt.s32.totalorder %s781_s12, 3 }
   0x4   : > { %p138_p2 = pnand %p596_p0, %p137_p1 }
   0x5   : > { %p161_p3 = scmp.lt.s32.totalorder (!%p138_p2), %s592_s13, 1  ;;  %v817_v0 = vld [vmem:[%s1098_s1] ss:$0 sm:$0xff] (!%p138_p2) }
   0x6   : > { %141 = sbr.rel (%p138_p2) target bundleno = 107 (0x6b), region = 32  ;;  %v829_v1 = vld [vmem:[%s1099_s2] ss:$0 sm:$0xff] (!%p138_p2) }
   0xd   : > { %s1102_s13 = smov (!%p161_p3, %s592_s13), 1 }
   0xe   : > { %s637_s14 = sshll.u32 %s1102_s13, 8 }
   0xf   : > { %s824_s19 = scalar_lea.vmem %s1097_s0, %s637_s14  ;;  %s957_s24 = scalar_lea.vmem %s1100_s3, %s637_s14 }
  0x10   : > { %v171_v2 = vld [vmem:[%s824_s19] sm:$0xff]  ;;  %v172_v3 = vld [vmem:[%s824_s19 + $0x8] sm:$0xff]  ;;  %v173_v4 = vld [vmem:[%s824_s19 + $0x10] sm:$0xff] }
  0x11   : > { %v210_v5 = vmul.f32 %v817_v0, %v171_v2  ;;  %v211_v6 = vmul.f32 %v817_v0, %v172_v3  ;;  %v212_v7 = vmul.f32 %v817_v0, %v173_v4  ;;  %v174_v8 = vld [vmem:[%s824_s19 + $0x18] sm:$0xff]  ;;  %v175_v9 = vld [vmem:[%s824_s19 + $0x20] sm:$0xff]  ;;  %v176_v10 = vld [vmem:[%s824_s19 + $0x28] sm:$0xff] }
  0x12   : > { %v213_v11 = vmul.f32 %v817_v0, %v174_v8  ;;  %v214_v12 = vmul.f32 %v817_v0, %v175_v9  ;;  %v215_v13 = vmul.f32 %v817_v0, %v176_v10  ;;  %v177_v14 = vld [vmem:[%s824_s19 + $0x30] sm:$0xff]  ;;  %v178_v15 = vld [vmem:[%s824_s19 + $0x38] sm:$0xff]  ;;  %v179_v20 = vld [vmem:[%s824_s19 + $0x40] sm:$0xff] }
  0x13   : > { %v846_v16 = vadd.f32 %v829_v1, %v210_v5  ;;  %v849_v17 = vadd.f32 %v829_v1, %v211_v6  ;;  %v852_v18 = vadd.f32 %v829_v1, %v212_v7  ;;  %v216_v19 = vmul.f32 %v817_v0, %v177_v14  ;;  %v180_v25 = vld [vmem:[%s824_s19 + $0x48] sm:$0xff]  ;;  %v181_v26 = vld [vmem:[%s824_s19 + $0x50] sm:$0xff]  ;;  %v182_v27 = vld [vmem:[%s824_s19 + $0x58] sm:$0xff] }
  0x14   : > { %v857_v21 = vadd.f32 %v829_v1, %v213_v11  ;;  %v860_v22 = vadd.f32 %v829_v1, %v214_v12  ;;  %v863_v23 = vadd.f32 %v829_v1, %v215_v13  ;;  %v217_v24 = vmul.f32 %v817_v0, %v178_v15  ;;  %v183_v35 = vld [vmem:[%s824_s19 + $0x60] sm:$0xff]  ;;  %v184_v53 = vld [vmem:[%s824_s19 + $0x68] sm:$0xff]  ;;  %v185_v55 = vld [vmem:[%s824_s19 + $0x70] sm:$0xff] }
  0x15   : > { %v603_v28 = vmul.f32 -1.442695, %v846_v16  ;;  %v604_v29 = vmul.f32 -1.442695, %v849_v17  ;;  %v605_v30 = vmul.f32 -1.442695, %v852_v18  ;;  %v873_v31 = vadd.f32 %v829_v1, %v216_v19 }
  0x16   : > { %v606_v32 = vmul.f32 -1.442695, %v857_v21  ;;  %v607_v33 = vmul.f32 -1.442695, %v860_v22  ;;  %v878_v34 = vadd.f32 %v829_v1, %v217_v24  ;;  %v608_v36 = vmul.f32 -1.442695, %v863_v23 }
  0x17   : > { %647 = vpow2.f32 %v603_v28  ;;  %v218_v37 = vmul.f32 %v817_v0, %v179_v20  ;;  %v219_v38 = vmul.f32 %v817_v0, %v180_v25  ;;  %v609_v39 = vmul.f32 -1.442695, %v873_v31  ;;  %v186_v56 = vld [vmem:[%s824_s19 + $0x78] sm:$0xff]  ;;  %v187_v61 = vld [vmem:[%s824_s19 + $0x80] sm:$0xff]  ;;  %v188_v4 = vld [vmem:[%s824_s19 + $0x88] sm:$0xff] }
  0x18   : > { %649 = vpow2.f32 %v604_v29  ;;  %v220_v40 = vmul.f32 %v817_v0, %v181_v26  ;;  %v221_v41 = vmul.f32 %v817_v0, %v182_v27  ;;  %v222_v44 = vmul.f32 %v817_v0, %v183_v35  ;;  %v189_v11 = vld [vmem:[%s824_s19 + $0x90] sm:$0xff]  ;;  %v190_v25 = vld [vmem:[%s824_s19 + $0x98] sm:$0xff]  ;;  %v191_v35 = vld [vmem:[%s824_s19 + $0xa0] sm:$0xff] }
  0x19   : > { %651 = vpow2.f32 %v605_v30  ;;  %v888_v42 = vadd.f32 %v829_v1, %v218_v37  ;;  %v891_v43 = vadd.f32 %v829_v1, %v219_v38  ;;  %v610_v45 = vmul.f32 -1.442695, %v878_v34 }
  0x1a   : > { %653 = vpow2.f32 %v606_v32  ;;  %v896_v46 = vadd.f32 %v829_v1, %v220_v40  ;;  %v899_v47 = vadd.f32 %v829_v1, %v221_v41  ;;  %v903_v49 = vadd.f32 %v829_v1, %v222_v44  ;;  %v192_v40 = vld [vmem:[%s824_s19 + $0xa8] sm:$0xff] }
  0x1b   : > { %655 = vpow2.f32 %v607_v33  ;;  %v611_v48 = vmul.f32 -1.442695, %v888_v42  ;;  %v612_v50 = vmul.f32 -1.442695, %v891_v43  ;;  %v223_v58 = vmul.f32 %v817_v0, %v184_v53 }
  0x1c   : > { %657 = vpow2.f32 %v608_v36  ;;  %v613_v51 = vmul.f32 -1.442695, %v896_v46  ;;  %v614_v52 = vmul.f32 -1.442695, %v899_v47  ;;  %v615_v54 = vmul.f32 -1.442695, %v903_v49 }
  0x1d   : > { %659 = vpow2.f32 %v609_v39  ;;  %v224_v2 = vmul.f32 %v817_v0, %v185_v55  ;;  %v225_v3 = vmul.f32 %v817_v0, %v186_v56  ;;  %v918_v9 = vadd.f32 %v829_v1, %v223_v58  ;;  %v194_v55 = vld [vmem:[%s824_s19 + $0xb8] sm:$0xff] }
  0x1e   : > { %661 = vpow2.f32 %v610_v45  ;;  %v226_v10 = vmul.f32 %v817_v0, %v187_v61  ;;  %v227_v14 = vmul.f32 %v817_v0, %v188_v4  ;;  %v228_v28 = vmul.f32 %v817_v0, %v189_v11 }
  0x1f   : > { %663 = vpow2.f32 %v611_v48  ;;  %v924_v20 = vadd.f32 %v829_v1, %v224_v2  ;;  %v927_v24 = vadd.f32 %v829_v1, %v225_v3  ;;  %v616_v32 = vmul.f32 -1.442695, %v918_v9  ;;  %v196_v3 = vld [vmem:[%s824_s19 + $0xc8] sm:$0xff] }
  0x20   : > { %665 = vpow2.f32 %v612_v50  ;;  %v933_v33 = vadd.f32 %v829_v1, %v226_v10  ;;  %v937_v38 = vadd.f32 %v829_v1, %v227_v14  ;;  %v229_v39 = vmul.f32 %v817_v0, %v190_v25  ;;  %v193_v50 = vld [vmem:[%s824_s19 + $0xb0] sm:$0xff] }
  0x21   : > { %v648_v57 = vpop.eup %647  ;;  %667 = vpow2.f32 %v613_v51  ;;  %v617_v45 = vmul.f32 -1.442695, %v924_v20  ;;  %v618_v48 = vmul.f32 -1.442695, %v927_v24  ;;  %v945_v53 = vadd.f32 %v829_v1, %v228_v28 }
  0x22   : > { %v650_v59 = vpop.eup %649  ;;  %v377_v60 = vadd.f32 1.0, %v648_v57  ;;  %669 = vpow2.f32 %v614_v52  ;;  %v619_v58 = vmul.f32 -1.442695, %v933_v33  ;;  %v232_v2 = vmul.f32 %v817_v0, %v193_v50 }
  0x23   : > { %v652_v62 = vpop.eup %651  ;;  %v378_v63 = vadd.f32 1.0, %v650_v59  ;;  %671 = vpow2.f32 %v615_v54  ;;  %v230_v54 = vmul.f32 %v817_v0, %v191_v35  ;;  %v231_v59 = vmul.f32 %v817_v0, %v192_v40 }
  0x24   : > { %v654_v5 = vpop.eup %653  ;;  %673 = vrcp.f32 %v377_v60  ;;  %v379_v6 = vadd.f32 1.0, %v652_v62  ;;  %v195_v60 = vld [vmem:[%s824_s19 + $0xc0] sm:$0xff]  ;;  %v621_v25 = vmul.f32 -1.442695, %v945_v53 }
  0x25   : > { %v656_v7 = vpop.eup %655  ;;  %675 = vrcp.f32 %v378_v63  ;;  %v380_v8 = vadd.f32 1.0, %v654_v5  ;;  %v620_v63 = vmul.f32 -1.442695, %v937_v38  ;;  %v969_v11 = vadd.f32 %v829_v1, %v230_v54 }
  0x26   : > { %v658_v12 = vpop.eup %657  ;;  %677 = vrcp.f32 %v379_v6  ;;  %v381_v13 = vadd.f32 1.0, %v656_v7  ;;  %v964_v6 = vadd.f32 %v829_v1, %v229_v39  ;;  %v233_v7 = vmul.f32 %v817_v0, %v194_v55 }
  0x27   : > { %v660_v15 = vpop.eup %659  ;;  %679 = vrcp.f32 %v380_v8  ;;  %v382_v19 = vadd.f32 1.0, %v658_v12  ;;  %v234_v12 = vmul.f32 %v817_v0, %v195_v60  ;;  %v975_v14 = vadd.f32 %v829_v1, %v231_v59 }
  0x28   : > { %v662_v26 = vpop.eup %661  ;;  %681 = vrcp.f32 %v381_v13  ;;  %v383_v27 = vadd.f32 1.0, %v660_v15  ;;  %v235_v15 = vmul.f32 %v817_v0, %v196_v3  ;;  %v622_v28 = vmul.f32 -1.442695, %v964_v6 }
  0x29   : > { %v664_v29 = vpop.eup %663  ;;  %683 = vrcp.f32 %v382_v19  ;;  %v384_v30 = vadd.f32 1.0, %v662_v26  ;;  %v982_v26 = vadd.f32 %v829_v1, %v232_v2  ;;  %v994_v35 = vadd.f32 %v829_v1, %v234_v12 }
  0x2a   : > { %v666_v36 = vpop.eup %665  ;;  %685 = vrcp.f32 %v383_v27  ;;  %v385_v37 = vadd.f32 1.0, %v664_v29  ;;  %v988_v29 = vadd.f32 %v829_v1, %v233_v7  ;;  %v1000_v39 = vadd.f32 %v829_v1, %v235_v15  ;;  %v202_v15 = vld [vmem:[%s824_s19 + $0xf8] sm:$0xff] }
  0x2b   : > { %v668_v41 = vpop.eup %667  ;;  %687 = vrcp.f32 %v384_v30  ;;  %v386_v44 = vadd.f32 1.0, %v666_v36 }
  0x2c   : > { %v670_v51 = vpop.eup %669  ;;  %689 = vrcp.f32 %v385_v37  ;;  %v387_v52 = vadd.f32 1.0, %v668_v41  ;;  %v624_v37 = vmul.f32 -1.442695, %v975_v14  ;;  %v625_v41 = vmul.f32 -1.442695, %v982_v26 }
  0x2d   : > { %v672_v56 = vpop.eup %671  ;;  %691 = vrcp.f32 %v386_v44  ;;  %v388_v57 = vadd.f32 1.0, %v670_v51 }
  0x2e   : > { %v674_v61 = vpop.eup %673  ;;  %693 = vrcp.f32 %v387_v52  ;;  %v389_v62 = vadd.f32 1.0, %v672_v56 }
  0x2f   : > { %v676_v4 = vpop.eup %675  ;;  %v473_v5 = vmul.f32 %v674_v61, %v846_v16  ;;  %695 = vrcp.f32 %v388_v57  ;;  %v198_v61 = vld [vmem:[%s824_s19 + $0xd8] sm:$0xff] }
  0x30   : > { %v678_v8 = vpop.eup %677  ;;  %v474_v10 = vmul.f32 %v676_v4, %v849_v17  ;;  %697 = vrcp.f32 %v389_v62  ;;  %v200_v4 = vld [vmem:[%s824_s19 + $0xe8] sm:$0xff] }
  0x31   : > { %v680_v13 = vpop.eup %679  ;;  %505 = vst [vmem:[%s957_s24] sm:$0xff] %v473_v5  ;;  %v475_v16 = vmul.f32 %v678_v8, %v852_v18  ;;  %699 = vpow2.f32 %v616_v32  ;;  %v623_v32 = vmul.f32 -1.442695, %v969_v11  ;;  %v237_v8 = vmul.f32 %v817_v0, %v198_v61 }
  0x32   : > { %v682_v19 = vpop.eup %681  ;;  %506 = vst [vmem:[%s957_s24 + $0x8] sm:$0xff] %v474_v10  ;;  %v476_v17 = vmul.f32 %v680_v13, %v857_v21  ;;  %701 = vpow2.f32 %v617_v45  ;;  %v201_v10 = vld [vmem:[%s824_s19 + $0xf0] sm:$0xff] }
  0x33   : > { %v684_v27 = vpop.eup %683  ;;  %507 = vst [vmem:[%s957_s24 + $0x10] sm:$0xff] %v475_v16  ;;  %v477_v18 = vmul.f32 %v682_v19, %v860_v22  ;;  %703 = vpow2.f32 %v618_v48 }
  0x34   : > { %v686_v30 = vpop.eup %685  ;;  %508 = vst [vmem:[%s957_s24 + $0x18] sm:$0xff] %v476_v17  ;;  %v478_v21 = vmul.f32 %v684_v27, %v863_v23  ;;  %705 = vpow2.f32 %v619_v58 }
  0x35   : > { %v688_v36 = vpop.eup %687  ;;  %509 = vst [vmem:[%s957_s24 + $0x20] sm:$0xff] %v477_v18  ;;  %v479_v22 = vmul.f32 %v686_v30, %v873_v31  ;;  %707 = vpow2.f32 %v620_v63  ;;  %v626_v31 = vmul.f32 -1.442695, %v988_v29  ;;  %v199_v63 = vld [vmem:[%s824_s19 + $0xe0] sm:$0xff]  ;;  %v240_v30 = vmul.f32 %v817_v0, %v201_v10 }
  0x36   : > { %v690_v40 = vpop.eup %689  ;;  %510 = vst [vmem:[%s957_s24 + $0x28] sm:$0xff] %v478_v21  ;;  %v480_v23 = vmul.f32 %v688_v36, %v878_v34  ;;  %709 = vpow2.f32 %v621_v25  ;;  %v627_v34 = vmul.f32 -1.442695, %v994_v35  ;;  %v238_v16 = vmul.f32 %v817_v0, %v199_v63 }
  0x37   : > { %v692_v44 = vpop.eup %691  ;;  %511 = vst [vmem:[%s957_s24 + $0x30] sm:$0xff] %v479_v22  ;;  %v481_v45 = vmul.f32 %v690_v40, %v888_v42  ;;  %711 = vpow2.f32 %v622_v28  ;;  %v628_v42 = vmul.f32 -1.442695, %v1000_v39  ;;  %v239_v25 = vmul.f32 %v817_v0, %v200_v4 }
  0x38   : > { %v694_v48 = vpop.eup %693  ;;  %512 = vst [vmem:[%s957_s24 + $0x38] sm:$0xff] %v480_v23  ;;  %v482_v50 = vmul.f32 %v692_v44, %v891_v43  ;;  %713 = vpow2.f32 %v623_v32  ;;  %v1035_v36 = vadd.f32 %v829_v1, %v237_v8  ;;  %v241_v22 = vmul.f32 %v817_v0, %v202_v15 }
  0x39   : > { %v696_v51 = vpop.eup %695  ;;  %513 = vst [vmem:[%s957_s24 + $0x40] sm:$0xff] %v481_v45  ;;  %v483_v52 = vmul.f32 %v694_v48, %v896_v46  ;;  %715 = vpow2.f32 %v624_v37  ;;  %v197_v46 = vld [vmem:[%s824_s19 + $0xd0] sm:$0xff]  ;;  %v1039_v23 = vadd.f32 %v829_v1, %v238_v16  ;;  %v1042_v45 = vadd.f32 %v829_v1, %v239_v25 }
  0x3a   : > { %v698_v54 = vpop.eup %697  ;;  %514 = vst [vmem:[%s957_s24 + $0x48] sm:$0xff] %v482_v50  ;;  %v484_v55 = vmul.f32 %v696_v51, %v899_v47  ;;  %717 = vpow2.f32 %v625_v41  ;;  %v236_v3 = vmul.f32 %v817_v0, %v197_v46  ;;  %v1046_v0 = vadd.f32 %v829_v1, %v240_v30 }
  0x3b   : > { %v700_v43 = vpop.eup %699  ;;  %515 = vst [vmem:[%s957_s24 + $0x50] sm:$0xff] %v483_v52  ;;  %v485_v56 = vmul.f32 %v698_v54, %v903_v49  ;;  %719 = vpow2.f32 %v626_v31  ;;  %v630_v52 = vmul.f32 -1.442695, %v1035_v36 }
  0x3c   : > { %v702_v57 = vpop.eup %701  ;;  %516 = vst [vmem:[%s957_s24 + $0x58] sm:$0xff] %v484_v55  ;;  %v390_v58 = vadd.f32 1.0, %v700_v43  ;;  %721 = vpow2.f32 %v627_v34  ;;  %v1031_v28 = vadd.f32 %v829_v1, %v236_v3  ;;  %v631_v43 = vmul.f32 -1.442695, %v1039_v23 }
  0x3d   : > { %v704_v59 = vpop.eup %703  ;;  %517 = vst [vmem:[%s957_s24 + $0x60] sm:$0xff] %v485_v56  ;;  %v391_v60 = vadd.f32 1.0, %v702_v57  ;;  %723 = vpow2.f32 %v628_v42  ;;  %v1050_v42 = vadd.f32 %v829_v1, %v241_v22  ;;  %v633_v1 = vmul.f32 -1.442695, %v1046_v0 }
  0x3e   : > { %v706_v47 = vpop.eup %705  ;;  %725 = vrcp.f32 %v390_v58  ;;  %v392_v62 = vadd.f32 1.0, %v704_v59  ;;  %v629_v50 = vmul.f32 -1.442695, %v1031_v28  ;;  %v632_v58 = vmul.f32 -1.442695, %v1042_v45 }
  0x3f   : > { %v708_v2 = vpop.eup %707  ;;  %727 = vrcp.f32 %v391_v60  ;;  %v393_v49 = vadd.f32 1.0, %v706_v47 }
  0x40   : > { %v710_v5 = vpop.eup %709  ;;  %729 = vrcp.f32 %v392_v62  ;;  %v394_v7 = vadd.f32 1.0, %v708_v2 }
  0x41   : > { %v712_v12 = vpop.eup %711  ;;  %731 = vrcp.f32 %v393_v49  ;;  %v395_v13 = vadd.f32 1.0, %v710_v5 }
  0x42   : > { %v714_v19 = vpop.eup %713  ;;  %733 = vrcp.f32 %v394_v7  ;;  %v396_v17 = vadd.f32 1.0, %v712_v12 }
  0x43   : > { %v716_v27 = vpop.eup %715  ;;  %735 = vrcp.f32 %v395_v13  ;;  %v397_v18 = vadd.f32 1.0, %v714_v19 }
  0x44   : > { %v718_v21 = vpop.eup %717  ;;  %737 = vrcp.f32 %v396_v17  ;;  %v398_v32 = vadd.f32 1.0, %v716_v27 }
  0x45   : > { %v720_v37 = vpop.eup %719  ;;  %739 = vrcp.f32 %v397_v18  ;;  %v399_v40 = vadd.f32 1.0, %v718_v21 }
  0x46   : > { %v722_v41 = vpop.eup %721  ;;  %741 = vrcp.f32 %v398_v32  ;;  %v400_v44 = vadd.f32 1.0, %v720_v37 }
  0x47   : > { %v724_v31 = vpop.eup %723  ;;  %743 = vrcp.f32 %v399_v40  ;;  %v401_v48 = vadd.f32 1.0, %v722_v41 }
  0x48   : > { %v726_v34 = vpop.eup %725  ;;  %745 = vrcp.f32 %v400_v44  ;;  %v402_v51 = vadd.f32 1.0, %v724_v31 }
  0x49   : > { %v728_v54 = vpop.eup %727  ;;  %v486_v55 = vmul.f32 %v726_v34, %v918_v9  ;;  %747 = vrcp.f32 %v401_v48 }
  0x4a   : > { %v730_v56 = vpop.eup %729  ;;  %v487_v57 = vmul.f32 %v728_v54, %v924_v20  ;;  %749 = vrcp.f32 %v402_v51  ;;  %v634_v20 = vmul.f32 -1.442695, %v1050_v42 }
  0x4b   : > { %v732_v46 = vpop.eup %731  ;;  %518 = vst [vmem:[%s957_s24 + $0x68] sm:$0xff] %v486_v55  ;;  %v488_v59 = vmul.f32 %v730_v56, %v927_v24  ;;  %751 = vpow2.f32 %v629_v50 }
  0x4c   : > { %v734_v9 = vpop.eup %733  ;;  %519 = vst [vmem:[%s957_s24 + $0x70] sm:$0xff] %v487_v57  ;;  %v489_v60 = vmul.f32 %v732_v46, %v933_v33  ;;  %753 = vpow2.f32 %v630_v52 }
  0x4d   : > { %v736_v61 = vpop.eup %735  ;;  %520 = vst [vmem:[%s957_s24 + $0x78] sm:$0xff] %v488_v59  ;;  %v490_v47 = vmul.f32 %v734_v9, %v937_v38  ;;  %755 = vpow2.f32 %v631_v43 }
  0x4e   : > { %v738_v62 = vpop.eup %737  ;;  %521 = vst [vmem:[%s957_s24 + $0x80] sm:$0xff] %v489_v60  ;;  %v491_v24 = vmul.f32 %v736_v61, %v945_v53  ;;  %757 = vpow2.f32 %v632_v58 }
  0x4f   : > { %v740_v63 = vpop.eup %739  ;;  %522 = vst [vmem:[%s957_s24 + $0x88] sm:$0xff] %v490_v47  ;;  %v492_v33 = vmul.f32 %v738_v62, %v964_v6  ;;  %759 = vpow2.f32 %v633_v1 }
  0x50   : > { %v742_v2 = vpop.eup %741  ;;  %523 = vst [vmem:[%s957_s24 + $0x90] sm:$0xff] %v491_v24  ;;  %v493_v49 = vmul.f32 %v740_v63, %v969_v11  ;;  %761 = vpow2.f32 %v634_v20 }
  0x51   : > { %v744_v38 = vpop.eup %743  ;;  %524 = vst [vmem:[%s957_s24 + $0x98] sm:$0xff] %v492_v33  ;;  %v494_v3 = vmul.f32 %v742_v2, %v975_v14 }
  0x52   : > { %v746_v53 = vpop.eup %745  ;;  %525 = vst [vmem:[%s957_s24 + $0xa0] sm:$0xff] %v493_v49  ;;  %v495_v4 = vmul.f32 %v744_v38, %v982_v26 }
  0x53   : > { %v748_v5 = vpop.eup %747  ;;  %526 = vst [vmem:[%s957_s24 + $0xa8] sm:$0xff] %v494_v3  ;;  %v496_v6 = vmul.f32 %v746_v53, %v988_v29 }
  0x54   : > { %v750_v7 = vpop.eup %749  ;;  %527 = vst [vmem:[%s957_s24 + $0xb0] sm:$0xff] %v495_v4  ;;  %v497_v8 = vmul.f32 %v748_v5, %v994_v35 }
  0x55   : > { %v752_v11 = vpop.eup %751  ;;  %528 = vst [vmem:[%s957_s24 + $0xb8] sm:$0xff] %v496_v6  ;;  %v498_v10 = vmul.f32 %v750_v7, %v1000_v39 }
  0x56   : > { %v754_v12 = vpop.eup %753  ;;  %529 = vst [vmem:[%s957_s24 + $0xc0] sm:$0xff] %v497_v8  ;;  %v403_v14 = vadd.f32 1.0, %v752_v11 }
  0x57   : > { %v756_v13 = vpop.eup %755  ;;  %530 = vst [vmem:[%s957_s24 + $0xc8] sm:$0xff] %v498_v10  ;;  %v404_v16 = vadd.f32 1.0, %v754_v12 }
  0x58   : > { %v758_v15 = vpop.eup %757  ;;  %763 = vrcp.f32 %v403_v14  ;;  %v405_v26 = vadd.f32 1.0, %v756_v13 }
  0x59   : > { %v760_v19 = vpop.eup %759  ;;  %765 = vrcp.f32 %v404_v16  ;;  %v406_v29 = vadd.f32 1.0, %v758_v15 }
  0x5a   : > { %v762_v17 = vpop.eup %761  ;;  %767 = vrcp.f32 %v405_v26  ;;  %v407_v35 = vadd.f32 1.0, %v760_v19 }
  0x5b   : > { %769 = vrcp.f32 %v406_v29  ;;  %v408_v39 = vadd.f32 1.0, %v762_v17 }
  0x5c   : > { %771 = vrcp.f32 %v407_v35 }
  0x5d   : > { %773 = vrcp.f32 %v408_v39 }
  0x62   : > { %v764_v25 = vpop.eup %763 }
  0x63   : > { %v766_v27 = vpop.eup %765  ;;  %v499_v18 = vmul.f32 %v764_v25, %v1031_v28 }
  0x64   : > { %v768_v30 = vpop.eup %767  ;;  %v500_v21 = vmul.f32 %v766_v27, %v1035_v36 }
  0x65   : > { %v770_v32 = vpop.eup %769  ;;  %531 = vst [vmem:[%s957_s24 + $0xd0] sm:$0xff] %v499_v18  ;;  %v501_v22 = vmul.f32 %v768_v30, %v1039_v23 }
  0x66   : > { %v772_v37 = vpop.eup %771  ;;  %532 = vst [vmem:[%s957_s24 + $0xd8] sm:$0xff] %v500_v21  ;;  %v502_v40 = vmul.f32 %v770_v32, %v1042_v45 }
  0x67   : > { %v774_v41 = vpop.eup %773  ;;  %533 = vst [vmem:[%s957_s24 + $0xe0] sm:$0xff] %v501_v22  ;;  %v503_v44 = vmul.f32 %v772_v37, %v1046_v0 }
  0x68   : > { %534 = vst [vmem:[%s957_s24 + $0xe8] sm:$0xff] %v502_v40  ;;  %v504_v31 = vmul.f32 %v774_v41, %v1050_v42 }
  0x69   : > { %535 = vst [vmem:[%s957_s24 + $0xf0] sm:$0xff] %v503_v44 }
  0x6a   : > { %536 = vst [vmem:[%s957_s24 + $0xf8] sm:$0xff] %v504_v31 }
  0x6b PF: > { %s13_s12 = sadd.s32 1, %s781_s12  }
  0x6c   : > { %p10_p4 = scmp.ge.s32.totalorder %s13_s12, 4  }
  0x6e   :  { %12 = sbr.rel (!%p10_p4) target bundleno = 1 (0x1), region = 62 }

// kernel: block_forward.3
= control target key start
LH: loop header
LB: loop body
LE: loop exit
PB: predicated region body
PF: predicated region fallthrough
CT: control target
= control target key end

     0   :  { %s7097_s18 = smov 0   ;;  %s8807_s0 = inlined_call_operand.vmem [shape: bf16[2,18,32,4], index: 0, kind: input, shape index: {}]   ;;  %s8808_s1 = inlined_call_operand.vmem [shape: bf16[9,4,128], index: 1, kind: input, shape index: {}]   ;;  %s8809_s2 = inlined_call_operand.vmem [shape: f32[1,128], index: 2, kind: input, shape index: {}]   ;;  %s8810_s3 = inlined_call_operand.vmem [shape: f32[2,256,128], index: 3, kind: output, shape index: {0}]   ;;  %s8811_s4 = inlined_call_operand.vmem [shape: f32[2,1,128], index: 4, kind: output, shape index: {1}]   ;;  %s8812_s5 = inlined_call_operand.vmem [shape: f32[2,1,128], index: 5, kind: output, shape index: {2}]  }
   0x1 LB: > { %s5710_s19 = sadd.s32 4294967295, %s7065_s18   ;;  %p5714_p0 = scmp.ge.s32.totalorder %s7065_s18, 1  ;;  %s7065_s18 = sphi %s7097_s18, %s16_s18  }
   0x2   : > { %p192_p1 = scmp.lt.s32.totalorder %s7065_s18, 3 }
   0x4   : > { %p193_p2 = pnand %p5714_p0, %p192_p1 }
   0x6   : > { %196 = sbr.rel (%p193_p2) target bundleno = 656 (0x290), region = 32 }
   0xd   : > { %v5734_v0 = vld [vmem:[%s8808_s1 + $0x2] sm:$0x3]  ;;  %vm778_vm0 = vcmask 1041408   ;;  %v5929_v1 = vld [vmem:[%s8808_s1 + $0x8] sm:$0x3]  ;;  %p226_p3 = scmp.lt.s32.totalorder %s5710_s19, 1 }
   0xe   : > { %6975 = vmatprep.subr.msk.bf16.mxu1 %vm778_vm0, %v5734_v0  ;;  %6979 = vmatprep.subr.msk.bf16.mxu0 %vm778_vm0, %v5929_v1  ;;  %v780_v2 = vsel %vm778_vm0, %v5734_v0, 0  ;;  %v7115_v3 = vsel %vm778_vm0, %v5929_v1, 0  ;;  %v646_v4 = vld [vmem:[%s8808_s1] sm:$0x3]  ;;  %v6010_v5 = vld [vmem:[%s8808_s1 + $0xa] sm:$0x3] }
   0xf   : > { %8853 = vst [vmem:[#allocation2_spill] sm:$0xff] %v7115_v3  ;;  %6412 = vmatpush3.bf16.msra.mxu1 %v780_v2  ;;  %6548 = vmatpush3.bf16.msra.mxu0 %v7115_v3  ;;  %s9016_s19 = smov (!%p226_p3, %s5710_s19), 1  ;;  %v7131_v6 = vld [vmem:[%s8808_s1 + $0xc] sm:$0x3]  ;;  %vm729_vm1 = vcmask 31744   ;;  %v1040_v8 = vsel %vm778_vm0, %v646_v4, 0 }
  0x10   : > { %6976 = vmatprep.subr.msk.bf16.mxu1 %vm778_vm0, %v646_v4  ;;  %6981 = vmatprep.subr.msk.bf16.mxu0 %vm778_vm0, %v6010_v5  ;;  %s6985_s30 = smul.u32 288, %s9016_s19  ;;  %v7137_v7 = vld [vmem:[%s8808_s1 + $0x4] sm:$0x3]  ;;  %v7146_v9 = vsel %vm778_vm0, %v6010_v5, 0  ;;  %v7150_v10 = vsel %vm778_vm0, %v7131_v6, 0  ;;  %s6257_s21 = sshll.u32 %s9016_s19, 8 }
  0x11   : > { %v7154_v11 = vsel %vm778_vm0, %v7137_v7, 0  ;;  %vm1251_vm2 = vsmask.f32 3328  ;;  %vm1252_vm3 = vsmask.f32 7440  ;;  %s8722_s26 = scalar_lea.vmem %s8810_s3, %s6257_s21  ;;  %s238_s29 = scalar_lea.vmem %s8811_s4, %s9016_s19 }
  0x12   : > { %s7142_s10 = scalar_lea.vmem %s8807_s0, %s6985_s30  ;;  %vm7448_vm4 = vmor %vm1251_vm2, %vm1252_vm3  ;;  %vm291_vm5 = vsmask.f32 256  ;;  %vm292_vm6 = vsmask.f32 4368  ;;  %s241_s7 = scalar_lea.vmem %s8812_s5, %s9016_s19 }
  0x13   : > { %v244_v12 = vld [vmem:[%s7142_s10 + $0x4] sm:$0xf]  ;;  %v245_v13 = vld [vmem:[%s7142_s10 + $0x8] sm:$0xf]  ;;  %v5833_v14 = vld [vmem:[%s7142_s10 + $0x14] sm:$0xf] }
  0x14   : > { %v300_v15 = vshrl.u32 %v244_v12, 16  ;;  %v303_v16 = vshll.u32 %v244_v12, 16  ;;  %v309_v17 = vshrl.u32 %v245_v13, 16  ;;  %v312_v18 = vshll.u32 %v245_v13, 16  ;;  %v5834_v19 = vld [vmem:[%s7142_s10 + $0x18] sm:$0xf]  ;;  %vm7608_vm7 = vmor %vm291_vm5, %vm292_vm6 }
  0x15   : > { %v5735_v20 = vcombine.low %v244_v12, %v245_v13  ;;  %v1987_v21 = vshrl.u32 %v5833_v14, 16  ;;  %v1990_v22 = vshll.u32 %v5833_v14, 16  ;;  %v1996_v23 = vshrl.u32 %v5834_v19, 16  ;;  %v247_v28 = vld [vmem:[%s7142_s10 + $0x14] sm:$0xf] }
  0x16   : > { %v7160_v24 = vrot.slane %v300_v15, 7  ;;  %v311_v25 = vrot.slane %v309_v17, 7  ;;  %v1999_v26 = vshll.u32 %v5834_v19, 16  ;;  %v5930_v27 = vcombine.low %v5833_v14, %v5834_v19  ;;  %v248_v31 = vld [vmem:[%s7142_s10 + $0x18] sm:$0xf] }
  0x17   : > { %6413 = vmatprep.mubr.msk.bf16.mxu1 %vm729_vm1, %v5735_v20  ;;  %v7164_v29 = vrot.slane %v1987_v21, 7  ;;  %v1998_v30 = vrot.slane %v1996_v23, 7  ;;  %v322_v32 = vshrl.u32 %v247_v28, 16  ;;  %v325_v33 = vshll.u32 %v247_v28, 16  ;;  %v5836_v42 = vld [vmem:[%s7142_s10 + $0x24] sm:$0xf] }
  0x18   : > { %v7168_v34 = vor.u32 %v303_v16, %v7160_v24  ;;  %v7171_v36 = vor.u32 %v312_v18, %v311_v25  ;;  %6549 = vmatprep.mubr.msk.bf16.mxu0 %vm729_vm1, %v5930_v27  ;;  %v331_v37 = vshrl.u32 %v248_v31, 16  ;;  %v5837_v43 = vld [vmem:[%s7142_s10 + $0x28] sm:$0xf]  ;;  %v334_v45 = vshll.u32 %v248_v31, 16  ;;  %v7185_v48 = vld [vmem:[%s7142_s10 + $0x24] sm:$0xf] }
  0x19   : > { %8854 = vst [vmem:[#allocation3_spill] sm:$0xff] %v7164_v29  ;;  %v7175_v38 = vor.u32 %v1990_v22, %v7164_v29  ;;  %v7178_v40 = vor.u32 %v1999_v26, %v1998_v30  ;;  %v7180_v41 = vrot.slane %v322_v32, 7  ;;  %v5736_v46 = vcombine.low %v247_v28, %v248_v31  ;;  %v7192_v53 = vld [vmem:[%s7142_s10 + $0x28] sm:$0xf]  ;;  %v7200_v58 = vld [vmem:[%s7142_s10 + $0x34] sm:$0xf] }
  0x1a   : > { %v333_v44 = vrot.slane %v331_v37, 7  ;;  %v2009_v47 = vshrl.u32 %v5836_v42, 16  ;;  %v2012_v51 = vshll.u32 %v5836_v42, 16  ;;  %v2018_v52 = vshrl.u32 %v5837_v43, 16  ;;  %8858 = vst [vmem:[#allocation7_spill] sm:$0xff] %v7200_v58 }
  0x1b   : > { %8855 = vst [vmem:[#allocation4_spill] sm:$0xff] %v7175_v38  ;;  %8856 = vst [vmem:[#allocation5_spill] sm:$0xff] %v7178_v40  ;;  %v7188_v49 = vor.u32 %v325_v33, %v7180_v41  ;;  %6414 = vmatmul.mubr.msk.bf16.vlgmr.msra.gmra.mrb[0].mxu1 %vm729_vm1, %v5736_v46  ;;  %v2021_v56 = vshll.u32 %v5837_v43, 16  ;;  %v5931_v57 = vcombine.low %v5836_v42, %v5837_v43  ;;  %v344_v60 = vshrl.u32 %v7185_v48, 16  ;;  %v7206_v63 = vld [vmem:[%s7142_s10 + $0x38] sm:$0xf] }
  0x1c   : > { %v7194_v54 = vor.u32 %v334_v45, %v333_v44  ;;  %v7197_v55 = vrot.slane %v2009_v47, 7  ;;  %6446 = vmatpush3.bf16.msra.mxu1 %v1040_v8  ;;  %v2020_v59 = vrot.slane %v2018_v52, 7  ;;  %v353_v62 = vshrl.u32 %v7192_v53, 16  ;;  %8859 = vst [vmem:[#allocation8_spill] sm:$0xff] %v7206_v63  ;;  %v7217_v5 = vld [vmem:[%s7142_s10 + $0x34] sm:$0xf] }
  0x1d   : > { %6550 = vmatmul.mubr.msk.bf16.vlgmr.msra.gmra.mrb[0].mxu0 %vm729_vm1, %v5931_v57  ;;  %v5737_v4 = vcombine.low %v7185_v48, %v7192_v53  ;;  %v7220_v8 = vld [vmem:[%s7142_s10 + $0x38] sm:$0xf]  ;;  %6977 = vmatprep.subr.msk.bf16.mxu1 %vm778_vm0, %v7137_v7  ;;  %v7227_v13 = vrot.slane %v344_v60, 7  ;;  %v2031_v15 = vshrl.u32 %v7200_v58, 16  ;;  %v7233_v16 = vld [vmem:[%s7142_s10 + $0x44] sm:$0xf] }
  0x1e   : > { %8857 = vst [vmem:[#allocation6_spill] sm:$0xff] %v7197_v55  ;;  %v7209_v0 = vor.u32 %v2012_v51, %v7197_v55  ;;  %v7224_v12 = vor.u32 %v2021_v56, %v2020_v59  ;;  %6582 = vmatpush3.bf16.msra.mxu0 %v7146_v9  ;;  %v7229_v14 = vrot.slane %v353_v62, 7  ;;  %8862 = vst [vmem:[#allocation11_spill] sm:$0xff] %v7233_v16  ;;  %v2040_v7 = vshrl.u32 %v7206_v63, 16  ;;  %v7242_v19 = vld [vmem:[%s7142_s10 + $0x48] sm:$0xf] }
  0x1f   : > { %6417 = vmatprep.mubr.msk.bf16.mxu1 %vm729_vm1, %v5737_v4  ;;  %v5932_v9 = vcombine.low %v7200_v58, %v7206_v63  ;;  %8863 = vst [vmem:[#allocation12_spill] sm:$0xff] %v7242_v19  ;;  %6982 = vmatprep.subr.msk.bf16.mxu0 %vm778_vm0, %v7131_v6  ;;  %v7246_v20 = vrot.slane %v2031_v15, 7  ;;  %v366_v21 = vshrl.u32 %v7217_v5, 16  ;;  %v375_v23 = vshrl.u32 %v7220_v8, 16  ;;  %v7252_v25 = vld [vmem:[%s7142_s10 + $0x44] sm:$0xf] }
  0x20   : > { %8860 = vst [vmem:[#allocation9_spill] sm:$0xff] %v7209_v0  ;;  %8861 = vst [vmem:[#allocation10_spill] sm:$0xff] %v7224_v12  ;;  %v7255_v26 = vld [vmem:[%s7142_s10 + $0x48] sm:$0xf]  ;;  %v7257_v27 = vrot.slane %v2040_v7, 7  ;;  %v5738_v28 = vcombine.low %v7217_v5, %v7220_v8  ;;  %v2053_v30 = vshrl.u32 %v7233_v16, 16  ;;  %v5933_v46 = vcombine.low %v7233_v16, %v7242_v19 }
  0x21   : > { %8864 = vst [vmem:[#allocation13_spill] sm:$0xff] %v7246_v20  ;;  %6553 = vmatprep.mubr.msk.bf16.mxu0 %vm729_vm1, %v5932_v9  ;;  %v7265_v31 = vld [vmem:[%s7142_s10 + $0x54] sm:$0xf]  ;;  %v7267_v32 = vrot.slane %v366_v21, 7  ;;  %v7269_v33 = vrot.slane %v375_v23, 7  ;;  %v2062_v42 = vshrl.u32 %v7242_v19, 16  ;;  %v5739_v4 = vcombine.low %v7252_v25, %v7255_v26 }
  0x22   : > { %8865 = vst [vmem:[#allocation14_spill] sm:$0xff] %v7257_v27  ;;  %8866 = vst [vmem:[#allocation15_spill] sm:$0xff] %v7265_v31  ;;  %v7274_v43 = vld [vmem:[%s7142_s10 + $0x58] sm:$0xf]  ;;  %v7277_v44 = vrot.slane %v2053_v30, 7  ;;  %v388_v47 = vshrl.u32 %v7252_v25, 16 }
  0x23   : > { %8867 = vst [vmem:[#allocation16_spill] sm:$0xff] %v7274_v43  ;;  %6418 = vmatmul.mubr.msk.bf16.gmra.mrb[4].mxu1 %vm729_vm1, %v5738_v28  ;;  %v7284_v51 = vld [vmem:[%s7142_s10 + $0x54] sm:$0xf]  ;;  %v7286_v52 = vrot.slane %v2062_v42, 7  ;;  %v397_v57 = vshrl.u32 %v7255_v26, 16  ;;  %v2075_v15 = vshrl.u32 %v7265_v31, 16  ;;  %v5934_v30 = vcombine.low %v7265_v31, %v7274_v43 }
  0x24   : > { %8868 = vst [vmem:[#allocation17_spill] sm:$0xff] %v7277_v44  ;;  %v7292_v60 = vld [vmem:[%s7142_s10 + $0x58] sm:$0xf]  ;;  %v7295_v62 = vrot.slane %v388_v47, 7  ;;  %v7302_v9 = vld [vmem:[%s7142_s10 + $0x64] sm:$0xf]  ;;  %6421 = vmatprep.mubr.msk.bf16.mxu1 %vm729_vm1, %v5739_v4 }
  0x25   : > { %8869 = vst [vmem:[#allocation18_spill] sm:$0xff] %v7286_v52  ;;  %6554 = vmatmul.mubr.msk.bf16.gmra.mrb[4].mxu0 %vm729_vm1, %v5933_v46  ;;  %8870 = vst [vmem:[#allocation19_spill] sm:$0xff] %v7302_v9  ;;  %v7304_v21 = vrot.slane %v397_v57, 7  ;;  %v2084_v23 = vshrl.u32 %v7274_v43, 16  ;;  %v7311_v42 = vld [vmem:[%s7142_s10 + $0x68] sm:$0xf] }
  0x26   : > { %8871 = vst [vmem:[#allocation20_spill] sm:$0xff] %v7311_v42  ;;  %v7314_v46 = vrot.slane %v2075_v15, 7  ;;  %v410_v47 = vshrl.u32 %v7284_v51, 16  ;;  %v419_v7 = vshrl.u32 %v7292_v60, 16  ;;  %v7320_v45 = vld [vmem:[%s7142_s10 + $0x64] sm:$0xf]  ;;  %6557 = vmatprep.mubr.msk.bf16.mxu0 %vm729_vm1, %v5934_v30  ;;  %v5740_v15 = vcombine.low %v7284_v51, %v7292_v60 }
  0x27   : > { %v7323_v37 = vld [vmem:[%s7142_s10 + $0x68] sm:$0xf]  ;;  %v7325_v28 = vrot.slane %v2084_v23, 7  ;;  %v2097_v18 = vshrl.u32 %v7302_v9, 16  ;;  %v7333_v17 = vld [vmem:[%s7142_s10 + $0x74] sm:$0xf]  ;;  %v5935_v56 = vcombine.low %v7302_v9, %v7311_v42 }
  0x28   : > { %8872 = vst [vmem:[#allocation21_spill] sm:$0xff] %v7314_v46  ;;  %8874 = vst [vmem:[#allocation23_spill] sm:$0xff] %v7333_v17  ;;  %v7335_v1 = vrot.slane %v410_v47, 7  ;;  %v7337_v39 = vrot.slane %v419_v7, 7  ;;  %v2106_v23 = vshrl.u32 %v7311_v42, 16  ;;  %v432_v6 = vshrl.u32 %v7320_v45, 16 }
  0x29   : > { %8873 = vst [vmem:[#allocation22_spill] sm:$0xff] %v7325_v28  ;;  %v7342_v59 = vld [vmem:[%s7142_s10 + $0x78] sm:$0xf]  ;;  %v7344_v30 = vrot.slane %v2097_v18, 7  ;;  %v7351_v47 = vld [vmem:[%s7142_s10 + $0x74] sm:$0xf]  ;;  %v5741_v61 = vcombine.low %v7320_v45, %v7323_v37 }
  0x2a   : > { %8875 = vst [vmem:[#allocation24_spill] sm:$0xff] %v7342_v59  ;;  %v7354_v7 = vrot.slane %v2106_v23, 7  ;;  %v441_v22 = vshrl.u32 %v7323_v37, 16  ;;  %v7360_v2 = vld [vmem:[%s7142_s10 + $0x78] sm:$0xf]  ;;  %v7362_v4 = vrot.slane %v432_v6, 7  ;;  %v5936_v35 = vcombine.low %v7333_v17, %v7342_v59 }
  0x2b   : > { %8876 = vst [vmem:[#allocation25_spill] sm:$0xff] %v7344_v30  ;;  %6422 = vmatmul.mubr.msk.bf16.gmra.mrb[8].mxu1 %vm729_vm1, %v5740_v15  ;;  %v2119_v50 = vshrl.u32 %v7333_v17, 16  ;;  %v7369_v23 = vld [vmem:[%s7142_s10 + $0x84] sm:$0xf]  ;;  %v2128_v18 = vshrl.u32 %v7342_v59, 16  ;;  %v463_v42 = vshrl.u32 %v7360_v2, 16 }
  0x2c   : > { %8877 = vst [vmem:[#allocation26_spill] sm:$0xff] %v7354_v7  ;;  %8878 = vst [vmem:[#allocation27_spill] sm:$0xff] %v7369_v23  ;;  %v7372_v57 = vrot.slane %v441_v22, 7  ;;  %v7379_v3 = vld [vmem:[%s7142_s10 + $0x88] sm:$0xf]  ;;  %6425 = vmatprep.mubr.msk.bf16.mxu1 %vm729_vm1, %v5741_v61  ;;  %v454_v22 = vshrl.u32 %v7351_v47, 16 }
  0x2d   : > { %6558 = vmatmul.mubr.msk.bf16.gmra.mrb[8].mxu0 %vm729_vm1, %v5935_v56  ;;  %8879 = vst [vmem:[#allocation28_spill] sm:$0xff] %v7379_v3  ;;  %v7382_v15 = vrot.slane %v2119_v50, 7  ;;  %v7388_v6 = vld [vmem:[%s7142_s10 + $0x84] sm:$0xf]  ;;  %v7391_v7 = vld [vmem:[%s7142_s10 + $0x88] sm:$0xf]  ;;  %v5742_v50 = vcombine.low %v7351_v47, %v7360_v2  ;;  %v5937_v43 = vcombine.low %v7369_v23, %v7379_v3 }
  0x2e   : > { %v7393_v59 = vrot.slane %v2128_v18, 7  ;;  %6561 = vmatprep.mubr.msk.bf16.mxu0 %vm729_vm1, %v5936_v35  ;;  %v2141_v17 = vshrl.u32 %v7369_v23, 16  ;;  %v5962_v56 = vld [vmem:[%s7142_s10 + $0x14] sm:$0xf]  ;;  %v7403_v9 = vrot.slane %v463_v42, 7  ;;  %v2150_v18 = vshrl.u32 %v7379_v3, 16 }
  0x2f   : > { %8880 = vst [vmem:[#allocation29_spill] sm:$0xff] %v7382_v15  ;;  %v7401_v15 = vrot.slane %v454_v22, 7  ;;  %v476_v28 = vshrl.u32 %v7388_v6, 16  ;;  %v5964_v31 = vld [vmem:[%s7142_s10 + $0x1c] sm:$0x1]  ;;  %v485_v30 = vshrl.u32 %v7391_v7, 16  ;;  %v5743_v61 = vcombine.low %v7388_v6, %v7391_v7 }
  0x30   : > { %8881 = vst [vmem:[#allocation30_spill] sm:$0xff] %v7393_v59  ;;  %v5963_v59 = vld [vmem:[%s7142_s10 + $0x18] sm:$0xf]  ;;  %v7408_v35 = vrot.slane %v2141_v17, 7  ;;  %v7415_v22 = vrot.slane %v2150_v18, 7  ;;  %v3002_v3 = vshrl.u32 %v5962_v56, 16 }
  0x31   : > { %v7421_v19 = vld [vmem:[%s7142_s10 + $0x94] sm:$0xf]  ;;  %v7424_v17 = vrot.slane %v476_v28, 7  ;;  %v3005_v23 = vshll.u32 %v5962_v56, 16  ;;  %v7429_v18 = vld [vmem:[%s7142_s10 + $0x98] sm:$0xf] }
  0x32   : > { %8882 = vst [vmem:[#allocation31_spill] sm:$0xff] %v7408_v35  ;;  %8883 = vst [vmem:[#allocation32_spill] sm:$0xff] %v7415_v22  ;;  %v7431_v22 = vrot.slane %v485_v30, 7  ;;  %v3011_v42 = vshll.u32 %v5963_v59, 16  ;;  %v3015_v35 = vshrl.u32 %v5963_v59, 16  ;;  %v3021_v46 = vshll.u32 %v5964_v31, 16 }
  0x33   : > { %6426 = vmatmul.mubr.msk.bf16.gmra.mrb[12].mxu1 %vm729_vm1, %v5742_v50  ;;  %8884 = vst [vmem:[#allocation33_spill] sm:$0xff] %v7429_v18  ;;  %v5965_v52 = vld [vmem:[%s7142_s10 + $0x24] sm:$0xf]  ;;  %v3004_v28 = vrot.slane %v3002_v3, 4  ;;  %v3007_v50 = vrot.slane %v3005_v23, 5  ;;  %v498_v16 = vshrl.u32 %v7421_v19, 16  ;;  %v5744_v3 = vcombine.low %v7421_v19, %v7429_v18 }
  0x34   : > { %6429 = vmatprep.mubr.msk.bf16.mxu1 %vm729_vm1, %v5743_v61  ;;  %v5966_v56 = vld [vmem:[%s7142_s10 + $0x28] sm:$0xf]  ;;  %v3013_v0 = vrot.slane %v3011_v42, 5  ;;  %v3017_v63 = vrot.slane %v3015_v35, 4  ;;  %v3023_v30 = vrot.slane %v3021_v46, 5  ;;  %v507_v27 = vshrl.u32 %v7429_v18, 16 }
  0x35   : > { %6562 = vmatmul.mubr.msk.bf16.gmra.mrb[12].mxu0 %vm729_vm1, %v5937_v43  ;;  %v5967_v59 = vld [vmem:[%s7142_s10 + $0x2c] sm:$0x1]  ;;  %v3008_v31 = vor.u32 %v3007_v50, %v3004_v28  ;;  %v7441_v58 = vrot.slane %v498_v16, 7  ;;  %v3026_v35 = vshrl.u32 %v5965_v52, 16  ;;  %v3029_v42 = vshll.u32 %v5965_v52, 16 }
  0x36   : > { %v3018_v46 = vor.u32 %v3017_v63, %v3013_v0  ;;  %v7452_v61 = vrot.slane %v507_v27, 7  ;;  %v3035_v28 = vshll.u32 %v5966_v56, 16  ;;  %v3039_v50 = vshrl.u32 %v5966_v56, 16  ;;  %v7455_v43 = vld [vmem:[%s7142_s10 + $0xa4] sm:$0xf] }
  0x37   : > { %v3009_v16 = vrot.slane %v3008_v31, 4  ;;  %v3045_v44 = vshll.u32 %v5967_v59, 16  ;;  %8888 = vst [vmem:[#allocation35_spill] sm:$0xff] %v7455_v43  ;;  %v3028_v38 = vrot.slane %v3026_v35, 4  ;;  %v3031_v55 = vrot.slane %v3029_v42, 5 }
  0x38   : > { %8887 = vst [vmem:[#allocation34_spill] sm:$0xff] %v7452_v61  ;;  %v3019_v20 = vrot.slane %v3018_v46, 4  ;;  %v7458_v12 = vld [vmem:[%s7142_s10 + $0xa8] sm:$0xf]  ;;  %v520_v29 = vshrl.u32 %v7455_v43, 16  ;;  %v3037_v27 = vrot.slane %v3035_v28, 5 }
  0x39   : > { %8889 = vst [vmem:[#allocation36_spill] sm:$0xff] %v7458_v12  ;;  %v3014_v63 = vsel %vm7448_vm4, %v3009_v16, %v3013_v0  ;;  %v3041_v52 = vrot.slane %v3039_v50, 4  ;;  %v3047_v56 = vrot.slane %v3045_v44, 5  ;;  %v5968_v59 = vld [vmem:[%s7142_s10 + $0x34] sm:$0xf]  ;;  %v3032_v46 = vor.u32 %v3031_v55, %v3028_v38 }
  0x3a   : > { %v3024_v31 = vsel %vm7448_vm4, %v3019_v20, %v3023_v30  ;;  %v7467_v35 = vrot.slane %v520_v29, 7  ;;  %v5969_v40 = vld [vmem:[%s7142_s10 + $0x38] sm:$0xf]  ;;  %v529_v0 = vshrl.u32 %v7458_v12, 16  ;;  %v5970_v16 = vld [vmem:[%s7142_s10 + $0x3c] sm:$0x1]  ;;  %v5745_v28 = vcombine.low %v7455_v43, %v7458_v12 }
  0x3b   : > { %6430 = vmatmul.mubr.msk.bf16.gmra.mrb[16].mxu1 %vm729_vm1, %v5744_v3  ;;  %v6011_v18 = vcombine.low %v3014_v63, %v3024_v31  ;;  %v3042_v61 = vor.u32 %v3041_v52, %v3037_v27  ;;  %v3033_v44 = vrot.slane %v3032_v46, 4  ;;  %v3050_v20 = vshrl.u32 %v5968_v59, 16  ;;  %v7480_v63 = vld [vmem:[%s7142_s10 + $0xb4] sm:$0xf]  ;;  %v5971_v42 = vld [vmem:[%s7142_s10 + $0x44] sm:$0xf] }
  0x3c   : > { %8890 = vst [vmem:[#allocation37_spill] sm:$0xff] %v7467_v35  ;;  %v3053_v38 = vshll.u32 %v5968_v59, 16  ;;  %v7477_v55 = vrot.slane %v529_v0, 7  ;;  %v3059_v30 = vshll.u32 %v5969_v40, 16  ;;  %v3063_v50 = vshrl.u32 %v5969_v40, 16  ;;  %8892 = vst [vmem:[#allocation39_spill] sm:$0xff] %v7480_v63  ;;  %6433 = vmatprep.mubr.msk.bf16.mxu1 %vm729_vm1, %v5745_v28 }
  0x3d   : > { %6583 = vmatprep.mubr.msk.bf16.mxu0 %vm729_vm1, %v6011_v18  ;;  %v3043_v29 = vrot.slane %v3042_v61, 4  ;;  %v3038_v52 = vsel %vm7448_vm4, %v3033_v44, %v3037_v27  ;;  %v3052_v31 = vrot.slane %v3050_v20, 4  ;;  %v3069_v3 = vshll.u32 %v5970_v16, 16  ;;  %v7486_v59 = vld [vmem:[%s7142_s10 + $0xb8] sm:$0xf] }
  0x3e   : > { %8891 = vst [vmem:[#allocation38_spill] sm:$0xff] %v7477_v55  ;;  %v3055_v46 = vrot.slane %v3053_v38, 5  ;;  %8893 = vst [vmem:[#allocation40_spill] sm:$0xff] %v7486_v59  ;;  %v3061_v61 = vrot.slane %v3059_v30, 5  ;;  %v3065_v0 = vrot.slane %v3063_v50, 4  ;;  %v542_v40 = vshrl.u32 %v7480_v63, 16 }
  0x3f   : > { %v3048_v18 = vsel %vm7448_vm4, %v3043_v29, %v3047_v56  ;;  %v3071_v43 = vrot.slane %v3069_v3, 5  ;;  %v5972_v44 = vld [vmem:[%s7142_s10 + $0x48] sm:$0xf]  ;;  %v551_v20 = vshrl.u32 %v7486_v59, 16  ;;  %v5973_v56 = vld [vmem:[%s7142_s10 + $0x4c] sm:$0x1]  ;;  %v5746_v30 = vcombine.low %v7480_v63, %v7486_v59 }
  0x40   : > { %v6012_v12 = vcombine.low %v3038_v52, %v3048_v18  ;;  %v3056_v55 = vor.u32 %v3055_v46, %v3052_v31  ;;  %v3066_v28 = vor.u32 %v3065_v0, %v3061_v61  ;;  %v7494_v16 = vrot.slane %v542_v40, 7  ;;  %v7506_v0 = vld [vmem:[%s7142_s10 + $0xc4] sm:$0xf]  ;;  %v5974_v27 = vld [vmem:[%s7142_s10 + $0x54] sm:$0xf] }
  0x41   : > { %v3074_v3 = vshrl.u32 %v5971_v42, 16  ;;  %v3077_v50 = vshll.u32 %v5971_v42, 16  ;;  %v7503_v31 = vrot.slane %v551_v20, 7  ;;  %v3083_v46 = vshll.u32 %v5972_v44, 16  ;;  %8896 = vst [vmem:[#allocation43_spill] sm:$0xff] %v7506_v0 }
  0x42   : > { %8894 = vst [vmem:[#allocation41_spill] sm:$0xff] %v7494_v16  ;;  %6584 = vmatmul.mubr.msk.bf16.vlgmr.msra.gmra.mrb[0].mxu0 %vm729_vm1, %v6012_v12  ;;  %v3057_v29 = vrot.slane %v3056_v55, 4  ;;  %v3067_v52 = vrot.slane %v3066_v28, 4  ;;  %v3087_v18 = vshrl.u32 %v5972_v44, 16  ;;  %v3093_v38 = vshll.u32 %v5973_v56, 16 }
  0x43   : > { %6616 = vmatpush3.bf16.msra.mxu0 %v7150_v10  ;;  %8895 = vst [vmem:[#allocation42_spill] sm:$0xff] %v7503_v31  ;;  %6434 = vmatmul.mubr.msk.bf16.gmra.mrb[20].mxu1 %vm729_vm1, %v5746_v30  ;;  %v3076_v55 = vrot.slane %v3074_v3, 4  ;;  %v3079_v40 = vrot.slane %v3077_v50, 5  ;;  %v7512_v42 = vld [vmem:[%s7142_s10 + $0xc8] sm:$0xf]  ;;  %v3085_v28 = vrot.slane %v3083_v46, 5 }
  0x44   : > { %v3062_v12 = vsel %vm7448_vm4, %v3057_v29, %v3061_v61  ;;  %8897 = vst [vmem:[#allocation44_spill] sm:$0xff] %v7512_v42  ;;  %v3072_v10 = vsel %vm7448_vm4, %v3067_v52, %v3071_v43  ;;  %v3089_v20 = vrot.slane %v3087_v18, 4  ;;  %v564_v44 = vshrl.u32 %v7506_v0, 16  ;;  %v5975_v29 = vld [vmem:[%s7142_s10 + $0x58] sm:$0xf] }
  0x45   : > { %v6013_v59 = vcombine.low %v3062_v12, %v3072_v10  ;;  %v3080_v31 = vor.u32 %v3079_v40, %v3076_v55  ;;  %v3095_v63 = vrot.slane %v3093_v38, 5  ;;  %v573_v3 = vshrl.u32 %v7512_v42, 16  ;;  %v5976_v43 = vld [vmem:[%s7142_s10 + $0x5c] sm:$0x1]  ;;  %v7537_v61 = vld [vmem:[%s7142_s10 + $0xd8] sm:$0xf] }
  0x46   : > { %v3090_v30 = vor.u32 %v3089_v20, %v3085_v28  ;;  %v7520_v56 = vrot.slane %v564_v44, 7  ;;  %v5747_v46 = vcombine.low %v7506_v0, %v7512_v42  ;;  %v3098_v38 = vshrl.u32 %v5974_v27, 16  ;;  %v7531_v20 = vld [vmem:[%s7142_s10 + $0xd4] sm:$0xf]  ;;  %8901 = vst [vmem:[#allocation48_spill] sm:$0xff] %v7537_v61 }
  0x47   : > { %6587 = vmatprep.mubr.msk.bf16.mxu0 %vm729_vm1, %v6013_v59  ;;  %v3081_v52 = vrot.slane %v3080_v31, 4  ;;  %v3101_v18 = vshll.u32 %v5974_v27, 16  ;;  %v7528_v55 = vrot.slane %v573_v3, 7  ;;  %v3107_v40 = vshll.u32 %v5975_v29, 16  ;;  %8900 = vst [vmem:[#allocation47_spill] sm:$0xff] %v7531_v20 }
  0x48   : > { %8898 = vst [vmem:[#allocation45_spill] sm:$0xff] %v7520_v56  ;;  %v3091_v12 = vrot.slane %v3090_v30, 4  ;;  %v3111_v10 = vshrl.u32 %v5975_v29, 16  ;;  %6437 = vmatprep.mubr.msk.bf16.mxu1 %vm729_vm1, %v5747_v46  ;;  %v3100_v59 = vrot.slane %v3098_v38, 4  ;;  %v3117_v50 = vshll.u32 %v5976_v43, 16 }
  0x49   : > { %8899 = vst [vmem:[#allocation46_spill] sm:$0xff] %v7528_v55  ;;  %v3086_v44 = vsel %vm7448_vm4, %v3081_v52, %v3085_v28  ;;  %v3103_v31 = vrot.slane %v3101_v18, 5  ;;  %v3109_v30 = vrot.slane %v3107_v40, 5  ;;  %v586_v29 = vshrl.u32 %v7531_v20, 16  ;;  %v5977_v42 = vld [vmem:[%s7142_s10 + $0x64] sm:$0xf] }
  0x4a   : > { %v3096_v27 = vsel %vm7448_vm4, %v3091_v12, %v3095_v63  ;;  %v3113_v3 = vrot.slane %v3111_v10, 4  ;;  %v3119_v56 = vrot.slane %v3117_v50, 5  ;;  %v5978_v52 = vld [vmem:[%s7142_s10 + $0x68] sm:$0xf]  ;;  %v595_v38 = vshrl.u32 %v7537_v61, 16 }
  0x4b   : > { %v6014_v55 = vcombine.low %v3086_v44, %v3096_v27  ;;  %v3104_v0 = vor.u32 %v3103_v31, %v3100_v59  ;;  %v7545_v43 = vrot.slane %v586_v29, 7  ;;  %v5979_v63 = vld [vmem:[%s7142_s10 + $0x6c] sm:$0x1]  ;;  %v5748_v40 = vcombine.low %v7531_v20, %v7537_v61  ;;  %v7562_v28 = vld [vmem:[%s7142_s10 + $0xe8] sm:$0xf] }
  0x4c   : > { %v3114_v46 = vor.u32 %v3113_v3, %v3109_v30  ;;  %v3122_v50 = vshrl.u32 %v5977_v42, 16  ;;  %v3125_v10 = vshll.u32 %v5977_v42, 16  ;;  %v7553_v59 = vrot.slane %v595_v38, 7  ;;  %v7556_v3 = vld [vmem:[%s7142_s10 + $0xe4] sm:$0xf]  ;;  %8905 = vst [vmem:[#allocation52_spill] sm:$0xff] %v7562_v28 }
  0x4d   : > { %8902 = vst [vmem:[#allocation49_spill] sm:$0xff] %v7545_v43  ;;  %6588 = vmatmul.mubr.msk.bf16.gmra.mrb[4].mxu0 %vm729_vm1, %v6014_v55  ;;  %v3105_v12 = vrot.slane %v3104_v0, 4  ;;  %v3131_v31 = vshll.u32 %v5978_v52, 16  ;;  %v3135_v27 = vshrl.u32 %v5978_v52, 16  ;;  %8904 = vst [vmem:[#allocation51_spill] sm:$0xff] %v7556_v3  ;;  %6438 = vmatmul.mubr.msk.bf16.gmra.mrb[24].mxu1 %vm729_vm1, %v5748_v40  ;;  %v3141_v18 = vshll.u32 %v5979_v63, 16 }
  0x4e   : > { %v3115_v44 = vrot.slane %v3114_v46, 4  ;;  %8903 = vst [vmem:[#allocation50_spill] sm:$0xff] %v7553_v59  ;;  %v3124_v0 = vrot.slane %v3122_v50, 4  ;;  %v3127_v55 = vrot.slane %v3125_v10, 5  ;;  %v608_v38 = vshrl.u32 %v7556_v3, 16 }
  0x4f   : > { %v3110_v29 = vsel %vm7448_vm4, %v3105_v12, %v3109_v30  ;;  %v3133_v52 = vrot.slane %v3131_v31, 5  ;;  %v3137_v46 = vrot.slane %v3135_v27, 4  ;;  %v5980_v61 = vld [vmem:[%s7142_s10 + $0x74] sm:$0xf]  ;;  %v3143_v40 = vrot.slane %v3141_v18, 5 }
  0x50   : > { %v3120_v42 = vsel %vm7448_vm4, %v3115_v44, %v3119_v56  ;;  %v3128_v12 = vor.u32 %v3127_v55, %v3124_v0  ;;  %v5981_v63 = vld [vmem:[%s7142_s10 + $0x78] sm:$0xf]  ;;  %v7570_v59 = vrot.slane %v608_v38, 7  ;;  %v617_v20 = vshrl.u32 %v7562_v28, 16  ;;  %v5982_v56 = vld [vmem:[%s7142_s10 + $0x7c] sm:$0x1] }
  0x51   : > { %v6015_v30 = vcombine.low %v3110_v29, %v3120_v42  ;;  %v3138_v10 = vor.u32 %v3137_v46, %v3133_v52  ;;  %v5749_v31 = vcombine.low %v7556_v3, %v7562_v28  ;;  %v3146_v18 = vshrl.u32 %v5980_v61, 16  ;;  %v7581_v46 = vld [vmem:[%s7142_s10 + $0xf4] sm:$0xf]  ;;  %v7587_v50 = vld [vmem:[%s7142_s10 + $0xf8] sm:$0xf] }
  0x52   : > { %8906 = vst [vmem:[#allocation53_spill] sm:$0xff] %v7570_v59  ;;  %v3129_v44 = vrot.slane %v3128_v12, 4  ;;  %v3149_v27 = vshll.u32 %v5980_v61, 16  ;;  %v7578_v0 = vrot.slane %v617_v20, 7  ;;  %v3155_v55 = vshll.u32 %v5981_v63, 16  ;;  %8908 = vst [vmem:[#allocation55_spill] sm:$0xff] %v7581_v46 }
  0x53   : > { %6591 = vmatprep.mubr.msk.bf16.mxu0 %vm729_vm1, %v6015_v30  ;;  %v3139_v29 = vrot.slane %v3138_v10, 4  ;;  %v3159_v42 = vshrl.u32 %v5981_v63, 16  ;;  %6441 = vmatprep.mubr.msk.bf16.mxu1 %vm729_vm1, %v5749_v31  ;;  %v3148_v30 = vrot.slane %v3146_v18, 4  ;;  %v3165_v43 = vshll.u32 %v5982_v56, 16  ;;  %8909 = vst [vmem:[#allocation56_spill] sm:$0xff] %v7587_v50 }
  0x54   : > { %8907 = vst [vmem:[#allocation54_spill] sm:$0xff] %v7578_v0  ;;  %v3134_v38 = vsel %vm7448_vm4, %v3129_v44, %v3133_v52  ;;  %v3151_v12 = vrot.slane %v3149_v27, 5  ;;  %v3157_v20 = vrot.slane %v3155_v55, 5  ;;  %v630_v63 = vshrl.u32 %v7581_v46, 16  ;;  %v5983_v28 = vld [vmem:[%s7142_s10 + $0x84] sm:$0xf] }
  0x55   : > { %v3144_v61 = vsel %vm7448_vm4, %v3139_v29, %v3143_v40  ;;  %v3161_v10 = vrot.slane %v3159_v42, 4  ;;  %v3167_v52 = vrot.slane %v3165_v43, 5  ;;  %v5984_v31 = vld [vmem:[%s7142_s10 + $0x88] sm:$0xf]  ;;  %v639_v27 = vshrl.u32 %v7587_v50, 16 }
  0x56   : > { %v6016_v0 = vcombine.low %v3134_v38, %v3144_v61  ;;  %v3152_v3 = vor.u32 %v3151_v12, %v3148_v30  ;;  %v7595_v56 = vrot.slane %v630_v63, 7  ;;  %v5985_v29 = vld [vmem:[%s7142_s10 + $0x8c] sm:$0x1]  ;;  %v5750_v42 = vcombine.low %v7581_v46, %v7587_v50  ;;  %v243_v30 = vld [vmem:[%s7142_s10] sm:$0x8] }
  0x57   : > { %v3162_v18 = vor.u32 %v3161_v10, %v3157_v20  ;;  %v3170_v43 = vshrl.u32 %v5983_v28, 16  ;;  %v3173_v38 = vshll.u32 %v5983_v28, 16  ;;  %v7604_v61 = vrot.slane %v639_v27, 7  ;;  %v5987_v50 = vld [vmem:[%s7142_s10 + $0x98] sm:$0xf] }
  0x58   : > { %8910 = vst [vmem:[#allocation57_spill] sm:$0xff] %v7595_v56  ;;  %6592 = vmatmul.mubr.msk.bf16.gmra.mrb[8].mxu0 %vm729_vm1, %v6016_v0  ;;  %v3153_v55 = vrot.slane %v3152_v3, 4  ;;  %v3179_v10 = vshll.u32 %v5984_v31, 16  ;;  %v3183_v63 = vshrl.u32 %v5984_v31, 16  ;;  %v5986_v3 = vld [vmem:[%s7142_s10 + $0x94] sm:$0xf]  ;;  %6442 = vmatmul.mubr.msk.bf16.gmra.mrb[28].mxu1 %vm729_vm1, %v5750_v42 }
  0x59   : > { %v3163_v12 = vrot.slane %v3162_v18, 4  ;;  %8911 = vst [vmem:[#allocation58_spill] sm:$0xff] %v7604_v61  ;;  %v3172_v28 = vrot.slane %v3170_v43, 4  ;;  %v3175_v44 = vrot.slane %v3173_v38, 5  ;;  %v3189_v18 = vshll.u32 %v5985_v29, 16 }
  0x5a   : > { %v3158_v0 = vsel %vm7448_vm4, %v3153_v55, %v3157_v20  ;;  %v3181_v31 = vrot.slane %v3179_v10, 5  ;;  %v3185_v61 = vrot.slane %v3183_v63, 4  ;;  %v295_v46 = vshrl.u32 %v243_v30, 16  ;;  %v5988_v56 = vld [vmem:[%s7142_s10 + $0x9c] sm:$0x1] }
  0x5b   : > { %v3168_v27 = vsel %vm7448_vm4, %v3163_v12, %v3167_v52  ;;  %v3176_v16 = vor.u32 %v3175_v44, %v3172_v28  ;;  %v3191_v35 = vrot.slane %v3189_v18, 5  ;;  %v8914_v20 = vrot.slane %v7160_v24, 4  ;;  %v246_v44 = vld [vmem:[%s7142_s10 + $0x10] sm:$0x8] }
  0x5c   : > { %v6017_v59 = vcombine.low %v3158_v0, %v3168_v27  ;;  %v3186_v29 = vor.u32 %v3185_v61, %v3181_v31  ;;  %v5718_v42 = vrot.slane %v295_v46, 11  ;;  %v3194_v43 = vshrl.u32 %v5986_v3, 16  ;;  %v5989_v61 = vld [vmem:[%s7142_s10 + $0xa4] sm:$0xf] }
  0x5d   : > { %v315_v55 = vsel %vm7608_vm7, %v8914_v20, %v7171_v36  ;;  %v3197_v38 = vshll.u32 %v5986_v3, 16  ;;  %v3177_v52 = vrot.slane %v3176_v16, 4  ;;  %v3203_v30 = vshll.u32 %v5987_v50, 16  ;;  %v5990_v16 = vld [vmem:[%s7142_s10 + $0xa8] sm:$0xf] }
  0x5e   : > { %6595 = vmatprep.mubr.msk.bf16.mxu0 %vm729_vm1, %v6017_v59  ;;  %v3207_v12 = vshrl.u32 %v5987_v50, 16  ;;  %v3213_v10 = vshll.u32 %v5988_v56, 16  ;;  %v3187_v63 = vrot.slane %v3186_v29, 4  ;;  %v306_v24 = vsel %vm7608_vm7, %v5718_v42, %v7168_v34  ;;  %v5991_v20 = vld [vmem:[%s7142_s10 + $0xac] sm:$0x1] }
  0x5f   : > { %v3196_v0 = vrot.slane %v3194_v43, 4  ;;  %v3199_v36 = vrot.slane %v3197_v38, 5  ;;  %v3182_v46 = vsel %vm7448_vm4, %v3177_v52, %v3181_v31  ;;  %v5767_v3 = vcombine.low %v306_v24, %v315_v55 }
  0x60   : > { %v3205_v28 = vrot.slane %v3203_v30, 5  ;;  %v3209_v59 = vrot.slane %v3207_v12, 4  ;;  %v3192_v50 = vsel %vm7448_vm4, %v3187_v63, %v3191_v35  ;;  %v3215_v18 = vrot.slane %v3213_v10, 5  ;;  %v249_v63 = vld [vmem:[%s7142_s10 + $0x20] sm:$0x8] }
  0x61   : > { %v3200_v56 = vor.u32 %v3199_v36, %v3196_v0  ;;  %v317_v27 = vshrl.u32 %v246_v44, 16  ;;  %v6018_v29 = vcombine.low %v3182_v46, %v3192_v50  ;;  %6447 = vmatprep.mubr.msk.bf16.mxu1 %vm729_vm1, %v5767_v3  ;;  %v8915_v42 = vrot.slane %v7180_v41, 4  ;;  %v5992_v36 = vld [vmem:[%s7142_s10 + $0xb4] sm:$0xf]  ;;  %v5993_v50 = vld [vmem:[%s7142_s10 + $0xb8] sm:$0xf] }
  0x62   : > { %v3210_v34 = vor.u32 %v3209_v59, %v3205_v28  ;;  %v3218_v55 = vshrl.u32 %v5989_v61, 16  ;;  %v3221_v35 = vshll.u32 %v5989_v61, 16  ;;  %v3227_v52 = vshll.u32 %v5990_v16, 16 }
  0x63   : > { %v337_v31 = vsel %vm7608_vm7, %v8915_v42, %v7194_v54  ;;  %v3201_v43 = vrot.slane %v3200_v56, 4  ;;  %v5719_v38 = vrot.slane %v317_v27, 11  ;;  %6596 = vmatmul.mubr.msk.bf16.gmra.mrb[12].mxu0 %vm729_vm1, %v6018_v29  ;;  %v3231_v10 = vshrl.u32 %v5990_v16, 16  ;;  %v7657_v16 = vld [vmem:[%s8808_s1 + $0xe] sm:$0x3] }
  0x64   : > { %v3211_v30 = vrot.slane %v3210_v34, 4  ;;  %v3220_v12 = vrot.slane %v3218_v55, 4  ;;  %v3237_v44 = vshll.u32 %v5991_v20, 16  ;;  %v3223_v24 = vrot.slane %v3221_v35, 5  ;;  %6983 = vmatprep.subr.msk.bf16.mxu0 %vm778_vm0, %v7657_v16 }
  0x65   : > { %v3206_v41 = vsel %vm7448_vm4, %v3201_v43, %v3205_v28  ;;  %v328_v54 = vsel %vm7608_vm7, %v5719_v38, %v7188_v49  ;;  %v3229_v0 = vrot.slane %v3227_v52, 5  ;;  %v3233_v3 = vrot.slane %v3231_v10, 4  ;;  %v5994_v43 = vld [vmem:[%s7142_s10 + $0xbc] sm:$0x1] }
  0x66   : > { %v3216_v61 = vsel %vm7448_vm4, %v3211_v30, %v3215_v18  ;;  %v5768_v46 = vcombine.low %v328_v54, %v337_v31  ;;  %v3239_v59 = vrot.slane %v3237_v44, 5  ;;  %v3224_v56 = vor.u32 %v3223_v24, %v3220_v12 }
  0x67   : > { %v6019_v28 = vcombine.low %v3206_v41, %v3216_v61  ;;  %v339_v27 = vshrl.u32 %v249_v63, 16  ;;  %v8916_v49 = vshll.u32 %v7185_v48, 16  ;;  %v3234_v18 = vor.u32 %v3233_v3, %v3229_v0 }
  0x68   : > { %6448 = vmatmul.mubr.msk.bf16.vlgmr.msra.gmra.mrb[0].mxu1 %vm729_vm1, %v5768_v46  ;;  %v351_v29 = vrot.slane %v7227_v13, 4  ;;  %v8917_v34 = vshll.u32 %v7192_v53, 16  ;;  %v3242_v31 = vshrl.u32 %v5992_v36, 16  ;;  %v3225_v48 = vrot.slane %v3224_v56, 4  ;;  %v252_v53 = vld [vmem:[%s7142_s10 + $0x30] sm:$0x8] }
  0x69   : > { %v349_v20 = vor.u32 %v8916_v49, %v7227_v13  ;;  %6599 = vmatprep.mubr.msk.bf16.mxu0 %vm729_vm1, %v6019_v28  ;;  %6480 = vmatpush3.bf16.msra.mxu1 %v7154_v11  ;;  %v5720_v55 = vrot.slane %v339_v27, 11  ;;  %v3245_v38 = vshll.u32 %v5992_v36, 16  ;;  %v3251_v35 = vshll.u32 %v5993_v50, 16  ;;  %v5995_v36 = vld [vmem:[%s7142_s10 + $0xc4] sm:$0xf] }
  0x6a   : > { %v358_v42 = vor.u32 %v8917_v34, %v7229_v14  ;;  %v3235_v52 = vrot.slane %v3234_v18, 4  ;;  %v3244_v13 = vrot.slane %v3242_v31, 4  ;;  %v3255_v12 = vshrl.u32 %v5993_v50, 16  ;;  %v5996_v28 = vld [vmem:[%s7142_s10 + $0xc8] sm:$0xf] }
  0x6b   : > { %v3230_v14 = vsel %vm7448_vm4, %v3225_v48, %v3229_v0  ;;  %v350_v11 = vsel %vm7608_vm7, %v5720_v55, %v349_v20  ;;  %v3247_v10 = vrot.slane %v3245_v38, 5  ;;  %v3253_v44 = vrot.slane %v3251_v35, 5  ;;  %v5997_v34 = vld [vmem:[%s7142_s10 + $0xcc] sm:$0x1] }
  0x6c   : > { %v359_v30 = vsel %vm7608_vm7, %v351_v29, %v358_v42  ;;  %v3240_v63 = vsel %vm7448_vm4, %v3235_v52, %v3239_v59  ;;  %v3257_v54 = vrot.slane %v3255_v12, 4  ;;  %v3261_v24 = vshll.u32 %v5994_v43, 16 }
  0x6d   : > { %v5769_v41 = vcombine.low %v350_v11, %v359_v30  ;;  %v6020_v61 = vcombine.low %v3230_v14, %v3240_v63  ;;  %v3248_v46 = vor.u32 %v3247_v10, %v3244_v13  ;;  %v361_v3 = vshrl.u32 %v252_v53, 16  ;;  %v5998_v53 = vld [vmem:[%s7142_s10 + $0xd4] sm:$0xf] }
  0x6e   : > { %v8918_v50 = vshll.u32 %v7217_v5, 16  ;;  %v3258_v56 = vor.u32 %v3257_v54, %v3253_v44  ;;  %v3263_v27 = vrot.slane %v3261_v24, 5  ;;  %v373_v59 = vrot.slane %v7267_v32, 4 }
  0x6f   : > { %6451 = vmatprep.mubr.msk.bf16.mxu1 %vm729_vm1, %v5769_v41  ;;  %v8919_v49 = vshll.u32 %v7220_v8, 16  ;;  %6600 = vmatmul.mubr.msk.bf16.gmra.mrb[16].mxu0 %vm729_vm1, %v6020_v61  ;;  %v3249_v18 = vrot.slane %v3248_v46, 4  ;;  %v5721_v29 = vrot.slane %v361_v3, 11  ;;  %v3266_v5 = vshrl.u32 %v5995_v36, 16  ;;  %v5999_v41 = vld [vmem:[%s7142_s10 + $0xd8] sm:$0xf] }
  0x70   : > { %v371_v0 = vor.u32 %v8918_v50, %v7267_v32  ;;  %v3269_v42 = vshll.u32 %v5995_v36, 16  ;;  %v3259_v31 = vrot.slane %v3258_v56, 4  ;;  %v3275_v55 = vshll.u32 %v5996_v28, 16  ;;  %v255_v32 = vld [vmem:[%s7142_s10 + $0x40] sm:$0x8] }
  0x71   : > { %v380_v20 = vor.u32 %v8919_v49, %v7269_v33  ;;  %v3279_v43 = vshrl.u32 %v5996_v28, 16  ;;  %v3254_v8 = vsel %vm7448_vm4, %v3249_v18, %v3253_v44  ;;  %v3268_v38 = vrot.slane %v3266_v5, 4  ;;  %v6000_v28 = vld [vmem:[%s7142_s10 + $0xdc] sm:$0x1] }
  0x72   : > { %v372_v33 = vsel %vm7608_vm7, %v5721_v29, %v371_v0  ;;  %v3271_v35 = vrot.slane %v3269_v42, 5  ;;  %v3264_v52 = vsel %vm7448_vm4, %v3259_v31, %v3263_v27  ;;  %v3277_v13 = vrot.slane %v3275_v55, 5  ;;  %v6001_v31 = vld [vmem:[%s7142_s10 + $0xe4] sm:$0xf] }
  0x73   : > { %v381_v48 = vsel %vm7608_vm7, %v373_v59, %v380_v20  ;;  %v3281_v12 = vrot.slane %v3279_v43, 4  ;;  %v6021_v14 = vcombine.low %v3254_v8, %v3264_v52  ;;  %v3285_v10 = vshll.u32 %v5997_v34, 16  ;;  %v6002_v8 = vld [vmem:[%s7142_s10 + $0xe8] sm:$0xf] }
  0x74   : > { %v5770_v30 = vcombine.low %v372_v33, %v381_v48  ;;  %v3272_v11 = vor.u32 %v3271_v35, %v3268_v38  ;;  %v383_v63 = vshrl.u32 %v255_v32, 16  ;;  %v8920_v54 = vshll.u32 %v7252_v25, 16 }
  0x75   : > { %v3282_v44 = vor.u32 %v3281_v12, %v3277_v13  ;;  %v395_v36 = vrot.slane %v7295_v62, 4  ;;  %v8921_v61 = vshll.u32 %v7255_v26, 16  ;;  %6603 = vmatprep.mubr.msk.bf16.mxu0 %vm729_vm1, %v6021_v14  ;;  %v3287_v50 = vrot.slane %v3285_v10, 5  ;;  %v7736_v12 = vld [vmem:[%s8808_s1 + $0x6] sm:$0x3] }
  0x76   : > { %6452 = vmatmul.mubr.msk.bf16.gmra.mrb[4].mxu1 %vm729_vm1, %v5770_v30  ;;  %v393_v24 = vor.u32 %v8920_v54, %v7295_v62  ;;  %v3273_v3 = vrot.slane %v3272_v11, 4  ;;  %v5722_v0 = vrot.slane %v383_v63, 11  ;;  %v3290_v56 = vshrl.u32 %v5998_v53, 16  ;;  %v258_v62 = vld [vmem:[%s7142_s10 + $0x50] sm:$0x8]  ;;  %6978 = vmatprep.subr.msk.bf16.mxu1 %vm778_vm0, %v7736_v12 }
  0x77   : > { %v402_v46 = vor.u32 %v8921_v61, %v7304_v21  ;;  %v3283_v27 = vrot.slane %v3282_v44, 4  ;;  %v3293_v25 = vshll.u32 %v5998_v53, 16  ;;  %v3299_v49 = vshll.u32 %v5999_v41, 16  ;;  %v6003_v10 = vld [vmem:[%s7142_s10 + $0xec] sm:$0x1] }
  0x78   : > { %v3278_v26 = vsel %vm7448_vm4, %v3273_v3, %v3277_v13  ;;  %v394_v21 = vsel %vm7608_vm7, %v5722_v0, %v393_v24  ;;  %v3292_v20 = vrot.slane %v3290_v56, 4  ;;  %v3303_v18 = vshrl.u32 %v5999_v41, 16  ;;  %v261_v41 = vld [vmem:[%s7142_s10 + $0x60] sm:$0x8]  ;;  %v6004_v0 = vld [vmem:[%s7142_s10 + $0xf4] sm:$0xf] }
  0x79   : > { %v403_v59 = vsel %vm7608_vm7, %v395_v36, %v402_v46  ;;  %v3288_v29 = vsel %vm7448_vm4, %v3283_v27, %v3287_v50  ;;  %v3295_v5 = vrot.slane %v3293_v25, 5  ;;  %v3301_v42 = vrot.slane %v3299_v49, 5  ;;  %v6005_v25 = vld [vmem:[%s7142_s10 + $0xf8] sm:$0xf] }
  0x7a   : > { %v5771_v34 = vcombine.low %v394_v21, %v403_v59  ;;  %v6022_v48 = vcombine.low %v3278_v26, %v3288_v29  ;;  %v3305_v55 = vrot.slane %v3303_v18, 4  ;;  %v3309_v43 = vshll.u32 %v6000_v28, 16 }
  0x7b   : > { %v405_v32 = vshrl.u32 %v258_v62, 16  ;;  %v3296_v33 = vor.u32 %v3295_v5, %v3292_v20  ;;  %v8922_v38 = vshll.u32 %v7284_v51, 16  ;;  %v417_v52 = vrot.slane %v7335_v1, 4 }
  0x7c   : > { %6455 = vmatprep.mubr.msk.bf16.mxu1 %vm729_vm1, %v5771_v34  ;;  %v8923_v30 = vshll.u32 %v7292_v60, 16  ;;  %6604 = vmatmul.mubr.msk.bf16.gmra.mrb[20].mxu0 %vm729_vm1, %v6022_v48  ;;  %v3306_v53 = vor.u32 %v3305_v55, %v3301_v42  ;;  %v3311_v14 = vrot.slane %v3309_v43, 5  ;;  %v3314_v51 = vshrl.u32 %v6001_v31, 16  ;;  %v6006_v48 = vld [vmem:[%s7142_s10 + $0xfc] sm:$0x1] }
  0x7d   : > { %v415_v35 = vor.u32 %v8922_v38, %v7335_v1  ;;  %v5723_v11 = vrot.slane %v405_v32, 11  ;;  %v3297_v1 = vrot.slane %v3296_v33, 4  ;;  %v3317_v60 = vshll.u32 %v6001_v31, 16  ;;  %v264_v38 = vld [vmem:[%s7142_s10 + $0x70] sm:$0x8] }
  0x7e   : > { %v424_v13 = vor.u32 %v8923_v30, %v7337_v39  ;;  %v3323_v63 = vshll.u32 %v6002_v8, 16  ;;  %v3307_v44 = vrot.slane %v3306_v53, 4  ;;  %v3316_v24 = vrot.slane %v3314_v51, 4 }
  0x7f   : > { %v416_v54 = vsel %vm7608_vm7, %v5723_v11, %v415_v35  ;;  %v3327_v36 = vshrl.u32 %v6002_v8, 16  ;;  %v3302_v61 = vsel %vm7448_vm4, %v3297_v1, %v3301_v42  ;;  %v3319_v3 = vrot.slane %v3317_v60, 5  ;;  %v6007_v11 = vld [vmem:[%s7142_s10 + $0x104] sm:$0xf] }
  0x80   : > { %v425_v39 = vsel %vm7608_vm7, %v417_v52, %v424_v13  ;;  %v3325_v50 = vrot.slane %v3323_v63, 5  ;;  %v3312_v28 = vsel %vm7448_vm4, %v3307_v44, %v3311_v14  ;;  %v3333_v27 = vshll.u32 %v6003_v10, 16  ;;  %v6008_v63 = vld [vmem:[%s7142_s10 + $0x108] sm:$0xf] }
  0x81   : > { %v5772_v46 = vcombine.low %v416_v54, %v425_v39  ;;  %v3329_v56 = vrot.slane %v3327_v36, 4  ;;  %v427_v59 = vshrl.u32 %v261_v41, 16  ;;  %v6023_v49 = vcombine.low %v3302_v61, %v3312_v28 }
  0x82   : > { %v3320_v62 = vor.u32 %v3319_v3, %v3316_v24  ;;  %v8924_v26 = vshll.u32 %v7320_v45, 16  ;;  %v439_v20 = vrot.slane %v7362_v4, 4  ;;  %v3335_v29 = vrot.slane %v3333_v27, 5  ;;  %v6009_v3 = vld [vmem:[%s7142_s10 + $0x10c] sm:$0x1] }
  0x83   : > { %6456 = vmatmul.mubr.msk.bf16.gmra.mrb[8].mxu1 %vm729_vm1, %v5772_v46  ;;  %v3330_v18 = vor.u32 %v3329_v56, %v3325_v50  ;;  %v5724_v34 = vrot.slane %v427_v59, 11  ;;  %v8925_v5 = vshll.u32 %v7323_v37, 16  ;;  %6607 = vmatprep.mubr.msk.bf16.mxu0 %vm729_vm1, %v6023_v49  ;;  %v3338_v55 = vshrl.u32 %v6004_v0, 16 }
  0x84   : > { %v437_v21 = vor.u32 %v8924_v26, %v7362_v4  ;;  %v3321_v31 = vrot.slane %v3320_v62, 4  ;;  %v3341_v43 = vshll.u32 %v6004_v0, 16  ;;  %v3347_v32 = vshll.u32 %v6005_v25, 16 }
  0x85   : > { %v446_v42 = vor.u32 %v8925_v5, %v7372_v57  ;;  %v3331_v45 = vrot.slane %v3330_v18, 4  ;;  %v3351_v33 = vshrl.u32 %v6005_v25, 16  ;;  %v3340_v35 = vrot.slane %v3338_v55, 4 }
  0x86   : > { %v438_v8 = vsel %vm7608_vm7, %v5724_v34, %v437_v21  ;;  %v3326_v37 = vsel %vm7448_vm4, %v3321_v31, %v3325_v50  ;;  %v3343_v52 = vrot.slane %v3341_v43, 5  ;;  %v3349_v13 = vrot.slane %v3347_v32, 5 }
  0x87   : > { %v447_v4 = vsel %vm7608_vm7, %v439_v20, %v446_v42  ;;  %v3336_v30 = vsel %vm7448_vm4, %v3331_v45, %v3335_v29  ;;  %v3353_v53 = vrot.slane %v3351_v33, 4  ;;  %v3357_v14 = vshll.u32 %v6006_v48, 16  ;;  %v6043_v20 = vld [vmem:[%s7142_s10 + $0x20] sm:$0x8]  ;;  %v6044_v42 = vld [vmem:[%s7142_s10 + $0x24] sm:$0xf] }
  0x88   : > { %v5773_v57 = vcombine.low %v438_v8, %v447_v4  ;;  %v6024_v10 = vcombine.low %v3326_v37, %v3336_v30  ;;  %v3344_v51 = vor.u32 %v3343_v52, %v3340_v35  ;;  %v449_v1 = vshrl.u32 %v264_v38, 16  ;;  %v6045_v8 = vld [vmem:[%s7142_s10 + $0x28] sm:$0xf] }
  0x89   : > { %v8926_v39 = vshll.u32 %v7351_v47, 16  ;;  %v3354_v41 = vor.u32 %v3353_v53, %v3349_v13  ;;  %v3359_v44 = vrot.slane %v3357_v14, 5  ;;  %v461_v54 = vrot.slane %v7401_v15, 4 }
  0x8a   : > { %6459 = vmatprep.mubr.msk.bf16.mxu1 %vm729_vm1, %v5773_v57  ;;  %v8927_v24 = vshll.u32 %v7360_v2, 16  ;;  %6608 = vmatmul.mubr.msk.bf16.gmra.mrb[24].mxu0 %vm729_vm1, %v6024_v10  ;;  %v3345_v61 = vrot.slane %v3344_v51, 4  ;;  %v5725_v46 = vrot.slane %v449_v1, 11  ;;  %v3362_v50 = vshrl.u32 %v6007_v11, 16  ;;  %v6046_v51 = vld [vmem:[%s7142_s10 + $0x30] sm:$0x8] }
  0x8b   : > { %v459_v60 = vor.u32 %v8926_v39, %v7401_v15  ;;  %v3365_v0 = vshll.u32 %v6007_v11, 16  ;;  %v3355_v47 = vrot.slane %v3354_v41, 4  ;;  %v3371_v56 = vshll.u32 %v6008_v63, 16  ;;  %v267_v15 = vld [vmem:[%s7142_s10 + $0x80] sm:$0x8] }
  0x8c   : > { %v468_v36 = vor.u32 %v8927_v24, %v7403_v9  ;;  %v3375_v27 = vshrl.u32 %v6008_v63, 16  ;;  %v3350_v2 = vsel %vm7448_vm4, %v3345_v61, %v3349_v13  ;;  %v3364_v59 = vrot.slane %v3362_v50, 4  ;;  %v6047_v1 = vld [vmem:[%s7142_s10 + $0x34] sm:$0xf] }
  0x8d   : > { %v460_v9 = vsel %vm7608_vm7, %v5725_v46, %v459_v60  ;;  %v3367_v25 = vrot.slane %v3365_v0, 5  ;;  %v3360_v49 = vsel %vm7448_vm4, %v3355_v47, %v3359_v44  ;;  %v3373_v26 = vrot.slane %v3371_v56, 5  ;;  %v8931_v46 = vld [vmem:[#allocation34_spill] sm:$0xff] }
  0x8e   : > { %v469_v28 = vsel %vm7608_vm7, %v461_v54, %v468_v36  ;;  %v3377_v21 = vrot.slane %v3375_v27, 4  ;;  %v6025_v18 = vcombine.low %v3350_v2, %v3360_v49  ;;  %v3381_v34 = vshll.u32 %v6009_v3, 16  ;;  %v6048_v54 = vld [vmem:[%s7142_s10 + $0x38] sm:$0xf] }
  0x8f   : > { %v5774_v62 = vcombine.low %v460_v9, %v469_v28  ;;  %v3368_v29 = vor.u32 %v3367_v25, %v3364_v59  ;;  %v471_v5 = vshrl.u32 %v267_v15, 16  ;;  %v8928_v48 = vshll.u32 %v7388_v6, 16  ;;  %v8932_v3 = vld [vmem:[#allocation33_spill] sm:$0xff]  ;;  %v273_v9 = vld [vmem:[%s7142_s10 + $0xa0] sm:$0x8] }
  0x90   : > { %v3378_v31 = vor.u32 %v3377_v21, %v3373_v26  ;;  %v483_v43 = vrot.slane %v7424_v17, 4  ;;  %v8929_v32 = vshll.u32 %v7391_v7, 16  ;;  %6611 = vmatprep.mubr.msk.bf16.mxu0 %vm729_vm1, %v6025_v18  ;;  %v3383_v33 = vrot.slane %v3381_v34, 5  ;;  %v6050_v34 = vld [vmem:[%s7142_s10 + $0x44] sm:$0xf] }
  0x91   : > { %6460 = vmatmul.mubr.msk.bf16.gmra.mrb[12].mxu1 %vm729_vm1, %v5774_v62  ;;  %v481_v55 = vor.u32 %v8928_v48, %v7424_v17  ;;  %v3369_v4 = vrot.slane %v3368_v29, 4  ;;  %v5726_v38 = vrot.slane %v471_v5, 11  ;;  %v3729_v37 = vshrl.u32 %v6043_v20, 16  ;;  %v270_v17 = vld [vmem:[%s7142_s10 + $0x90] sm:$0x8] }
  0x92   : > { %v490_v45 = vor.u32 %v8929_v32, %v7431_v22  ;;  %v3379_v57 = vrot.slane %v3378_v31, 4  ;;  %v3734_v35 = vshrl.u32 %v6044_v42, 16  ;;  %v3737_v52 = vshll.u32 %v6044_v42, 16  ;;  %v6049_v29 = vld [vmem:[%s7142_s10 + $0x40] sm:$0x8]  ;;  %v8934_v32 = vld [vmem:[#allocation37_spill] sm:$0xff] }
  0x93   : > { %v3374_v7 = vsel %vm7448_vm4, %v3369_v4, %v3373_v26  ;;  %v482_v22 = vsel %vm7608_vm7, %v5726_v38, %v481_v55  ;;  %v6091_v30 = vrot.slane %v3729_v37, 11  ;;  %v3743_v13 = vshrl.u32 %v6045_v8, 16  ;;  %v6051_v55 = vld [vmem:[%s7142_s10 + $0x48] sm:$0xf]  ;;  %v8937_v38 = vld [vmem:[#allocation38_spill] sm:$0xff]  ;;  %v8938_v37 = vld [vmem:[#allocation36_spill] sm:$0xff] }
  0x94   : > { %v491_v6 = vsel %vm7608_vm7, %v483_v43, %v490_v45  ;;  %v3384_v53 = vsel %vm7448_vm4, %v3379_v57, %v3383_v33  ;;  %v3736_v11 = vrot.slane %v3734_v35, 7  ;;  %v3746_v10 = vshll.u32 %v6045_v8, 16  ;;  %v8935_v45 = vld [vmem:[#allocation35_spill] sm:$0xff] }
  0x95   : > { %v5775_v14 = vcombine.low %v482_v22, %v491_v6  ;;  %v6026_v39 = vcombine.low %v3374_v7, %v3384_v53  ;;  %v3745_v60 = vrot.slane %v3743_v13, 7  ;;  %v493_v63 = vshrl.u32 %v270_v17, 16  ;;  %v276_v7 = vld [vmem:[%s7142_s10 + $0xb0] sm:$0x8] }
  0x96   : > { %v8930_v41 = vshll.u32 %v7421_v19, 16  ;;  %v3739_v24 = vor.u32 %v3737_v52, %v3736_v11  ;;  %v3741_v36 = vrot.slane %v3736_v11, 4  ;;  %v505_v61 = vrot.slane %v7441_v58, 4 }
  0x97   : > { %6463 = vmatprep.mubr.msk.bf16.mxu1 %vm729_vm1, %v5775_v14  ;;  %v8933_v50 = vshll.u32 %v8932_v3, 16  ;;  %6612 = vmatmul.mubr.msk.bf16.gmra.mrb[28].mxu0 %vm729_vm1, %v6026_v39  ;;  %v3748_v47 = vor.u32 %v3746_v10, %v3745_v60  ;;  %v5727_v28 = vrot.slane %v493_v63, 11  ;;  %v3751_v56 = vshrl.u32 %v6046_v51, 16  ;;  %v6052_v14 = vld [vmem:[%s7142_s10 + $0x50] sm:$0x8]  ;;  %v8941_v3 = vld [vmem:[#allocation39_spill] sm:$0xff] }
  0x98   : > { %v503_v44 = vor.u32 %v8930_v41, %v7441_v58  ;;  %v3756_v19 = vshrl.u32 %v6047_v1, 16  ;;  %v3740_v27 = vsel %vm7608_vm7, %v6091_v30, %v3739_v24  ;;  %v3759_v2 = vshll.u32 %v6047_v1, 16  ;;  %v6053_v39 = vld [vmem:[%s7142_s10 + $0x54] sm:$0xf]  ;;  %v6054_v60 = vld [vmem:[%s7142_s10 + $0x58] sm:$0xf] }
  0x99   : > { %v512_v0 = vor.u32 %v8933_v50, %v8931_v46  ;;  %v3765_v58 = vshrl.u32 %v6048_v54, 16  ;;  %v3749_v59 = vsel %vm7608_vm7, %v3741_v36, %v3748_v47  ;;  %v6092_v49 = vrot.slane %v3751_v56, 11  ;;  %v7864_v24 = vld [vmem:[%s8808_s1 + $0x10] sm:$0x3]  ;;  %v8940_v46 = vld [vmem:[#allocation41_spill] sm:$0xff] }
  0x9a   : > { %v504_v25 = vsel %vm7608_vm7, %v5727_v28, %v503_v44  ;;  %v3758_v62 = vrot.slane %v3756_v19, 7  ;;  %v6108_v26 = vcombine.low %v3740_v27, %v3749_v59  ;;  %v3768_v18 = vshll.u32 %v6048_v54, 16  ;;  %v8943_v19 = vld [vmem:[#allocation42_spill] sm:$0xff]  ;;  %v8944_v27 = vld [vmem:[#allocation40_spill] sm:$0xff] }
  0x9b   : > { %v513_v15 = vsel %vm7608_vm7, %v505_v61, %v512_v0  ;;  %v3767_v20 = vrot.slane %v3765_v58, 7  ;;  %v4505_v31 = vsel %vm778_vm0, %v7657_v16, 0  ;;  %v515_v48 = vshrl.u32 %v273_v9, 16 }
  0x9c   : > { %v5776_v21 = vcombine.low %v504_v25, %v513_v15  ;;  %v3761_v5 = vor.u32 %v3759_v2, %v3758_v62  ;;  %v3763_v42 = vrot.slane %v3758_v62, 4  ;;  %6617 = vmatprep.mubr.msk.bf16.mxu0 %vm729_vm1, %v6108_v26  ;;  %v8936_v8 = vshll.u32 %v8935_v45, 16  ;;  %v279_v62 = vld [vmem:[%s7142_s10 + $0xc0] sm:$0x8]  ;;  %v8947_v45 = vld [vmem:[#allocation43_spill] sm:$0xff] }
  0x9d   : > { %v3770_v43 = vor.u32 %v3768_v18, %v3767_v20  ;;  %v527_v33 = vrot.slane %v8934_v32, 4  ;;  %v8939_v57 = vshll.u32 %v8938_v37, 16  ;;  %v5728_v35 = vrot.slane %v515_v48, 11  ;;  %v6056_v48 = vld [vmem:[%s7142_s10 + $0x64] sm:$0xf] }
  0x9e   : > { %6464 = vmatmul.mubr.msk.bf16.gmra.mrb[16].mxu1 %vm729_vm1, %v5776_v21  ;;  %v525_v4 = vor.u32 %v8936_v8, %v8934_v32  ;;  %v3762_v16 = vsel %vm7608_vm7, %v6092_v49, %v3761_v5  ;;  %v3773_v52 = vshrl.u32 %v6049_v29, 16  ;;  %v3778_v17 = vshrl.u32 %v6050_v34, 16  ;;  %v6055_v29 = vld [vmem:[%s7142_s10 + $0x60] sm:$0x8]  ;;  %v8946_v32 = vld [vmem:[#allocation45_spill] sm:$0xff] }
  0x9f   : > { %v534_v6 = vor.u32 %v8939_v57, %v8937_v38  ;;  %v3771_v22 = vsel %vm7608_vm7, %v3763_v42, %v3770_v43  ;;  %v3781_v13 = vshll.u32 %v6050_v34, 16  ;;  %v3787_v53 = vshrl.u32 %v6051_v55, 16  ;;  %v6057_v38 = vld [vmem:[%s7142_s10 + $0x68] sm:$0xf] }
  0xa0   : > { %v6109_v11 = vcombine.low %v3762_v16, %v3771_v22  ;;  %v526_v10 = vsel %vm7608_vm7, %v5728_v35, %v525_v4  ;;  %v6093_v51 = vrot.slane %v3773_v52, 11  ;;  %v3780_v1 = vrot.slane %v3778_v17, 7  ;;  %v8950_v16 = vld [vmem:[#allocation44_spill] sm:$0xff] }
  0xa1   : > { %v535_v30 = vsel %vm7608_vm7, %v527_v33, %v534_v6  ;;  %v3789_v41 = vrot.slane %v3787_v53, 7  ;;  %v3790_v44 = vshll.u32 %v6051_v55, 16  ;;  %v537_v54 = vshrl.u32 %v276_v7, 16  ;;  %v8949_v6 = vld [vmem:[#allocation46_spill] sm:$0xff]  ;;  %v282_v53 = vld [vmem:[%s7142_s10 + $0xd0] sm:$0x8] }
  0xa2   : > { %v5777_v63 = vcombine.low %v526_v10, %v535_v30  ;;  %6618 = vmatmul.mubr.msk.bf16.vlgmr.msra.gmra.mrb[0].mxu0 %vm729_vm1, %v6109_v11  ;;  %v3783_v36 = vor.u32 %v3781_v13, %v3780_v1  ;;  %v3785_v61 = vrot.slane %v3780_v1, 4  ;;  %v8942_v50 = vshll.u32 %v8941_v3, 16  ;;  %v6060_v3 = vld [vmem:[%s7142_s10 + $0x78] sm:$0xf] }
  0xa3   : > { %v549_v47 = vrot.slane %v8940_v46, 4  ;;  %6650 = vmatpush3.bf16.msra.mxu0 %v4505_v31  ;;  %v3792_v28 = vor.u32 %v3790_v44, %v3789_v41  ;;  %v5729_v56 = vrot.slane %v537_v54, 11  ;;  %v8945_v15 = vshll.u32 %v8944_v27, 16  ;;  %v6058_v41 = vld [vmem:[%s7142_s10 + $0x70] sm:$0x8] }
  0xa4   : > { %v547_v0 = vor.u32 %v8942_v50, %v8940_v46  ;;  %6467 = vmatprep.mubr.msk.bf16.mxu1 %vm729_vm1, %v5777_v63  ;;  %v3795_v58 = vshrl.u32 %v6052_v14, 16  ;;  %v3784_v9 = vsel %vm7608_vm7, %v6093_v51, %v3783_v36  ;;  %v3800_v59 = vshrl.u32 %v6053_v39, 16  ;;  %6984 = vmatprep.subr.msk.bf16.mxu0 %vm778_vm0, %v7864_v24  ;;  %v6059_v46 = vld [vmem:[%s7142_s10 + $0x74] sm:$0xf] }
  0xa5   : > { %v556_v2 = vor.u32 %v8945_v15, %v8943_v19  ;;  %v3803_v25 = vshll.u32 %v6053_v39, 16  ;;  %v3809_v49 = vshrl.u32 %v6054_v60, 16  ;;  %v3793_v26 = vsel %vm7608_vm7, %v3785_v61, %v3792_v28  ;;  %v8953_v28 = vld [vmem:[#allocation47_spill] sm:$0xff] }
  0xa6   : > { %v548_v21 = vsel %vm7608_vm7, %v5729_v56, %v547_v0  ;;  %v6094_v18 = vrot.slane %v3795_v58, 11  ;;  %v6110_v34 = vcombine.low %v3784_v9, %v3793_v26  ;;  %v3802_v42 = vrot.slane %v3800_v59, 7  ;;  %v8955_v58 = vld [vmem:[#allocation50_spill] sm:$0xff]  ;;  %v8956_v9 = vld [vmem:[#allocation48_spill] sm:$0xff] }
  0xa7   : > { %v557_v20 = vsel %vm7608_vm7, %v549_v47, %v556_v2  ;;  %v3811_v31 = vrot.slane %v3809_v49, 7  ;;  %v3812_v55 = vshll.u32 %v6054_v60, 16  ;;  %v559_v43 = vshrl.u32 %v279_v62, 16  ;;  %v8952_v47 = vld [vmem:[#allocation49_spill] sm:$0xff] }
  0xa8   : > { %v5778_v5 = vcombine.low %v548_v21, %v557_v20  ;;  %v8948_v8 = vshll.u32 %v8947_v45, 16  ;;  %v571_v33 = vrot.slane %v8946_v32, 4  ;;  %6621 = vmatprep.mubr.msk.bf16.mxu0 %vm729_vm1, %v6110_v34  ;;  %v3805_v37 = vor.u32 %v3803_v25, %v3802_v42  ;;  %v6062_v45 = vld [vmem:[%s7142_s10 + $0x84] sm:$0xf] }
  0xa9   : > { %v3807_v57 = vrot.slane %v3802_v42, 4  ;;  %v8951_v35 = vshll.u32 %v8950_v16, 16  ;;  %v3817_v17 = vshrl.u32 %v6055_v29, 16  ;;  %v3814_v7 = vor.u32 %v3812_v55, %v3811_v31  ;;  %v6061_v31 = vld [vmem:[%s7142_s10 + $0x80] sm:$0x8] }
  0xaa   : > { %v569_v4 = vor.u32 %v8948_v8, %v8946_v32  ;;  %6468 = vmatmul.mubr.msk.bf16.gmra.mrb[20].mxu1 %vm729_vm1, %v5778_v5  ;;  %v5730_v22 = vrot.slane %v559_v43, 11  ;;  %v3822_v30 = vshrl.u32 %v6056_v48, 16  ;;  %v3825_v13 = vshll.u32 %v6056_v48, 16  ;;  %v6063_v16 = vld [vmem:[%s7142_s10 + $0x88] sm:$0xf] }
  0xab   : > { %v578_v52 = vor.u32 %v8951_v35, %v8949_v6  ;;  %v3806_v14 = vsel %vm7608_vm7, %v6094_v18, %v3805_v37  ;;  %v6095_v10 = vrot.slane %v3817_v17, 11  ;;  %v3831_v51 = vshrl.u32 %v6057_v38, 16  ;;  %v285_v18 = vld [vmem:[%s7142_s10 + $0xe0] sm:$0x8] }
  0xac   : > { %v3815_v1 = vsel %vm7608_vm7, %v3807_v57, %v3814_v7  ;;  %v570_v39 = vsel %vm7608_vm7, %v5730_v22, %v569_v4  ;;  %v3824_v60 = vrot.slane %v3822_v30, 7  ;;  %v3834_v63 = vshll.u32 %v6057_v38, 16  ;;  %v8959_v38 = vld [vmem:[#allocation51_spill] sm:$0xff]  ;;  %v8961_v17 = vld [vmem:[#allocation54_spill] sm:$0xff]  ;;  %v8962_v7 = vld [vmem:[#allocation52_spill] sm:$0xff] }
  0xad   : > { %v579_v11 = vsel %vm7608_vm7, %v571_v33, %v578_v52  ;;  %v6111_v44 = vcombine.low %v3806_v14, %v3815_v1  ;;  %v3833_v36 = vrot.slane %v3831_v51, 7  ;;  %v581_v61 = vshrl.u32 %v282_v53, 16  ;;  %v8958_v33 = vld [vmem:[#allocation53_spill] sm:$0xff]  ;;  %v288_v51 = vld [vmem:[%s7142_s10 + $0xf0] sm:$0x8] }
  0xae   : > { %v5779_v54 = vcombine.low %v570_v39, %v579_v11  ;;  %v3827_v50 = vor.u32 %v3825_v13, %v3824_v60  ;;  %v3829_v0 = vrot.slane %v3824_v60, 4  ;;  %v8954_v56 = vshll.u32 %v8953_v28, 16  ;;  %v6066_v28 = vld [vmem:[%s7142_s10 + $0x98] sm:$0xf] }
  0xaf   : > { %v593_v27 = vrot.slane %v8952_v47, 4  ;;  %6622 = vmatmul.mubr.msk.bf16.gmra.mrb[4].mxu0 %vm729_vm1, %v6111_v44  ;;  %v3836_v15 = vor.u32 %v3834_v63, %v3833_v36  ;;  %v5731_v2 = vrot.slane %v581_v61, 11  ;;  %v8957_v59 = vshll.u32 %v8956_v9, 16  ;;  %v6064_v61 = vld [vmem:[%s7142_s10 + $0x90] sm:$0x8] }
  0xb0   : > { %v591_v19 = vor.u32 %v8954_v56, %v8952_v47  ;;  %6471 = vmatprep.mubr.msk.bf16.mxu1 %vm729_vm1, %v5779_v54  ;;  %v3839_v49 = vshrl.u32 %v6058_v41, 16  ;;  %v3828_v62 = vsel %vm7608_vm7, %v6095_v10, %v3827_v50  ;;  %v3844_v26 = vshrl.u32 %v6059_v46, 16  ;;  %v6065_v47 = vld [vmem:[%s7142_s10 + $0x94] sm:$0xf] }
  0xb1   : > { %v600_v25 = vor.u32 %v8957_v59, %v8955_v58  ;;  %v3847_v21 = vshll.u32 %v6059_v46, 16  ;;  %v3853_v20 = vshrl.u32 %v6060_v3, 16  ;;  %v3837_v29 = vsel %vm7608_vm7, %v3829_v0, %v3836_v15  ;;  %v8965_v15 = vld [vmem:[#allocation55_spill] sm:$0xff] }
  0xb2   : > { %v592_v34 = vsel %vm7608_vm7, %v5731_v2, %v591_v19  ;;  %v6096_v42 = vrot.slane %v3839_v49, 11  ;;  %v6112_v48 = vcombine.low %v3828_v62, %v3837_v29  ;;  %v3846_v43 = vrot.slane %v3844_v26, 7  ;;  %v8967_v49 = vld [vmem:[#allocation58_spill] sm:$0xff]  ;;  %v8968_v62 = vld [vmem:[#allocation56_spill] sm:$0xff] }
  0xb3   : > { %v601_v5 = vsel %vm7608_vm7, %v593_v27, %v600_v25  ;;  %v3855_v32 = vrot.slane %v3853_v20, 7  ;;  %v3856_v8 = vshll.u32 %v6060_v3, 16  ;;  %v603_v4 = vshrl.u32 %v285_v18, 16  ;;  %v8964_v27 = vld [vmem:[#allocation57_spill] sm:$0xff]  ;;  %v1203_v18 = vld [vmem:[%s7142_s10 + $0x4] sm:$0xf] }
  0xb4   : > { %v5780_v55 = vcombine.low %v592_v34, %v601_v5  ;;  %v8960_v37 = vshll.u32 %v8959_v38, 16  ;;  %v615_v6 = vrot.slane %v8958_v33, 4  ;;  %6625 = vmatprep.mubr.msk.bf16.mxu0 %vm729_vm1, %v6112_v48  ;;  %v3849_v35 = vor.u32 %v3847_v21, %v3846_v43 }
  0xb5   : > { %v3851_v52 = vrot.slane %v3846_v43, 4  ;;  %v8963_v22 = vshll.u32 %v8962_v7, 16  ;;  %v3861_v13 = vshrl.u32 %v6061_v31, 16  ;;  %v3858_v53 = vor.u32 %v3856_v8, %v3855_v32  ;;  %v1204_v31 = vld [vmem:[%s7142_s10 + $0x8] sm:$0xf] }
  0xb6   : > { %v613_v57 = vor.u32 %v8960_v37, %v8958_v33  ;;  %6472 = vmatmul.mubr.msk.bf16.gmra.mrb[24].mxu1 %vm729_vm1, %v5780_v55  ;;  %v5732_v14 = vrot.slane %v603_v4, 11  ;;  %v3866_v11 = vshrl.u32 %v6062_v45, 16  ;;  %v3869_v10 = vshll.u32 %v6062_v45, 16  ;;  %v1205_v45 = vld [vmem:[%s7142_s10 + $0xc] sm:$0x1] }
  0xb7   : > { %v622_v30 = vor.u32 %v8963_v22, %v8961_v17  ;;  %v3850_v1 = vsel %vm7608_vm7, %v6096_v42, %v3849_v35  ;;  %v6097_v60 = vrot.slane %v3861_v13, 11  ;;  %v3875_v63 = vshrl.u32 %v6063_v16, 16  ;;  %v6067_v35 = vld [vmem:[%s7142_s10 + $0xa0] sm:$0x8] }
  0xb8   : > { %v3859_v41 = vsel %vm7608_vm7, %v3851_v52, %v3858_v53  ;;  %v614_v44 = vsel %vm7608_vm7, %v5732_v14, %v613_v57  ;;  %v3868_v54 = vrot.slane %v3866_v11, 7  ;;  %v3878_v36 = vshll.u32 %v6063_v16, 16 }
  0xb9   : > { %v623_v39 = vsel %vm7608_vm7, %v615_v6, %v622_v30  ;;  %v6113_v46 = vcombine.low %v3850_v1, %v3859_v41  ;;  %v3877_v50 = vrot.slane %v3875_v63, 7  ;;  %v625_v0 = vshrl.u32 %v288_v51, 16  ;;  %v7976_v30 = vld [vmem:[%s7142_s10 + $0xa4] sm:$0xf]  ;;  %v1206_v63 = vld [vmem:[%s7142_s10 + $0x14] sm:$0xf] }
  0xba   : > { %v5781_v3 = vcombine.low %v614_v44, %v623_v39  ;;  %v3871_v56 = vor.u32 %v3869_v10, %v3868_v54  ;;  %v3873_v19 = vrot.slane %v3868_v54, 4  ;;  %v8966_v2 = vshll.u32 %v8965_v15, 16  ;;  %v7979_v10 = vld [vmem:[%s7142_s10 + $0xa8] sm:$0xf] }
  0xbb   : > { %v637_v9 = vrot.slane %v8964_v27, 4  ;;  %6626 = vmatmul.mubr.msk.bf16.gmra.mrb[8].mxu0 %vm729_vm1, %v6113_v46  ;;  %v3880_v59 = vor.u32 %v3878_v36, %v3877_v50  ;;  %v5733_v25 = vrot.slane %v625_v0, 11  ;;  %v8969_v26 = vshll.u32 %v8968_v62, 16 }
  0xbc   : > { %v635_v58 = vor.u32 %v8966_v2, %v8964_v27  ;;  %6475 = vmatprep.mubr.msk.bf16.mxu1 %vm729_vm1, %v5781_v3  ;;  %v3883_v20 = vshrl.u32 %v6064_v61, 16  ;;  %v3872_v29 = vsel %vm7608_vm7, %v6097_v60, %v3871_v56  ;;  %v3888_v34 = vshrl.u32 %v6065_v47, 16  ;;  %v1207_v61 = vld [vmem:[%s7142_s10 + $0x18] sm:$0xf]  ;;  %v1208_v2 = vld [vmem:[%s7142_s10 + $0x1c] sm:$0x1] }
  0xbd   : > { %v644_v21 = vor.u32 %v8969_v26, %v8967_v49  ;;  %v3891_v5 = vshll.u32 %v6065_v47, 16  ;;  %v3897_v42 = vshrl.u32 %v6066_v28, 16  ;;  %v3881_v48 = vsel %vm7608_vm7, %v3873_v19, %v3880_v59  ;;  %v6070_v26 = vld [vmem:[%s7142_s10 + $0xb0] sm:$0x8] }
  0xbe   : > { %v636_v55 = vsel %vm7608_vm7, %v5733_v25, %v635_v58  ;;  %v6098_v32 = vrot.slane %v3883_v20, 11  ;;  %v6114_v8 = vcombine.low %v3872_v29, %v3881_v48  ;;  %v3890_v33 = vrot.slane %v3888_v34, 7  ;;  %v7999_v34 = vld [vmem:[%s7142_s10 + $0xb4] sm:$0xf] }
  0xbf   : > { %v645_v43 = vsel %vm7608_vm7, %v637_v9, %v644_v21  ;;  %v3899_v38 = vrot.slane %v3897_v42, 7  ;;  %v3900_v37 = vshll.u32 %v6066_v28, 16  ;;  %v1255_v57 = vshrl.u32 %v1203_v18, 16 }
  0xc0   : > { %v5782_v4 = vcombine.low %v636_v55, %v645_v43  ;;  %v1258_v6 = vshll.u32 %v1203_v18, 16  ;;  %v1264_v16 = vshll.u32 %v1204_v31, 16  ;;  %6629 = vmatprep.mubr.msk.bf16.mxu0 %vm729_vm1, %v6114_v8  ;;  %v3893_v52 = vor.u32 %v3891_v5, %v3890_v33  ;;  %v8004_v55 = vld [vmem:[%s7142_s10 + $0xb8] sm:$0xf] }
  0xc1   : > { %v3895_v17 = vrot.slane %v3890_v33, 4  ;;  %v1268_v7 = vshrl.u32 %v1204_v31, 16  ;;  %v1274_v22 = vshll.u32 %v1205_v45, 16  ;;  %v3902_v13 = vor.u32 %v3900_v37, %v3899_v38 }
  0xc2   : > { %6476 = vmatmul.mubr.msk.bf16.gmra.mrb[28].mxu1 %vm729_vm1, %v5782_v4  ;;  %v1257_v53 = vrot.slane %v1255_v57, 4  ;;  %v1260_v14 = vrot.slane %v1258_v6, 5  ;;  %v1266_v11 = vrot.slane %v1264_v16, 5  ;;  %v3894_v51 = vsel %vm7608_vm7, %v6098_v32, %v3893_v52  ;;  %v1209_v4 = vld [vmem:[%s7142_s10 + $0x24] sm:$0xf] }
  0xc3   : > { %v1270_v1 = vrot.slane %v1268_v7, 4  ;;  %v1276_v39 = vrot.slane %v1274_v22, 5  ;;  %v3905_v60 = vshrl.u32 %v6067_v35, 16  ;;  %v3903_v41 = vsel %vm7608_vm7, %v3895_v17, %v3902_v13  ;;  %v1210_v6 = vld [vmem:[%s7142_s10 + $0x28] sm:$0xf] }
  0xc4   : > { %v1261_v44 = vor.u32 %v1260_v14, %v1257_v53  ;;  %v3910_v54 = vshrl.u32 %v7976_v30, 16  ;;  %v3913_v36 = vshll.u32 %v7976_v30, 16  ;;  %v6115_v46 = vcombine.low %v3894_v51, %v3903_v41  ;;  %v1211_v13 = vld [vmem:[%s7142_s10 + $0x2c] sm:$0x1] }
  0xc5   : > { %v1271_v3 = vor.u32 %v1270_v1, %v1266_v11  ;;  %v6099_v50 = vrot.slane %v3905_v60, 11  ;;  %v3919_v0 = vshrl.u32 %v7979_v10, 16  ;;  %v3922_v56 = vshll.u32 %v7979_v10, 16 }
  0xc6   : > { %v1262_v47 = vrot.slane %v1261_v44, 4  ;;  %v3912_v28 = vrot.slane %v3910_v54, 7  ;;  %v1279_v19 = vshrl.u32 %v1206_v63, 16  ;;  %6630 = vmatmul.mubr.msk.bf16.gmra.mrb[12].mxu0 %vm729_vm1, %v6115_v46  ;;  %v1282_v58 = vshll.u32 %v1206_v63, 16 }
  0xc7   : > { %v1272_v27 = vrot.slane %v1271_v3, 4  ;;  %v3921_v15 = vrot.slane %v3919_v0, 7  ;;  %v1288_v9 = vshll.u32 %v1207_v61, 16  ;;  %v1292_v31 = vshrl.u32 %v1207_v61, 16  ;;  %v8023_v3 = vld [vmem:[%s7142_s10 + $0xc4] sm:$0xf] }
  0xc8   : > { %v1267_v59 = vsel %vm7448_vm4, %v1262_v47, %v1266_v11  ;;  %v3915_v25 = vor.u32 %v3913_v36, %v3912_v28  ;;  %v3917_v49 = vrot.slane %v3912_v28, 4  ;;  %v1281_v62 = vrot.slane %v1279_v19, 4  ;;  %v8030_v28 = vld [vmem:[%s7142_s10 + $0xc8] sm:$0xf] }
  0xc9   : > { %v1277_v21 = vsel %vm7448_vm4, %v1272_v27, %v1276_v39  ;;  %v3924_v20 = vor.u32 %v3922_v56, %v3921_v15  ;;  %v1284_v18 = vrot.slane %v1282_v58, 5  ;;  %v1290_v29 = vrot.slane %v1288_v9, 5  ;;  %v6073_v39 = vld [vmem:[%s7142_s10 + $0xc0] sm:$0x8]  ;;  %v1212_v58 = vld [vmem:[%s7142_s10 + $0x34] sm:$0xf] }
  0xca   : > { %v5800_v5 = vcombine.low %v1267_v59, %v1277_v21  ;;  %v3916_v42 = vsel %vm7608_vm7, %v6099_v50, %v3915_v25  ;;  %v1298_v48 = vshll.u32 %v1208_v2, 16  ;;  %v2432_v45 = vsel %vm778_vm0, %v7736_v12, 0 }
  0xcb   : > { %v3925_v43 = vsel %vm7608_vm7, %v3917_v49, %v3924_v20  ;;  %v1285_v32 = vor.u32 %v1284_v18, %v1281_v62  ;;  %v3927_v8 = vshrl.u32 %v6070_v26, 16  ;;  %v1294_v38 = vrot.slane %v1292_v31, 4  ;;  %v1213_v62 = vld [vmem:[%s7142_s10 + $0x38] sm:$0xf] }
  0xcc   : > { %6481 = vmatprep.mubr.msk.bf16.mxu1 %vm729_vm1, %v5800_v5  ;;  %v6116_v33 = vcombine.low %v3916_v42, %v3925_v43  ;;  %v1300_v37 = vrot.slane %v1298_v48, 5  ;;  %v3932_v57 = vshrl.u32 %v7999_v34, 16  ;;  %v3935_v52 = vshll.u32 %v7999_v34, 16  ;;  %v1214_v42 = vld [vmem:[%s7142_s10 + $0x3c] sm:$0x1] }
  0xcd   : > { %v1286_v16 = vrot.slane %v1285_v32, 4  ;;  %v6100_v35 = vrot.slane %v3927_v8, 11  ;;  %v3941_v17 = vshrl.u32 %v8004_v55, 16  ;;  %v1295_v12 = vor.u32 %v1294_v38, %v1290_v29 }
  0xce   : > { %6633 = vmatprep.mubr.msk.bf16.mxu0 %vm729_vm1, %v6116_v33  ;;  %v3934_v7 = vrot.slane %v3932_v57, 7  ;;  %v3944_v22 = vshll.u32 %v8004_v55, 16  ;;  %v1303_v53 = vshrl.u32 %v1209_v4, 16  ;;  %v1306_v51 = vshll.u32 %v1209_v4, 16  ;;  %v6076_v33 = vld [vmem:[%s7142_s10 + $0xd0] sm:$0x8] }
  0xcf   : > { %v1291_v14 = vsel %vm7448_vm4, %v1286_v16, %v1290_v29  ;;  %v3943_v11 = vrot.slane %v3941_v17, 7  ;;  %v1312_v1 = vshll.u32 %v1210_v6, 16  ;;  %v1296_v60 = vrot.slane %v1295_v12, 4  ;;  %v8051_v16 = vld [vmem:[%s7142_s10 + $0xd4] sm:$0xf] }
  0xd0   : > { %v3937_v63 = vor.u32 %v3935_v52, %v3934_v7  ;;  %v3939_v41 = vrot.slane %v3934_v7, 4  ;;  %v1305_v44 = vrot.slane %v1303_v53, 4  ;;  %v1308_v36 = vrot.slane %v1306_v51, 5 }
  0xd1   : > { %v3946_v54 = vor.u32 %v3944_v22, %v3943_v11  ;;  %v1314_v61 = vrot.slane %v1312_v1, 5  ;;  %v1316_v46 = vshrl.u32 %v1210_v6, 16  ;;  %v1301_v50 = vsel %vm7448_vm4, %v1296_v60, %v1300_v37  ;;  %v1215_v60 = vld [vmem:[%s7142_s10 + $0x44] sm:$0xf] }
  0xd2   : > { %v3938_v0 = vsel %vm7608_vm7, %v6100_v35, %v3937_v63  ;;  %v1322_v47 = vshll.u32 %v1211_v13, 16  ;;  %v3949_v56 = vshrl.u32 %v6073_v39, 16  ;;  %v5801_v19 = vcombine.low %v1291_v14, %v1301_v50  ;;  %v8058_v14 = vld [vmem:[%s7142_s10 + $0xd8] sm:$0xf] }
  0xd3   : > { %v3947_v27 = vsel %vm7608_vm7, %v3939_v41, %v3946_v54  ;;  %v1309_v15 = vor.u32 %v1308_v36, %v1305_v44  ;;  %v1318_v2 = vrot.slane %v1316_v46, 4  ;;  %v3954_v49 = vshrl.u32 %v8023_v3, 16 }
  0xd4   : > { %v6117_v9 = vcombine.low %v3938_v0, %v3947_v27  ;;  %v1324_v59 = vrot.slane %v1322_v47, 5  ;;  %v6101_v25 = vrot.slane %v3949_v56, 11  ;;  %6482 = vmatmul.mubr.msk.bf16.vlgmr.msra.gmra.mrb[0].mxu1 %vm729_vm1, %v5801_v19  ;;  %v3957_v20 = vshll.u32 %v8023_v3, 16  ;;  %v1216_v0 = vld [vmem:[%s7142_s10 + $0x48] sm:$0xf] }
  0xd5   : > { %v1310_v26 = vrot.slane %v1309_v15, 4  ;;  %v1319_v21 = vor.u32 %v1318_v2, %v1314_v61  ;;  %v3963_v18 = vshrl.u32 %v8030_v28, 16  ;;  %6514 = vmatpush3.bf16.msra.mxu1 %v2432_v45  ;;  %v3956_v29 = vrot.slane %v3954_v49, 7  ;;  %v7042_v45 = vld [vmem:[%s8808_s1 + $0x8] sm:$0x3] }
  0xd6   : > { %6634 = vmatmul.mubr.msk.bf16.gmra.mrb[16].mxu0 %vm729_vm1, %v6117_v9  ;;  %v3966_v5 = vshll.u32 %v8030_v28, 16  ;;  %v1327_v31 = vshrl.u32 %v1212_v58, 16  ;;  %v1330_v48 = vshll.u32 %v1212_v58, 16  ;;  %v1336_v4 = vshll.u32 %v1213_v62, 16  ;;  %6980 = vmatprep.subr.msk.bf16.mxu1 %vm778_vm0, %v7042_v45  ;;  %v1217_v19 = vld [vmem:[%s7142_s10 + $0x4c] sm:$0x1] }
  0xd7   : > { %v1315_v43 = vsel %vm7448_vm4, %v1310_v26, %v1314_v61  ;;  %v1320_v32 = vrot.slane %v1319_v21, 4  ;;  %v3965_v8 = vrot.slane %v3963_v18, 7  ;;  %v3959_v38 = vor.u32 %v3957_v20, %v3956_v29  ;;  %v8075_v20 = vld [vmem:[%s7142_s10 + $0xe4] sm:$0xf] }
  0xd8   : > { %v3961_v37 = vrot.slane %v3956_v29, 4  ;;  %v1329_v57 = vrot.slane %v1327_v31, 4  ;;  %v1332_v6 = vrot.slane %v1330_v48, 5  ;;  %v1338_v17 = vrot.slane %v1336_v4, 5 }
  0xd9   : > { %v1325_v35 = vsel %vm7448_vm4, %v1320_v32, %v1324_v59  ;;  %v3968_v52 = vor.u32 %v3966_v5, %v3965_v8  ;;  %v1340_v12 = vshrl.u32 %v1213_v62, 16  ;;  %v3960_v22 = vsel %vm7608_vm7, %v6101_v25, %v3959_v38  ;;  %v6079_v25 = vld [vmem:[%s7142_s10 + $0xe0] sm:$0x8]  ;;  %v8082_v8 = vld [vmem:[%s7142_s10 + $0xe8] sm:$0xf] }
  0xda   : > { %v5802_v7 = vcombine.low %v1315_v43, %v1325_v35  ;;  %v1333_v13 = vor.u32 %v1332_v6, %v1329_v57  ;;  %v1346_v53 = vshll.u32 %v1214_v42, 16  ;;  %v3971_v1 = vshrl.u32 %v6076_v33, 16 }
  0xdb   : > { %v3969_v11 = vsel %vm7608_vm7, %v3961_v37, %v3968_v52  ;;  %v1342_v51 = vrot.slane %v1340_v12, 4  ;;  %v3976_v39 = vshrl.u32 %v8051_v16, 16  ;;  %v3979_v54 = vshll.u32 %v8051_v16, 16  ;;  %v1218_v37 = vld [vmem:[%s7142_s10 + $0x54] sm:$0xf] }
  0xdc   : > { %6485 = vmatprep.mubr.msk.bf16.mxu1 %vm729_vm1, %v5802_v7  ;;  %v6118_v63 = vcombine.low %v3960_v22, %v3969_v11  ;;  %v1334_v41 = vrot.slane %v1333_v13, 4  ;;  %v1348_v44 = vrot.slane %v1346_v53, 5  ;;  %v6102_v61 = vrot.slane %v3971_v1, 11  ;;  %v1220_v53 = vld [vmem:[%s7142_s10 + $0x5c] sm:$0x1] }
  0xdd   : > { %v1343_v36 = vor.u32 %v1342_v51, %v1338_v17  ;;  %v3978_v46 = vrot.slane %v3976_v39, 7  ;;  %v3985_v50 = vshrl.u32 %v8058_v14, 16  ;;  %v3988_v56 = vshll.u32 %v8058_v14, 16 }
  0xde   : > { %6637 = vmatprep.mubr.msk.bf16.mxu0 %vm729_vm1, %v6118_v63  ;;  %v1339_v47 = vsel %vm7448_vm4, %v1334_v41, %v1338_v17  ;;  %v1351_v27 = vshrl.u32 %v1215_v60, 16  ;;  %v1354_v15 = vshll.u32 %v1215_v60, 16  ;;  %v1360_v26 = vshll.u32 %v1216_v0, 16  ;;  %v1219_v17 = vld [vmem:[%s7142_s10 + $0x58] sm:$0xf] }
  0xdf   : > { %v1344_v2 = vrot.slane %v1343_v36, 4  ;;  %v3981_v58 = vor.u32 %v3979_v54, %v3978_v46  ;;  %v3983_v9 = vrot.slane %v3978_v46, 4  ;;  %v3987_v59 = vrot.slane %v3985_v50, 7  ;;  %v6082_v60 = vld [vmem:[%s7142_s10 + $0xf0] sm:$0x8] }
  0xe0   : > { %v1353_v49 = vrot.slane %v1351_v27, 4  ;;  %v1356_v62 = vrot.slane %v1354_v15, 5  ;;  %v1364_v21 = vshrl.u32 %v1216_v0, 16  ;;  %v1370_v42 = vshll.u32 %v1217_v19, 16  ;;  %v8099_v36 = vld [vmem:[%s7142_s10 + $0xf4] sm:$0xf] }
  0xe1   : > { %v1349_v18 = vsel %vm7448_vm4, %v1344_v2, %v1348_v44  ;;  %v3982_v29 = vsel %vm7608_vm7, %v6102_v61, %v3981_v58  ;;  %v3990_v5 = vor.u32 %v3988_v56, %v3987_v59  ;;  %v1362_v43 = vrot.slane %v1360_v26, 5 }
  0xe2   : > { %v5803_v31 = vcombine.low %v1339_v47, %v1349_v18  ;;  %v1357_v48 = vor.u32 %v1356_v62, %v1353_v49  ;;  %v1366_v32 = vrot.slane %v1364_v21, 4  ;;  %v1372_v33 = vrot.slane %v1370_v42, 5  ;;  %v8104_v47 = vld [vmem:[%s7142_s10 + $0xf8] sm:$0xf]  ;;  %v1221_v21 = vld [vmem:[%s7142_s10 + $0x64] sm:$0xf] }
  0xe3   : > { %v3991_v4 = vsel %vm7608_vm7, %v3983_v9, %v3990_v5  ;;  %v3993_v45 = vshrl.u32 %v6079_v25, 16  ;;  %v3998_v38 = vshrl.u32 %v8075_v20, 16  ;;  %v4001_v52 = vshll.u32 %v8075_v20, 16 }
  0xe4   : > { %6486 = vmatmul.mubr.msk.bf16.gmra.mrb[4].mxu1 %vm729_vm1, %v5803_v31  ;;  %v6119_v57 = vcombine.low %v3982_v29, %v3991_v4  ;;  %v1358_v6 = vrot.slane %v1357_v48, 4  ;;  %v1367_v35 = vor.u32 %v1366_v32, %v1362_v43  ;;  %v4007_v22 = vshrl.u32 %v8082_v8, 16  ;;  %v1222_v31 = vld [vmem:[%s7142_s10 + $0x68] sm:$0xf] }
  0xe5   : > { %v6103_v12 = vrot.slane %v3993_v45, 11  ;;  %v4000_v7 = vrot.slane %v3998_v38, 7  ;;  %v4010_v13 = vshll.u32 %v8082_v8, 16  ;;  %v1375_v1 = vshrl.u32 %v1218_v37, 16  ;;  %v1223_v38 = vld [vmem:[%s7142_s10 + $0x6c] sm:$0x1] }
  0xe6   : > { %6638 = vmatmul.mubr.msk.bf16.gmra.mrb[20].mxu0 %vm729_vm1, %v6119_v57  ;;  %v1363_v11 = vsel %vm7448_vm4, %v1358_v6, %v1362_v43  ;;  %v1368_v51 = vrot.slane %v1367_v35, 4  ;;  %v1378_v39 = vshll.u32 %v1218_v37, 16  ;;  %v4009_v44 = vrot.slane %v4007_v22, 7 }
  0xe7   : > { %v4003_v63 = vor.u32 %v4001_v52, %v4000_v7  ;;  %v4005_v41 = vrot.slane %v4000_v7, 4  ;;  %v1384_v54 = vshll.u32 %v1219_v17, 16  ;;  %v1377_v46 = vrot.slane %v1375_v1, 4  ;;  %v8123_v7 = vld [vmem:[%s7142_s10 + $0x104] sm:$0xf] }
  0xe8   : > { %v1373_v61 = vsel %vm7448_vm4, %v1368_v51, %v1372_v33  ;;  %v1380_v50 = vrot.slane %v1378_v39, 5  ;;  %v1388_v0 = vshrl.u32 %v1219_v17, 16  ;;  %v4012_v27 = vor.u32 %v4010_v13, %v4009_v44  ;;  %v8128_v51 = vld [vmem:[%s7142_s10 + $0x108] sm:$0xf] }
  0xe9   : > { %v5804_v56 = vcombine.low %v1363_v11, %v1373_v61  ;;  %v4004_v19 = vsel %vm7608_vm7, %v6103_v12, %v4003_v63  ;;  %v1386_v15 = vrot.slane %v1384_v54, 5  ;;  %v1394_v9 = vshll.u32 %v1220_v53, 16  ;;  %v6085_v12 = vld [vmem:[%s7142_s10 + $0x100] sm:$0x8] }
  0xea   : > { %v1381_v2 = vor.u32 %v1380_v50, %v1377_v46  ;;  %v1390_v58 = vrot.slane %v1388_v0, 4  ;;  %v4015_v59 = vshrl.u32 %v6082_v60, 16  ;;  %v4013_v25 = vsel %vm7608_vm7, %v4005_v41, %v4012_v27  ;;  %v1224_v46 = vld [vmem:[%s7142_s10 + $0x74] sm:$0xf]  ;;  %v1225_v27 = vld [vmem:[%s7142_s10 + $0x78] sm:$0xf] }
  0xeb   : > { %6489 = vmatprep.mubr.msk.bf16.mxu1 %vm729_vm1, %v5804_v56  ;;  %v4020_v49 = vshrl.u32 %v8099_v36, 16  ;;  %v4023_v62 = vshll.u32 %v8099_v36, 16  ;;  %v4029_v26 = vshrl.u32 %v8104_v47, 16  ;;  %v6120_v18 = vcombine.low %v4004_v19, %v4013_v25 }
  0xec   : > { %v1382_v29 = vrot.slane %v1381_v2, 4  ;;  %v1391_v5 = vor.u32 %v1390_v58, %v1386_v15  ;;  %v1396_v42 = vrot.slane %v1394_v9, 5  ;;  %v6104_v48 = vrot.slane %v4015_v59, 11 }
  0xed   : > { %v4022_v43 = vrot.slane %v4020_v49, 7  ;;  %v4031_v32 = vrot.slane %v4029_v26, 7  ;;  %v4032_v4 = vshll.u32 %v8104_v47, 16  ;;  %6641 = vmatprep.mubr.msk.bf16.mxu0 %vm729_vm1, %v6120_v18  ;;  %v1399_v37 = vshrl.u32 %v1221_v21, 16  ;;  %v1226_v18 = vld [vmem:[%s7142_s10 + $0x7c] sm:$0x1] }
  0xee   : > { %v1387_v33 = vsel %vm7448_vm4, %v1382_v29, %v1386_v15  ;;  %v1392_v45 = vrot.slane %v1391_v5, 4  ;;  %v1402_v57 = vshll.u32 %v1221_v21, 16  ;;  %v1408_v17 = vshll.u32 %v1222_v31, 16 }
  0xef   : > { %v4025_v6 = vor.u32 %v4023_v62, %v4022_v43  ;;  %v4027_v35 = vrot.slane %v4022_v43, 4  ;;  %v4034_v52 = vor.u32 %v4032_v4, %v4031_v32  ;;  %v1401_v13 = vrot.slane %v1399_v37, 4  ;;  %v6088_v32 = vld [vmem:[%s7142_s10 + $0x110] sm:$0x8]  ;;  %v8147_v4 = vld [vmem:[%s7142_s10 + $0x114] sm:$0xf] }
  0xf0   : > { %v1397_v22 = vsel %vm7448_vm4, %v1392_v45, %v1396_v42  ;;  %v1404_v53 = vrot.slane %v1402_v57, 5  ;;  %v1412_v11 = vshrl.u32 %v1222_v31, 16  ;;  %v1410_v63 = vrot.slane %v1408_v17, 5  ;;  %v8152_v57 = vld [vmem:[%s7142_s10 + $0x118] sm:$0xf] }
  0xf1   : > { %v5805_v1 = vcombine.low %v1387_v33, %v1397_v22  ;;  %v4026_v39 = vsel %vm7608_vm7, %v6104_v48, %v4025_v6  ;;  %v4035_v60 = vsel %vm7608_vm7, %v4027_v35, %v4034_v52  ;;  %v1418_v61 = vshll.u32 %v1223_v38, 16 }
  0xf2   : > { %v6121_v41 = vcombine.low %v4026_v39, %v4035_v60  ;;  %v1405_v44 = vor.u32 %v1404_v53, %v1401_v13  ;;  %v1414_v54 = vrot.slane %v1412_v11, 4  ;;  %v4037_v50 = vshrl.u32 %v6085_v12, 16  ;;  %v1227_v11 = vld [vmem:[%s7142_s10 + $0x84] sm:$0xf] }
  0xf3   : > { %6490 = vmatmul.mubr.msk.bf16.gmra.mrb[8].mxu1 %vm729_vm1, %v5805_v1  ;;  %v4042_v0 = vshrl.u32 %v8123_v7, 16  ;;  %v4045_v56 = vshll.u32 %v8123_v7, 16  ;;  %v4051_v19 = vshrl.u32 %v8128_v51, 16  ;;  %v1420_v58 = vrot.slane %v1418_v61, 5 }
  0xf4   : > { %6642 = vmatmul.mubr.msk.bf16.gmra.mrb[24].mxu0 %vm729_vm1, %v6121_v41  ;;  %v1406_v15 = vrot.slane %v1405_v44, 4  ;;  %v1415_v2 = vor.u32 %v1414_v54, %v1410_v63  ;;  %v4054_v9 = vshll.u32 %v8128_v51, 16  ;;  %v6105_v59 = vrot.slane %v4037_v50, 11  ;;  %v1228_v41 = vld [vmem:[%s7142_s10 + $0x88] sm:$0xf] }
  0xf5   : > { %v4044_v25 = vrot.slane %v4042_v0, 7  ;;  %v4053_v49 = vrot.slane %v4051_v19, 7  ;;  %v1423_v62 = vshrl.u32 %v1224_v46, 16  ;;  %v1426_v29 = vshll.u32 %v1224_v46, 16 }
  0xf6   : > { %v1411_v26 = vsel %vm7448_vm4, %v1406_v15, %v1410_v63  ;;  %v1416_v21 = vrot.slane %v1415_v2, 4  ;;  %v1432_v5 = vshll.u32 %v1225_v27, 16  ;;  %v1436_v37 = vshrl.u32 %v1225_v27, 16  ;;  %v1229_v2 = vld [vmem:[%s7142_s10 + $0x8c] sm:$0x1] }
  0xf7   : > { %v4047_v42 = vor.u32 %v4045_v56, %v4044_v25  ;;  %v4049_v31 = vrot.slane %v4044_v25, 4  ;;  %v4056_v48 = vor.u32 %v4054_v9, %v4053_v49  ;;  %v1425_v43 = vrot.slane %v1423_v62, 4 }
  0xf8   : > { %v1421_v33 = vsel %vm7448_vm4, %v1416_v21, %v1420_v58  ;;  %v1428_v45 = vrot.slane %v1426_v29, 5  ;;  %v1434_v38 = vrot.slane %v1432_v5, 5  ;;  %v1442_v17 = vshll.u32 %v1226_v18, 16 }
  0xf9   : > { %v5806_v6 = vcombine.low %v1411_v26, %v1421_v33  ;;  %v4048_v35 = vsel %vm7608_vm7, %v6105_v59, %v4047_v42  ;;  %v4057_v52 = vsel %vm7608_vm7, %v4049_v31, %v4056_v48  ;;  %v1438_v13 = vrot.slane %v1436_v37, 4  ;;  %v1230_v26 = vld [vmem:[%s7142_s10 + $0x94] sm:$0xf]  ;;  %v1231_v42 = vld [vmem:[%s7142_s10 + $0x98] sm:$0xf] }
  0xfa   : > { %v6122_v12 = vcombine.low %v4048_v35, %v4057_v52  ;;  %v1429_v22 = vor.u32 %v1428_v45, %v1425_v43  ;;  %v4059_v53 = vshrl.u32 %v6088_v32, 16  ;;  %v1444_v1 = vrot.slane %v1442_v17, 5  ;;  %v1232_v33 = vld [vmem:[%s7142_s10 + $0x9c] sm:$0x1]  ;;  %v7044_v35 = vld [vmem:[%s7142_s10 + $0x28] sm:$0xf] }
  0xfb   : > { %6493 = vmatprep.mubr.msk.bf16.mxu1 %vm729_vm1, %v5806_v6  ;;  %v4064_v39 = vshrl.u32 %v8147_v4, 16  ;;  %v4067_v60 = vshll.u32 %v8147_v4, 16  ;;  %v4073_v63 = vshrl.u32 %v8152_v57, 16  ;;  %v1439_v54 = vor.u32 %v1438_v13, %v1434_v38  ;;  %v7043_v6 = vld [vmem:[%s7142_s10 + $0x24] sm:$0xf] }
  0xfc   : > { %6645 = vmatprep.mubr.msk.bf16.mxu0 %vm729_vm1, %v6122_v12  ;;  %v1430_v44 = vrot.slane %v1429_v22, 4  ;;  %v6106_v61 = vrot.slane %v4059_v53, 11  ;;  %v4076_v46 = vshll.u32 %v8152_v57, 16  ;;  %v1447_v56 = vshrl.u32 %v1227_v11, 16 }
  0xfd   : > { %v4066_v50 = vrot.slane %v4064_v39, 7  ;;  %v4075_v0 = vrot.slane %v4073_v63, 7  ;;  %v1450_v19 = vshll.u32 %v1227_v11, 16  ;;  %v1440_v15 = vrot.slane %v1439_v54, 4  ;;  %v7045_v54 = vld [vmem:[%s7142_s10 + $0x34] sm:$0xf] }
  0xfe   : > { %v1435_v27 = vsel %vm7448_vm4, %v1430_v44, %v1434_v38  ;;  %v1456_v58 = vshll.u32 %v1228_v41, 16  ;;  %v1460_v9 = vshrl.u32 %v1228_v41, 16  ;;  %v1449_v62 = vrot.slane %v1447_v56, 4 }
  0xff   : > { %v4069_v59 = vor.u32 %v4067_v60, %v4066_v50  ;;  %v4071_v25 = vrot.slane %v4066_v50, 4  ;;  %v4078_v49 = vor.u32 %v4076_v46, %v4075_v0  ;;  %v1445_v21 = vsel %vm7448_vm4, %v1440_v15, %v1444_v1  ;;  %v1233_v60 = vld [vmem:[%s7142_s10 + $0xa4] sm:$0xf]  ;;  %v1234_v50 = vld [vmem:[%s7142_s10 + $0xa8] sm:$0xf] }
 0x100   : > { %v1452_v18 = vrot.slane %v1450_v19, 5  ;;  %v1458_v29 = vrot.slane %v1456_v58, 5  ;;  %v1462_v5 = vrot.slane %v1460_v9, 4  ;;  %v5807_v31 = vcombine.low %v1435_v27, %v1445_v21  ;;  %v1235_v15 = vld [vmem:[%s7142_s10 + $0xac] sm:$0x1] }
 0x101   : > { %v4070_v48 = vsel %vm7608_vm7, %v6106_v61, %v4069_v59  ;;  %v4079_v43 = vsel %vm7608_vm7, %v4071_v25, %v4078_v49  ;;  %v1466_v32 = vshll.u32 %v1229_v2, 16  ;;  %v6141_v52 = vcombine.low %v7043_v6, %v7044_v35  ;;  %v7046_v61 = vld [vmem:[%s7142_s10 + $0x38] sm:$0xf]  ;;  %v1236_v21 = vld [vmem:[%s7142_s10 + $0xb4] sm:$0xf] }
 0x102   : > { %v6123_v45 = vcombine.low %v4070_v48, %v4079_v43  ;;  %v1453_v38 = vor.u32 %v1452_v18, %v1449_v62  ;;  %v1463_v37 = vor.u32 %v1462_v5, %v1458_v29  ;;  %6494 = vmatmul.mubr.msk.bf16.gmra.mrb[12].mxu1 %vm729_vm1, %v5807_v31  ;;  %v1471_v12 = vshrl.u32 %v1230_v26, 16  ;;  %v7048_v31 = vld [vmem:[%s7142_s10 + $0x48] sm:$0xf]  ;;  %v1237_v43 = vld [vmem:[%s7142_s10 + $0xb8] sm:$0xf] }
 0x103   : > { %v1468_v17 = vrot.slane %v1466_v32, 5  ;;  %v1474_v22 = vshll.u32 %v1230_v26, 16  ;;  %v1480_v13 = vshll.u32 %v1231_v42, 16  ;;  %v1484_v1 = vshrl.u32 %v1231_v42, 16  ;;  %v7047_v42 = vld [vmem:[%s7142_s10 + $0x44] sm:$0xf] }
 0x104   : > { %6646 = vmatmul.mubr.msk.bf16.gmra.mrb[28].mxu0 %vm729_vm1, %v6123_v45  ;;  %v1454_v53 = vrot.slane %v1453_v38, 4  ;;  %v1464_v11 = vrot.slane %v1463_v37, 4  ;;  %v1490_v39 = vshll.u32 %v1232_v33, 16  ;;  %v1473_v63 = vrot.slane %v1471_v12, 4  ;;  %v1238_v6 = vld [vmem:[%s7142_s10 + $0xbc] sm:$0x1] }
 0x105   : > { %6651 = vmatprep.mubr.msk.bf16.mxu0 %vm729_vm1, %v6141_v52  ;;  %v1476_v41 = vrot.slane %v1474_v22, 5  ;;  %v1482_v44 = vrot.slane %v1480_v13, 5  ;;  %v6142_v46 = vcombine.low %v7045_v54, %v7046_v61  ;;  %v1486_v19 = vrot.slane %v1484_v1, 4 }
 0x106   : > { %v1459_v0 = vsel %vm7448_vm4, %v1454_v53, %v1458_v29  ;;  %v1469_v56 = vsel %vm7448_vm4, %v1464_v11, %v1468_v17  ;;  %v1492_v27 = vrot.slane %v1490_v39, 5  ;;  %v5231_v9 = vsel %vm778_vm0, %v7864_v24, 0  ;;  %v1239_v53 = vld [vmem:[%s7142_s10 + $0xc4] sm:$0xf] }
 0x107   : > { %v5808_v2 = vcombine.low %v1459_v0, %v1469_v56  ;;  %v1477_v58 = vor.u32 %v1476_v41, %v1473_v63  ;;  %v1495_v59 = vshrl.u32 %v1233_v60, 16  ;;  %v1487_v25 = vor.u32 %v1486_v19, %v1482_v44  ;;  %v7050_v0 = vld [vmem:[%s7142_s10 + $0x58] sm:$0xf]  ;;  %v1240_v19 = vld [vmem:[%s7142_s10 + $0xc8] sm:$0xf] }
 0x108   : > { %v1498_v49 = vshll.u32 %v1233_v60, 16  ;;  %v1504_v62 = vshll.u32 %v1234_v50, 16  ;;  %v1508_v26 = vshrl.u32 %v1234_v50, 16  ;;  %v1514_v5 = vshll.u32 %v1235_v15, 16  ;;  %v7049_v50 = vld [vmem:[%s7142_s10 + $0x54] sm:$0xf] }
 0x109   : > { %6497 = vmatprep.mubr.msk.bf16.mxu1 %vm729_vm1, %v5808_v2  ;;  %v1478_v18 = vrot.slane %v1477_v58, 4  ;;  %v1497_v29 = vrot.slane %v1495_v59, 4  ;;  %v6143_v48 = vcombine.low %v7047_v42, %v7048_v31  ;;  %v1488_v32 = vrot.slane %v1487_v25, 4  ;;  %v1242_v25 = vld [vmem:[%s7142_s10 + $0xd4] sm:$0xf] }
 0x10a   : > { %v1500_v33 = vrot.slane %v1498_v49, 5  ;;  %v1506_v24 = vrot.slane %v1504_v62, 5  ;;  %v1510_v45 = vrot.slane %v1508_v26, 4  ;;  %v1516_v37 = vrot.slane %v1514_v5, 5  ;;  %v1243_v31 = vld [vmem:[%s7142_s10 + $0xd8] sm:$0xf] }
 0x10b   : > { %v1483_v38 = vsel %vm7448_vm4, %v1478_v18, %v1482_v44  ;;  %v1519_v35 = vshrl.u32 %v1236_v21, 16  ;;  %v1522_v52 = vshll.u32 %v1236_v21, 16  ;;  %v1493_v17 = vsel %vm7448_vm4, %v1488_v32, %v1492_v27  ;;  %v1241_v27 = vld [vmem:[%s7142_s10 + $0xcc] sm:$0x1]  ;;  %v7051_v32 = vld [vmem:[%s7142_s10 + $0x64] sm:$0xf] }
 0x10c   : > { %6652 = vmatmul.mubr.msk.bf16.vlgmr.msra.gmra.mrb[0].mxu0 %vm729_vm1, %v6142_v46  ;;  %v1501_v12 = vor.u32 %v1500_v33, %v1497_v29  ;;  %v1511_v22 = vor.u32 %v1510_v45, %v1506_v24  ;;  %v1528_v13 = vshll.u32 %v1237_v43, 16  ;;  %v5809_v11 = vcombine.low %v1483_v38, %v1493_v17  ;;  %v7052_v33 = vld [vmem:[%s7142_s10 + $0x68] sm:$0xf] }
 0x10d   : > { %6684 = vmatpush3.bf16.msra.mxu0 %v5231_v9  ;;  %6655 = vmatprep.mubr.msk.bf16.mxu0 %vm729_vm1, %v6143_v48  ;;  %v1521_v1 = vrot.slane %v1519_v35, 4  ;;  %v1524_v39 = vrot.slane %v1522_v52, 5  ;;  %v1532_v60 = vshrl.u32 %v1237_v43, 16  ;;  %v1538_v54 = vshll.u32 %v1238_v6, 16  ;;  %v1244_v52 = vld [vmem:[%s7142_s10 + $0xdc] sm:$0x1] }
 0x10e   : > { %v1502_v63 = vrot.slane %v1501_v12, 4  ;;  %v1512_v41 = vrot.slane %v1511_v22, 4  ;;  %v1530_v44 = vrot.slane %v1528_v13, 5  ;;  %6498 = vmatmul.mubr.msk.bf16.gmra.mrb[16].mxu1 %vm729_vm1, %v5809_v11  ;;  %v6144_v56 = vcombine.low %v7049_v50, %v7050_v0 }
 0x10f   : > { %v1525_v61 = vor.u32 %v1524_v39, %v1521_v1  ;;  %v1534_v46 = vrot.slane %v1532_v60, 4  ;;  %v1543_v15 = vshrl.u32 %v1239_v53, 16  ;;  %v1540_v9 = vrot.slane %v1538_v54, 5 }
 0x110   : > { %v1507_v2 = vsel %vm7448_vm4, %v1502_v63, %v1506_v24  ;;  %v1517_v58 = vsel %vm7448_vm4, %v1512_v41, %v1516_v37  ;;  %v1546_v59 = vshll.u32 %v1239_v53, 16  ;;  %v1552_v29 = vshll.u32 %v1240_v19, 16  ;;  %v1245_v53 = vld [vmem:[%s7142_s10 + $0xe4] sm:$0xf]  ;;  %v1246_v63 = vld [vmem:[%s7142_s10 + $0xe8] sm:$0xf] }
 0x111   : > { %v5810_v49 = vcombine.low %v1507_v2, %v1517_v58  ;;  %v1526_v62 = vrot.slane %v1525_v61, 4  ;;  %v1535_v26 = vor.u32 %v1534_v46, %v1530_v44  ;;  %v1545_v21 = vrot.slane %v1543_v15, 4  ;;  %v7053_v61 = vld [vmem:[%s7142_s10 + $0x74] sm:$0xf]  ;;  %v7054_v46 = vld [vmem:[%s7142_s10 + $0x78] sm:$0xf] }
 0x112   : > { %v1548_v18 = vrot.slane %v1546_v59, 5  ;;  %v1556_v5 = vshrl.u32 %v1240_v19, 16  ;;  %v1562_v42 = vshll.u32 %v1241_v27, 16  ;;  %v6145_v24 = vcombine.low %v7051_v32, %v7052_v33  ;;  %v1247_v58 = vld [vmem:[%s7142_s10 + $0xec] sm:$0x1] }
 0x113   : > { %6501 = vmatprep.mubr.msk.bf16.mxu1 %vm729_vm1, %v5810_v49  ;;  %v1531_v48 = vsel %vm7448_vm4, %v1526_v62, %v1530_v44  ;;  %v1536_v43 = vrot.slane %v1535_v26, 4  ;;  %v1567_v45 = vshrl.u32 %v1242_v25, 16  ;;  %v1554_v37 = vrot.slane %v1552_v29, 5  ;;  %v7055_v33 = vld [vmem:[%s7142_s10 + $0x84] sm:$0xf] }
 0x114   : > { %6656 = vmatmul.mubr.msk.bf16.gmra.mrb[4].mxu0 %vm729_vm1, %v6144_v56  ;;  %v1549_v38 = vor.u32 %v1548_v18, %v1545_v21  ;;  %v1558_v6 = vrot.slane %v1556_v5, 4  ;;  %v1564_v35 = vrot.slane %v1562_v42, 5  ;;  %v1570_v22 = vshll.u32 %v1242_v25, 16  ;;  %v1248_v21 = vld [vmem:[%s7142_s10 + $0xf4] sm:$0xf] }
 0x115   : > { %v1541_v17 = vsel %vm7448_vm4, %v1536_v43, %v1540_v9  ;;  %6659 = vmatprep.mubr.msk.bf16.mxu0 %vm729_vm1, %v6145_v24  ;;  %v1569_v12 = vrot.slane %v1567_v45, 4  ;;  %v1576_v13 = vshll.u32 %v1243_v31, 16  ;;  %v1580_v60 = vshrl.u32 %v1243_v31, 16  ;;  %v1249_v31 = vld [vmem:[%s7142_s10 + $0xf8] sm:$0xf] }
 0x116   : > { %v5811_v11 = vcombine.low %v1531_v48, %v1541_v17  ;;  %v1550_v1 = vrot.slane %v1549_v38, 4  ;;  %v1559_v39 = vor.u32 %v1558_v6, %v1554_v37  ;;  %v1572_v41 = vrot.slane %v1570_v22, 5  ;;  %v7056_v24 = vld [vmem:[%s7142_s10 + $0x88] sm:$0xf]  ;;  %v1250_v6 = vld [vmem:[%s7142_s10 + $0xfc] sm:$0x1] }
 0x117   : > { %v1578_v44 = vrot.slane %v1576_v13, 5  ;;  %v1586_v54 = vshll.u32 %v1244_v52, 16  ;;  %v6146_v50 = vcombine.low %v7053_v61, %v7054_v46  ;;  %v1582_v19 = vrot.slane %v1580_v60, 4 }
 0x118   : > { %6502 = vmatmul.mubr.msk.bf16.gmra.mrb[20].mxu1 %vm729_vm1, %v5811_v11  ;;  %v1555_v0 = vsel %vm7448_vm4, %v1550_v1, %v1554_v37  ;;  %v1560_v56 = vrot.slane %v1559_v39, 4  ;;  %v1591_v27 = vshrl.u32 %v1245_v53, 16  ;;  %v1573_v15 = vor.u32 %v1572_v41, %v1569_v12 }
 0x119   : > { %v1588_v2 = vrot.slane %v1586_v54, 5  ;;  %v1594_v9 = vshll.u32 %v1245_v53, 16  ;;  %v1600_v59 = vshll.u32 %v1246_v63, 16  ;;  %v1583_v49 = vor.u32 %v1582_v19, %v1578_v44  ;;  %v5832_v53 = vld [vmem:[%s7142_s10 + $0x10] sm:$0x8] }
 0x11a   : > { %v1565_v25 = vsel %vm7448_vm4, %v1560_v56, %v1564_v35  ;;  %v1593_v62 = vrot.slane %v1591_v27, 4  ;;  %v1604_v26 = vshrl.u32 %v1246_v63, 16  ;;  %v1574_v29 = vrot.slane %v1573_v15, 4  ;;  %v5835_v27 = vld [vmem:[%s7142_s10 + $0x20] sm:$0x8] }
 0x11b   : > { %v5812_v18 = vcombine.low %v1555_v0, %v1565_v25  ;;  %v1596_v5 = vrot.slane %v1594_v9, 5  ;;  %v1602_v42 = vrot.slane %v1600_v59, 5  ;;  %v1584_v48 = vrot.slane %v1583_v49, 4  ;;  %v7058_v0 = vld [vmem:[%s7142_s10 + $0x98] sm:$0xf]  ;;  %v8971_v59 = vld [vmem:[#allocation3_spill] sm:$0xff] }
 0x11c   : > { %6660 = vmatmul.mubr.msk.bf16.gmra.mrb[8].mxu0 %vm729_vm1, %v6146_v50  ;;  %v1606_v43 = vrot.slane %v1604_v26, 4  ;;  %v1610_v32 = vshll.u32 %v1247_v58, 16  ;;  %v6147_v45 = vcombine.low %v7055_v33, %v7056_v24  ;;  %v1579_v38 = vsel %vm7448_vm4, %v1574_v29, %v1578_v44  ;;  %v7057_v50 = vld [vmem:[%s7142_s10 + $0x94] sm:$0xf]  ;;  %v8970_v9 = vld [vmem:[#allocation5_spill] sm:$0xff] }
 0x11d   : > { %6505 = vmatprep.mubr.msk.bf16.mxu1 %vm729_vm1, %v5812_v18  ;;  %v1597_v37 = vor.u32 %v1596_v5, %v1593_v62  ;;  %v1615_v35 = vshrl.u32 %v1248_v21, 16  ;;  %v1618_v52 = vshll.u32 %v1248_v21, 16  ;;  %v1589_v17 = vsel %vm7448_vm4, %v1584_v48, %v1588_v2  ;;  %v5838_v62 = vld [vmem:[%s7142_s10 + $0x30] sm:$0x8]  ;;  %v8974_v48 = vld [vmem:[#allocation6_spill] sm:$0xff] }
 0x11e   : > { %v1607_v12 = vor.u32 %v1606_v43, %v1602_v42  ;;  %v1612_v22 = vrot.slane %v1610_v32, 5  ;;  %6663 = vmatprep.mubr.msk.bf16.mxu0 %vm729_vm1, %v6147_v45  ;;  %v1624_v13 = vshll.u32 %v1249_v31, 16  ;;  %v5813_v11 = vcombine.low %v1579_v38, %v1589_v17  ;;  %v5841_v24 = vld [vmem:[%s7142_s10 + $0x40] sm:$0x8] }
 0x11f   : > { %v1598_v1 = vrot.slane %v1597_v37, 4  ;;  %v1617_v39 = vrot.slane %v1615_v35, 4  ;;  %v1620_v60 = vrot.slane %v1618_v52, 5  ;;  %v1628_v44 = vshrl.u32 %v1249_v31, 16  ;;  %v8973_v31 = vld [vmem:[#allocation10_spill] sm:$0xff]  ;;  %v8977_v37 = vld [vmem:[#allocation13_spill] sm:$0xff] }
 0x120   : > { %v1608_v63 = vrot.slane %v1607_v12, 4  ;;  %v1626_v41 = vrot.slane %v1624_v13, 5  ;;  %v1634_v54 = vshll.u32 %v1250_v6, 16  ;;  %6506 = vmatmul.mubr.msk.bf16.gmra.mrb[24].mxu1 %vm729_vm1, %v5813_v11  ;;  %v6148_v56 = vcombine.low %v7057_v50, %v7058_v0  ;;  %v8978_v6 = vld [vmem:[#allocation7_spill] sm:$0xff]  ;;  %v8980_v13 = vld [vmem:[#allocation14_spill] sm:$0xff] }
 0x121   : > { %v1603_v61 = vsel %vm7448_vm4, %v1598_v1, %v1602_v42  ;;  %v1621_v46 = vor.u32 %v1620_v60, %v1617_v39  ;;  %v1982_v19 = vshrl.u32 %v5832_v53, 16  ;;  %v1630_v2 = vrot.slane %v1628_v44, 4  ;;  %v8981_v53 = vld [vmem:[#allocation8_spill] sm:$0xff] }
 0x122   : > { %v1613_v15 = vsel %vm7448_vm4, %v1608_v63, %v1612_v22  ;;  %v1636_v58 = vrot.slane %v1634_v54, 5  ;;  %v8972_v25 = vrot.slane %v8971_v59, 4  ;;  %v6149_v29 = vcombine.low %v7976_v30, %v7979_v10  ;;  %v8976_v30 = vld [vmem:[#allocation4_spill] sm:$0xff]  ;;  %v8984_v54 = vld [vmem:[#allocation17_spill] sm:$0xff] }
 0x123   : > { %v5814_v26 = vcombine.low %v1603_v61, %v1613_v15  ;;  %v1622_v21 = vrot.slane %v1621_v46, 4  ;;  %v5880_v18 = vrot.slane %v1982_v19, 11  ;;  %v1631_v5 = vor.u32 %v1630_v2, %v1626_v41  ;;  %v8985_v61 = vld [vmem:[#allocation11_spill] sm:$0xff]  ;;  %v5847_v15 = vld [vmem:[%s7142_s10 + $0x60] sm:$0x8]  ;;  %v8988_v59 = vld [vmem:[#allocation12_spill] sm:$0xff] }
 0x124   : > { %v2002_v49 = vsel %vm7608_vm7, %v8972_v25, %v8970_v9  ;;  %6664 = vmatmul.mubr.msk.bf16.gmra.mrb[12].mxu0 %vm729_vm1, %v6148_v56  ;;  %v2004_v42 = vshrl.u32 %v5835_v27, 16  ;;  %v8975_v43 = vrot.slane %v8974_v48, 4  ;;  %v6150_v33 = vcombine.low %v7999_v34, %v8004_v55  ;;  %v5844_v56 = vld [vmem:[%s7142_s10 + $0x50] sm:$0x8]  ;;  %v8987_v9 = vld [vmem:[#allocation18_spill] sm:$0xff] }
 0x125   : > { %6509 = vmatprep.mubr.msk.bf16.mxu1 %vm729_vm1, %v5814_v26  ;;  %v1627_v45 = vsel %vm7448_vm4, %v1622_v21, %v1626_v41  ;;  %v1993_v10 = vsel %vm7608_vm7, %v5880_v18, %v8976_v30  ;;  %6667 = vmatprep.mubr.msk.bf16.mxu0 %vm729_vm1, %v6149_v29  ;;  %v2026_v38 = vshrl.u32 %v5838_v62, 16  ;;  %v8979_v35 = vshll.u32 %v8978_v6, 16  ;;  %v8983_v41 = vld [vmem:[#allocation9_spill] sm:$0xff]  ;;  %v8991_v18 = vld [vmem:[#allocation15_spill] sm:$0xff]  ;;  %v8994_v48 = vld [vmem:[#allocation16_spill] sm:$0xff] }
 0x126   : > { %v2024_v32 = vsel %vm7608_vm7, %v8975_v43, %v8973_v31  ;;  %v1632_v17 = vrot.slane %v1631_v5, 4  ;;  %v5897_v34 = vcombine.low %v1993_v10, %v2002_v49  ;;  %v5881_v55 = vrot.slane %v2004_v42, 11  ;;  %v8990_v21 = vld [vmem:[#allocation21_spill] sm:$0xff]  ;;  %v8993_v31 = vld [vmem:[#allocation22_spill] sm:$0xff]  ;;  %v5850_v30 = vld [vmem:[%s7142_s10 + $0x70] sm:$0x8] }
 0x127   : > { %v2036_v52 = vor.u32 %v8979_v35, %v8977_v37  ;;  %v2038_v12 = vrot.slane %v8977_v37, 4  ;;  %v5882_v22 = vrot.slane %v2026_v38, 11  ;;  %v8982_v11 = vshll.u32 %v8981_v53, 16  ;;  %v8996_v37 = vld [vmem:[#allocation25_spill] sm:$0xff]  ;;  %v8997_v6 = vld [vmem:[#allocation19_spill] sm:$0xff] }
 0x128   : > { %v6151_v39 = vcombine.low %v8023_v3, %v8030_v28  ;;  %v2048_v60 = vshrl.u32 %v5841_v24, 16  ;;  %v1637_v63 = vsel %vm7448_vm4, %v1632_v17, %v1636_v58  ;;  %v2015_v44 = vsel %vm7608_vm7, %v5881_v55, %v8983_v41  ;;  %v8999_v55 = vld [vmem:[#allocation26_spill] sm:$0xff] }
 0x129   : > { %v2045_v1 = vor.u32 %v8982_v11, %v8980_v13  ;;  %v8986_v46 = vshll.u32 %v8985_v61, 16  ;;  %v2060_v0 = vrot.slane %v8984_v54, 4  ;;  %v5815_v19 = vcombine.low %v1627_v45, %v1637_v63  ;;  %v5853_v13 = vld [vmem:[%s7142_s10 + $0x80] sm:$0x8] }
 0x12a   : > { %v5898_v27 = vcombine.low %v2015_v44, %v2024_v32  ;;  %v2037_v3 = vsel %vm7608_vm7, %v5882_v22, %v2036_v52  ;;  %v5883_v58 = vrot.slane %v2048_v60, 11  ;;  %v8989_v25 = vshll.u32 %v8988_v59, 16 }
 0x12b   : > { %v2058_v50 = vor.u32 %v8986_v46, %v8984_v54  ;;  %v2046_v28 = vsel %vm7608_vm7, %v2038_v12, %v2045_v1  ;;  %v6152_v62 = vcombine.low %v8051_v16, %v8058_v14  ;;  %6510 = vmatmul.mubr.msk.bf16.gmra.mrb[28].mxu1 %vm729_vm1, %v5815_v19  ;;  %v2070_v26 = vshrl.u32 %v5844_v56, 16  ;;  %v9002_v1 = vld [vmem:[#allocation29_spill] sm:$0xff]  ;;  %v9005_v46 = vld [vmem:[#allocation30_spill] sm:$0xff]  ;;  %v5856_v19 = vld [vmem:[%s7142_s10 + $0x90] sm:$0x8] }
 0x12c   : > { %v5899_v2 = vcombine.low %v2037_v3, %v2046_v28  ;;  %v2067_v49 = vor.u32 %v8989_v25, %v8987_v9  ;;  %v8992_v29 = vshll.u32 %v8991_v18, 16  ;;  %v2082_v42 = vrot.slane %v8990_v21, 4  ;;  %6515 = vmatprep.mubr.msk.bf16.mxu1 %vm729_vm1, %v5897_v34  ;;  %6668 = vmatmul.mubr.msk.bf16.gmra.mrb[16].mxu0 %vm729_vm1, %v6150_v33  ;;  %v8365_v9 = vld [vmem:[%s7142_s10 + $0x94] sm:$0xf]  ;;  %v9008_v25 = vld [vmem:[#allocation31_spill] sm:$0xff] }
 0x12d   : > { %v8995_v43 = vshll.u32 %v8994_v48, 16  ;;  %v2059_v16 = vsel %vm7608_vm7, %v5883_v58, %v2058_v50  ;;  %v6153_v24 = vcombine.low %v8075_v20, %v8082_v8  ;;  %v2092_v45 = vshrl.u32 %v5847_v15, 16  ;;  %6671 = vmatprep.mubr.msk.bf16.mxu0 %vm729_vm1, %v6151_v39  ;;  %v9000_v20 = vld [vmem:[#allocation20_spill] sm:$0xff]  ;;  %v9003_v39 = vld [vmem:[#allocation23_spill] sm:$0xff]  ;;  %v8377_v48 = vld [vmem:[%s7142_s10 + $0x98] sm:$0xf] }
 0x12e   : > { %v2080_v5 = vor.u32 %v8992_v29, %v8990_v21  ;;  %v2068_v14 = vsel %vm7608_vm7, %v2060_v0, %v2067_v49  ;;  %v5884_v38 = vrot.slane %v2070_v26, 11  ;;  %v8998_v35 = vshll.u32 %v8997_v6, 16  ;;  %v9006_v50 = vld [vmem:[#allocation24_spill] sm:$0xff]  ;;  %v9009_v49 = vld [vmem:[#allocation27_spill] sm:$0xff] }
 0x12f   : > { %v2089_v32 = vor.u32 %v8995_v43, %v8993_v31  ;;  %v8330_v10 = vcombine.low %v2059_v16, %v2068_v14  ;;  %v5885_v17 = vrot.slane %v2092_v45, 11  ;;  %v2104_v34 = vrot.slane %v8996_v37, 4  ;;  %v9011_v29 = vld [vmem:[#allocation32_spill] sm:$0xff]  ;;  %v6173_v45 = vld [vmem:[%s7142_s10 + $0x24] sm:$0xf] }
 0x130   : > { %v2102_v52 = vor.u32 %v8998_v35, %v8996_v37  ;;  %v9001_v8 = vshll.u32 %v9000_v20, 16  ;;  %v6154_v22 = vcombine.low %v8099_v36, %v8104_v47  ;;  %v2081_v53 = vsel %vm7608_vm7, %v5884_v38, %v2080_v5  ;;  %v9012_v5 = vld [vmem:[#allocation28_spill] sm:$0xff]  ;;  %v6174_v6 = vld [vmem:[%s7142_s10 + $0x28] sm:$0xf]  ;;  %v6175_v35 = vld [vmem:[%s7142_s10 + $0x2c] sm:$0x1] }
 0x131   : > { %v2090_v33 = vsel %vm7608_vm7, %v2082_v42, %v2089_v32  ;;  %v2114_v11 = vshrl.u32 %v5850_v30, 16  ;;  %v9004_v60 = vshll.u32 %v9003_v39, 16  ;;  %v2126_v41 = vrot.slane %v9002_v1, 4  ;;  %v9014_v30 = vld [vmem:[#allocation2_spill] sm:$0xff]  ;;  %v6178_v36 = vld [vmem:[%s7142_s10 + $0x3c] sm:$0x1] }
 0x132   : > { %v2111_v12 = vor.u32 %v9001_v8, %v8999_v55  ;;  %v8350_v44 = vcombine.low %v2081_v53, %v2090_v33  ;;  %v2103_v54 = vsel %vm7608_vm7, %v5885_v17, %v2102_v52  ;;  %v9007_v0 = vshll.u32 %v9006_v50, 16  ;;  %v5859_v39 = vld [vmem:[%s7142_s10 + $0xa0] sm:$0x8] }
 0x133   : > { %v2124_v63 = vor.u32 %v9004_v60, %v9002_v1  ;;  %v5886_v28 = vrot.slane %v2114_v11, 11  ;;  %v6155_v15 = vcombine.low %v8123_v7, %v8128_v51  ;;  %v2136_v58 = vshrl.u32 %v5853_v13, 16  ;;  %6516 = vmatmul.mubr.msk.bf16.vlgmr.msra.gmra.mrb[0].mxu1 %vm729_vm1, %v5898_v27  ;;  %v8404_v13 = vld [vmem:[%s7142_s10 + $0xa4] sm:$0xf]  ;;  %v8441_v7 = vld [vmem:[%s7142_s10 + $0xb4] sm:$0xf] }
 0x134   : > { %v2112_v61 = vsel %vm7608_vm7, %v2104_v34, %v2111_v12  ;;  %v2133_v56 = vor.u32 %v9007_v0, %v9005_v46  ;;  %v9010_v26 = vshll.u32 %v9009_v49, 16  ;;  %v2148_v18 = vrot.slane %v9008_v25, 4  ;;  %6718 = vmatpush3.bf16.msra.mxu1 %v9014_v30  ;;  %6519 = vmatprep.mubr.msk.bf16.mxu1 %vm729_vm1, %v5899_v2 }
 0x135   : > { %v8360_v3 = vcombine.low %v2103_v54, %v2112_v61  ;;  %v9013_v42 = vshll.u32 %v9012_v5, 16  ;;  %v2125_v43 = vsel %vm7608_vm7, %v5886_v28, %v2124_v63  ;;  %v5887_v32 = vrot.slane %v2136_v58, 11  ;;  %6672 = vmatmul.mubr.msk.bf16.gmra.mrb[20].mxu0 %vm729_vm1, %v6152_v62  ;;  %v8408_v61 = vld [vmem:[%s7142_s10 + $0xa8] sm:$0xf] }
 0x136   : > { %v2134_v59 = vsel %vm7608_vm7, %v2126_v41, %v2133_v56  ;;  %v2146_v21 = vor.u32 %v9010_v26, %v9008_v25  ;;  %v6156_v16 = vcombine.low %v8147_v4, %v8152_v57  ;;  %v2158_v14 = vshrl.u32 %v5856_v19, 16  ;;  %6675 = vmatprep.mubr.msk.bf16.mxu0 %vm729_vm1, %v6153_v24 }
 0x137   : > { %v2155_v31 = vor.u32 %v9013_v42, %v9011_v29  ;;  %v8387_v38 = vcombine.low %v2125_v43, %v2134_v59  ;;  %v2163_v27 = vshrl.u32 %v8365_v9, 16  ;;  %v2166_v37 = vshll.u32 %v8365_v9, 16  ;;  %v6176_v59 = vld [vmem:[%s7142_s10 + $0x34] sm:$0xf] }
 0x138   : > { %v2147_v52 = vsel %vm7608_vm7, %v5887_v32, %v2146_v21  ;;  %v5888_v17 = vrot.slane %v2158_v14, 11  ;;  %v2172_v2 = vshrl.u32 %v8377_v48, 16  ;;  %v2175_v34 = vshll.u32 %v8377_v48, 16 }
 0x139   : > { %v2156_v33 = vsel %vm7608_vm7, %v2148_v18, %v2155_v31  ;;  %v2165_v20 = vrot.slane %v2163_v27, 7  ;;  %v4749_v8 = vshrl.u32 %v6173_v45, 16  ;;  %v4752_v12 = vshll.u32 %v6173_v45, 16  ;;  %v6177_v31 = vld [vmem:[%s7142_s10 + $0x38] sm:$0xf] }
 0x13a   : > { %v8401_v55 = vcombine.low %v2147_v52, %v2156_v33  ;;  %v2174_v53 = vrot.slane %v2172_v2, 7  ;;  %v4758_v62 = vshll.u32 %v6174_v6, 16  ;;  %v4762_v11 = vshrl.u32 %v6174_v6, 16 }
 0x13b   : > { %v4768_v1 = vshll.u32 %v6175_v35, 16  ;;  %v2168_v60 = vor.u32 %v2166_v37, %v2165_v20  ;;  %v2170_v63 = vrot.slane %v2165_v20, 4  ;;  %v4751_v41 = vrot.slane %v4749_v8, 4  ;;  %6520 = vmatmul.mubr.msk.bf16.gmra.mrb[4].mxu1 %vm729_vm1, %v8330_v10 }
 0x13c   : > { %v4754_v54 = vrot.slane %v4752_v12, 5  ;;  %v2177_v24 = vor.u32 %v2175_v34, %v2174_v53  ;;  %v4760_v46 = vrot.slane %v4758_v62, 5  ;;  %v4764_v50 = vrot.slane %v4762_v11, 4  ;;  %6523 = vmatprep.mubr.msk.bf16.mxu1 %vm729_vm1, %v8350_v44 }
 0x13d   : > { %v4770_v0 = vrot.slane %v4768_v1, 5  ;;  %v2169_v56 = vsel %vm7608_vm7, %v5888_v17, %v2168_v60  ;;  %v2180_v28 = vshrl.u32 %v5859_v39, 16  ;;  %v2185_v58 = vshrl.u32 %v8404_v13, 16  ;;  %6676 = vmatmul.mubr.msk.bf16.gmra.mrb[24].mxu0 %vm729_vm1, %v6154_v22  ;;  %v5862_v22 = vld [vmem:[%s7142_s10 + $0xb0] sm:$0x8] }
 0x13e   : > { %v4755_v19 = vor.u32 %v4754_v54, %v4751_v41  ;;  %v2178_v25 = vsel %vm7608_vm7, %v2170_v63, %v2177_v24  ;;  %v4765_v49 = vor.u32 %v4764_v50, %v4760_v46  ;;  %v2188_v26 = vshll.u32 %v8404_v13, 16  ;;  %6679 = vmatprep.mubr.msk.bf16.mxu0 %vm729_vm1, %v6155_v15  ;;  %v8446_v17 = vld [vmem:[%s7142_s10 + $0xb8] sm:$0xf]  ;;  %v6179_v1 = vld [vmem:[%s7142_s10 + $0x44] sm:$0xf] }
 0x13f   : > { %v2194_v21 = vshrl.u32 %v8408_v61, 16  ;;  %v8422_v18 = vcombine.low %v2169_v56, %v2178_v25  ;;  %v5889_v5 = vrot.slane %v2180_v28, 11  ;;  %v2187_v42 = vrot.slane %v2185_v58, 7  ;;  %v6180_v39 = vld [vmem:[%s7142_s10 + $0x48] sm:$0xf] }
 0x140   : > { %v4756_v29 = vrot.slane %v4755_v19, 4  ;;  %v4766_v10 = vrot.slane %v4765_v49, 4  ;;  %v2197_v32 = vshll.u32 %v8408_v61, 16  ;;  %v4773_v14 = vshrl.u32 %v6176_v59, 16  ;;  %v6181_v56 = vld [vmem:[%s7142_s10 + $0x4c] sm:$0x1] }
 0x141   : > { %v2196_v43 = vrot.slane %v2194_v21, 7  ;;  %v2190_v45 = vor.u32 %v2188_v26, %v2187_v42  ;;  %v2192_v30 = vrot.slane %v2187_v42, 4  ;;  %v4776_v47 = vshll.u32 %v6176_v59, 16  ;;  %v5865_v26 = vld [vmem:[%s7142_s10 + $0xc0] sm:$0x8] }
 0x142   : > { %v4761_v44 = vsel %vm7448_vm4, %v4756_v29, %v4760_v46  ;;  %v4771_v33 = vsel %vm7448_vm4, %v4766_v10, %v4770_v0  ;;  %v4775_v37 = vrot.slane %v4773_v14, 4  ;;  %v4782_v6 = vshll.u32 %v6177_v31, 16  ;;  %v8472_v29 = vld [vmem:[%s7142_s10 + $0xc4] sm:$0xf] }
 0x143   : > { %v2199_v27 = vor.u32 %v2197_v32, %v2196_v43  ;;  %v6222_v51 = vcombine.low %v4761_v44, %v4771_v33  ;;  %v2191_v15 = vsel %vm7608_vm7, %v5889_v5, %v2190_v45  ;;  %v4778_v35 = vrot.slane %v4776_v47, 5  ;;  %6524 = vmatmul.mubr.msk.bf16.gmra.mrb[8].mxu1 %vm729_vm1, %v8360_v3  ;;  %v8479_v43 = vld [vmem:[%s7142_s10 + $0xc8] sm:$0xf] }
 0x144   : > { %v4786_v52 = vshrl.u32 %v6177_v31, 16  ;;  %v4784_v34 = vrot.slane %v4782_v6, 5  ;;  %v4792_v20 = vshll.u32 %v6178_v36, 16  ;;  %v2202_v8 = vshrl.u32 %v5862_v22, 16  ;;  %6527 = vmatprep.mubr.msk.bf16.mxu1 %vm729_vm1, %v8387_v38 }
 0x145   : > { %v2200_v2 = vsel %vm7608_vm7, %v2192_v30, %v2199_v27  ;;  %v4779_v53 = vor.u32 %v4778_v35, %v4775_v37  ;;  %v2207_v11 = vshrl.u32 %v8441_v7, 16  ;;  %v2210_v41 = vshll.u32 %v8441_v7, 16  ;;  %6680 = vmatmul.mubr.msk.bf16.gmra.mrb[28].mxu0 %vm729_vm1, %v6156_v16  ;;  %v6182_v30 = vld [vmem:[%s7142_s10 + $0x54] sm:$0xf]  ;;  %v6183_v27 = vld [vmem:[%s7142_s10 + $0x58] sm:$0xf] }
 0x146   : > { %v8450_v12 = vcombine.low %v2191_v15, %v2200_v2  ;;  %v4788_v62 = vrot.slane %v4786_v52, 4  ;;  %v4794_v60 = vrot.slane %v4792_v20, 5  ;;  %v5890_v63 = vrot.slane %v2202_v8, 11  ;;  %6685 = vmatprep.mubr.msk.bf16.mxu0 %vm729_vm1, %v6222_v51 }
 0x147   : > { %v2216_v54 = vshrl.u32 %v8446_v17, 16  ;;  %v4780_v24 = vrot.slane %v4779_v53, 4  ;;  %v2209_v50 = vrot.slane %v2207_v11, 7  ;;  %v2219_v0 = vshll.u32 %v8446_v17, 16  ;;  %v5868_v11 = vld [vmem:[%s7142_s10 + $0xd0] sm:$0x8] }
 0x148   : > { %v4789_v46 = vor.u32 %v4788_v62, %v4784_v34  ;;  %v4797_v19 = vshrl.u32 %v6179_v1, 16  ;;  %v4800_v28 = vshll.u32 %v6179_v1, 16  ;;  %v4806_v58 = vshll.u32 %v6180_v39, 16 }
 0x149   : > { %v2218_v3 = vrot.slane %v2216_v54, 7  ;;  %v4785_v38 = vsel %vm7448_vm4, %v4780_v24, %v4784_v34  ;;  %v2212_v25 = vor.u32 %v2210_v41, %v2209_v50  ;;  %v2214_v49 = vrot.slane %v2209_v50, 4  ;;  %v6184_v34 = vld [vmem:[%s7142_s10 + $0x5c] sm:$0x1] }
 0x14a   : > { %v4790_v59 = vrot.slane %v4789_v46, 4  ;;  %v4799_v57 = vrot.slane %v4797_v19, 4  ;;  %v4802_v16 = vrot.slane %v4800_v28, 5  ;;  %v4808_v21 = vrot.slane %v4806_v58, 5  ;;  %v8499_v46 = vld [vmem:[%s7142_s10 + $0xd4] sm:$0xf] }
 0x14b   : > { %v2221_v4 = vor.u32 %v2219_v0, %v2218_v3  ;;  %v2213_v42 = vsel %vm7608_vm7, %v5890_v63, %v2212_v25  ;;  %v4810_v31 = vshrl.u32 %v6180_v39, 16  ;;  %v4816_v10 = vshll.u32 %v6181_v56, 16  ;;  %6528 = vmatmul.mubr.msk.bf16.gmra.mrb[12].mxu1 %vm729_vm1, %v8401_v55  ;;  %v8506_v56 = vld [vmem:[%s7142_s10 + $0xd8] sm:$0xf]  ;;  %v6185_v25 = vld [vmem:[%s7142_s10 + $0x64] sm:$0xf] }
 0x14c   : > { %v4795_v5 = vsel %vm7448_vm4, %v4790_v59, %v4794_v60  ;;  %v4803_v44 = vor.u32 %v4802_v16, %v4799_v57  ;;  %v2224_v45 = vshrl.u32 %v5865_v26, 16  ;;  %v2229_v33 = vshrl.u32 %v8472_v29, 16  ;;  %6531 = vmatprep.mubr.msk.bf16.mxu1 %vm729_vm1, %v8422_v18  ;;  %v6186_v16 = vld [vmem:[%s7142_s10 + $0x68] sm:$0xf] }
 0x14d   : > { %v6223_v32 = vcombine.low %v4785_v38, %v4795_v5  ;;  %v2222_v14 = vsel %vm7608_vm7, %v2214_v49, %v2221_v4  ;;  %v4812_v47 = vrot.slane %v4810_v31, 4  ;;  %v4818_v22 = vrot.slane %v4816_v10, 5 }
 0x14e   : > { %v5907_v36 = vcombine.low %v2213_v42, %v2222_v14  ;;  %v4804_v37 = vrot.slane %v4803_v44, 4  ;;  %v5891_v6 = vrot.slane %v2224_v45, 11  ;;  %v2232_v51 = vshll.u32 %v8472_v29, 16  ;;  %v6187_v14 = vld [vmem:[%s7142_s10 + $0x6c] sm:$0x1] }
 0x14f   : > { %v2238_v15 = vshrl.u32 %v8479_v43, 16  ;;  %v4813_v35 = vor.u32 %v4812_v47, %v4808_v21  ;;  %v2231_v52 = vrot.slane %v2229_v33, 7  ;;  %v2241_v2 = vshll.u32 %v8479_v43, 16  ;;  %6686 = vmatmul.mubr.msk.bf16.vlgmr.msra.gmra.mrb[0].mxu0 %vm729_vm1, %v6223_v32  ;;  %v5871_v33 = vld [vmem:[%s7142_s10 + $0xe0] sm:$0x8] }
 0x150   : > { %v4821_v20 = vshrl.u32 %v6182_v30, 16  ;;  %v4809_v55 = vsel %vm7448_vm4, %v4804_v37, %v4808_v21  ;;  %v4824_v53 = vshll.u32 %v6182_v30, 16  ;;  %v4830_v62 = vshll.u32 %v6183_v27, 16 }
 0x151   : > { %v2240_v8 = vrot.slane %v2238_v15, 7  ;;  %v4814_v1 = vrot.slane %v4813_v35, 4  ;;  %v2234_v39 = vor.u32 %v2232_v51, %v2231_v52  ;;  %v2236_v18 = vrot.slane %v2231_v52, 4 }
 0x152   : > { %v4823_v60 = vrot.slane %v4821_v20, 4  ;;  %v4826_v41 = vrot.slane %v4824_v53, 5  ;;  %v4832_v54 = vrot.slane %v4830_v62, 5  ;;  %v4834_v24 = vshrl.u32 %v6183_v27, 16  ;;  %v8532_v53 = vld [vmem:[%s7142_s10 + $0xe8] sm:$0xf] }
 0x153   : > { %v2243_v63 = vor.u32 %v2241_v2, %v2240_v8  ;;  %v4819_v50 = vsel %vm7448_vm4, %v4814_v1, %v4818_v22  ;;  %v2235_v0 = vsel %vm7608_vm7, %v5891_v6, %v2234_v39  ;;  %v4840_v3 = vshll.u32 %v6184_v34, 16  ;;  %6532 = vmatmul.mubr.msk.bf16.gmra.mrb[16].mxu1 %vm729_vm1, %v8450_v12 }
 0x154   : > { %v2246_v19 = vshrl.u32 %v5868_v11, 16  ;;  %v6224_v28 = vcombine.low %v4809_v55, %v4819_v50  ;;  %v4827_v38 = vor.u32 %v4826_v41, %v4823_v60  ;;  %v4836_v59 = vrot.slane %v4834_v24, 4  ;;  %6535 = vmatprep.mubr.msk.bf16.mxu1 %vm729_vm1, %v5907_v36  ;;  %v8525_v36 = vld [vmem:[%s7142_s10 + $0xe4] sm:$0xf] }
 0x155   : > { %v2244_v58 = vsel %vm7608_vm7, %v2236_v18, %v2243_v63  ;;  %v4842_v26 = vrot.slane %v4840_v3, 5  ;;  %v2251_v57 = vshrl.u32 %v8499_v46, 16  ;;  %v2254_v42 = vshll.u32 %v8499_v46, 16  ;;  %v6188_v18 = vld [vmem:[%s7142_s10 + $0x74] sm:$0xf] }
 0x156   : > { %v5908_v49 = vcombine.low %v2235_v0, %v2244_v58  ;;  %v5892_v4 = vrot.slane %v2246_v19, 11  ;;  %6689 = vmatprep.mubr.msk.bf16.mxu0 %vm729_vm1, %v6224_v28  ;;  %v4828_v21 = vrot.slane %v4827_v38, 4  ;;  %v4837_v5 = vor.u32 %v4836_v59, %v4832_v54  ;;  %v6189_v19 = vld [vmem:[%s7142_s10 + $0x78] sm:$0xf]  ;;  %v6190_v38 = vld [vmem:[%s7142_s10 + $0x7c] sm:$0x1] }
 0x157   : > { %v2260_v31 = vshrl.u32 %v8506_v56, 16  ;;  %v2253_v10 = vrot.slane %v2251_v57, 7  ;;  %v2263_v32 = vshll.u32 %v8506_v56, 16  ;;  %v4845_v44 = vshrl.u32 %v6185_v25, 16 }
 0x158   : > { %v4848_v45 = vshll.u32 %v6185_v25, 16  ;;  %v4833_v12 = vsel %vm7448_vm4, %v4828_v21, %v4832_v54  ;;  %v4838_v30 = vrot.slane %v4837_v5, 4  ;;  %v4854_v22 = vshll.u32 %v6186_v16, 16 }
 0x159   : > { %v2262_v47 = vrot.slane %v2260_v31, 7  ;;  %v2256_v27 = vor.u32 %v2254_v42, %v2253_v10  ;;  %v2258_v37 = vrot.slane %v2253_v10, 4  ;;  %v4847_v6 = vrot.slane %v4845_v44, 4  ;;  %v5874_v10 = vld [vmem:[%s7142_s10 + $0xf0] sm:$0x8] }
 0x15a   : > { %v4850_v51 = vrot.slane %v4848_v45, 5  ;;  %v4843_v15 = vsel %vm7448_vm4, %v4838_v30, %v4842_v26  ;;  %v4856_v52 = vrot.slane %v4854_v22, 5  ;;  %v4858_v2 = vshrl.u32 %v6186_v16, 16  ;;  %v8549_v16 = vld [vmem:[%s7142_s10 + $0xf4] sm:$0xf] }
 0x15b   : > { %v2265_v35 = vor.u32 %v2263_v32, %v2262_v47  ;;  %v6225_v34 = vcombine.low %v4833_v12, %v4843_v15  ;;  %v2257_v20 = vsel %vm7608_vm7, %v5892_v4, %v2256_v27  ;;  %v4864_v8 = vshll.u32 %v6187_v14, 16  ;;  %6536 = vmatmul.mubr.msk.bf16.gmra.mrb[20].mxu1 %vm729_vm1, %v5908_v49  ;;  %v6191_v15 = vld [vmem:[%s7142_s10 + $0x84] sm:$0xf] }
 0x15c   : > { %v4851_v55 = vor.u32 %v4850_v51, %v4847_v6  ;;  %v4860_v11 = vrot.slane %v4858_v2, 4  ;;  %v2268_v1 = vshrl.u32 %v5871_v33, 16  ;;  %v2273_v39 = vshrl.u32 %v8525_v36, 16  ;;  %v8557_v33 = vld [vmem:[%s7142_s10 + $0xf8] sm:$0xf] }
 0x15d   : > { %v2266_v62 = vsel %vm7608_vm7, %v2258_v37, %v2265_v35  ;;  %6690 = vmatmul.mubr.msk.bf16.gmra.mrb[4].mxu0 %vm729_vm1, %v6225_v34  ;;  %v4866_v41 = vrot.slane %v4864_v8, 5  ;;  %v2276_v54 = vshll.u32 %v8525_v36, 16  ;;  %v2282_v3 = vshrl.u32 %v8532_v53, 16 }
 0x15e   : > { %v5909_v60 = vcombine.low %v2257_v20, %v2266_v62  ;;  %v4852_v63 = vrot.slane %v4851_v55, 4  ;;  %v4861_v24 = vor.u32 %v4860_v11, %v4856_v52  ;;  %v5893_v50 = vrot.slane %v2268_v1, 11  ;;  %v6192_v20 = vld [vmem:[%s7142_s10 + $0x88] sm:$0xf]  ;;  %v6193_v1 = vld [vmem:[%s7142_s10 + $0x8c] sm:$0x1] }
 0x15f   : > { %v2275_v0 = vrot.slane %v2273_v39, 7  ;;  %v2285_v58 = vshll.u32 %v8532_v53, 16  ;;  %v4869_v59 = vshrl.u32 %v6188_v18, 16  ;;  %v4872_v25 = vshll.u32 %v6188_v18, 16 }
 0x160   : > { %6539 = vmatprep.mubr.msk.bf16.mxu1 %vm729_vm1, %v5909_v60  ;;  %v4857_v28 = vsel %vm7448_vm4, %v4852_v63, %v4856_v52  ;;  %v4862_v26 = vrot.slane %v4861_v24, 4  ;;  %v2284_v57 = vrot.slane %v2282_v3, 7  ;;  %v4878_v42 = vshll.u32 %v6189_v19, 16  ;;  %v5877_v3 = vld [vmem:[%s7142_s10 + $0x100] sm:$0x8] }
 0x161   : > { %v2278_v49 = vor.u32 %v2276_v54, %v2275_v0  ;;  %v2280_v4 = vrot.slane %v2275_v0, 4  ;;  %v4871_v21 = vrot.slane %v4869_v59, 4  ;;  %v4874_v5 = vrot.slane %v4872_v25, 5  ;;  %v8579_v59 = vld [vmem:[%s7142_s10 + $0x108] sm:$0xf] }
 0x162   : > { %v4882_v31 = vshrl.u32 %v6189_v19, 16  ;;  %v4867_v32 = vsel %vm7448_vm4, %v4862_v26, %v4866_v41  ;;  %v2287_v44 = vor.u32 %v2285_v58, %v2284_v57  ;;  %v4888_v45 = vshll.u32 %v6190_v38, 16  ;;  %v8573_v41 = vld [vmem:[%s7142_s10 + $0x104] sm:$0xf] }
 0x163   : > { %v2279_v14 = vsel %vm7608_vm7, %v5893_v50, %v2278_v49  ;;  %v6226_v12 = vcombine.low %v4857_v28, %v4867_v32  ;;  %v4875_v30 = vor.u32 %v4874_v5, %v4871_v21  ;;  %v4880_v47 = vrot.slane %v4878_v42, 5 }
 0x164   : > { %v4884_v22 = vrot.slane %v4882_v31, 4  ;;  %v2288_v27 = vsel %vm7608_vm7, %v2280_v4, %v2287_v44  ;;  %v4890_v37 = vrot.slane %v4888_v45, 5  ;;  %v2290_v6 = vshrl.u32 %v5874_v10, 16  ;;  %v6194_v44 = vld [vmem:[%s7142_s10 + $0x94] sm:$0xf] }
 0x165   : > { %v2295_v51 = vshrl.u32 %v8549_v16, 16  ;;  %6693 = vmatprep.mubr.msk.bf16.mxu0 %vm729_vm1, %v6226_v12  ;;  %v5910_v35 = vcombine.low %v2279_v14, %v2288_v27  ;;  %v4876_v52 = vrot.slane %v4875_v30, 4  ;;  %v2298_v34 = vshll.u32 %v8549_v16, 16 }
 0x166   : > { %v4885_v2 = vor.u32 %v4884_v22, %v4880_v47  ;;  %v5894_v55 = vrot.slane %v2290_v6, 11  ;;  %v2304_v62 = vshrl.u32 %v8557_v33, 16  ;;  %v2307_v11 = vshll.u32 %v8557_v33, 16  ;;  %v6195_v22 = vld [vmem:[%s7142_s10 + $0x98] sm:$0xf] }
 0x167   : > { %v2297_v8 = vrot.slane %v2295_v51, 7  ;;  %6540 = vmatmul.mubr.msk.bf16.gmra.mrb[24].mxu1 %vm729_vm1, %v5910_v35  ;;  %v4881_v39 = vsel %vm7448_vm4, %v4876_v52, %v4880_v47  ;;  %v4893_v60 = vshrl.u32 %v6191_v15, 16  ;;  %v4896_v63 = vshll.u32 %v6191_v15, 16 }
 0x168   : > { %v4886_v18 = vrot.slane %v4885_v2, 4  ;;  %v2306_v50 = vrot.slane %v2304_v62, 7  ;;  %v4902_v0 = vshll.u32 %v6192_v20, 16  ;;  %v4906_v38 = vshrl.u32 %v6192_v20, 16 }
 0x169   : > { %v2300_v54 = vor.u32 %v2298_v34, %v2297_v8  ;;  %v2302_v24 = vrot.slane %v2297_v8, 4  ;;  %v4895_v28 = vrot.slane %v4893_v60, 4  ;;  %v4898_v58 = vrot.slane %v4896_v63, 5  ;;  %v6196_v8 = vld [vmem:[%s7142_s10 + $0x9c] sm:$0x1] }
 0x16a   : > { %v4891_v19 = vsel %vm7448_vm4, %v4886_v18, %v4890_v37  ;;  %v2309_v49 = vor.u32 %v2307_v11, %v2306_v50  ;;  %v4904_v4 = vrot.slane %v4902_v0, 5  ;;  %v4908_v21 = vrot.slane %v4906_v38, 4  ;;  %v6197_v11 = vld [vmem:[%s7142_s10 + $0xa4] sm:$0xf]  ;;  %v6198_v63 = vld [vmem:[%s7142_s10 + $0xa8] sm:$0xf] }
 0x16b   : > { %v6227_v25 = vcombine.low %v4881_v39, %v4891_v19  ;;  %v2301_v26 = vsel %vm7608_vm7, %v5894_v55, %v2300_v54  ;;  %v4899_v57 = vor.u32 %v4898_v58, %v4895_v28  ;;  %v4912_v5 = vshll.u32 %v6193_v1, 16  ;;  %v6199_v38 = vld [vmem:[%s7142_s10 + $0xac] sm:$0x1] }
 0x16c   : > { %v2312_v42 = vshrl.u32 %v5877_v3, 16  ;;  %v2310_v31 = vsel %vm7608_vm7, %v2302_v24, %v2309_v49  ;;  %v2317_v10 = vshrl.u32 %v8573_v41, 16  ;;  %v2320_v32 = vshll.u32 %v8573_v41, 16 }
 0x16d   : > { %6694 = vmatmul.mubr.msk.bf16.gmra.mrb[8].mxu0 %vm729_vm1, %v6227_v25  ;;  %v2326_v14 = vshrl.u32 %v8579_v59, 16  ;;  %v5911_v45 = vcombine.low %v2301_v26, %v2310_v31  ;;  %v4900_v12 = vrot.slane %v4899_v57, 4  ;;  %v4909_v30 = vor.u32 %v4908_v21, %v4904_v4 }
 0x16e   : > { %v4914_v47 = vrot.slane %v4912_v5, 5  ;;  %v5895_v27 = vrot.slane %v2312_v42, 11  ;;  %v2319_v37 = vrot.slane %v2317_v10, 7  ;;  %v2329_v51 = vshll.u32 %v8579_v59, 16  ;;  %v6200_v42 = vld [vmem:[%s7142_s10 + $0xb4] sm:$0xf] }
 0x16f   : > { %v2328_v6 = vrot.slane %v2326_v14, 7  ;;  %6543 = vmatprep.mubr.msk.bf16.mxu1 %vm729_vm1, %v5911_v45  ;;  %v4905_v15 = vsel %vm7448_vm4, %v4900_v12, %v4904_v4  ;;  %v4910_v35 = vrot.slane %v4909_v30, 4  ;;  %v4917_v52 = vshrl.u32 %v6194_v44, 16 }
 0x170   : > { %v4920_v2 = vshll.u32 %v6194_v44, 16  ;;  %v2322_v34 = vor.u32 %v2320_v32, %v2319_v37  ;;  %v2324_v20 = vrot.slane %v2319_v37, 4  ;;  %v4926_v62 = vshll.u32 %v6195_v22, 16  ;;  %v6201_v44 = vld [vmem:[%s7142_s10 + $0xb8] sm:$0xf] }
 0x171   : > { %v2331_v55 = vor.u32 %v2329_v51, %v2328_v6  ;;  %v4915_v1 = vsel %vm7448_vm4, %v4910_v35, %v4914_v47  ;;  %v4919_v39 = vrot.slane %v4917_v52, 4  ;;  %v4930_v60 = vshrl.u32 %v6195_v22, 16  ;;  %v6202_v22 = vld [vmem:[%s7142_s10 + $0xbc] sm:$0x1]  ;;  %v6203_v52 = vld [vmem:[%s7142_s10 + $0xc4] sm:$0xf] }
 0x172   : > { %v4922_v18 = vrot.slane %v4920_v2, 5  ;;  %v6228_v54 = vcombine.low %v4905_v15, %v4915_v1  ;;  %v2323_v24 = vsel %vm7608_vm7, %v5895_v27, %v2322_v34  ;;  %v4928_v0 = vrot.slane %v4926_v62, 5 }
 0x173   : > { %v2332_v50 = vsel %vm7608_vm7, %v2324_v20, %v2331_v55  ;;  %v4932_v28 = vrot.slane %v4930_v60, 4  ;;  %v4936_v58 = vshll.u32 %v6196_v8, 16  ;;  %v5938_v25 = vcombine.low %v8365_v9, %v8377_v48  ;;  %v6205_v60 = vld [vmem:[%s7142_s10 + $0xcc] sm:$0x1] }
 0x174   : > { %v5912_v3 = vcombine.low %v2323_v24, %v2332_v50  ;;  %v4923_v19 = vor.u32 %v4922_v18, %v4919_v39  ;;  %6697 = vmatprep.mubr.msk.bf16.mxu0 %vm729_vm1, %v6228_v54  ;;  %v4941_v26 = vshrl.u32 %v6197_v11, 16  ;;  %v4944_v49 = vshll.u32 %v6197_v11, 16  ;;  %v6204_v11 = vld [vmem:[%s7142_s10 + $0xc8] sm:$0xf] }
 0x175   : > { %v4950_v4 = vshll.u32 %v6198_v63, 16  ;;  %v4933_v57 = vor.u32 %v4932_v28, %v4928_v0  ;;  %v4938_v21 = vrot.slane %v4936_v58, 5  ;;  %v4954_v5 = vshrl.u32 %v6198_v63, 16 }
 0x176   : > { %6544 = vmatmul.mubr.msk.bf16.gmra.mrb[28].mxu1 %vm729_vm1, %v5912_v3  ;;  %v4924_v40 = vrot.slane %v4923_v19, 4  ;;  %v4943_v31 = vrot.slane %v4941_v26, 4  ;;  %v4946_v10 = vrot.slane %v4944_v49, 5  ;;  %v4960_v14 = vshll.u32 %v6199_v38, 16  ;;  %v6206_v3 = vld [vmem:[%s7142_s10 + $0xd4] sm:$0xf] }
 0x177   : > { %6565 = vmatprep.mubr.msk.bf16.mxu1 %vm729_vm1, %v5938_v25  ;;  %v4952_v32 = vrot.slane %v4950_v4, 5  ;;  %v4934_v48 = vrot.slane %v4933_v57, 4  ;;  %v4956_v45 = vrot.slane %v4954_v5, 4  ;;  %v5939_v12 = vcombine.low %v8404_v13, %v8408_v61  ;;  %v6207_v49 = vld [vmem:[%s7142_s10 + $0xd8] sm:$0xf] }
 0x178   : > { %v4929_v9 = vsel %vm7448_vm4, %v4924_v40, %v4928_v0  ;;  %v4947_v30 = vor.u32 %v4946_v10, %v4943_v31  ;;  %v4962_v47 = vrot.slane %v4960_v14, 5  ;;  %v4965_v27 = vshrl.u32 %v6200_v42, 16  ;;  %v6209_v14 = vld [vmem:[%s7142_s10 + $0xe4] sm:$0xf] }
 0x179   : > { %v4968_v37 = vshll.u32 %v6200_v42, 16  ;;  %v4939_v6 = vsel %vm7448_vm4, %v4934_v48, %v4938_v21  ;;  %v4957_v51 = vor.u32 %v4956_v45, %v4952_v32  ;;  %v4974_v15 = vshll.u32 %v6201_v44, 16  ;;  %v6208_v21 = vld [vmem:[%s7142_s10 + $0xdc] sm:$0x1] }
 0x17a   : > { %v4978_v35 = vshrl.u32 %v6201_v44, 16  ;;  %v6229_v2 = vcombine.low %v4929_v9, %v4939_v6  ;;  %v4948_v34 = vrot.slane %v4947_v30, 4  ;;  %v4967_v20 = vrot.slane %v4965_v27, 4  ;;  %v6211_v6 = vld [vmem:[%s7142_s10 + $0xec] sm:$0x1] }
 0x17b   : > { %v4970_v55 = vrot.slane %v4968_v37, 5  ;;  %v4958_v8 = vrot.slane %v4957_v51, 4  ;;  %v4976_v13 = vrot.slane %v4974_v15, 5  ;;  %v4984_v62 = vshll.u32 %v6202_v22, 16 }
 0x17c   : > { %v4980_v61 = vrot.slane %v4978_v35, 4  ;;  %6698 = vmatmul.mubr.msk.bf16.gmra.mrb[12].mxu0 %vm729_vm1, %v6229_v2  ;;  %v4953_v1 = vsel %vm7448_vm4, %v4948_v34, %v4952_v32  ;;  %v5940_v18 = vcombine.low %v8441_v7, %v8446_v17  ;;  %v4989_v63 = vshrl.u32 %v6203_v52, 16 }
 0x17d   : > { %v4971_v39 = vor.u32 %v4970_v55, %v4967_v20  ;;  %v4963_v54 = vsel %vm7448_vm4, %v4958_v8, %v4962_v47  ;;  %v4986_v50 = vrot.slane %v4984_v62, 5  ;;  %v4992_v0 = vshll.u32 %v6203_v52, 16  ;;  %v6212_v62 = vld [vmem:[%s7142_s10 + $0xf4] sm:$0xf] }
 0x17e   : > { %6566 = vmatmul.mubr.msk.bf16.vlgmr.msra.gmra.mrb[16].mxu1 %vm729_vm1, %v5939_v12  ;;  %v4981_v24 = vor.u32 %v4980_v61, %v4976_v13  ;;  %v6230_v19 = vcombine.low %v4953_v1, %v4963_v54  ;;  %v4991_v58 = vrot.slane %v4989_v63, 4  ;;  %v4998_v38 = vshll.u32 %v6204_v11, 16 }
 0x17f   : > { %v4972_v28 = vrot.slane %v4971_v39, 4  ;;  %6569 = vmatprep.mubr.msk.bf16.mxu1 %vm729_vm1, %v5940_v18  ;;  %v4994_v17 = vrot.slane %v4992_v0, 5  ;;  %v5002_v25 = vshrl.u32 %v6204_v11, 16  ;;  %v5008_v26 = vshll.u32 %v6205_v60, 16  ;;  %v6213_v60 = vld [vmem:[%s7142_s10 + $0xf8] sm:$0xf] }
 0x180   : > { %v4982_v7 = vrot.slane %v4981_v24, 4  ;;  %6701 = vmatprep.mubr.msk.bf16.mxu0 %vm729_vm1, %v6230_v19  ;;  %v5000_v40 = vrot.slane %v4998_v38, 5  ;;  %v5941_v57 = vcombine.low %v8472_v29, %v8479_v43  ;;  %v5013_v5 = vshrl.u32 %v6206_v3, 16  ;;  %v6210_v29 = vld [vmem:[%s7142_s10 + $0xe8] sm:$0xf] }
 0x181   : > { %v4977_v4 = vsel %vm7448_vm4, %v4972_v28, %v4976_v13  ;;  %v4995_v31 = vor.u32 %v4994_v17, %v4991_v58  ;;  %v5004_v10 = vrot.slane %v5002_v25, 4  ;;  %v5010_v32 = vrot.slane %v5008_v26, 5  ;;  %v6214_v19 = vld [vmem:[%s7142_s10 + $0xfc] sm:$0x1]  ;;  %v6215_v26 = vld [vmem:[%s7142_s10 + $0x104] sm:$0xf] }
 0x182   : > { %v4987_v42 = vsel %vm7448_vm4, %v4982_v7, %v4986_v50  ;;  %v5015_v9 = vrot.slane %v5013_v5, 4  ;;  %v5016_v48 = vshll.u32 %v6206_v3, 16  ;;  %v5022_v45 = vshll.u32 %v6207_v49, 16 }
 0x183   : > { %v6231_v44 = vcombine.low %v4977_v4, %v4987_v42  ;;  %v4996_v12 = vrot.slane %v4995_v31, 4  ;;  %v5005_v30 = vor.u32 %v5004_v10, %v5000_v40  ;;  %v5026_v47 = vshrl.u32 %v6207_v49, 16  ;;  %v6216_v42 = vld [vmem:[%s7142_s10 + $0x108] sm:$0xf] }
 0x184   : > { %v5032_v22 = vshll.u32 %v6208_v21, 16  ;;  %v5018_v43 = vrot.slane %v5016_v48, 5  ;;  %v5024_v27 = vrot.slane %v5022_v45, 5  ;;  %v5942_v37 = vcombine.low %v8499_v46, %v8506_v56 }
 0x185   : > { %6702 = vmatmul.mubr.msk.bf16.gmra.mrb[16].mxu0 %vm729_vm1, %v6231_v44  ;;  %v5037_v51 = vshrl.u32 %v6209_v14, 16  ;;  %v5001_v15 = vsel %vm7448_vm4, %v4996_v12, %v5000_v40  ;;  %v5006_v35 = vrot.slane %v5005_v30, 4  ;;  %v5028_v52 = vrot.slane %v5026_v47, 4  ;;  %v6218_v30 = vld [vmem:[%s7142_s10 + $0x114] sm:$0xf] }
 0x186   : > { %6570 = vmatmul.mubr.msk.bf16.gmra.mrb[20].mxu1 %vm729_vm1, %v5941_v57  ;;  %v5034_v2 = vrot.slane %v5032_v22, 5  ;;  %v5019_v34 = vor.u32 %v5018_v43, %v5015_v9  ;;  %v5040_v55 = vshll.u32 %v6209_v14, 16  ;;  %v5046_v8 = vshll.u32 %v6210_v29, 16  ;;  %v6217_v14 = vld [vmem:[%s7142_s10 + $0x10c] sm:$0x1] }
 0x187   : > { %6573 = vmatprep.mubr.msk.bf16.mxu1 %vm729_vm1, %v5942_v37  ;;  %v5039_v20 = vrot.slane %v5037_v51, 4  ;;  %v5011_v46 = vsel %vm7448_vm4, %v5006_v35, %v5010_v32  ;;  %v5029_v56 = vor.u32 %v5028_v52, %v5024_v27  ;;  %v5050_v13 = vshrl.u32 %v6210_v29, 16  ;;  %v6220_v52 = vld [vmem:[%s7142_s10 + $0x11c] sm:$0x1] }
 0x188   : > { %v5056_v61 = vshll.u32 %v6211_v6, 16  ;;  %v6232_v11 = vcombine.low %v5001_v15, %v5011_v46  ;;  %v5020_v1 = vrot.slane %v5019_v34, 4  ;;  %v5042_v39 = vrot.slane %v5040_v55, 5  ;;  %v6219_v6 = vld [vmem:[%s7142_s10 + $0x118] sm:$0xf] }
 0x189   : > { %v5048_v18 = vrot.slane %v5046_v8, 5  ;;  %v5030_v63 = vrot.slane %v5029_v56, 4  ;;  %v5052_v54 = vrot.slane %v5050_v13, 4  ;;  %v5943_v50 = vcombine.low %v8525_v36, %v8532_v53 }
 0x18a   : > { %v5058_v24 = vrot.slane %v5056_v61, 5  ;;  %6705 = vmatprep.mubr.msk.bf16.mxu0 %vm729_vm1, %v6232_v11  ;;  %v5025_v0 = vsel %vm7448_vm4, %v5020_v1, %v5024_v27  ;;  %v5043_v3 = vor.u32 %v5042_v39, %v5039_v20  ;;  %v5061_v28 = vshrl.u32 %v6212_v62, 16 }
 0x18b   : > { %v5064_v58 = vshll.u32 %v6212_v62, 16  ;;  %v5035_v38 = vsel %vm7448_vm4, %v5030_v63, %v5034_v2  ;;  %v5053_v7 = vor.u32 %v5052_v54, %v5048_v18  ;;  %v5070_v17 = vshll.u32 %v6213_v60, 16 }
 0x18c   : > { %v5074_v25 = vshrl.u32 %v6213_v60, 16  ;;  %v6233_v49 = vcombine.low %v5025_v0, %v5035_v38  ;;  %v5044_v36 = vrot.slane %v5043_v3, 4  ;;  %v5063_v53 = vrot.slane %v5061_v28, 4 }
 0x18d   : > { %v5066_v4 = vrot.slane %v5064_v58, 5  ;;  %v5054_v40 = vrot.slane %v5053_v7, 4  ;;  %v5072_v57 = vrot.slane %v5070_v17, 5  ;;  %v5080_v5 = vshll.u32 %v6214_v19, 16 }
 0x18e   : > { %6574 = vmatmul.mubr.msk.bf16.gmra.mrb[24].mxu1 %vm729_vm1, %v5943_v50  ;;  %v5076_v21 = vrot.slane %v5074_v25, 4  ;;  %6706 = vmatmul.mubr.msk.bf16.gmra.mrb[20].mxu0 %vm729_vm1, %v6233_v49  ;;  %v5049_v31 = vsel %vm7448_vm4, %v5044_v36, %v5048_v18  ;;  %v5944_v32 = vcombine.low %v8549_v16, %v8557_v33  ;;  %v5085_v44 = vshrl.u32 %v6215_v26, 16 }
 0x18f   : > { %v5067_v10 = vor.u32 %v5066_v4, %v5063_v53  ;;  %v5059_v9 = vsel %vm7448_vm4, %v5054_v40, %v5058_v24  ;;  %v5082_v45 = vrot.slane %v5080_v5, 5  ;;  %v5088_v12 = vshll.u32 %v6215_v26, 16 }
 0x190   : > { %v5077_v48 = vor.u32 %v5076_v21, %v5072_v57  ;;  %v6234_v47 = vcombine.low %v5049_v31, %v5059_v9  ;;  %6577 = vmatprep.mubr.msk.bf16.mxu1 %vm729_vm1, %v5944_v32  ;;  %v5087_v29 = vrot.slane %v5085_v44, 4  ;;  %v5094_v43 = vshll.u32 %v6216_v42, 16 }
 0x191   : > { %v5068_v22 = vrot.slane %v5067_v10, 4  ;;  %v5090_v37 = vrot.slane %v5088_v12, 5  ;;  %v5098_v16 = vshrl.u32 %v6216_v42, 16  ;;  %v5104_v33 = vshll.u32 %v6217_v14, 16  ;;  %v8715_v14 = vld [vmem:[%s8809_s2] ss:$0 sm:$0xff] }
 0x192   : > { %v5078_v27 = vrot.slane %v5077_v48, 4  ;;  %6709 = vmatprep.mubr.msk.bf16.mxu0 %vm729_vm1, %v6234_v47  ;;  %v5096_v15 = vrot.slane %v5094_v43, 5  ;;  %v5945_v35 = vcombine.low %v8573_v41, %v8579_v59  ;;  %v5109_v2 = vshrl.u32 %v6218_v30, 16 }
 0x193   : > { %v5073_v51 = vsel %vm7448_vm4, %v5068_v22, %v5072_v57  ;;  %v5091_v20 = vor.u32 %v5090_v37, %v5087_v29  ;;  %v5100_v55 = vrot.slane %v5098_v16, 4  ;;  %v5106_v8 = vrot.slane %v5104_v33, 5 }
 0x194   : > { %v5083_v34 = vsel %vm7448_vm4, %v5078_v27, %v5082_v45  ;;  %v5111_v56 = vrot.slane %v5109_v2, 4  ;;  %v5112_v13 = vshll.u32 %v6218_v30, 16  ;;  %v5118_v61 = vshll.u32 %v6219_v6, 16 }
 0x195   : > { %v6235_v46 = vcombine.low %v5073_v51, %v5083_v34  ;;  %v5092_v62 = vrot.slane %v5091_v20, 4  ;;  %v5101_v11 = vor.u32 %v5100_v55, %v5096_v15  ;;  %v5122_v1 = vshrl.u32 %v6219_v6, 16 }
 0x196   : > { %6578 = vmatmul.mubr.msk.bf16.gmra.mrb[28].mxu1 %vm729_vm1, %v5945_v35  ;;  %v5128_v39 = vshll.u32 %v6220_v52, 16  ;;  %v5114_v41 = vrot.slane %v5112_v13, 5  ;;  %v5120_v59 = vrot.slane %v5118_v61, 5 }
 0x197   : > { %6710 = vmatmul.mubr.msk.bf16.gmra.mrb[24].mxu0 %vm729_vm1, %v6235_v46  ;;  %v5097_v18 = vsel %vm7448_vm4, %v5092_v62, %v5096_v15  ;;  %v5102_v60 = vrot.slane %v5101_v11, 4  ;;  %v5124_v63 = vrot.slane %v5122_v1, 4 }
 0x198   : > { %v5115_v54 = vor.u32 %v5114_v41, %v5111_v56  ;;  %v5130_v0 = vrot.slane %v5128_v39, 5 }
 0x199   : > { %v5107_v24 = vsel %vm7448_vm4, %v5102_v60, %v5106_v8  ;;  %v5125_v50 = vor.u32 %v5124_v63, %v5120_v59 }
 0x19a   : > { %v6236_v3 = vcombine.low %v5097_v18, %v5107_v24  ;;  %v5116_v19 = vrot.slane %v5115_v54, 4 }
 0x19b   : > { %v5126_v28 = vrot.slane %v5125_v50, 4 }
 0x19c   : > { %6713 = vmatprep.mubr.msk.bf16.mxu0 %vm729_vm1, %v6236_v3  ;;  %v5121_v58 = vsel %vm7448_vm4, %v5116_v19, %v5120_v59 }
 0x19d   : > { %v5131_v38 = vsel %vm7448_vm4, %v5126_v28, %v5130_v0 }
 0x19e   : > { %v6237_v7 = vcombine.low %v5121_v58, %v5131_v38 }
 0x1a0   : > { %6714 = vmatmul.mubr.msk.bf16.gmra.mrb[28].mxu0 %vm729_vm1, %v6237_v7 }
 0x206   : > { %v6517_v17 = vpop.f32.mrb[0].mxu1 }
 0x207   : > { %v2468_v25 = vpop.f32.mrb[1].mxu1 }
 0x208   : > { %v6518_v26 = vpop.f32.mrb[2].mxu1 }
 0x209   : > { %v2471_v49 = vpop.f32.mrb[3].mxu1 }
 0x20e   : > { %v6521_v36 = vpop.f32.mrb[4].mxu1 }
 0x20f   : > { %v2484_v53 = vpop.f32.mrb[5].mxu1 }
 0x210   : > { %v6522_v4 = vpop.f32.mrb[6].mxu1 }
 0x211   : > { %v2487_v40 = vpop.f32.mrb[7].mxu1 }
 0x216   : > { %v8697_v57 = vpop.f32.mrb[8].mxu1 }
 0x217   : > { %v8699_v21 = vpop.f32.mrb[9].mxu1 }
 0x218   : > { %v8701_v5 = vpop.f32.mrb[10].mxu1 }
 0x219   : > { %v8703_v23 = vpop.f32.mrb[11].mxu1 }
 0x21e   : > { %v8705_v42 = vpop.f32.mrb[12].mxu1 }
 0x21f   : > { %v8707_v31 = vpop.f32.mrb[13].mxu1 }
 0x220   : > { %v8710_v10 = vpop.f32.mrb[14].mxu1 }
 0x221   : > { %v8717_v44 = vpop.f32.mrb[15].mxu1 }
 0x222   : > { %v6687_v32 = vpop.f32.mrb[0].mxu0 }
 0x223   : > { %v6719_v9 = vadd.f32 %v6687_v32, %v6517_v17  ;;  %v5267_v48 = vpop.f32.mrb[1].mxu0 }
 0x224   : > { %v6720_v45 = vadd.f32 %v5267_v48, %v2468_v25  ;;  %v6688_v12 = vpop.f32.mrb[2].mxu0 }
 0x225   : > { %v5435_v30 = vadd.f32 %v6719_v9, %v8715_v14  ;;  %v6721_v47 = vadd.f32 %v6688_v12, %v6518_v26  ;;  %v5270_v22 = vpop.f32.mrb[3].mxu0 }
 0x226   : > { %v5433_v29 = vadd.f32 %v6720_v45, %v8715_v14  ;;  %v6722_v43 = vadd.f32 %v5270_v22, %v2471_v49 }
 0x227   : > { %5467 = vst [vmem:[%s8722_s26 + $0x10] sm:$0xff] %v5435_v30  ;;  %v5436_v27 = vadd.f32 %v6721_v47, %v8715_v14  ;;  %v5537_v51 = vmul.f32 %v5435_v30, %v5435_v30 }
 0x228   : > { %5465 = vst [vmem:[%s8722_s26] sm:$0xff] %v5433_v29  ;;  %v5434_v37 = vadd.f32 %v6722_v43, %v8715_v14  ;;  %v5535_v16 = vmul.f32 %v5433_v29, %v5433_v29 }
 0x229   : > { %5468 = vst [vmem:[%s8722_s26 + $0x18] sm:$0xff] %v5436_v27  ;;  %v5538_v52 = vmul.f32 %v5436_v27, %v5436_v27 }
 0x22a   : > { %5466 = vst [vmem:[%s8722_s26 + $0x8] sm:$0xff] %v5434_v37  ;;  %v5497_v33 = vadd.f32 %v5434_v37, %v5433_v29  ;;  %v5536_v6 = vmul.f32 %v5434_v37, %v5434_v37 }
 0x22c   : > { %v5498_v15 = vadd.f32 %v5497_v33, %v5435_v30  ;;  %v5567_v35 = vadd.f32 %v5536_v6, %v5535_v16 }
 0x22e   : > { %v5568_v2 = vadd.f32 %v5567_v35, %v5537_v51  ;;  %v5499_v34 = vadd.f32 %v5498_v15, %v5436_v27 }
 0x230   : > { %v6691_v20 = vpop.f32.mrb[4].mxu0  ;;  %v5569_v46 = vadd.f32 %v5568_v2, %v5538_v52 }
 0x231   : > { %v6723_v55 = vadd.f32 %v6691_v20, %v6521_v36  ;;  %v5283_v8 = vpop.f32.mrb[5].mxu0 }
 0x232   : > { %v6724_v56 = vadd.f32 %v5283_v8, %v2484_v53  ;;  %v6692_v13 = vpop.f32.mrb[6].mxu0 }
 0x233   : > { %v5439_v61 = vadd.f32 %v6723_v55, %v8715_v14  ;;  %v6725_v62 = vadd.f32 %v6692_v13, %v6522_v4  ;;  %v5286_v11 = vpop.f32.mrb[7].mxu0 }
 0x234   : > { %v5437_v1 = vadd.f32 %v6724_v56, %v8715_v14  ;;  %v6726_v39 = vadd.f32 %v5286_v11, %v2487_v40 }
 0x235   : > { %5471 = vst [vmem:[%s8722_s26 + $0x30] sm:$0xff] %v5439_v61  ;;  %v5440_v41 = vadd.f32 %v6725_v62, %v8715_v14  ;;  %v5541_v50 = vmul.f32 %v5439_v61, %v5439_v61 }
 0x236   : > { %5469 = vst [vmem:[%s8722_s26 + $0x20] sm:$0xff] %v5437_v1  ;;  %v5500_v59 = vadd.f32 %v5499_v34, %v5437_v1  ;;  %v5539_v18 = vmul.f32 %v5437_v1, %v5437_v1  ;;  %v5438_v60 = vadd.f32 %v6726_v39, %v8715_v14 }
 0x237   : > { %5472 = vst [vmem:[%s8722_s26 + $0x38] sm:$0xff] %v5440_v41  ;;  %v5542_v19 = vmul.f32 %v5440_v41, %v5440_v41 }
 0x238   : > { %v5570_v63 = vadd.f32 %v5569_v46, %v5539_v18  ;;  %5470 = vst [vmem:[%s8722_s26 + $0x28] sm:$0xff] %v5438_v60  ;;  %v5501_v54 = vadd.f32 %v5500_v59, %v5438_v60  ;;  %v5540_v24 = vmul.f32 %v5438_v60, %v5438_v60 }
 0x23a   : > { %v5502_v0 = vadd.f32 %v5501_v54, %v5439_v61  ;;  %v5571_v3 = vadd.f32 %v5570_v63, %v5540_v24 }
 0x23c   : > { %v5572_v28 = vadd.f32 %v5571_v3, %v5541_v50  ;;  %v5503_v58 = vadd.f32 %v5502_v0, %v5440_v41 }
 0x23e   : > { %v5573_v38 = vadd.f32 %v5572_v28, %v5542_v19 }
 0x240   : > { %v6695_v7 = vpop.f32.mrb[8].mxu0 }
 0x241   : > { %v6727_v17 = vadd.f32 %v6695_v7, %v8697_v57  ;;  %v5299_v25 = vpop.f32.mrb[9].mxu0 }
 0x242   : > { %v6728_v26 = vadd.f32 %v5299_v25, %v8699_v21  ;;  %v6696_v49 = vpop.f32.mrb[10].mxu0 }
 0x243   : > { %v5443_v36 = vadd.f32 %v6727_v17, %v8715_v14  ;;  %v6729_v53 = vadd.f32 %v6696_v49, %v8701_v5  ;;  %v5302_v4 = vpop.f32.mrb[11].mxu0 }
 0x244   : > { %v5441_v40 = vadd.f32 %v6728_v26, %v8715_v14  ;;  %v6730_v32 = vadd.f32 %v5302_v4, %v8703_v23 }
 0x245   : > { %5475 = vst [vmem:[%s8722_s26 + $0x50] sm:$0xff] %v5443_v36  ;;  %v5444_v9 = vadd.f32 %v6729_v53, %v8715_v14  ;;  %v5545_v47 = vmul.f32 %v5443_v36, %v5443_v36 }
 0x246   : > { %5473 = vst [vmem:[%s8722_s26 + $0x40] sm:$0xff] %v5441_v40  ;;  %v5504_v48 = vadd.f32 %v5503_v58, %v5441_v40  ;;  %v5543_v57 = vmul.f32 %v5441_v40, %v5441_v40  ;;  %v5442_v45 = vadd.f32 %v6730_v32, %v8715_v14 }
 0x247   : > { %5476 = vst [vmem:[%s8722_s26 + $0x58] sm:$0xff] %v5444_v9  ;;  %v5546_v29 = vmul.f32 %v5444_v9, %v5444_v9 }
 0x248   : > { %v5574_v21 = vadd.f32 %v5573_v38, %v5543_v57  ;;  %5474 = vst [vmem:[%s8722_s26 + $0x48] sm:$0xff] %v5442_v45  ;;  %v5505_v12 = vadd.f32 %v5504_v48, %v5442_v45  ;;  %v5544_v30 = vmul.f32 %v5442_v45, %v5442_v45 }
 0x24a   : > { %v5506_v5 = vadd.f32 %v5505_v12, %v5443_v36  ;;  %v5575_v22 = vadd.f32 %v5574_v21, %v5544_v30 }
 0x24c   : > { %v5576_v43 = vadd.f32 %v5575_v22, %v5545_v47  ;;  %v5507_v27 = vadd.f32 %v5506_v5, %v5444_v9 }
 0x24e   : > { %v5577_v23 = vadd.f32 %v5576_v43, %v5546_v29 }
 0x24f   : > { %v6699_v37 = vpop.f32.mrb[12].mxu0 }
 0x250   : > { %v6731_v16 = vadd.f32 %v6699_v37, %v8705_v42  ;;  %v5315_v33 = vpop.f32.mrb[13].mxu0 }
 0x251   : > { %v6567_v6 = vpop.f32.mrb[16].mxu1  ;;  %v6732_v51 = vadd.f32 %v5315_v33, %v8707_v31  ;;  %v6700_v15 = vpop.f32.mrb[14].mxu0 }
 0x252   : > { %v2858_v35 = vpop.f32.mrb[17].mxu1  ;;  %v5447_v52 = vadd.f32 %v6731_v16, %v8715_v14  ;;  %v6733_v2 = vadd.f32 %v6700_v15, %v8710_v10  ;;  %v5318_v34 = vpop.f32.mrb[15].mxu0 }
 0x253   : > { %v6568_v20 = vpop.f32.mrb[18].mxu1  ;;  %v5445_v55 = vadd.f32 %v6732_v51, %v8715_v14  ;;  %v6734_v8 = vadd.f32 %v5318_v34, %v8717_v44 }
 0x254   : > { %v2861_v46 = vpop.f32.mrb[19].mxu1  ;;  %5479 = vst [vmem:[%s8722_s26 + $0x70] sm:$0xff] %v5447_v52  ;;  %v5448_v42 = vadd.f32 %v6733_v2, %v8715_v14  ;;  %v5549_v59 = vmul.f32 %v5447_v52, %v5447_v52 }
 0x255   : > { %5477 = vst [vmem:[%s8722_s26 + $0x60] sm:$0xff] %v5445_v55  ;;  %v5508_v31 = vadd.f32 %v5507_v27, %v5445_v55  ;;  %v5547_v56 = vmul.f32 %v5445_v55, %v5445_v55  ;;  %v5446_v13 = vadd.f32 %v6734_v8, %v8715_v14 }
 0x256   : > { %5480 = vst [vmem:[%s8722_s26 + $0x78] sm:$0xff] %v5448_v42  ;;  %v5550_v24 = vmul.f32 %v5448_v42, %v5448_v42 }
 0x257   : > { %v5578_v61 = vadd.f32 %v5577_v23, %v5547_v56  ;;  %5478 = vst [vmem:[%s8722_s26 + $0x68] sm:$0xff] %v5446_v13  ;;  %v5509_v62 = vadd.f32 %v5508_v31, %v5446_v13  ;;  %v5548_v10 = vmul.f32 %v5446_v13, %v5446_v13 }
 0x258   : > { %v6703_v11 = vpop.f32.mrb[16].mxu0 }
 0x259   : > { %v6735_v1 = vadd.f32 %v6703_v11, %v6567_v6  ;;  %v5331_v39 = vpop.f32.mrb[17].mxu0  ;;  %v6571_v41 = vpop.f32.mrb[20].mxu1  ;;  %v5510_v44 = vadd.f32 %v5509_v62, %v5447_v52  ;;  %v5579_v18 = vadd.f32 %v5578_v61, %v5548_v10 }
 0x25a   : > { %v6736_v60 = vadd.f32 %v5331_v39, %v2858_v35  ;;  %v6704_v63 = vpop.f32.mrb[18].mxu0  ;;  %v2874_v54 = vpop.f32.mrb[21].mxu1 }
 0x25b   : > { %v5451_v50 = vadd.f32 %v6735_v1, %v8715_v14  ;;  %v6737_v0 = vadd.f32 %v6704_v63, %v6568_v20  ;;  %v5334_v3 = vpop.f32.mrb[19].mxu0  ;;  %v6572_v19 = vpop.f32.mrb[22].mxu1  ;;  %v5580_v28 = vadd.f32 %v5579_v18, %v5549_v59  ;;  %v5511_v38 = vadd.f32 %v5510_v44, %v5448_v42 }
 0x25c   : > { %v5449_v58 = vadd.f32 %v6736_v60, %v8715_v14  ;;  %v6738_v7 = vadd.f32 %v5334_v3, %v2861_v46  ;;  %v2877_v17 = vpop.f32.mrb[23].mxu1 }
 0x25d   : > { %5483 = vst [vmem:[%s8722_s26 + $0x90] sm:$0xff] %v5451_v50  ;;  %v5452_v25 = vadd.f32 %v6737_v0, %v8715_v14  ;;  %v5581_v36 = vadd.f32 %v5580_v28, %v5550_v24  ;;  %v5553_v48 = vmul.f32 %v5451_v50, %v5451_v50 }
 0x25e   : > { %5481 = vst [vmem:[%s8722_s26 + $0x80] sm:$0xff] %v5449_v58  ;;  %v5512_v26 = vadd.f32 %v5511_v38, %v5449_v58  ;;  %v5551_v49 = vmul.f32 %v5449_v58, %v5449_v58  ;;  %v5450_v53 = vadd.f32 %v6738_v7, %v8715_v14 }
 0x25f   : > { %5484 = vst [vmem:[%s8722_s26 + $0x98] sm:$0xff] %v5452_v25  ;;  %v5554_v22 = vmul.f32 %v5452_v25, %v5452_v25 }
 0x260   : > { %v5582_v4 = vadd.f32 %v5581_v36, %v5551_v49  ;;  %5482 = vst [vmem:[%s8722_s26 + $0x88] sm:$0xff] %v5450_v53  ;;  %v5513_v40 = vadd.f32 %v5512_v26, %v5450_v53  ;;  %v5552_v32 = vmul.f32 %v5450_v53, %v5450_v53 }
 0x261   : > { %v6575_v9 = vpop.f32.mrb[24].mxu1  ;;  %v6707_v21 = vpop.f32.mrb[20].mxu0 }
 0x262   : > { %v5514_v57 = vadd.f32 %v5513_v40, %v5451_v50  ;;  %v5583_v45 = vadd.f32 %v5582_v4, %v5552_v32  ;;  %v2890_v12 = vpop.f32.mrb[25].mxu1  ;;  %v6739_v30 = vadd.f32 %v6707_v21, %v6571_v41  ;;  %v5347_v47 = vpop.f32.mrb[21].mxu0 }
 0x263   : > { %v6576_v5 = vpop.f32.mrb[26].mxu1  ;;  %v6740_v43 = vadd.f32 %v5347_v47, %v2874_v54  ;;  %v6708_v23 = vpop.f32.mrb[22].mxu0 }
 0x264   : > { %v5584_v29 = vadd.f32 %v5583_v45, %v5553_v48  ;;  %v5515_v27 = vadd.f32 %v5514_v57, %v5452_v25  ;;  %v2893_v37 = vpop.f32.mrb[27].mxu1  ;;  %v5455_v16 = vadd.f32 %v6739_v30, %v8715_v14  ;;  %v6741_v33 = vadd.f32 %v6708_v23, %v6572_v19  ;;  %v5350_v6 = vpop.f32.mrb[23].mxu0 }
 0x265   : > { %v5453_v51 = vadd.f32 %v6740_v43, %v8715_v14  ;;  %v6742_v35 = vadd.f32 %v5350_v6, %v2877_v17 }
 0x266   : > { %v5585_v15 = vadd.f32 %v5584_v29, %v5554_v22  ;;  %5487 = vst [vmem:[%s8722_s26 + $0xb0] sm:$0xff] %v5455_v16  ;;  %v5456_v52 = vadd.f32 %v6741_v33, %v8715_v14  ;;  %v5557_v10 = vmul.f32 %v5455_v16, %v5455_v16 }
 0x267   : > { %5485 = vst [vmem:[%s8722_s26 + $0xa0] sm:$0xff] %v5453_v51  ;;  %v5516_v2 = vadd.f32 %v5515_v27, %v5453_v51  ;;  %v5555_v34 = vmul.f32 %v5453_v51, %v5453_v51  ;;  %v5454_v20 = vadd.f32 %v6742_v35, %v8715_v14 }
 0x268   : > { %5488 = vst [vmem:[%s8722_s26 + $0xb8] sm:$0xff] %v5456_v52  ;;  %v5558_v44 = vmul.f32 %v5456_v52, %v5456_v52 }
 0x269   : > { %v6579_v55 = vpop.f32.mrb[28].mxu1  ;;  %v5586_v8 = vadd.f32 %v5585_v15, %v5555_v34  ;;  %5486 = vst [vmem:[%s8722_s26 + $0xa8] sm:$0xff] %v5454_v20  ;;  %v5517_v46 = vadd.f32 %v5516_v2, %v5454_v20  ;;  %v5556_v42 = vmul.f32 %v5454_v20, %v5454_v20 }
 0x26a   : > { %v6711_v31 = vpop.f32.mrb[24].mxu0  ;;  %v2906_v56 = vpop.f32.mrb[29].mxu1 }
 0x26b   : > { %v6743_v13 = vadd.f32 %v6711_v31, %v6575_v9  ;;  %v5363_v61 = vpop.f32.mrb[25].mxu0  ;;  %v6580_v62 = vpop.f32.mrb[30].mxu1  ;;  %v5518_v11 = vadd.f32 %v5517_v46, %v5455_v16  ;;  %v5587_v1 = vadd.f32 %v5586_v8, %v5556_v42 }
 0x26c   : > { %v6744_v39 = vadd.f32 %v5363_v61, %v2890_v12  ;;  %v6712_v41 = vpop.f32.mrb[26].mxu0  ;;  %v2909_v59 = vpop.f32.mrb[31].mxu1 }
 0x26d   : > { %v5459_v18 = vadd.f32 %v6743_v13, %v8715_v14  ;;  %v6745_v60 = vadd.f32 %v6712_v41, %v6576_v5  ;;  %v5366_v63 = vpop.f32.mrb[27].mxu0  ;;  %v5588_v54 = vadd.f32 %v5587_v1, %v5557_v10  ;;  %v5519_v50 = vadd.f32 %v5518_v11, %v5456_v52 }
 0x26e   : > { %v5457_v24 = vadd.f32 %v6744_v39, %v8715_v14  ;;  %v6746_v0 = vadd.f32 %v5366_v63, %v2893_v37 }
 0x26f   : > { %5491 = vst [vmem:[%s8722_s26 + $0xd0] sm:$0xff] %v5459_v18  ;;  %v5460_v3 = vadd.f32 %v6745_v60, %v8715_v14  ;;  %v5589_v58 = vadd.f32 %v5588_v54, %v5558_v44  ;;  %v5561_v26 = vmul.f32 %v5459_v18, %v5459_v18 }
 0x270   : > { %5489 = vst [vmem:[%s8722_s26 + $0xc0] sm:$0xff] %v5457_v24  ;;  %v5520_v19 = vadd.f32 %v5519_v50, %v5457_v24  ;;  %v5559_v28 = vmul.f32 %v5457_v24, %v5457_v24  ;;  %v5458_v38 = vadd.f32 %v6746_v0, %v8715_v14 }
 0x271   : > { %5492 = vst [vmem:[%s8722_s26 + $0xd8] sm:$0xff] %v5460_v3  ;;  %v5562_v32 = vmul.f32 %v5460_v3, %v5460_v3 }
 0x272   : > { %v5590_v7 = vadd.f32 %v5589_v58, %v5559_v28  ;;  %5490 = vst [vmem:[%s8722_s26 + $0xc8] sm:$0xff] %v5458_v38  ;;  %v5521_v17 = vadd.f32 %v5520_v19, %v5458_v38  ;;  %v5560_v25 = vmul.f32 %v5458_v38, %v5458_v38 }
 0x273   : > { %v6715_v53 = vpop.f32.mrb[28].mxu0 }
 0x274   : > { %v5522_v49 = vadd.f32 %v5521_v17, %v5459_v18  ;;  %v5591_v36 = vadd.f32 %v5590_v7, %v5560_v25  ;;  %v6747_v4 = vadd.f32 %v6715_v53, %v6579_v55  ;;  %v5379_v40 = vpop.f32.mrb[29].mxu0 }
 0x275   : > { %v6748_v48 = vadd.f32 %v5379_v40, %v2906_v56  ;;  %v6716_v45 = vpop.f32.mrb[30].mxu0 }
 0x276   : > { %v5592_v9 = vadd.f32 %v5591_v36, %v5561_v26  ;;  %v5523_v57 = vadd.f32 %v5522_v49, %v5460_v3  ;;  %v5463_v21 = vadd.f32 %v6747_v4, %v8715_v14  ;;  %v6749_v12 = vadd.f32 %v6716_v45, %v6580_v62  ;;  %v5382_v30 = vpop.f32.mrb[31].mxu0 }
 0x277   : > { %v5461_v47 = vadd.f32 %v6748_v48, %v8715_v14  ;;  %v6750_v22 = vadd.f32 %v5382_v30, %v2909_v59 }
 0x278   : > { %v5593_v5 = vadd.f32 %v5592_v9, %v5562_v32  ;;  %5495 = vst [vmem:[%s8722_s26 + $0xf0] sm:$0xff] %v5463_v21  ;;  %v5464_v29 = vadd.f32 %v6749_v12, %v8715_v14  ;;  %v5565_v6 = vmul.f32 %v5463_v21, %v5463_v21 }
 0x279   : > { %5493 = vst [vmem:[%s8722_s26 + $0xe0] sm:$0xff] %v5461_v47  ;;  %v5524_v43 = vadd.f32 %v5523_v57, %v5461_v47  ;;  %v5563_v27 = vmul.f32 %v5461_v47, %v5461_v47  ;;  %v5462_v23 = vadd.f32 %v6750_v22, %v8715_v14 }
 0x27a   : > { %5496 = vst [vmem:[%s8722_s26 + $0xf8] sm:$0xff] %v5464_v29  ;;  %v5566_v35 = vmul.f32 %v5464_v29, %v5464_v29 }
 0x27b   : > { %v5594_v37 = vadd.f32 %v5593_v5, %v5563_v27  ;;  %5494 = vst [vmem:[%s8722_s26 + $0xe8] sm:$0xff] %v5462_v23  ;;  %v5525_v16 = vadd.f32 %v5524_v43, %v5462_v23  ;;  %v5564_v33 = vmul.f32 %v5462_v23, %v5462_v23 }
 0x27d   : > { %v5526_v51 = vadd.f32 %v5525_v16, %v5463_v21  ;;  %v5595_v15 = vadd.f32 %v5594_v37, %v5564_v33 }
 0x27f   : > { %v5527_v52 = vadd.f32 %v5526_v51, %v5464_v29  ;;  %v5596_v2 = vadd.f32 %v5595_v15, %v5565_v6 }
 0x281   : > { %v5528_v34 = vrot.slane %v5527_v52, 4  ;;  %v5597_v20 = vadd.f32 %v5596_v2, %v5566_v35 }
 0x283   : > { %v5529_v55 = vadd.f32 %v5528_v34, %v5527_v52  ;;  %v5598_v8 = vrot.slane %v5597_v20, 4 }
 0x285   : > { %v5530_v46 = vrot.slane %v5529_v55, 2  ;;  %v5599_v42 = vadd.f32 %v5598_v8, %v5597_v20 }
 0x287   : > { %v5531_v14 = vadd.f32 %v5530_v46, %v5529_v55  ;;  %v5600_v31 = vrot.slane %v5599_v42, 2 }
 0x289   : > { %v5532_v56 = vrot.slane %v5531_v14, 1  ;;  %v5601_v13 = vadd.f32 %v5600_v31, %v5599_v42 }
 0x28b   : > { %v5533_v61 = vadd.f32 %v5532_v56, %v5531_v14  ;;  %v5602_v62 = vrot.slane %v5601_v13, 1 }
 0x28d   : > { %5534 = vst [vmem:[%s238_s29] sm:$0x1] %v5533_v61  ;;  %v5603_v10 = vadd.f32 %v5602_v62, %v5601_v13 }
 0x28f   : > { %5604 = vst [vmem:[%s241_s7] sm:$0x1] %v5603_v10 }
 0x290 PF: > { %s16_s18 = sadd.s32 1, %s7065_s18  }
 0x291   : > { %p13_p4 = scmp.ge.s32.totalorder %s16_s18, 4  }
 0x293   :  { %15 = sbr.rel (!%p13_p4) target bundleno = 1 (0x1), region = 96 }

// kernel: block_forward.4
= control target key start
LH: loop header
LB: loop body
LE: loop exit
PB: predicated region body
PF: predicated region fallthrough
CT: control target
= control target key end

     0   :  { %s6080_s27 = smov 0   ;;  %s8004_s0 = inlined_call_operand.vmem [shape: f32[2,256,128], index: 0, kind: input, shape index: {}]   ;;  %s8005_s1 = inlined_call_operand.vmem [shape: f32[1,128], index: 1, kind: input, shape index: {}]   ;;  %s8006_s2 = inlined_call_operand.vmem [shape: f32[1,128], index: 2, kind: input, shape index: {}]   ;;  %s8007_s3 = inlined_call_operand.vmem [shape: f32[2,1,128], index: 3, kind: input, shape index: {}]   ;;  %s8008_s4 = inlined_call_operand.vmem [shape: bf16[1152,128], index: 4, kind: input, shape index: {}]   ;;  %s8009_s5 = inlined_call_operand.vmem [shape: f32[1,128], index: 5, kind: input, shape index: {}]   ;;  %s8010_s6 = inlined_call_operand.vmem [shape: f32[2,256,128], index: 6, kind: output, shape index: {0}]   ;;  %s8011_s7 = inlined_call_operand.vmem [shape: f32[2,1,128], index: 7, kind: output, shape index: {1}]   ;;  %s8012_s8 = inlined_call_operand.vmem [shape: f32[2,1,128], index: 8, kind: output, shape index: {2}]  }
   0x1 LB: > { %s5152_s28 = sadd.s32 4294967295, %s6032_s27   ;;  %p5156_p0 = scmp.ge.s32.totalorder %s6032_s27, 1  ;;  %s6032_s27 = sphi %s6080_s27, %s19_s27  }
   0x2   : > { %p275_p1 = scmp.lt.s32.totalorder %s6032_s27, 3 }
   0x4   : > { %p276_p2 = pnand %p5156_p0, %p275_p1 }
   0x6   : > { %279 = sbr.rel (%p276_p2) target bundleno = 686 (0x2ae), region = 44 }
   0xd   : > { %v5818_v0 = vld [vmem:[%s8008_s4 + $0x40] sm:$0xff]   ;;  %v6034_v2 = vmov 0   ;;  %v5820_v3 = vld [vmem:[%s8008_s4 + $0x48] sm:$0xff]   ;;  %v5822_v5 = vld [vmem:[%s8008_s4 + $0x50] sm:$0xff]   ;;  %p318_p3 = scmp.lt.s32.totalorder %s5152_s28, 1  ;;  %vm1315_vm0 = vcmask 1043456  }
   0xe   : > { %v5819_v1 = vld [vmem:[%s8008_s4] sm:$0xff]   ;;  %711 = vst [vmem:[#allocation2] sm:$0xff] %v6034_v2  ;;  %712 = vst [vmem:[#allocation2 + $0x8] sm:$0xff] %v6034_v2  ;;  %5273 = vmatprep.subr.bf16.mxu0 %v5818_v0  ;;  %5793 = vmatprep.subr.bf16.mxu1 %v5818_v0  ;;  %v5821_v4 = vld [vmem:[%s8008_s4 + $0x8] sm:$0xff]   ;;  %vm717_vm1 = vcmask 1043459   ;;  %vm768_vm6 = vcmask 1044484  }
   0xf   : > { %714 = vst [vmem:[#allocation2 + $0x110] sm:$0xff] %v6034_v2  ;;  %715 = vst [vmem:[#allocation2 + $0x118] sm:$0xff] %v6034_v2  ;;  %5274 = vmatpush3.bf16.msra.mxu0 %v5819_v1  ;;  %5801 = vmatpush3.bf16.msra.mxu1 %v5819_v1  ;;  %v5823_v6 = vld [vmem:[%s8008_s4 + $0x10] sm:$0xff]   ;;  %v5824_v7 = vld [vmem:[%s8008_s4 + $0x58] sm:$0xff]   ;;  %s8105_s28 = smov (!%p318_p3, %s5152_s28), 1 }
  0x10   : > { %5275 = vmatprep.subr.bf16.mxu0 %v5820_v3  ;;  %5794 = vmatprep.subr.bf16.mxu1 %v5820_v3  ;;  %v5825_v8 = vld [vmem:[%s8008_s4 + $0x18] sm:$0xff]   ;;  %v5826_v9 = vld [vmem:[%s8008_s4 + $0x60] sm:$0xff]   ;;  %s5271_s25 = sshll.u32 %s8105_s28, 8  ;;  %v5828_v11 = vld [vmem:[%s8008_s4 + $0x68] sm:$0xff]   ;;  %vm718_vm2 = vsmask.f32 7950  ;;  %s6264_s21 = scalar_lea.vmem %s8007_s3, %s8105_s28 }
  0x11   : > { %v5827_v10 = vld [vmem:[%s8008_s4 + $0x20] sm:$0xff]   ;;  %s6126_s10 = scalar_lea.vmem %s8004_s0, %s5271_s25  ;;  %v5829_v24 = vld [vmem:[%s8008_s4 + $0x28] sm:$0xff]   ;;  %v5830_v25 = vld [vmem:[%s8008_s4 + $0x70] sm:$0xff]   ;;  %vm769_vm3 = vsmask.f32 4352  ;;  %s7933_s17 = scalar_lea.vmem %s8010_s6, %s5271_s25 }
  0x12   : > { %v338_v22 = vld [vmem:[%s6126_s10] sm:$0xff]  ;;  %v339_v23 = vld [vmem:[%s6126_s10 + $0x8] sm:$0xff]  ;;  %v360_v31 = vld [vmem:[%s6126_s10 + $0xb0] sm:$0xff]  ;;  %vm1428_vm5 = vsmask.f32 3328  ;;  %s333_s19 = scalar_lea.vmem %s8011_s7, %s8105_s28  ;;  %s336_s23 = scalar_lea.vmem %s8012_s8, %s8105_s28 }
  0x13   : > { %5276 = vmatpush3.bf16.msra.mxu0 %v5821_v4  ;;  %5802 = vmatpush3.bf16.msra.mxu1 %v5821_v4  ;;  %v6143_v27 = vld [vmem:[%s8005_s1] ss:$0 sm:$0xff]  ;;  %v361_v32 = vld [vmem:[%s6126_s10 + $0xb8] sm:$0xff]  ;;  %v5831_v33 = vld [vmem:[%s8008_s4 + $0x30] sm:$0xff]  }
  0x14   : > { %5277 = vmatprep.subr.bf16.mxu0 %v5822_v5  ;;  %5795 = vmatprep.subr.bf16.mxu1 %v5822_v5  ;;  %v6148_v30 = vld [vmem:[%s8006_s2] ss:$0 sm:$0xff]  ;;  %v377_v34 = vmul.f32 %v6143_v27, %v338_v22  ;;  %v378_v35 = vmul.f32 %v6143_v27, %v339_v23  ;;  %v399_v36 = vmul.f32 %v6143_v27, %v360_v31  ;;  %v5832_v38 = vld [vmem:[%s8008_s4 + $0x78] sm:$0xff]   ;;  %v720_v44 = vld [vmem:[#allocation2 + $0x10] sm:$0x8] }
  0x15   : > { %v1251_v12 = vld [vmem:[#allocation2] sm:$0xf0]  ;;  %v1252_v13 = vld [vmem:[#allocation2 + $0x8] sm:$0xf]  ;;  %v400_v37 = vmul.f32 %v6143_v27, %v361_v32  ;;  %v753_v45 = vld [vmem:[#allocation2 + $0xc0] sm:$0x8] }
  0x16   : > { %v1316_v14 = vrot.slane %v1251_v12, 4  ;;  %v1317_v15 = vrot.slane %v1252_v13, 4  ;;  %v915_v16 = vld [vmem:[#allocation2] sm:$0xf8]  ;;  %v916_v17 = vld [vmem:[#allocation2 + $0x8] sm:$0xf]  ;;  %v6163_v41 = vadd.f32 %v6148_v30, %v377_v34  ;;  %v6166_v42 = vadd.f32 %v6148_v30, %v378_v35  ;;  %vm6175_vm4 = vmand %vm717_vm1, %vm718_vm2 }
  0x17   : > { %5278 = vmatpush3.bf16.msra.mxu0 %v5823_v6  ;;  %5803 = vmatpush3.bf16.msra.mxu1 %v5823_v6  ;;  %v948_v18 = vshrl.u32 %v915_v16, 16  ;;  %v951_v19 = vshll.u32 %v915_v16, 16  ;;  %v956_v20 = vshrl.u32 %v916_v17, 16  ;;  %v959_v21 = vshll.u32 %v916_v17, 16  ;;  %v5833_v52 = vld [vmem:[%s8008_s4 + $0x38] sm:$0xff]   ;;  %v5834_v55 = vld [vmem:[%s8008_s4 + $0xc0] sm:$0xff]   ;;  %vm6592_vm7 = vmand %vm768_vm6, %vm769_vm3 }
  0x18   : > { %5279 = vmatprep.subr.bf16.mxu0 %v5824_v7  ;;  %5796 = vmatprep.subr.bf16.mxu1 %v5824_v7  ;;  %v1318_v26 = vsel %vm1315_vm0, %v1316_v14, %v1317_v15  ;;  %v6169_v43 = vadd.f32 %v6148_v30, %v399_v36  ;;  %v6172_v46 = vadd.f32 %v6148_v30, %v400_v37  ;;  %v5163_v49 = vmul.f32 -1.442695, %v6163_v41  ;;  %v5835_v58 = vld [vmem:[%s8008_s4 + $0x140] sm:$0xff]   ;;  %v340_v59 = vld [vmem:[%s6126_s10 + $0x10] sm:$0xff]  ;;  %v341_v61 = vld [vmem:[%s6126_s10 + $0x18] sm:$0xff] }
  0x19   : > { %v950_v28 = vrot.slane %v948_v18, 3  ;;  %v953_v29 = vrot.slane %v951_v19, 4  ;;  %4125 = vmatprep.mubr.bf16.mxu0 %v1318_v26  ;;  %v958_v39 = vrot.slane %v956_v20, 3  ;;  %v961_v40 = vrot.slane %v959_v21, 4  ;;  %v362_v63 = vld [vmem:[%s6126_s10 + $0xc0] sm:$0xff]  ;;  %v363_v0 = vld [vmem:[%s6126_s10 + $0xc8] sm:$0xff] }
  0x1a   : > { %v5164_v50 = vmul.f32 -1.442695, %v6166_v42  ;;  %v5185_v51 = vmul.f32 -1.442695, %v6169_v43  ;;  %v5186_v54 = vmul.f32 -1.442695, %v6172_v46  ;;  %5890 = vpow2.f32 %v5163_v49 }
  0x1b   : > { %5280 = vmatpush3.bf16.msra.mxu0 %v5825_v8  ;;  %5804 = vmatpush3.bf16.msra.mxu1 %v5825_v8  ;;  %v954_v48 = vor.u32 %v953_v29, %v950_v28  ;;  %v962_v53 = vor.u32 %v961_v40, %v958_v39  ;;  %v721_v56 = vsel %vm6175_vm4, 0, %v720_v44  ;;  %v754_v57 = vsel %vm6175_vm4, 0, %v753_v45  ;;  %v5837_v1 = vld [vmem:[%s8008_s4 + $0x100] sm:$0xff]   ;;  %v756_v7 = vld [vmem:[#allocation2 + $0xd0] sm:$0x8]  ;;  %v5843_v17 = vld [vmem:[%s8008_s4 + $0x148] sm:$0xff]  }
  0x1c   : > { %5281 = vmatprep.subr.bf16.mxu0 %v5826_v9  ;;  %5797 = vmatprep.subr.bf16.mxu1 %v5826_v9  ;;  %722 = vst [vmem:[#allocation2 + $0x10] sm:$0x8] %v721_v56  ;;  %755 = vst [vmem:[#allocation2 + $0xc0] sm:$0x8] %v754_v57  ;;  %5892 = vpow2.f32 %v5164_v50  ;;  %v379_v62 = vmul.f32 %v6143_v27, %v340_v59  ;;  %v380_v2 = vmul.f32 %v6143_v27, %v341_v61  ;;  %v723_v6 = vld [vmem:[#allocation2 + $0x20] sm:$0x8] }
  0x1d   : > { %5894 = vpow2.f32 %v5185_v51  ;;  %v963_v60 = vsel %vm769_vm3, %v954_v48, %v962_v53  ;;  %v401_v3 = vmul.f32 %v6143_v27, %v362_v63  ;;  %v402_v4 = vmul.f32 %v6143_v27, %v363_v0  ;;  %v5845_v21 = vld [vmem:[%s8008_s4 + $0x108] sm:$0xff]   ;;  %v364_v26 = vld [vmem:[%s6126_s10 + $0xd0] sm:$0xff]  ;;  %v345_v56 = vld [vmem:[%s6126_s10 + $0x38] sm:$0xff] }
  0x1e   : > { %5896 = vpow2.f32 %v5186_v54  ;;  %v6209_v5 = vadd.f32 %v6148_v30, %v379_v62  ;;  %v6212_v8 = vadd.f32 %v6148_v30, %v380_v2  ;;  %v757_v13 = vsel %vm6175_vm4, 0, %v756_v7  ;;  %v726_v37 = vld [vmem:[#allocation2 + $0x30] sm:$0x8]  ;;  %v366_v61 = vld [vmem:[%s6126_s10 + $0xe0] sm:$0xff]  ;;  %v367_v62 = vld [vmem:[%s6126_s10 + $0xe8] sm:$0xff] }
  0x1f   : > { %5282 = vmatpush3.bf16.msra.mxu0 %v5827_v10  ;;  %5805 = vmatpush3.bf16.msra.mxu1 %v5827_v10  ;;  %v6215_v9 = vadd.f32 %v6148_v30, %v401_v3  ;;  %v6218_v10 = vadd.f32 %v6148_v30, %v402_v4  ;;  %758 = vst [vmem:[#allocation2 + $0xd0] sm:$0x8] %v757_v13  ;;  %v727_v44 = vsel %vm6175_vm4, 0, %v726_v37  ;;  %v6275_v0 = vld [vmem:[%s6264_s21] ss:$0 sm:$0xff] }
  0x20   : > { %5283 = vmatprep.subr.bf16.mxu0 %v5828_v11  ;;  %5798 = vmatprep.subr.bf16.mxu1 %v5828_v11  ;;  %v724_v11 = vsel %vm6175_vm4, 0, %v723_v6  ;;  %v5165_v12 = vmul.f32 -1.442695, %v6209_v5  ;;  %v5166_v14 = vmul.f32 -1.442695, %v6212_v8  ;;  %v403_v35 = vmul.f32 %v6143_v27, %v364_v26 }
  0x21   : > { %725 = vst [vmem:[#allocation2 + $0x20] sm:$0x8] %v724_v11  ;;  %v5187_v15 = vmul.f32 -1.442695, %v6215_v9  ;;  %v5188_v16 = vmul.f32 -1.442695, %v6218_v10  ;;  %v405_v2 = vmul.f32 %v6143_v27, %v366_v61  ;;  %v406_v3 = vmul.f32 %v6143_v27, %v367_v62 }
  0x22   : > { %5898 = vpow2.f32 %v5165_v12  ;;  %v6251_v45 = vadd.f32 %v6148_v30, %v403_v35  ;;  %728 = vst [vmem:[#allocation2 + $0x30] sm:$0x8] %v727_v44  ;;  %v5851_v12 = vld [vmem:[%s8008_s4 + $0x150] sm:$0xff]   ;;  %v729_v13 = vld [vmem:[#allocation2 + $0x40] sm:$0x8]  ;;  %v347_v44 = vld [vmem:[%s6126_s10 + $0x48] sm:$0xff] }
  0x23   : > { %5284 = vmatpush3.bf16.msra.mxu0 %v5829_v24  ;;  %5806 = vmatpush3.bf16.msra.mxu1 %v5829_v24  ;;  %5900 = vpow2.f32 %v5166_v14  ;;  %v342_v24 = vld [vmem:[%s6126_s10 + $0x20] sm:$0xff] }
  0x24   : > { %5285 = vmatprep.subr.bf16.mxu0 %v5830_v25  ;;  %5799 = vmatprep.subr.bf16.mxu1 %v5830_v25  ;;  %v5891_v18 = vpop.eup %5890  ;;  %5902 = vpow2.f32 %v5187_v15  ;;  %v343_v25 = vld [vmem:[%s6126_s10 + $0x28] sm:$0xff]  ;;  %v381_v31 = vmul.f32 %v6143_v27, %v342_v24  ;;  %v346_v35 = vld [vmem:[%s6126_s10 + $0x40] sm:$0xff] }
  0x25   : > { %v544_v20 = vadd.f32 1.0, %v5891_v18  ;;  %5904 = vpow2.f32 %v5188_v16  ;;  %v382_v32 = vmul.f32 %v6143_v27, %v343_v25  ;;  %v6289_v16 = vadd.f32 %v6148_v30, %v405_v2  ;;  %v762_v18 = vld [vmem:[#allocation2 + $0xf0] sm:$0x8] }
  0x26   : > { %v5893_v19 = vpop.eup %5892  ;;  %v6243_v39 = vadd.f32 %v6148_v30, %v381_v31  ;;  %v730_v31 = vsel %vm6175_vm4, 0, %v729_v13 }
  0x27   : > { %5286 = vmatpush3.bf16.msra.mxu0 %v5831_v33  ;;  %5807 = vmatpush3.bf16.msra.mxu1 %v5831_v33  ;;  %v5895_v22 = vpop.eup %5894  ;;  %v545_v23 = vadd.f32 1.0, %v5893_v19  ;;  %5906 = vrcp.f32 %v544_v20  ;;  %v365_v33 = vld [vmem:[%s6126_s10 + $0xd8] sm:$0xff]  ;;  %v6246_v40 = vadd.f32 %v6148_v30, %v382_v32  ;;  %v5191_v25 = vmul.f32 -1.442695, %v6289_v16  ;;  %731 = vst [vmem:[#allocation2 + $0x40] sm:$0x8] %v730_v31 }
  0x28   : > { %5287 = vmatprep.subr.bf16.mxu0 %v5832_v38  ;;  %5800 = vmatprep.subr.bf16.mxu1 %v5832_v38  ;;  %v5897_v28 = vpop.eup %5896  ;;  %v566_v29 = vadd.f32 1.0, %v5895_v22  ;;  %v404_v36 = vmul.f32 %v6143_v27, %v365_v33  ;;  %v759_v38 = vld [vmem:[#allocation2 + $0xe0] sm:$0x8]  ;;  %v5167_v50 = vmul.f32 -1.442695, %v6243_v39  ;;  %v349_v31 = vld [vmem:[%s6126_s10 + $0x58] sm:$0xff] }
  0x29   : > { %5908 = vrcp.f32 %v545_v23  ;;  %v567_v34 = vadd.f32 1.0, %v5897_v28  ;;  %v760_v49 = vsel %vm6175_vm4, 0, %v759_v38  ;;  %v5168_v51 = vmul.f32 -1.442695, %v6246_v40 }
  0x2a   : > { %5910 = vrcp.f32 %v566_v29  ;;  %v6254_v48 = vadd.f32 %v6148_v30, %v404_v36  ;;  %761 = vst [vmem:[#allocation2 + $0xe0] sm:$0x8] %v760_v49  ;;  %v385_v49 = vmul.f32 %v6143_v27, %v346_v35 }
  0x2b   : > { %5288 = vmatpush3.bf16.msra.mxu0 %v5833_v52  ;;  %5808 = vmatpush3.bf16.msra.mxu1 %v5833_v52  ;;  %5912 = vrcp.f32 %v567_v34  ;;  %v5189_v52 = vmul.f32 -1.442695, %v6251_v45  ;;  %v763_v34 = vsel %vm6175_vm4, 0, %v762_v18 }
  0x2c   : > { %5385 = vmatprep.subr.bf16.mxu1 %v5834_v55  ;;  %5497 = vmatprep.subr.bf16.mxu0 %v5835_v58  ;;  %v5899_v53 = vpop.eup %5898  ;;  %5914 = vpow2.f32 %v5167_v50  ;;  %v5190_v54 = vmul.f32 -1.442695, %v6254_v48  ;;  %v344_v55 = vld [vmem:[%s6126_s10 + $0x30] sm:$0xff]  ;;  %764 = vst [vmem:[#allocation2 + $0xf0] sm:$0x8] %v763_v34 }
  0x2d   : > { %v5901_v57 = vpop.eup %5900  ;;  %v546_v58 = vadd.f32 1.0, %v5899_v53  ;;  %5916 = vpow2.f32 %v5168_v51  ;;  %v383_v59 = vmul.f32 %v6143_v27, %v344_v55  ;;  %v386_v51 = vmul.f32 %v6143_v27, %v347_v44 }
  0x2e   : > { %4126 = vmatmul.mubr.bf16.vlgmr.msra.gmra.mrb[0].mxu0 %v963_v60  ;;  %v384_v60 = vmul.f32 %v6143_v27, %v345_v56  ;;  %v5903_v63 = vpop.eup %5902  ;;  %5918 = vpow2.f32 %v5189_v52  ;;  %v732_v52 = vld [vmem:[#allocation2 + $0x50] sm:$0x8] }
  0x2f   : > { %5498 = vmatpush3.bf16.msra.mxu0 %v5837_v1  ;;  %v547_v1 = vadd.f32 1.0, %v5901_v57  ;;  %v5905_v4 = vpop.eup %5904  ;;  %5920 = vrcp.f32 %v546_v58  ;;  %v568_v6 = vadd.f32 1.0, %v5903_v63  ;;  %v6280_v7 = vadd.f32 %v6148_v30, %v383_v59  ;;  %v1396_v58 = vld [vmem:[#allocation2] sm:$0xf0]  ;;  %v6325_v63 = vld [vmem:[#allocation2 + $0x8] sm:$0x1f] }
  0x30   : > { %5499 = vmatprep.subr.bf16.mxu0 %v5843_v17  ;;  %v6283_v11 = vadd.f32 %v6148_v30, %v384_v60  ;;  %v569_v15 = vadd.f32 1.0, %v5905_v4  ;;  %v6292_v17 = vadd.f32 %v6148_v30, %v406_v3  ;;  %v6318_v57 = vadd.f32 %v6148_v30, %v385_v49 }
  0x31   : > { %v5907_v14 = vpop.eup %5906  ;;  %5922 = vrcp.f32 %v547_v1  ;;  %v6321_v61 = vadd.f32 %v6148_v30, %v386_v51  ;;  %v733_v62 = vsel %vm6175_vm4, 0, %v732_v52  ;;  %v5858_v1 = vld [vmem:[%s8008_s4 + $0x158] sm:$0xff]   ;;  %v1430_v18 = vshrl.u32 %v1396_v58, 16 }
  0x32   : > { %v640_v20 = vmul.f32 %v5907_v14, %v6163_v41  ;;  %5924 = vrcp.f32 %v568_v6  ;;  %v5170_v22 = vmul.f32 -1.442695, %v6283_v11  ;;  %v5192_v26 = vmul.f32 -1.442695, %v6292_v17  ;;  %734 = vst [vmem:[#allocation2 + $0x50] sm:$0x8] %v733_v62 }
  0x33   : > { %5500 = vmatpush3.bf16.msra.mxu0 %v5845_v21  ;;  %v5909_v19 = vpop.eup %5908  ;;  %v5169_v21 = vmul.f32 -1.442695, %v6280_v7  ;;  %5926 = vrcp.f32 %v569_v15  ;;  %v5171_v6 = vmul.f32 -1.442695, %v6318_v57  ;;  %v5172_v15 = vmul.f32 -1.442695, %v6321_v61 }
  0x34   : > { %5501 = vmatprep.subr.bf16.mxu0 %v5851_v12  ;;  %v5911_v23 = vpop.eup %5910  ;;  %v641_v24 = vmul.f32 %v5909_v19, %v6166_v42  ;;  %v679_v29 = vadd.f32 %v6275_v0, %v640_v20  ;;  %5928 = vpow2.f32 %v5190_v54  ;;  %v5853_v42 = vld [vmem:[%s8008_s4 + $0x110] sm:$0xff]   ;;  %v5859_v12 = vld [vmem:[%s8008_s4 + $0x118] sm:$0xff]   ;;  %v1441_v34 = vshll.u32 %v6325_v63, 16 }
  0x35   : > { %v5913_v28 = vpop.eup %5912  ;;  %v662_v41 = vmul.f32 %v5911_v23, %v6169_v43  ;;  %5930 = vpow2.f32 %v5169_v21  ;;  %v1433_v21 = vshll.u32 %v1396_v58, 16 }
  0x36   : > { %v680_v32 = vadd.f32 %v6275_v0, %v641_v24  ;;  %v663_v33 = vmul.f32 %v5913_v28, %v6172_v46  ;;  %5932 = vpow2.f32 %v5170_v22  ;;  %v5915_v36 = vpop.eup %5914  ;;  %v6345_v24 = vrot.slane %v1430_v18, 4 }
  0x37   : > { %v701_v43 = vadd.f32 %v6275_v0, %v662_v41  ;;  %5502 = vmatpush3.bf16.msra.mxu0 %v5853_v42  ;;  %5934 = vpow2.f32 %v5191_v25  ;;  %v5917_v46 = vpop.eup %5916  ;;  %v548_v50 = vadd.f32 1.0, %v5915_v36  ;;  %v348_v25 = vld [vmem:[%s6126_s10 + $0x50] sm:$0xff]  ;;  %v6351_v41 = vrot.slane %v1433_v21, 5 }
  0x38   : > { %v819_v37 = vpack.c.bf16 %v680_v32, %v679_v29  ;;  %v702_v38 = vadd.f32 %v6275_v0, %v663_v33  ;;  %5936 = vpow2.f32 %v5192_v26  ;;  %v5919_v53 = vpop.eup %5918  ;;  %v549_v56 = vadd.f32 1.0, %v5917_v46  ;;  %5503 = vmatprep.subr.bf16.mxu0 %v5858_v1 }
  0x39   : > { %v5921_v59 = vpop.eup %5920  ;;  %5938 = vrcp.f32 %v548_v50  ;;  %v570_v60 = vadd.f32 1.0, %v5919_v53  ;;  %v387_v52 = vmul.f32 %v6143_v27, %v348_v25  ;;  %v6371_v53 = vmul.f32 %v6143_v27, %v349_v31 }
  0x3a   : > { %v851_v54 = vrot.slane %v819_v37, 4  ;;  %v830_v55 = vpack.c.bf16 %v702_v38, %v701_v43  ;;  %v642_v4 = vmul.f32 %v5921_v59, %v6209_v5  ;;  %5940 = vrcp.f32 %v549_v56  ;;  %v5860_v43 = vld [vmem:[%s8008_s4 + $0x160] sm:$0xff]  }
  0x3b   : > { %v5923_v2 = vpop.eup %5922  ;;  %5942 = vrcp.f32 %v570_v60  ;;  %5504 = vmatpush3.bf16.msra.mxu0 %v5859_v12  ;;  %v1436_v37 = vor.u32 %v6351_v41, %v6345_v24 }
  0x3c   : > { %883 = vst [vmem:[#allocation2 + $0x18] ss:$-4 sps:$4 sm:$0xff] %v851_v54   ;;  %v862_v3 = vrot.slane %v830_v55, 4  ;;  %v5925_v13 = vpop.eup %5924  ;;  %v643_v14 = vmul.f32 %v5923_v2, %v6212_v8  ;;  %v6338_v5 = vadd.f32 %v6275_v0, %v642_v4  ;;  %5944 = vpow2.f32 %v5171_v6  ;;  %5505 = vmatprep.subr.bf16.mxu0 %v5860_v43 }
  0x3d   : > { %v5927_v19 = vpop.eup %5926  ;;  %v664_v20 = vmul.f32 %v5925_v13, %v6215_v9  ;;  %5946 = vpow2.f32 %v5172_v15  ;;  %v1438_v9 = vshrl.u32 %v6325_v63, 16  ;;  %v6374_v4 = vadd.f32 %v6148_v30, %v387_v52 }
  0x3e   : > { %905 = vst [vmem:[#allocation2 + $0xc8] ss:$-4 sps:$4 sm:$0xff] %v862_v3   ;;  %v5929_v22 = vpop.eup %5928  ;;  %v6342_v8 = vadd.f32 %v6275_v0, %v643_v14  ;;  %v665_v23 = vmul.f32 %v5927_v19, %v6218_v10  ;;  %v5862_v19 = vld [vmem:[%s8008_s4 + $0x120] sm:$0xff]  }
  0x3f   : > { %v5931_v26 = vpop.eup %5930  ;;  %v6349_v28 = vadd.f32 %v6275_v0, %v664_v20  ;;  %v571_v29 = vadd.f32 1.0, %v5929_v22  ;;  %v6366_v38 = vrot.slane %v1438_v9, 4  ;;  %5506 = vmatpush3.bf16.msra.mxu0 %v5862_v19  ;;  %v5840_v19 = vld [vmem:[%s8008_s4 + $0xd0] sm:$0xff]  }
  0x40   : > { %v5933_v42 = vpop.eup %5932  ;;  %v820_v32 = vpack.c.bf16 %v6342_v8, %v6338_v5  ;;  %v704_v10 = vadd.f32 %v6275_v0, %v665_v23  ;;  %v550_v33 = vadd.f32 1.0, %v5931_v26 }
  0x41   : > { %v6362_v35 = vpop.eup %5934  ;;  %5948 = vrcp.f32 %v571_v29  ;;  %v551_v36 = vadd.f32 1.0, %v5933_v42 }
  0x42   : > { %v5937_v44 = vpop.eup %5936  ;;  %v831_v51 = vpack.c.bf16 %v704_v10, %v6349_v28  ;;  %5950 = vrcp.f32 %v550_v33  ;;  %v852_v43 = vrot.slane %v820_v32, 4 }
  0x43   : > { %v1253_v49 = vld [vmem:[#allocation2 + $0x10] sm:$0xf0]  ;;  %v1254_v46 = vld [vmem:[#allocation2 + $0x18] sm:$0xf]  ;;  %v5939_v60 = vpop.eup %5938  ;;  %5952 = vrcp.f32 %v551_v36 }
  0x44   : > { %v917_v50 = vld [vmem:[#allocation2 + $0x10] sm:$0xf8]  ;;  %v1319_v54 = vrot.slane %v1253_v49, 4  ;;  %v1320_v55 = vrot.slane %v1254_v46, 4  ;;  %v918_v56 = vld [vmem:[#allocation2 + $0x18] sm:$0xf]  ;;  %v5941_v6 = vpop.eup %5940 }
  0x45   : > { %v965_v58 = vshrl.u32 %v917_v50, 16  ;;  %v968_v59 = vshll.u32 %v917_v50, 16  ;;  %v1275_v62 = vld [vmem:[#allocation2 + $0xc0] sm:$0xf0]  ;;  %v1276_v1 = vld [vmem:[#allocation2 + $0xc8] sm:$0xf]  ;;  %v5943_v5 = vpop.eup %5942 }
  0x46   : > { %v973_v2 = vshrl.u32 %v918_v56, 16  ;;  %v976_v3 = vshll.u32 %v918_v56, 16  ;;  %v1321_v12 = vsel %vm1315_vm0, %v1319_v54, %v1320_v55  ;;  %v1352_v13 = vrot.slane %v1275_v62, 4  ;;  %v939_v18 = vld [vmem:[#allocation2 + $0xc0] sm:$0xf8]  ;;  %v5945_v25 = vpop.eup %5944 }
  0x47   : > { %v1353_v14 = vrot.slane %v1276_v1, 4  ;;  %v967_v15 = vrot.slane %v965_v58, 3  ;;  %4133 = vmatprep.mubr.bf16.mxu0 %v1321_v12  ;;  %v970_v20 = vrot.slane %v968_v59, 4  ;;  %v940_v8 = vld [vmem:[#allocation2 + $0xc8] sm:$0xf]  ;;  %v1152_v23 = vshrl.u32 %v939_v18, 16  ;;  %v5947_v31 = vpop.eup %5946 }
  0x48   : > { %v975_v21 = vrot.slane %v973_v2, 3  ;;  %v978_v22 = vrot.slane %v976_v3, 4  ;;  %v1155_v28 = vshll.u32 %v939_v18, 16  ;;  %v1160_v29 = vshrl.u32 %v940_v8, 16  ;;  %v5836_v54 = vld [vmem:[%s8008_s4 + $0x80] sm:$0xff]   ;;  %v5838_v3 = vld [vmem:[%s8008_s4 + $0xc8] sm:$0xff]  }
  0x49   : > { %v1354_v26 = vsel %vm1315_vm0, %v1352_v13, %v1353_v14  ;;  %v1163_v9 = vshll.u32 %v940_v8, 16  ;;  %v971_v42 = vor.u32 %v970_v20, %v967_v15  ;;  %v1154_v33 = vrot.slane %v1152_v23, 3  ;;  %885 = vst [vmem:[#allocation2 + $0x28] ss:$-4 sps:$4 sm:$0xff] %v852_v43   ;;  %v350_v12 = vld [vmem:[%s6126_s10 + $0x60] sm:$0xff]  ;;  %v351_v15 = vld [vmem:[%s6126_s10 + $0x68] sm:$0xff] }
  0x4a   : > { %4221 = vmatprep.mubr.bf16.mxu1 %v1354_v26  ;;  %v979_v10 = vor.u32 %v978_v22, %v975_v21  ;;  %v1157_v36 = vrot.slane %v1155_v28, 4  ;;  %v1162_v49 = vrot.slane %v1160_v29, 3  ;;  %v863_v50 = vrot.slane %v831_v51, 4  ;;  %v5865_v21 = vld [vmem:[%s8008_s4 + $0x128] sm:$0xff]   ;;  %v353_v26 = vld [vmem:[%s6126_s10 + $0x78] sm:$0xff] }
  0x4b   : > { %v1165_v46 = vrot.slane %v1163_v9, 4  ;;  %v644_v55 = vmul.f32 %v5939_v60, %v6243_v39  ;;  %v645_v56 = vmul.f32 %v5941_v6, %v6246_v40  ;;  %v666_v58 = vmul.f32 %v5943_v5, %v6251_v45  ;;  %v5949_v59 = vpop.eup %5948  ;;  %v6398_v6 = vld [vmem:[#allocation2 + $0x10] sm:$0xf8] }
  0x4c   : > { %v980_v52 = vsel %vm769_vm3, %v971_v42, %v979_v10  ;;  %v1158_v32 = vor.u32 %v1157_v36, %v1154_v33  ;;  %907 = vst [vmem:[#allocation2 + $0xd8] ss:$-4 sps:$4 sm:$0xff] %v863_v50   ;;  %v572_v51 = vadd.f32 1.0, %v6362_v35  ;;  %v573_v1 = vadd.f32 1.0, %v5937_v44  ;;  %v5951_v2 = vpop.eup %5950  ;;  %v5839_v44 = vld [vmem:[%s8008_s4 + $0x88] sm:$0xff]   ;;  %v5841_v10 = vld [vmem:[%s8008_s4 + $0x90] sm:$0xff]  }
  0x4d   : > { %4134 = vmatmul.mubr.bf16.gmra.mrb[4].mxu0 %v980_v52  ;;  %v1166_v62 = vor.u32 %v1165_v46, %v1162_v49  ;;  %v683_v39 = vadd.f32 %v6275_v0, %v644_v55  ;;  %v684_v40 = vadd.f32 %v6275_v0, %v645_v56  ;;  %v667_v45 = vmul.f32 %v5949_v59, %v6254_v48  ;;  %v5864_v48 = vld [vmem:[%s8008_s4 + $0x168] sm:$0xff]   ;;  %v5953_v18 = vpop.eup %5952  ;;  %v5842_v55 = vld [vmem:[%s8008_s4 + $0xd8] sm:$0xff]  }
  0x4e   : > { %v6396_v60 = vadd.f32 %v6275_v0, %v666_v58  ;;  %v646_v13 = vmul.f32 %v5951_v2, %v6280_v7  ;;  %5954 = vrcp.f32 %v572_v51  ;;  %v552_v14 = vadd.f32 1.0, %v5945_v25  ;;  %v352_v25 = vld [vmem:[%s6126_s10 + $0x70] sm:$0xff]  ;;  %5507 = vmatprep.subr.bf16.mxu0 %v5864_v48 }
  0x4f   : > { %v1167_v35 = vsel %vm769_vm3, %v1158_v32, %v1166_v62  ;;  %v821_v5 = vpack.c.bf16 %v684_v40, %v683_v39  ;;  %v6414_v20 = vadd.f32 %v6275_v0, %v667_v45  ;;  %5956 = vrcp.f32 %v573_v1  ;;  %5508 = vmatpush3.bf16.msra.mxu0 %v5865_v21 }
  0x50   : > { %4222 = vmatmul.mubr.bf16.vlgmr.msra.gmra.mrb[0].mxu1 %v1167_v35  ;;  %v553_v7 = vadd.f32 1.0, %v5947_v31  ;;  %v647_v22 = vmul.f32 %v5953_v18, %v6283_v11  ;;  %v6421_v8 = vadd.f32 %v6275_v0, %v646_v13  ;;  %5958 = vrcp.f32 %v552_v14  ;;  %v1255_v31 = vld [vmem:[#allocation2 + $0x20] sm:$0xf0]  ;;  %v1256_v11 = vld [vmem:[#allocation2 + $0x28] sm:$0xf] }
  0x51   : > { %5386 = vmatpush3.bf16.msra.mxu1 %v5836_v54  ;;  %v1766_v23 = vshrl.u32 %v6398_v6, 16  ;;  %v853_v28 = vrot.slane %v821_v5, 4  ;;  %v832_v29 = vpack.c.bf16 %v6414_v20, %v6396_v60  ;;  %v1769_v9 = vshll.u32 %v6398_v6, 16  ;;  %v919_v42 = vld [vmem:[#allocation2 + $0x20] sm:$0xf8]  ;;  %v5844_v5 = vld [vmem:[%s8008_s4 + $0x98] sm:$0xff]  }
  0x52   : > { %5387 = vmatprep.subr.bf16.mxu1 %v5838_v3  ;;  %5960 = vrcp.f32 %v553_v7  ;;  %v686_v33 = vadd.f32 %v6275_v0, %v647_v22  ;;  %v6435_v43 = vadd.f32 %v6148_v30, %v6371_v53  ;;  %v6438_v36 = vmul.f32 %v6143_v27, %v350_v12  ;;  %v920_v59 = vld [vmem:[#allocation2 + $0x28] sm:$0xf]  ;;  %v6505_v6 = vld [vmem:[%s8006_s2] ss:$0 sm:$0xff] }
  0x53   : > { %v6441_v49 = vmul.f32 %v6143_v27, %v351_v15  ;;  %v1322_v46 = vrot.slane %v1255_v31, 4  ;;  %v1323_v50 = vrot.slane %v1256_v11, 4  ;;  %v1277_v52 = vld [vmem:[#allocation2 + $0xd0] sm:$0xf0]  ;;  %v1278_v54 = vld [vmem:[#allocation2 + $0xd8] sm:$0xf]  ;;  %v6447_v56 = vmul.f32 %v6143_v27, %v352_v25 }
  0x54   : > { %887 = vst [vmem:[#allocation2 + $0x38] ss:$-4 sps:$4 sm:$0xff] %v853_v28   ;;  %v6450_v30 = vmul.f32 %v6143_v27, %v353_v26  ;;  %v1355_v53 = vrot.slane %v1277_v52, 4  ;;  %v1356_v58 = vrot.slane %v1278_v54, 4  ;;  %v982_v32 = vshrl.u32 %v919_v42, 16  ;;  %v5846_v25 = vld [vmem:[%s8008_s4 + $0xe0] sm:$0xff]  }
  0x55   : > { %5388 = vmatpush3.bf16.msra.mxu1 %v5839_v44  ;;  %v985_v62 = vshll.u32 %v919_v42, 16  ;;  %v1324_v51 = vsel %vm1315_vm0, %v1322_v46, %v1323_v50  ;;  %v990_v1 = vshrl.u32 %v920_v59, 16  ;;  %v993_v2 = vshll.u32 %v920_v59, 16  ;;  %v941_v3 = vld [vmem:[#allocation2 + $0xd0] sm:$0xf8] }
  0x56   : > { %5389 = vmatprep.subr.bf16.mxu1 %v5840_v19  ;;  %v942_v39 = vld [vmem:[#allocation2 + $0xd8] sm:$0xf]  ;;  %v822_v40 = vpack.c.bf16 %v686_v33, %v6421_v8  ;;  %4141 = vmatprep.mubr.bf16.mxu0 %v1324_v51  ;;  %v1357_v45 = vsel %vm1315_vm0, %v1355_v53, %v1356_v58  ;;  %v984_v27 = vrot.slane %v982_v32, 3  ;;  %v1169_v12 = vshrl.u32 %v941_v3, 16 }
  0x57   : > { %v987_v60 = vrot.slane %v985_v62, 4  ;;  %4229 = vmatprep.mubr.bf16.mxu1 %v1357_v45  ;;  %v992_v35 = vrot.slane %v990_v1, 3  ;;  %v995_v44 = vrot.slane %v993_v2, 4  ;;  %v1172_v13 = vshll.u32 %v941_v3, 16  ;;  %v5848_v1 = vld [vmem:[%s8008_s4 + $0xe8] sm:$0xff]  }
  0x58   : > { %v1177_v14 = vshrl.u32 %v942_v39, 16  ;;  %v5955_v15 = vpop.eup %5954  ;;  %v1171_v18 = vrot.slane %v1169_v12, 3  ;;  %v1180_v19 = vshll.u32 %v942_v39, 16  ;;  %v864_v20 = vrot.slane %v832_v29, 4  ;;  %v6477_v39 = vld [vmem:[#allocation2 + $0x18] sm:$0xf] }
  0x59   : > { %v988_v48 = vor.u32 %v987_v60, %v984_v27  ;;  %5390 = vmatpush3.bf16.msra.mxu1 %v5841_v10  ;;  %v5957_v7 = vpop.eup %5956  ;;  %v996_v21 = vor.u32 %v995_v44, %v992_v35  ;;  %v1174_v22 = vrot.slane %v1172_v13, 4  ;;  %v854_v26 = vrot.slane %v822_v40, 4  ;;  %v5868_v40 = vld [vmem:[%s8008_s4 + $0x170] sm:$0xff]   ;;  %v5849_v13 = vld [vmem:[%s8008_s4 + $0xa8] sm:$0xff]  }
  0x5a   : > { %v1179_v8 = vrot.slane %v1177_v14, 3  ;;  %5391 = vmatprep.subr.bf16.mxu1 %v5842_v55  ;;  %v5959_v28 = vpop.eup %5958  ;;  %v1182_v31 = vrot.slane %v1180_v19, 4  ;;  %909 = vst [vmem:[#allocation2 + $0xe8] ss:$-4 sps:$4 sm:$0xff] %v864_v20   ;;  %v668_v10 = vmul.f32 %v5955_v15, %v6289_v16  ;;  %v669_v33 = vmul.f32 %v5957_v7, %v6292_v17  ;;  %v5847_v17 = vld [vmem:[%s8008_s4 + $0xa0] sm:$0xff]   ;;  %v5869_v35 = vld [vmem:[%s8008_s4 + $0x130] sm:$0xff]   ;;  %5509 = vmatprep.subr.bf16.mxu0 %v5868_v40 }
  0x5b   : > { %v1257_v11 = vld [vmem:[#allocation2 + $0x30] sm:$0xf0]  ;;  %v1258_v42 = vld [vmem:[#allocation2 + $0x38] sm:$0xf]  ;;  %v6465_v29 = vrot.slane %v1766_v23, 3  ;;  %v997_v50 = vsel %vm769_vm3, %v988_v48, %v996_v21  ;;  %v1175_v52 = vor.u32 %v1174_v22, %v1171_v18  ;;  %v648_v15 = vmul.f32 %v5959_v28, %v6318_v57  ;;  %5510 = vmatpush3.bf16.msra.mxu0 %v5869_v35  ;;  %v5856_v35 = vld [vmem:[%s8008_s4 + $0x1c0] sm:$0xff]  }
  0x5c   : > { %v5961_v46 = vpop.eup %5960  ;;  %v1325_v54 = vrot.slane %v1257_v11, 4  ;;  %v1326_v55 = vrot.slane %v1258_v42, 4  ;;  %v921_v53 = vld [vmem:[#allocation2 + $0x30] sm:$0xf8]  ;;  %v922_v58 = vld [vmem:[#allocation2 + $0x38] sm:$0xf]  ;;  %4142 = vmatmul.mubr.bf16.gmra.mrb[8].mxu0 %v997_v50  ;;  %v1183_v59 = vor.u32 %v1182_v31, %v1179_v8  ;;  %v707_v2 = vadd.f32 %v6275_v0, %v668_v10 }
  0x5d   : > { %889 = vst [vmem:[#allocation2 + $0x48] ss:$-4 sps:$4 sm:$0xff] %v854_v26   ;;  %5392 = vmatpush3.bf16.msra.mxu1 %v5844_v5  ;;  %v999_v32 = vshrl.u32 %v921_v53, 16  ;;  %v1002_v16 = vshll.u32 %v921_v53, 16  ;;  %v1007_v62 = vshrl.u32 %v922_v58, 16  ;;  %v1010_v51 = vshll.u32 %v922_v58, 16 }
  0x5e   : > { %v1327_v23 = vsel %vm1315_vm0, %v1325_v54, %v1326_v55  ;;  %5393 = vmatprep.subr.bf16.mxu1 %v5846_v25  ;;  %v708_v3 = vadd.f32 %v6275_v0, %v669_v33  ;;  %v1184_v45 = vsel %vm769_vm3, %v1175_v52, %v1183_v59  ;;  %v649_v48 = vmul.f32 %v5961_v46, %v6321_v61  ;;  %v5850_v19 = vld [vmem:[%s8008_s4 + $0xf0] sm:$0xff]  }
  0x5f   : > { %4149 = vmatprep.mubr.bf16.mxu0 %v1327_v23  ;;  %v1001_v27 = vrot.slane %v999_v32, 3  ;;  %v1004_v60 = vrot.slane %v1002_v16, 4  ;;  %v1009_v12 = vrot.slane %v1007_v62, 3  ;;  %4230 = vmatmul.mubr.bf16.gmra.mrb[4].mxu1 %v1184_v45  ;;  %v1012_v44 = vrot.slane %v1010_v51, 4  ;;  %v5852_v10 = vld [vmem:[%s8008_s4 + $0xb0] sm:$0xff]   ;;  %v5854_v32 = vld [vmem:[%s8008_s4 + $0xf8] sm:$0xff]  }
  0x60   : > { %v833_v14 = vpack.c.bf16 %v708_v3, %v707_v2  ;;  %v6496_v5 = vrot.slane %v1769_v9, 4  ;;  %v1774_v20 = vshrl.u32 %v6477_v39, 16  ;;  %v1777_v7 = vshll.u32 %v6477_v39, 16 }
  0x61   : > { %v1005_v18 = vor.u32 %v1004_v60, %v1001_v27  ;;  %5394 = vmatpush3.bf16.msra.mxu1 %v5847_v17  ;;  %v1279_v21 = vld [vmem:[#allocation2 + $0xe0] sm:$0xf0]  ;;  %v1280_v57 = vld [vmem:[#allocation2 + $0xe8] sm:$0xf]  ;;  %v1013_v22 = vor.u32 %v1012_v44, %v1009_v12  ;;  %v687_v8 = vadd.f32 %v6275_v0, %v648_v15  ;;  %v688_v25 = vadd.f32 %v6275_v0, %v649_v48  ;;  %v5855_v60 = vld [vmem:[%s8008_s4 + $0xb8] sm:$0xff]  }
  0x62   : > { %v943_v61 = vld [vmem:[#allocation2 + $0xe0] sm:$0xf8]  ;;  %5395 = vmatprep.subr.bf16.mxu1 %v5848_v1  ;;  %v6509_v9 = vadd.f32 %v6505_v6, %v6438_v36  ;;  %v1358_v26 = vrot.slane %v1279_v21, 4  ;;  %v1359_v28 = vrot.slane %v1280_v57, 4  ;;  %v944_v31 = vld [vmem:[#allocation2 + $0xe8] sm:$0xf]  ;;  %v1772_v48 = vor.u32 %v6496_v5, %v6465_v29 }
  0x63   : > { %v1186_v11 = vshrl.u32 %v943_v61, 16  ;;  %v1189_v42 = vshll.u32 %v943_v61, 16  ;;  %v1014_v0 = vsel %vm769_vm3, %v1005_v18, %v1013_v22  ;;  %v1194_v33 = vshrl.u32 %v944_v31, 16  ;;  %v6526_v44 = vld [vmem:[#allocation2 + $0x20] sm:$0xf8]  ;;  %v5872_v18 = vld [vmem:[%s8008_s4 + $0x178] sm:$0xff]  }
  0x64   : > { %v1197_v46 = vshll.u32 %v944_v31, 16  ;;  %v1259_v50 = vld [vmem:[#allocation2 + $0x40] sm:$0xf0]  ;;  %v1260_v52 = vld [vmem:[#allocation2 + $0x48] sm:$0xf]  ;;  %v823_v54 = vpack.c.bf16 %v688_v25, %v687_v8  ;;  %v1360_v36 = vsel %vm1315_vm0, %v1358_v26, %v1359_v28  ;;  %4150 = vmatmul.mubr.bf16.gmra.mrb[12].mxu0 %v1014_v0  ;;  %v865_v23 = vrot.slane %v833_v14, 4  ;;  %5511 = vmatprep.subr.bf16.mxu0 %v5872_v18 }
  0x65   : > { %v1188_v55 = vrot.slane %v1186_v11, 3  ;;  %v1191_v53 = vrot.slane %v1189_v42, 4  ;;  %5396 = vmatpush3.bf16.msra.mxu1 %v5849_v13  ;;  %v1328_v58 = vrot.slane %v1259_v50, 4  ;;  %v923_v59 = vld [vmem:[#allocation2 + $0x40] sm:$0xf8]  ;;  %4237 = vmatprep.mubr.bf16.mxu1 %v1360_v36  ;;  %v1196_v16 = vrot.slane %v1194_v33, 3 }
  0x66   : > { %v1199_v62 = vrot.slane %v1197_v46, 4  ;;  %v1329_v17 = vrot.slane %v1260_v52, 4  ;;  %5397 = vmatprep.subr.bf16.mxu1 %v5850_v19  ;;  %v924_v51 = vld [vmem:[#allocation2 + $0x48] sm:$0xf]  ;;  %v1016_v2 = vshrl.u32 %v923_v59, 16  ;;  %v1019_v3 = vshll.u32 %v923_v59, 16 }
  0x67   : > { %v1192_v1 = vor.u32 %v1191_v53, %v1188_v55  ;;  %v1024_v39 = vshrl.u32 %v924_v51, 16  ;;  %911 = vst [vmem:[#allocation2 + $0xf8] ss:$-4 sps:$4 sm:$0xff] %v865_v23   ;;  %v1027_v27 = vshll.u32 %v924_v51, 16  ;;  %v855_v12 = vrot.slane %v823_v54, 4  ;;  %v5873_v8 = vld [vmem:[%s8008_s4 + $0x138] sm:$0xff]  }
  0x68   : > { %v1200_v40 = vor.u32 %v1199_v62, %v1196_v16  ;;  %v1330_v45 = vsel %vm1315_vm0, %v1328_v58, %v1329_v17  ;;  %v1018_v13 = vrot.slane %v1016_v2, 3  ;;  %v1021_v14 = vrot.slane %v1019_v3, 4  ;;  %v6534_v61 = vld [vmem:[#allocation2 + $0x28] sm:$0xf]  ;;  %5512 = vmatpush3.bf16.msra.mxu0 %v5873_v8  ;;  %v354_v33 = vld [vmem:[%s6126_s10 + $0x80] sm:$0xff] }
  0x69   : > { %4157 = vmatprep.mubr.bf16.mxu0 %v1330_v45  ;;  %v1026_v15 = vrot.slane %v1024_v39, 3  ;;  %5398 = vmatpush3.bf16.msra.mxu1 %v5852_v10  ;;  %v1029_v21 = vrot.slane %v1027_v27, 4  ;;  %891 = vst [vmem:[#allocation2 + $0x58] ss:$-4 sps:$4 sm:$0xff] %v855_v12   ;;  %v1776_v57 = vrot.slane %v1774_v20, 3  ;;  %v1779_v22 = vrot.slane %v1777_v7, 4 }
  0x6a   : > { %v1201_v19 = vsel %vm769_vm3, %v1192_v1, %v1200_v40  ;;  %5399 = vmatprep.subr.bf16.mxu1 %v5854_v32  ;;  %v1022_v29 = vor.u32 %v1021_v14, %v1018_v13  ;;  %v1443_v5 = vrot.slane %v1441_v34, 5  ;;  %v5173_v25 = vmul.f32 -1.442695, %v6374_v4  ;;  %v355_v46 = vld [vmem:[%s6126_s10 + $0x88] sm:$0xff]  ;;  %v5875_v39 = vld [vmem:[%s8008_s4 + $0x200] sm:$0xff]  }
  0x6b   : > { %4238 = vmatmul.mubr.bf16.gmra.mrb[8].mxu1 %v1201_v19  ;;  %v5174_v26 = vmul.f32 -1.442695, %v6435_v43  ;;  %v1030_v20 = vor.u32 %v1029_v21, %v1026_v15  ;;  %v1780_v7 = vor.u32 %v1779_v22, %v1776_v57  ;;  %v1783_v28 = vshrl.u32 %v6526_v44, 16  ;;  %v735_v15 = vld [vmem:[#allocation2 + $0x60] sm:$0x8]  ;;  %5745 = vmatprep.subr.bf16.mxu0 %v5875_v39 }
  0x6c   : > { %v1786_v31 = vshll.u32 %v6526_v44, 16  ;;  %v1444_v11 = vor.u32 %v1443_v5, %v6366_v38  ;;  %5962 = vpow2.f32 %v5173_v25  ;;  %v1791_v63 = vshrl.u32 %v6534_v61, 16  ;;  %v771_v22 = vld [vmem:[#allocation2 + $0x18] sm:$0x10]  ;;  %v1398_v25 = vld [vmem:[#allocation2 + $0x10] sm:$0xf0] }
  0x6d   : > { %5400 = vmatpush3.bf16.msra.mxu1 %v5855_v60  ;;  %v1794_v34 = vshll.u32 %v6534_v61, 16  ;;  %v1031_v42 = vsel %vm769_vm3, %v1022_v29, %v1030_v20  ;;  %v6550_v10 = vsel %vm769_vm3, %v1772_v48, %v1780_v7  ;;  %5964 = vpow2.f32 %v5174_v26 }
  0x6e   : > { %5609 = vmatprep.subr.bf16.mxu1 %v5856_v35  ;;  %v6552_v0 = vrot.slane %v1783_v28, 3  ;;  %v1281_v50 = vld [vmem:[#allocation2 + $0xf0] sm:$0xf0]  ;;  %v1282_v52 = vld [vmem:[#allocation2 + $0xf8] sm:$0xf]  ;;  %4158 = vmatmul.mubr.bf16.gmra.mrb[16].mxu0 %v1031_v42  ;;  %v6560_v54 = vsel %vm1428_vm5, %v1436_v37, %v1444_v11  ;;  %v6564_v36 = vadd.f32 %v6505_v6, %v6441_v49  ;;  %v6568_v55 = vadd.f32 %v6505_v6, %v6447_v56 }
  0x6f   : > { %v945_v38 = vld [vmem:[#allocation2 + $0xf0] sm:$0xf8]  ;;  %v6572_v53 = vadd.f32 %v6505_v6, %v6450_v30  ;;  %v1361_v58 = vrot.slane %v1281_v50, 4  ;;  %v1362_v59 = vrot.slane %v1282_v52, 4  ;;  %v946_v32 = vld [vmem:[#allocation2 + $0xf8] sm:$0xf] }
  0x70   : > { %v1203_v16 = vshrl.u32 %v945_v38, 16  ;;  %v1206_v24 = vshll.u32 %v945_v38, 16  ;;  %v1211_v41 = vshrl.u32 %v946_v32, 16  ;;  %v1214_v37 = vshll.u32 %v946_v32, 16  ;;  %v1261_v62 = vld [vmem:[#allocation2 + $0x50] sm:$0xf0] }
  0x71   : > { %v1262_v17 = vld [vmem:[#allocation2 + $0x58] sm:$0xf]  ;;  %v6577_v49 = vld [vmem:[%s8005_s1] ss:$0 sm:$0xff]  ;;  %v1363_v23 = vsel %vm1315_vm0, %v1361_v58, %v1362_v59  ;;  %v1331_v2 = vrot.slane %v1261_v62, 4  ;;  %v1788_v21 = vrot.slane %v1786_v31, 4 }
  0x72   : > { %v6580_v56 = vmul.f32 %v6577_v49, %v354_v33  ;;  %v6583_v30 = vmul.f32 %v6577_v49, %v355_v46  ;;  %v1205_v51 = vrot.slane %v1203_v16, 3  ;;  %v1208_v1 = vrot.slane %v1206_v24, 4  ;;  %v925_v3 = vld [vmem:[#allocation2 + $0x50] sm:$0xf8]  ;;  %4245 = vmatprep.mubr.bf16.mxu1 %v1363_v23  ;;  %v926_v60 = vld [vmem:[#allocation2 + $0x58] sm:$0xf] }
  0x73   : > { %v1213_v40 = vrot.slane %v1211_v41, 3  ;;  %v1216_v45 = vrot.slane %v1214_v37, 4  ;;  %v1332_v27 = vrot.slane %v1262_v17, 4  ;;  %v1033_v12 = vshrl.u32 %v925_v3, 16  ;;  %v1737_v11 = vld [vmem:[#allocation2 + $0x30] sm:$0xf8] }
  0x74   : > { %v1209_v35 = vor.u32 %v1208_v1, %v1205_v51  ;;  %v1036_v44 = vshll.u32 %v925_v3, 16  ;;  %v1041_v13 = vshrl.u32 %v926_v60, 16  ;;  %v1044_v14 = vshll.u32 %v926_v60, 16  ;;  %v1738_v42 = vld [vmem:[#allocation2 + $0x38] sm:$0xf] }
  0x75   : > { %v1217_v48 = vor.u32 %v1216_v45, %v1213_v40  ;;  %v1333_v18 = vsel %vm1315_vm0, %v1331_v2, %v1332_v27  ;;  %v1035_v19 = vrot.slane %v1033_v12, 3  ;;  %v1793_v5 = vrot.slane %v1791_v63, 3  ;;  %v738_v38 = vld [vmem:[#allocation2 + $0x70] sm:$0x8]  ;;  %v1400_v1 = vld [vmem:[#allocation2 + $0x20] sm:$0xf0] }
  0x76   : > { %4165 = vmatprep.mubr.bf16.mxu0 %v1333_v18  ;;  %v1038_v61 = vrot.slane %v1036_v44, 4  ;;  %v1043_v8 = vrot.slane %v1041_v13, 3  ;;  %v1046_v29 = vrot.slane %v1044_v14, 4  ;;  %v5963_v26 = vpop.eup %5962  ;;  %v1789_v7 = vor.u32 %v1788_v21, %v6552_v0  ;;  %v5857_v2 = vld [vmem:[%s8008_s4 + $0x180] sm:$0xff]   ;;  %v5861_v40 = vld [vmem:[%s8008_s4 + $0x1c8] sm:$0xff]  }
  0x77   : > { %v1218_v20 = vsel %vm769_vm3, %v1209_v35, %v1217_v48  ;;  %v1796_v28 = vrot.slane %v1794_v34, 4  ;;  %v736_v31 = vsel %vm6175_vm4, 0, %v735_v15  ;;  %v5965_v33 = vpop.eup %5964  ;;  %v554_v52 = vadd.f32 1.0, %v5963_v26  ;;  %v1739_v27 = vld [vmem:[#allocation2 + $0x40] sm:$0xf8] }
  0x78   : > { %4246 = vmatmul.mubr.bf16.gmra.mrb[12].mxu1 %v1218_v20  ;;  %v1039_v46 = vor.u32 %v1038_v61, %v1035_v19  ;;  %v1047_v50 = vor.u32 %v1046_v29, %v1043_v8  ;;  %737 = vst [vmem:[#allocation2 + $0x60] sm:$0x8] %v736_v31  ;;  %v772_v63 = vsel %vm6592_vm7, 0, %v771_v22  ;;  %v555_v58 = vadd.f32 1.0, %v5965_v33  ;;  %v741_v8 = vld [vmem:[#allocation2 + $0x80] sm:$0x8] }
  0x79   : > { %4286 = vmatprep.mubr.bf16.mxu1 %v6550_v10  ;;  %v1797_v0 = vor.u32 %v1796_v28, %v1793_v5  ;;  %773 = vst [vmem:[#allocation2 + $0x18] sm:$0x10] %v772_v63  ;;  %v1447_v34 = vshrl.u32 %v1398_v25, 16  ;;  %v1450_v59 = vshll.u32 %v1398_v25, 16  ;;  %5966 = vrcp.f32 %v554_v52  ;;  %v774_v10 = vld [vmem:[#allocation2 + $0x28] sm:$0x10] }
  0x7a   : > { %v1048_v32 = vsel %vm769_vm3, %v1039_v46, %v1047_v50  ;;  %v5175_v16 = vmul.f32 -1.442695, %v6509_v9  ;;  %v5176_v24 = vmul.f32 -1.442695, %v6564_v36  ;;  %5968 = vrcp.f32 %v555_v58  ;;  %v777_v29 = vld [vmem:[#allocation2 + $0x38] sm:$0x10] }
  0x7b   : > { %4166 = vmatmul.mubr.bf16.gmra.mrb[20].mxu0 %v1048_v32  ;;  %v1798_v41 = vsel %vm769_vm3, %v1789_v7, %v1797_v0  ;;  %v6607_v37 = vrot.slane %v1447_v34, 4  ;;  %v6609_v62 = vrot.slane %v1450_v59, 5  ;;  %v1800_v17 = vshrl.u32 %v1737_v11, 16  ;;  %v5863_v7 = vld [vmem:[%s8008_s4 + $0x188] sm:$0xff]   ;;  %v1402_v28 = vld [vmem:[#allocation2 + $0x30] sm:$0xf0] }
  0x7c   : > { %5970 = vpow2.f32 %v5175_v16  ;;  %v1803_v23 = vshll.u32 %v1737_v11, 16  ;;  %v1808_v51 = vshrl.u32 %v1738_v42, 16  ;;  %v1811_v39 = vshll.u32 %v1738_v42, 16  ;;  %v5866_v33 = vld [vmem:[%s8008_s4 + $0x1d0] sm:$0xff]  }
  0x7d   : > { %v1453_v3 = vor.u32 %v6609_v62, %v6607_v37  ;;  %5972 = vpow2.f32 %v5176_v24  ;;  %v739_v45 = vsel %vm6175_vm4, 0, %v738_v38  ;;  %v1802_v60 = vrot.slane %v1800_v17, 3  ;;  %v5871_v37 = vld [vmem:[%s8008_s4 + $0x198] sm:$0xff]  }
  0x7e   : > { %v1805_v12 = vrot.slane %v1803_v23, 4  ;;  %v1810_v35 = vrot.slane %v1808_v51, 3  ;;  %740 = vst [vmem:[#allocation2 + $0x70] sm:$0x8] %v739_v45  ;;  %v775_v44 = vsel %vm6592_vm7, 0, %v774_v10  ;;  %v1813_v13 = vrot.slane %v1811_v39, 4 }
  0x7f   : > { %776 = vst [vmem:[#allocation2 + $0x28] sm:$0x10] %v775_v44  ;;  %v1464_v14 = vshrl.u32 %v1400_v1, 16  ;;  %v1467_v15 = vshll.u32 %v1400_v1, 16  ;;  %v5177_v48 = vmul.f32 -1.442695, %v6568_v55 }
  0x80   : > { %4287 = vmatmul.mubr.bf16.vlgmr.msra.gmra.mrb[16].mxu1 %v6560_v54  ;;  %v1399_v18 = vld [vmem:[#allocation2 + $0x18] sm:$0x1f]  ;;  %v1806_v19 = vor.u32 %v1805_v12, %v1802_v60  ;;  %v5178_v21 = vmul.f32 -1.442695, %v6572_v53  ;;  %v1817_v22 = vshrl.u32 %v1739_v27, 16  ;;  %v1820_v61 = vshll.u32 %v1739_v27, 16 }
  0x81   : > { %5610 = vmatpush3.bf16.msra.mxu1 %v5857_v2  ;;  %4294 = vmatprep.mubr.bf16.mxu1 %v1798_v41  ;;  %v1455_v5 = vshrl.u32 %v1399_v18, 16  ;;  %v1458_v25 = vshll.u32 %v1399_v18, 16  ;;  %v1814_v26 = vor.u32 %v1813_v13, %v1810_v35  ;;  %v6626_v20 = vrot.slane %v1464_v14, 4  ;;  %v1740_v54 = vld [vmem:[#allocation2 + $0x48] sm:$0xf]  ;;  %v5867_v10 = vld [vmem:[%s8008_s4 + $0x190] sm:$0xff]  }
  0x82   : > { %5611 = vmatprep.subr.bf16.mxu1 %v5861_v40  ;;  %v6631_v31 = vrot.slane %v1467_v15, 5  ;;  %5974 = vpow2.f32 %v5177_v48  ;;  %v1819_v11 = vrot.slane %v1817_v22, 3  ;;  %v1822_v42 = vrot.slane %v1820_v61, 4  ;;  %v5870_v39 = vld [vmem:[%s8008_s4 + $0x1d8] sm:$0xff]   ;;  %v6652_v45 = vld [vmem:[%s6264_s21] ss:$0 sm:$0xff] }
  0x83   : > { %v1457_v46 = vrot.slane %v1455_v5, 4  ;;  %v1460_v50 = vrot.slane %v1458_v25, 5  ;;  %v1815_v52 = vsel %vm769_vm3, %v1806_v19, %v1814_v26  ;;  %5976 = vpow2.f32 %v5178_v21  ;;  %v5967_v63 = vpop.eup %5966  ;;  %v1741_v15 = vld [vmem:[#allocation2 + $0x50] sm:$0xf8]  ;;  %v1742_v21 = vld [vmem:[#allocation2 + $0x58] sm:$0xf] }
  0x84   : > { %v1470_v38 = vor.u32 %v6631_v31, %v6626_v20  ;;  %v1823_v58 = vor.u32 %v1822_v42, %v1819_v11  ;;  %v1825_v0 = vshrl.u32 %v1740_v54, 16  ;;  %v1828_v34 = vshll.u32 %v1740_v54, 16  ;;  %v5969_v59 = vpop.eup %5968  ;;  %v5874_v61 = vld [vmem:[%s8008_s4 + $0x1e0] sm:$0xff]   ;;  %v744_v42 = vld [vmem:[#allocation2 + $0x90] sm:$0x8] }
  0x85   : > { %v650_v32 = vmul.f32 %v5967_v63, %v6374_v4  ;;  %v1461_v16 = vor.u32 %v1460_v50, %v1457_v46  ;;  %5612 = vmatpush3.bf16.msra.mxu1 %v5863_v7  ;;  %v742_v24 = vsel %vm6175_vm4, 0, %v741_v8  ;;  %v778_v41 = vsel %vm6592_vm7, 0, %v777_v29  ;;  %v5876_v46 = vld [vmem:[%s8008_s4 + $0x1a0] sm:$0xff]  }
  0x86   : > { %v5971_v17 = vpop.eup %5970  ;;  %v651_v23 = vmul.f32 %v5969_v59, %v6435_v43  ;;  %v1401_v51 = vld [vmem:[#allocation2 + $0x28] sm:$0x1f]  ;;  %v1827_v1 = vrot.slane %v1825_v0, 3  ;;  %v1830_v2 = vrot.slane %v1828_v34, 4  ;;  %743 = vst [vmem:[#allocation2 + $0x80] sm:$0x8] %v742_v24  ;;  %5613 = vmatprep.subr.bf16.mxu1 %v5866_v33  ;;  %v6673_v29 = vadd.f32 %v6505_v6, %v6580_v56 }
  0x87   : > { %779 = vst [vmem:[#allocation2 + $0x38] sm:$0x10] %v778_v41  ;;  %v1481_v4 = vshrl.u32 %v1402_v28, 16  ;;  %v5973_v40 = vpop.eup %5972  ;;  %v689_v27 = vadd.f32 %v6652_v45, %v650_v32  ;;  %v1462_v43 = vsel %vm1428_vm5, %v1453_v3, %v1461_v16  ;;  %v556_v60 = vadd.f32 1.0, %v5971_v17  ;;  %v780_v33 = vld [vmem:[#allocation2 + $0x48] sm:$0x10] }
  0x88   : > { %v1472_v12 = vshrl.u32 %v1401_v51, 16  ;;  %v690_v35 = vadd.f32 %v6652_v45, %v651_v23  ;;  %4295 = vmatmul.mubr.bf16.gmra.mrb[20].mxu1 %v1462_v43  ;;  %v557_v44 = vadd.f32 1.0, %v5973_v40  ;;  %v1475_v13 = vshll.u32 %v1401_v51, 16  ;;  %v6691_v16 = vld [vmem:[#allocation2 + $0x40] sm:$0xf0]  ;;  %v356_v24 = vld [vmem:[%s6126_s10 + $0x90] sm:$0xff] }
  0x89   : > { %v1831_v14 = vor.u32 %v1830_v2, %v1827_v1  ;;  %5978 = vrcp.f32 %v556_v60  ;;  %4302 = vmatprep.mubr.bf16.mxu1 %v1815_v52  ;;  %v6660_v18 = vrot.slane %v1481_v4, 4  ;;  %v1484_v19 = vshll.u32 %v1402_v28, 16  ;;  %5614 = vmatpush3.bf16.msra.mxu1 %v5867_v10  ;;  %v5877_v41 = vld [vmem:[%s8008_s4 + $0x1e8] sm:$0xff]   ;;  %v357_v51 = vld [vmem:[%s6126_s10 + $0x98] sm:$0xff]  ;;  %v747_v1 = vld [vmem:[#allocation2 + $0xa0] sm:$0x8] }
  0x8a   : > { %v1474_v48 = vrot.slane %v1472_v12, 4  ;;  %v824_v62 = vpack.c.bf16 %v690_v35, %v689_v27  ;;  %5980 = vrcp.f32 %v557_v44  ;;  %v1477_v3 = vrot.slane %v1475_v13, 5  ;;  %5615 = vmatprep.subr.bf16.mxu1 %v5870_v39  ;;  %v358_v40 = vld [vmem:[%s6126_s10 + $0xa0] sm:$0xff]  ;;  %v5879_v27 = vld [vmem:[%s8008_s4 + $0x1a8] sm:$0xff]   ;;  %v5880_v43 = vld [vmem:[%s8008_s4 + $0x1f0] sm:$0xff]  }
  0x8b   : > { %v1832_v22 = vsel %vm769_vm3, %v1823_v58, %v1831_v14  ;;  %v6669_v8 = vrot.slane %v1484_v19, 5  ;;  %v6677_v5 = vadd.f32 %v6505_v6, %v6583_v30  ;;  %v1834_v25 = vshrl.u32 %v1741_v15, 16 }
  0x8c   : > { %v5975_v26 = vpop.eup %5974  ;;  %v856_v7 = vrot.slane %v824_v62, 4  ;;  %v1478_v54 = vor.u32 %v1477_v3, %v1474_v48  ;;  %v1837_v28 = vshll.u32 %v1741_v15, 16  ;;  %v1842_v11 = vshrl.u32 %v1742_v21, 16  ;;  %v5882_v3 = vld [vmem:[%s8008_s4 + $0x1b0] sm:$0xff]  }
  0x8d   : > { %v5977_v50 = vpop.eup %5976  ;;  %v558_v56 = vadd.f32 1.0, %v5975_v26  ;;  %v1487_v30 = vor.u32 %v6669_v8, %v6660_v18  ;;  %v5179_v63 = vmul.f32 -1.442695, %v6673_v29  ;;  %v6685_v58 = vrot.slane %v1834_v25, 3  ;;  %5616 = vmatpush3.bf16.msra.mxu1 %v5871_v37 }
  0x8e   : > { %v1403_v52 = vld [vmem:[#allocation2 + $0x38] sm:$0x1f]  ;;  %893 = vst [vmem:[#allocation2 + $0x68] ss:$-4 sps:$4 sm:$0xff] %v856_v7   ;;  %v1479_v0 = vsel %vm1428_vm5, %v1470_v38, %v1478_v54  ;;  %v559_v34 = vadd.f32 1.0, %v5977_v50  ;;  %5617 = vmatprep.subr.bf16.mxu1 %v5874_v61  ;;  %v1839_v17 = vrot.slane %v1837_v28, 4  ;;  %v395_v14 = vmul.f32 %v6577_v49, %v356_v24 }
  0x8f   : > { %v1489_v59 = vshrl.u32 %v1403_v52, 16  ;;  %v1492_v32 = vshll.u32 %v1403_v52, 16  ;;  %5982 = vrcp.f32 %v558_v56  ;;  %v5180_v10 = vmul.f32 -1.442695, %v6677_v5 }
  0x90   : > { %v1844_v20 = vrot.slane %v1842_v11, 3  ;;  %4303 = vmatmul.mubr.bf16.gmra.mrb[24].mxu1 %v1479_v0  ;;  %5984 = vrcp.f32 %v559_v34  ;;  %v1845_v23 = vshll.u32 %v1742_v21, 16  ;;  %v1840_v2 = vor.u32 %v1839_v17, %v6685_v58 }
  0x91   : > { %v1491_v31 = vrot.slane %v1489_v59, 4  ;;  %v1494_v38 = vrot.slane %v1492_v32, 5  ;;  %4310 = vmatprep.mubr.bf16.mxu1 %v1832_v22  ;;  %5986 = vpow2.f32 %v5179_v63  ;;  %v745_v4 = vsel %vm6175_vm4, 0, %v744_v42  ;;  %5618 = vmatpush3.bf16.msra.mxu1 %v5876_v46 }
  0x92   : > { %v781_v39 = vsel %vm6592_vm7, 0, %v780_v33  ;;  %5988 = vpow2.f32 %v5180_v10  ;;  %v1847_v12 = vrot.slane %v1845_v23, 4  ;;  %746 = vst [vmem:[#allocation2 + $0x90] sm:$0x8] %v745_v4  ;;  %v1498_v35 = vshrl.u32 %v6691_v16, 16  ;;  %5619 = vmatprep.subr.bf16.mxu1 %v5877_v41 }
  0x93   : > { %v1495_v60 = vor.u32 %v1494_v38, %v1491_v31  ;;  %782 = vst [vmem:[#allocation2 + $0x48] sm:$0x10] %v781_v39  ;;  %v5979_v44 = vpop.eup %5978  ;;  %v1501_v13 = vshll.u32 %v6691_v16, 16  ;;  %v396_v15 = vmul.f32 %v6577_v49, %v357_v51  ;;  %v748_v48 = vsel %vm6175_vm4, 0, %v747_v1 }
  0x94   : > { %v5981_v18 = vpop.eup %5980  ;;  %v652_v19 = vmul.f32 %v5979_v44, %v6509_v9  ;;  %v1848_v37 = vor.u32 %v1847_v12, %v1844_v20  ;;  %v6719_v62 = vrot.slane %v1498_v35, 4  ;;  %749 = vst [vmem:[#allocation2 + $0xa0] sm:$0x8] %v748_v48  ;;  %v6726_v26 = vadd.f32 %v6505_v6, %v395_v14  ;;  %v783_v14 = vld [vmem:[#allocation2 + $0x58] sm:$0x10] }
  0x95   : > { %v1496_v21 = vsel %vm1428_vm5, %v1487_v30, %v1495_v60  ;;  %v1263_v22 = vld [vmem:[#allocation2 + $0x60] sm:$0xf0]  ;;  %v1264_v61 = vld [vmem:[#allocation2 + $0x68] sm:$0xf]  ;;  %v653_v25 = vmul.f32 %v5981_v18, %v6564_v36  ;;  %v6729_v9 = vadd.f32 %v6505_v6, %v396_v15  ;;  %v6732_v7 = vmul.f32 %v6577_v49, %v358_v40  ;;  %5620 = vmatpush3.bf16.msra.mxu1 %v5879_v27  ;;  %v1406_v15 = vld [vmem:[#allocation2 + $0x50] sm:$0xf0] }
  0x96   : > { %v927_v8 = vld [vmem:[#allocation2 + $0x60] sm:$0xf8]  ;;  %v1334_v54 = vrot.slane %v1263_v22, 4  ;;  %v1335_v28 = vrot.slane %v1264_v61, 4  ;;  %v928_v11 = vld [vmem:[#allocation2 + $0x68] sm:$0xf]  ;;  %5621 = vmatprep.subr.bf16.mxu1 %v5880_v43  ;;  %v691_v36 = vadd.f32 %v6652_v45, %v652_v19  ;;  %v1849_v58 = vsel %vm769_vm3, %v1840_v2, %v1848_v37 }
  0x97   : > { %v1050_v42 = vshrl.u32 %v927_v8, 16  ;;  %v1053_v33 = vshll.u32 %v927_v8, 16  ;;  %v1058_v46 = vshrl.u32 %v928_v11, 16  ;;  %v1061_v50 = vshll.u32 %v928_v11, 16  ;;  %v1743_v4 = vld [vmem:[#allocation2 + $0x60] sm:$0xf8] }
  0x98   : > { %v692_v56 = vadd.f32 %v6652_v45, %v653_v25  ;;  %v1336_v52 = vsel %vm1315_vm0, %v1334_v54, %v1335_v28  ;;  %4311 = vmatmul.mubr.bf16.gmra.mrb[28].mxu1 %v1496_v21  ;;  %v1503_v24 = vrot.slane %v1501_v13, 5  ;;  %v1744_v12 = vld [vmem:[#allocation2 + $0x68] sm:$0xf]  ;;  %v5181_v13 = vmul.f32 -1.442695, %v6726_v26 }
  0x99   : > { %v1052_v30 = vrot.slane %v1050_v42, 3  ;;  %v1055_v63 = vrot.slane %v1053_v33, 4  ;;  %v5983_v0 = vpop.eup %5982  ;;  %4173 = vmatprep.mubr.bf16.mxu0 %v1336_v52  ;;  %v1060_v34 = vrot.slane %v1058_v46, 3  ;;  %v1063_v59 = vrot.slane %v1061_v50, 4  ;;  %4318 = vmatprep.mubr.bf16.mxu1 %v1849_v58  ;;  %v750_v8 = vld [vmem:[#allocation2 + $0xb0] sm:$0x8] }
  0x9a   : > { %v825_v32 = vpack.c.bf16 %v692_v56, %v691_v36  ;;  %v1405_v16 = vld [vmem:[#allocation2 + $0x48] sm:$0x1f]  ;;  %v5985_v41 = vpop.eup %5984  ;;  %v654_v17 = vmul.f32 %v5983_v0, %v6568_v55  ;;  %5622 = vmatpush3.bf16.msra.mxu1 %v5882_v3  ;;  %v1504_v2 = vor.u32 %v1503_v24, %v6719_v62  ;;  %v5883_v55 = vld [vmem:[%s8008_s4 + $0x1f8] sm:$0xff]   ;;  %v5182_v18 = vmul.f32 -1.442695, %v6729_v9 }
  0x9b   : > { %v1056_v10 = vor.u32 %v1055_v63, %v1052_v30  ;;  %v1506_v20 = vshrl.u32 %v1405_v16, 16  ;;  %v1509_v31 = vshll.u32 %v1405_v16, 16  ;;  %v5987_v38 = vpop.eup %5986  ;;  %v1064_v23 = vor.u32 %v1063_v59, %v1060_v34  ;;  %5623 = vmatprep.subr.bf16.mxu1 %v5883_v55  ;;  %v359_v11 = vld [vmem:[%s6126_s10 + $0xa8] sm:$0xff]  ;;  %v5885_v52 = vld [vmem:[%s8008_s4 + $0x1b8] sm:$0xff]  }
  0x9c   : > { %v857_v51 = vrot.slane %v825_v32, 4  ;;  %v655_v1 = vmul.f32 %v5985_v41, %v6572_v53  ;;  %v5989_v39 = vpop.eup %5988  ;;  %v693_v40 = vadd.f32 %v6652_v45, %v654_v17  ;;  %v560_v27 = vadd.f32 1.0, %v5987_v38 }
  0x9d   : > { %v1508_v43 = vrot.slane %v1506_v20, 4  ;;  %v1511_v60 = vrot.slane %v1509_v31, 5  ;;  %v1065_v35 = vsel %vm769_vm3, %v1056_v10, %v1064_v23  ;;  %v561_v53 = vadd.f32 1.0, %v5989_v39 }
  0x9e   : > { %895 = vst [vmem:[#allocation2 + $0x78] ss:$-4 sps:$4 sm:$0xff] %v857_v51   ;;  %v694_v44 = vadd.f32 %v6652_v45, %v655_v1  ;;  %4174 = vmatmul.mubr.bf16.gmra.mrb[24].mxu0 %v1065_v35  ;;  %5990 = vrcp.f32 %v560_v27  ;;  %v1851_v19 = vshrl.u32 %v1743_v4, 16  ;;  %v1854_v37 = vshll.u32 %v1743_v4, 16  ;;  %5624 = vmatpush3.bf16.msra.mxu1 %v5885_v52 }
  0x9f   : > { %v1512_v48 = vor.u32 %v1511_v60, %v1508_v43  ;;  %5992 = vrcp.f32 %v561_v53  ;;  %v1859_v62 = vshrl.u32 %v1744_v12, 16  ;;  %v1862_v61 = vshll.u32 %v1744_v12, 16 }
  0xa0   : > { %v826_v21 = vpack.c.bf16 %v694_v44, %v693_v40  ;;  %5994 = vpow2.f32 %v5181_v13  ;;  %v1853_v22 = vrot.slane %v1851_v19, 3  ;;  %v1856_v54 = vrot.slane %v1854_v37, 4 }
  0xa1   : > { %v1513_v3 = vsel %vm1428_vm5, %v1504_v2, %v1512_v48  ;;  %5996 = vpow2.f32 %v5182_v18  ;;  %v1861_v28 = vrot.slane %v1859_v62, 3  ;;  %v1864_v42 = vrot.slane %v1862_v61, 4 }
  0xa2   : > { %v858_v25 = vrot.slane %v826_v21, 4  ;;  %4319 = vmatmul.mubr.bf16.gmra.mrb[32].mxu1 %v1513_v3  ;;  %v784_v33 = vsel %vm6592_vm7, 0, %v783_v14  ;;  %v1515_v46 = vshrl.u32 %v1406_v15, 16  ;;  %v1518_v50 = vshll.u32 %v1406_v15, 16 }
  0xa3   : > { %v1857_v36 = vor.u32 %v1856_v54, %v1853_v22  ;;  %785 = vst [vmem:[#allocation2 + $0x58] sm:$0x10] %v784_v33  ;;  %v751_v56 = vsel %vm6175_vm4, 0, %v750_v8  ;;  %v1865_v0 = vor.u32 %v1864_v42, %v1861_v28  ;;  %v398_v34 = vmul.f32 %v6577_v49, %v359_v11 }
  0xa4   : > { %897 = vst [vmem:[#allocation2 + $0x88] ss:$-4 sps:$4 sm:$0xff] %v858_v25   ;;  %v6761_v59 = vadd.f32 %v6505_v6, %v6732_v7  ;;  %752 = vst [vmem:[#allocation2 + $0xb0] sm:$0x8] %v751_v56  ;;  %v6764_v38 = vrot.slane %v1515_v46, 4  ;;  %v6769_v1 = vrot.slane %v1518_v50, 5 }
  0xa5   : > { %v1265_v30 = vld [vmem:[#allocation2 + $0x70] sm:$0xf0]  ;;  %v1266_v63 = vld [vmem:[#allocation2 + $0x78] sm:$0xf]  ;;  %v1866_v31 = vsel %vm769_vm3, %v1857_v36, %v1865_v0  ;;  %v6774_v12 = vadd.f32 %v6505_v6, %v398_v34 }
  0xa6   : > { %v929_v58 = vld [vmem:[#allocation2 + $0x70] sm:$0xf8]  ;;  %v1337_v32 = vrot.slane %v1265_v30, 4  ;;  %v1338_v16 = vrot.slane %v1266_v63, 4  ;;  %v930_v24 = vld [vmem:[#allocation2 + $0x78] sm:$0xf]  ;;  %4326 = vmatprep.mubr.bf16.mxu1 %v1866_v31  ;;  %v1521_v48 = vor.u32 %v6769_v1, %v6764_v38 }
  0xa7   : > { %v1067_v41 = vshrl.u32 %v929_v58, 16  ;;  %v1070_v10 = vshll.u32 %v929_v58, 16  ;;  %v1075_v17 = vshrl.u32 %v930_v24, 16  ;;  %v1078_v20 = vshll.u32 %v930_v24, 16  ;;  %v6766_v23 = vld [vmem:[#allocation2 + $0x70] sm:$0xf8] }
  0xa8   : > { %v1339_v49 = vsel %vm1315_vm0, %v1337_v32, %v1338_v16  ;;  %v5991_v2 = vpop.eup %5990  ;;  %v5183_v40 = vmul.f32 -1.442695, %v6761_v59  ;;  %v1868_v55 = vshrl.u32 %v6766_v23, 16  ;;  %v1746_v30 = vld [vmem:[#allocation2 + $0x78] sm:$0xf] }
  0xa9   : > { %v1069_v51 = vrot.slane %v1067_v41, 3  ;;  %v1072_v7 = vrot.slane %v1070_v10, 4  ;;  %4181 = vmatprep.mubr.bf16.mxu0 %v1339_v49  ;;  %v1077_v4 = vrot.slane %v1075_v17, 3  ;;  %v1080_v39 = vrot.slane %v1078_v20, 4  ;;  %v5993_v27 = vpop.eup %5992  ;;  %v786_v63 = vld [vmem:[#allocation2 + $0x68] sm:$0x10] }
  0xaa   : > { %v656_v60 = vmul.f32 %v5991_v2, %v6673_v29  ;;  %v5995_v35 = vpop.eup %5994  ;;  %v657_v15 = vmul.f32 %v5993_v27, %v6677_v5  ;;  %5998 = vpow2.f32 %v5183_v40  ;;  %v1407_v8 = vld [vmem:[#allocation2 + $0x58] sm:$0x1f]  ;;  %v5184_v0 = vmul.f32 -1.442695, %v6774_v12  ;;  %v1408_v32 = vld [vmem:[#allocation2 + $0x60] sm:$0xf0] }
  0xab   : > { %v1073_v43 = vor.u32 %v1072_v7, %v1069_v51  ;;  %v1081_v44 = vor.u32 %v1080_v39, %v1077_v4  ;;  %v1267_v53 = vld [vmem:[#allocation2 + $0x80] sm:$0xf0]  ;;  %v1268_v13 = vld [vmem:[#allocation2 + $0x88] sm:$0xf]  ;;  %v5997_v18 = vpop.eup %5996  ;;  %v562_v33 = vadd.f32 1.0, %v5995_v35  ;;  %v1523_v56 = vshrl.u32 %v1407_v8, 16 }
  0xac   : > { %v931_v14 = vld [vmem:[#allocation2 + $0x80] sm:$0xf8]  ;;  %v1340_v19 = vrot.slane %v1267_v53, 4  ;;  %v1341_v21 = vrot.slane %v1268_v13, 4  ;;  %v932_v29 = vld [vmem:[#allocation2 + $0x88] sm:$0xf]  ;;  %v695_v61 = vadd.f32 %v6652_v45, %v656_v60  ;;  %v696_v28 = vadd.f32 %v6652_v45, %v657_v15 }
  0xad   : > { %v1084_v37 = vshrl.u32 %v931_v14, 16  ;;  %v1087_v6 = vshll.u32 %v931_v14, 16  ;;  %v1082_v62 = vsel %vm769_vm3, %v1073_v43, %v1081_v44  ;;  %v1092_v3 = vshrl.u32 %v932_v29, 16  ;;  %v1747_v10 = vld [vmem:[#allocation2 + $0x80] sm:$0xf8] }
  0xae   : > { %v1095_v22 = vshll.u32 %v932_v29, 16  ;;  %4182 = vmatmul.mubr.bf16.gmra.mrb[28].mxu0 %v1082_v62  ;;  %v1342_v5 = vsel %vm1315_vm0, %v1340_v19, %v1341_v21  ;;  %v563_v46 = vadd.f32 1.0, %v5997_v18  ;;  %v827_v36 = vpack.c.bf16 %v696_v28, %v695_v61  ;;  %v1748_v40 = vld [vmem:[#allocation2 + $0x88] sm:$0xf] }
  0xaf   : > { %v1086_v25 = vrot.slane %v1084_v37, 3  ;;  %v1089_v54 = vrot.slane %v1087_v6, 4  ;;  %4189 = vmatprep.mubr.bf16.mxu0 %v1342_v5  ;;  %v1094_v11 = vrot.slane %v1092_v3, 3  ;;  %v1526_v52 = vshll.u32 %v1407_v8, 16 }
  0xb0   : > { %v1097_v42 = vrot.slane %v1095_v22, 4  ;;  %6000 = vrcp.f32 %v562_v33  ;;  %v1870_v34 = vrot.slane %v1868_v55, 3  ;;  %v859_v16 = vrot.slane %v827_v36, 4 }
  0xb1   : > { %v1090_v50 = vor.u32 %v1089_v54, %v1086_v25  ;;  %6002 = vrcp.f32 %v563_v46  ;;  %v1525_v24 = vrot.slane %v1523_v56, 4  ;;  %v1528_v41 = vrot.slane %v1526_v52, 5 }
  0xb2   : > { %v1098_v58 = vor.u32 %v1097_v42, %v1094_v11  ;;  %6004 = vpow2.f32 %v5184_v0  ;;  %v1871_v20 = vshll.u32 %v6766_v23, 16  ;;  %v1876_v31 = vshrl.u32 %v1746_v30, 16  ;;  %899 = vst [vmem:[#allocation2 + $0x98] ss:$-4 sps:$4 sm:$0xff] %v859_v16  }
  0xb3   : > { %v1529_v38 = vor.u32 %v1528_v41, %v1525_v24  ;;  %v1879_v49 = vshll.u32 %v1746_v30, 16  ;;  %v787_v51 = vsel %vm6592_vm7, 0, %v786_v63  ;;  %v1532_v7 = vshrl.u32 %v1408_v32, 16  ;;  %v789_v41 = vld [vmem:[#allocation2 + $0x78] sm:$0x10] }
  0xb4   : > { %v1099_v17 = vsel %vm769_vm3, %v1090_v50, %v1098_v58  ;;  %v5999_v1 = vpop.eup %5998  ;;  %v1873_v2 = vrot.slane %v1871_v20, 4  ;;  %v1878_v4 = vrot.slane %v1876_v31, 3  ;;  %788 = vst [vmem:[#allocation2 + $0x68] sm:$0x10] %v787_v51  ;;  %v1535_v39 = vshll.u32 %v1408_v32, 16 }
  0xb5   : > { %v1885_v27 = vshrl.u32 %v1747_v10, 16  ;;  %v1530_v43 = vsel %vm1428_vm5, %v1521_v48, %v1529_v38  ;;  %v1881_v60 = vrot.slane %v1879_v49, 4  ;;  %v564_v23 = vadd.f32 1.0, %v5999_v1  ;;  %v2213_v32 = vld [vmem:[#allocation2 + $0x10] sm:$0xf0] }
  0xb6   : > { %4190 = vmatmul.mubr.bf16.gmra.mrb[32].mxu0 %v1099_v17  ;;  %4327 = vmatmul.mubr.bf16.gmra.mrb[36].mxu1 %v1530_v43  ;;  %v1874_v55 = vor.u32 %v1873_v2, %v1870_v34  ;;  %v1888_v35 = vshll.u32 %v1747_v10, 16  ;;  %v1893_v53 = vshrl.u32 %v1748_v40, 16  ;;  %v1896_v13 = vshll.u32 %v1748_v40, 16  ;;  %v2214_v31 = vld [vmem:[#allocation2 + $0x18] sm:$0x1f] }
  0xb7   : > { %v1882_v44 = vor.u32 %v1881_v60, %v1878_v4  ;;  %v6790_v14 = vrot.slane %v1532_v7, 4  ;;  %v6792_v15 = vrot.slane %v1535_v39, 5  ;;  %v1887_v18 = vrot.slane %v1885_v27, 3  ;;  %v1410_v1 = vld [vmem:[#allocation2 + $0x70] sm:$0xf0] }
  0xb8   : > { %v1890_v21 = vrot.slane %v1888_v35, 4  ;;  %v1895_v29 = vrot.slane %v1893_v53, 3  ;;  %v1898_v37 = vrot.slane %v1896_v13, 4  ;;  %6006 = vrcp.f32 %v564_v23 }
  0xb9   : > { %v1883_v19 = vsel %vm769_vm3, %v1874_v55, %v1882_v44  ;;  %v1269_v48 = vld [vmem:[#allocation2 + $0x90] sm:$0xf0]  ;;  %v1270_v62 = vld [vmem:[#allocation2 + $0x98] sm:$0xf]  ;;  %v1538_v38 = vor.u32 %v6792_v15, %v6790_v14  ;;  %v2246_v7 = vshrl.u32 %v2213_v32, 16  ;;  %v2249_v39 = vshll.u32 %v2213_v32, 16 }
  0xba   : > { %v6001_v6 = vpop.eup %6000  ;;  %v933_v3 = vld [vmem:[#allocation2 + $0x90] sm:$0xf8]  ;;  %4334 = vmatprep.mubr.bf16.mxu1 %v1883_v19  ;;  %v1343_v61 = vrot.slane %v1269_v48, 4  ;;  %v1344_v8 = vrot.slane %v1270_v62, 4  ;;  %v934_v5 = vld [vmem:[#allocation2 + $0x98] sm:$0xf]  ;;  %v1891_v17 = vor.u32 %v1890_v21, %v1887_v18  ;;  %v1899_v20 = vor.u32 %v1898_v37, %v1895_v29 }
  0xbb   : > { %v6003_v22 = vpop.eup %6002  ;;  %v1101_v25 = vshrl.u32 %v933_v3, 16  ;;  %v1104_v54 = vshll.u32 %v933_v3, 16  ;;  %v1109_v11 = vshrl.u32 %v934_v5, 16  ;;  %v1112_v42 = vshll.u32 %v934_v5, 16  ;;  %v1409_v50 = vld [vmem:[#allocation2 + $0x68] sm:$0x1f] }
  0xbc   : > { %v6005_v28 = vpop.eup %6004  ;;  %v658_v33 = vmul.f32 %v6001_v6, %v6726_v26  ;;  %v659_v46 = vmul.f32 %v6003_v22, %v6729_v9  ;;  %v1345_v36 = vsel %vm1315_vm0, %v1343_v61, %v1344_v8  ;;  %v1540_v24 = vshrl.u32 %v1409_v50, 16  ;;  %v1749_v40 = vld [vmem:[#allocation2 + $0x90] sm:$0xf8]  ;;  %v1750_v23 = vld [vmem:[#allocation2 + $0x98] sm:$0xf] }
  0xbd   : > { %v1103_v56 = vrot.slane %v1101_v25, 3  ;;  %v1106_v52 = vrot.slane %v1104_v54, 4  ;;  %v565_v30 = vadd.f32 1.0, %v6005_v28  ;;  %4197 = vmatprep.mubr.bf16.mxu0 %v1345_v36  ;;  %v1111_v63 = vrot.slane %v1109_v11, 3  ;;  %v6809_v19 = vld [vmem:[#allocation2 + $0x20] sm:$0xf0] }
  0xbe   : > { %v1114_v58 = vrot.slane %v1112_v42, 4  ;;  %v697_v0 = vadd.f32 %v6652_v45, %v658_v33  ;;  %v698_v34 = vadd.f32 %v6652_v45, %v659_v46  ;;  %v1543_v26 = vshll.u32 %v1409_v50, 16  ;;  %v2216_v48 = vld [vmem:[#allocation2 + $0x28] sm:$0x1f]  ;;  %v368_v25 = vld [vmem:[%s6126_s10 + $0xf0] sm:$0xff] }
  0xbf   : > { %v1107_v16 = vor.u32 %v1106_v52, %v1103_v56  ;;  %6008 = vrcp.f32 %v565_v30  ;;  %v1542_v49 = vrot.slane %v1540_v24, 4  ;;  %v2254_v43 = vshrl.u32 %v2214_v31, 16 }
  0xc0   : > { %v1115_v9 = vor.u32 %v1114_v58, %v1111_v63  ;;  %v828_v10 = vpack.c.bf16 %v698_v34, %v697_v0  ;;  %v1545_v51 = vrot.slane %v1543_v26, 5  ;;  %v790_v60 = vsel %vm6592_vm7, 0, %v789_v41  ;;  %v6836_v0 = vld [vmem:[%s8005_s1] ss:$0 sm:$0xff] }
  0xc1   : > { %v1900_v35 = vsel %vm769_vm3, %v1891_v17, %v1899_v20  ;;  %v2257_v44 = vshll.u32 %v2214_v31, 16  ;;  %791 = vst [vmem:[#allocation2 + $0x78] sm:$0x10] %v790_v60  ;;  %v1549_v53 = vshrl.u32 %v1410_v1, 16  ;;  %v1552_v13 = vshll.u32 %v1410_v1, 16 }
  0xc2   : > { %v1116_v2 = vsel %vm769_vm3, %v1107_v16, %v1115_v9  ;;  %v860_v4 = vrot.slane %v828_v10, 4  ;;  %v1546_v27 = vor.u32 %v1545_v51, %v1542_v49  ;;  %v6007_v55 = vpop.eup %6006  ;;  %v6807_v15 = vrot.slane %v2246_v7, 4  ;;  %v6843_v7 = vld [vmem:[#allocation2 + $0x10] sm:$0xf0]  ;;  %v2070_v60 = vld [vmem:[#allocation2 + $0x18] sm:$0xf] }
  0xc3   : > { %4198 = vmatmul.mubr.bf16.gmra.mrb[36].mxu0 %v1116_v2  ;;  %v1902_v18 = vshrl.u32 %v1749_v40, 16  ;;  %v6811_v21 = vrot.slane %v2249_v39, 5  ;;  %v6813_v29 = vrot.slane %v1549_v53, 4  ;;  %v1905_v37 = vshll.u32 %v1749_v40, 16  ;;  %v792_v40 = vld [vmem:[#allocation2 + $0x88] sm:$0x10] }
  0xc4   : > { %901 = vst [vmem:[#allocation2 + $0xa8] ss:$-4 sps:$4 sm:$0xff] %v860_v4   ;;  %v1547_v14 = vsel %vm1428_vm5, %v1538_v38, %v1546_v27  ;;  %v1910_v6 = vshrl.u32 %v1750_v23, 16  ;;  %v660_v62 = vmul.f32 %v6007_v55, %v6761_v59  ;;  %v6816_v3 = vrot.slane %v1552_v13, 5  ;;  %v1412_v55 = vld [vmem:[#allocation2 + $0x80] sm:$0xf0] }
  0xc5   : > { %4335 = vmatmul.mubr.bf16.gmra.mrb[40].mxu1 %v1547_v14  ;;  %v1913_v22 = vshll.u32 %v1750_v23, 16  ;;  %v6818_v61 = vrot.slane %v2254_v43, 4  ;;  %v6820_v8 = vrot.slane %v2257_v44, 5  ;;  %v6822_v5 = vrot.slane %v1902_v18, 3 }
  0xc6   : > { %4342 = vmatprep.mubr.bf16.mxu1 %v1900_v35  ;;  %v1907_v28 = vrot.slane %v1905_v37, 4  ;;  %v1912_v11 = vrot.slane %v1910_v6, 3  ;;  %v2263_v33 = vshrl.u32 %v6809_v19, 16  ;;  %v2266_v59 = vshll.u32 %v6809_v19, 16 }
  0xc7   : > { %v1915_v42 = vrot.slane %v1913_v22, 4  ;;  %v2271_v50 = vshrl.u32 %v2216_v48, 16  ;;  %v699_v30 = vadd.f32 %v6652_v45, %v660_v62  ;;  %v2252_v63 = vor.u32 %v6811_v21, %v6807_v15 }
  0xc8   : > { %v1555_v58 = vor.u32 %v6816_v3, %v6813_v29  ;;  %v1411_v17 = vld [vmem:[#allocation2 + $0x78] sm:$0x1f]  ;;  %v2274_v20 = vshll.u32 %v2216_v48, 16  ;;  %v2265_v13 = vrot.slane %v2263_v33, 4  ;;  %v2268_v18 = vrot.slane %v2266_v59, 5 }
  0xc9   : > { %v6009_v54 = vpop.eup %6008  ;;  %v1557_v51 = vshrl.u32 %v1411_v17, 16  ;;  %v1560_v39 = vshll.u32 %v1411_v17, 16  ;;  %v1916_v23 = vor.u32 %v1915_v42, %v1912_v11  ;;  %v2273_v19 = vrot.slane %v2271_v50, 4  ;;  %v2217_v42 = vld [vmem:[#allocation2 + $0x30] sm:$0xf0] }
  0xca   : > { %v661_v46 = vmul.f32 %v6009_v54, %v6774_v12  ;;  %v6839_v12 = vmul.f32 %v6836_v0, %v368_v25  ;;  %v2276_v29 = vrot.slane %v2274_v20, 5  ;;  %v793_v37 = vsel %vm6592_vm7, 0, %v792_v40  ;;  %v2218_v40 = vld [vmem:[#allocation2 + $0x38] sm:$0x1f] }
  0xcb   : > { %v1271_v36 = vld [vmem:[#allocation2 + $0xa0] sm:$0xf0]  ;;  %v1272_v56 = vld [vmem:[#allocation2 + $0xa8] sm:$0xf]  ;;  %v1559_v43 = vrot.slane %v1557_v51, 4  ;;  %v1562_v53 = vrot.slane %v1560_v39, 5 }
  0xcc   : > { %v935_v52 = vld [vmem:[#allocation2 + $0xa0] sm:$0xf8]  ;;  %v1346_v34 = vrot.slane %v1271_v36, 4  ;;  %v1347_v32 = vrot.slane %v1272_v56, 4  ;;  %v936_v16 = vld [vmem:[#allocation2 + $0xa8] sm:$0xf]  ;;  %v700_v10 = vadd.f32 %v6652_v45, %v661_v46  ;;  %v1908_v45 = vor.u32 %v1907_v28, %v6822_v5 }
  0xcd   : > { %v1118_v24 = vshrl.u32 %v935_v52, 16  ;;  %v1121_v26 = vshll.u32 %v935_v52, 16  ;;  %v1126_v41 = vshrl.u32 %v936_v16, 16  ;;  %v1129_v9 = vshll.u32 %v936_v16, 16  ;;  %v1751_v14 = vld [vmem:[#allocation2 + $0xa0] sm:$0xf8] }
  0xce   : > { %v1348_v31 = vsel %vm1315_vm0, %v1346_v34, %v1347_v32  ;;  %v829_v4 = vpack.c.bf16 %v700_v10, %v699_v30  ;;  %v1752_v6 = vld [vmem:[#allocation2 + $0xa8] sm:$0xf]  ;;  %v1563_v62 = vor.u32 %v1562_v53, %v1559_v43  ;;  %v2133_v3 = vrot.slane %v6843_v7, 4  ;;  %794 = vst [vmem:[#allocation2 + $0x88] sm:$0x10] %v793_v37 }
  0xcf   : > { %v1120_v38 = vrot.slane %v1118_v24, 3  ;;  %v1123_v49 = vrot.slane %v1121_v26, 4  ;;  %4205 = vmatprep.mubr.bf16.mxu0 %v1348_v31  ;;  %v1128_v1 = vrot.slane %v1126_v41, 3  ;;  %v1131_v2 = vrot.slane %v1129_v9, 4  ;;  %v6853_v28 = vld [vmem:[#allocation2 + $0x20] sm:$0xf0] }
  0xd0   : > { %v861_v44 = vrot.slane %v829_v4, 4  ;;  %v2134_v22 = vrot.slane %v2070_v60, 4  ;;  %v2260_v5 = vor.u32 %v6820_v8, %v6818_v61  ;;  %v1917_v25 = vsel %vm769_vm3, %v1908_v45, %v1916_v23  ;;  %v795_v36 = vld [vmem:[#allocation2 + $0x98] sm:$0x10]  ;;  %v6856_v30 = vld [vmem:[#allocation2 + $0x28] sm:$0xf] }
  0xd1   : > { %v1124_v27 = vor.u32 %v1123_v49, %v1120_v38  ;;  %v1132_v35 = vor.u32 %v1131_v2, %v1128_v1  ;;  %v1566_v54 = vshrl.u32 %v1412_v55, 16  ;;  %v1919_v11 = vshrl.u32 %v1751_v14, 16  ;;  %v1414_v38 = vld [vmem:[#allocation2 + $0x90] sm:$0xf0] }
  0xd2   : > { %903 = vst [vmem:[#allocation2 + $0xb8] ss:$-4 sps:$4 sm:$0xff] %v861_v44   ;;  %v1564_v33 = vsel %vm1428_vm5, %v1555_v58, %v1563_v62  ;;  %v1569_v46 = vshll.u32 %v1412_v55, 16  ;;  %v1922_v59 = vshll.u32 %v1751_v14, 16  ;;  %v1927_v50 = vshrl.u32 %v1752_v6, 16 }
  0xd3   : > { %v1133_v48 = vsel %vm769_vm3, %v1124_v27, %v1132_v35  ;;  %4343 = vmatmul.mubr.bf16.gmra.mrb[44].mxu1 %v1564_v33  ;;  %v2269_v56 = vor.u32 %v2268_v18, %v2265_v13  ;;  %v2277_v52 = vor.u32 %v2276_v29, %v2273_v19  ;;  %v1921_v34 = vrot.slane %v1919_v11, 3 }
  0xd4   : > { %4206 = vmatmul.mubr.bf16.gmra.mrb[40].mxu0 %v1133_v48  ;;  %v1930_v61 = vshll.u32 %v1752_v6, 16  ;;  %4350 = vmatprep.mubr.bf16.mxu1 %v1917_v25  ;;  %v2136_v8 = vrot.slane %v6853_v28, 4  ;;  %v1924_v32 = vrot.slane %v1922_v59, 4  ;;  %v2280_v16 = vshrl.u32 %v2217_v42, 16  ;;  %v6908_v28 = vld [vmem:[#allocation2 + $0x48] sm:$0xf] }
  0xd5   : > { %v2283_v24 = vshll.u32 %v2217_v42, 16  ;;  %v6859_v26 = vrot.slane %v1566_v54, 4  ;;  %v1929_v58 = vrot.slane %v1927_v50, 3  ;;  %v796_v9 = vsel %vm6592_vm7, 0, %v795_v36  ;;  %v1413_v44 = vld [vmem:[#allocation2 + $0x88] sm:$0x1f] }
  0xd6   : > { %v1932_v41 = vrot.slane %v1930_v61, 4  ;;  %v1571_v10 = vrot.slane %v1569_v46, 5  ;;  %v2137_v17 = vrot.slane %v6856_v30, 4  ;;  %v6864_v20 = vrot.slane %v2280_v16, 4  ;;  %797 = vst [vmem:[#allocation2 + $0x98] sm:$0x10] %v796_v9 }
  0xd7   : > { %v6866_v31 = vrot.slane %v2283_v24, 5  ;;  %v2261_v1 = vsel %vm1428_vm5, %v2252_v63, %v2260_v5  ;;  %v6873_v2 = vsel %vm1315_vm0, %v2133_v3, %v2134_v22  ;;  %v6876_v4 = vsel %vm1428_vm5, %v2269_v56, %v2277_v52 }
  0xd8   : > { %v1925_v39 = vor.u32 %v1924_v32, %v1921_v34  ;;  %v1933_v53 = vor.u32 %v1932_v41, %v1929_v58  ;;  %v1583_v15 = vshrl.u32 %v1414_v38, 16  ;;  %v1574_v14 = vshrl.u32 %v1413_v44, 16  ;;  %v2219_v32 = vld [vmem:[#allocation2 + $0x40] sm:$0xf0]  ;;  %v2220_v41 = vld [vmem:[#allocation2 + $0x48] sm:$0x1f] }
  0xd9   : > { %v1273_v49 = vld [vmem:[#allocation2 + $0xb0] sm:$0xf0]  ;;  %v1274_v51 = vld [vmem:[#allocation2 + $0xb8] sm:$0xf]  ;;  %v1572_v29 = vor.u32 %v1571_v10, %v6859_v26  ;;  %v1577_v37 = vshll.u32 %v1413_v44, 16  ;;  %v2288_v62 = vshrl.u32 %v2218_v40, 16  ;;  %v2286_v46 = vor.u32 %v6866_v31, %v6864_v20 }
  0xda   : > { %v937_v7 = vld [vmem:[#allocation2 + $0xb0] sm:$0xf8]  ;;  %v1349_v27 = vrot.slane %v1273_v49, 4  ;;  %v1350_v43 = vrot.slane %v1274_v51, 4  ;;  %v938_v60 = vld [vmem:[#allocation2 + $0xb8] sm:$0xf]  ;;  %v1934_v33 = vsel %vm769_vm3, %v1925_v39, %v1933_v53 }
  0xdb   : > { %v1135_v45 = vshrl.u32 %v937_v7, 16  ;;  %v1138_v23 = vshll.u32 %v937_v7, 16  ;;  %v1143_v55 = vshrl.u32 %v938_v60, 16  ;;  %v1146_v35 = vshll.u32 %v938_v60, 16  ;;  %v1753_v22 = vld [vmem:[#allocation2 + $0xb0] sm:$0xf8] }
  0xdc   : > { %v1351_v21 = vsel %vm1315_vm0, %v1349_v27, %v1350_v43  ;;  %v1576_v48 = vrot.slane %v1574_v14, 4  ;;  %v2291_v3 = vshll.u32 %v2218_v40, 16  ;;  %v1579_v25 = vrot.slane %v1577_v37, 5  ;;  %v1754_v34 = vld [vmem:[#allocation2 + $0xb8] sm:$0xf] }
  0xdd   : > { %v1137_v63 = vrot.slane %v1135_v45, 3  ;;  %v1140_v13 = vrot.slane %v1138_v23, 4  ;;  %4213 = vmatprep.mubr.bf16.mxu0 %v1351_v21  ;;  %v1145_v18 = vrot.slane %v1143_v55, 3  ;;  %v1148_v19 = vrot.slane %v1146_v35, 4  ;;  %v1415_v54 = vld [vmem:[#allocation2 + $0x98] sm:$0x1f] }
  0xde   : > { %v1585_v11 = vrot.slane %v1583_v15, 4  ;;  %v1586_v42 = vshll.u32 %v1414_v38, 16  ;;  %v1591_v59 = vshrl.u32 %v1415_v54, 16  ;;  %v1594_v50 = vshll.u32 %v1415_v54, 16  ;;  %v6885_v49 = vld [vmem:[#allocation2 + $0x30] sm:$0xf0] }
  0xdf   : > { %v1141_v6 = vor.u32 %v1140_v13, %v1137_v63  ;;  %v1149_v5 = vor.u32 %v1148_v19, %v1145_v18  ;;  %v1580_v56 = vor.u32 %v1579_v25, %v1576_v48  ;;  %v1936_v61 = vshrl.u32 %v1753_v22, 16  ;;  %v798_v40 = vld [vmem:[#allocation2 + $0xa8] sm:$0x10]  ;;  %v2074_v55 = vld [vmem:[#allocation2 + $0x38] sm:$0xf] }
  0xe0   : > { %v1588_v52 = vrot.slane %v1586_v42, 5  ;;  %v2290_v16 = vrot.slane %v2288_v62, 4  ;;  %v2293_v24 = vrot.slane %v2291_v3, 5  ;;  %v1593_v26 = vrot.slane %v1591_v59, 4  ;;  %v369_v15 = vld [vmem:[%s6126_s10 + $0xf8] sm:$0xff]  ;;  %v5881_v59 = vld [vmem:[%s8008_s4 + $0x210] sm:$0xff]  }
  0xe1   : > { %v1150_v36 = vsel %vm769_vm3, %v1141_v6, %v1149_v5  ;;  %v1596_v58 = vrot.slane %v1594_v50, 5  ;;  %v1581_v9 = vsel %vm1428_vm5, %v1572_v29, %v1580_v56  ;;  %v1938_v20 = vrot.slane %v1936_v61, 3  ;;  %v1755_v18 = vld [vmem:[#allocation2 + $0xc0] sm:$0xf8]  ;;  %v5878_v29 = vld [vmem:[%s8008_s4 + $0x208] sm:$0xff]  }
  0xe2   : > { %4214 = vmatmul.mubr.bf16.gmra.mrb[44].mxu0 %v1150_v36  ;;  %v1589_v10 = vor.u32 %v1588_v52, %v1585_v11  ;;  %v1939_v31 = vshll.u32 %v1753_v22, 16  ;;  %4351 = vmatmul.mubr.bf16.gmra.mrb[48].mxu1 %v1581_v9  ;;  %v1944_v51 = vshrl.u32 %v1754_v34, 16  ;;  %v1947_v7 = vshll.u32 %v1754_v34, 16  ;;  %v1756_v62 = vld [vmem:[#allocation2 + $0xc8] sm:$0xf] }
  0xe3   : > { %4447 = vmatprep.mubr.bf16.mxu0 %v2261_v1  ;;  %v1597_v38 = vor.u32 %v1596_v58, %v1593_v26  ;;  %v2297_v39 = vshrl.u32 %v2219_v32, 16  ;;  %4358 = vmatprep.mubr.bf16.mxu1 %v1934_v33  ;;  %v2300_v43 = vshll.u32 %v2219_v32, 16  ;;  %v2305_v60 = vshrl.u32 %v2220_v41, 16  ;;  %v1416_v1 = vld [vmem:[#allocation2 + $0xa0] sm:$0xf0] }
  0xe4   : > { %v1941_v27 = vrot.slane %v1939_v31, 4  ;;  %v2308_v45 = vshll.u32 %v2220_v41, 16  ;;  %v2294_v23 = vor.u32 %v2293_v24, %v2290_v16  ;;  %v1946_v35 = vrot.slane %v1944_v51, 3  ;;  %v2221_v25 = vld [vmem:[#allocation2 + $0x50] sm:$0xf0] }
  0xe5   : > { %v1949_v44 = vrot.slane %v1947_v7, 4  ;;  %v2299_v53 = vrot.slane %v2297_v39, 4  ;;  %v2302_v63 = vrot.slane %v2300_v43, 5  ;;  %v2307_v13 = vrot.slane %v2305_v60, 4  ;;  %v6906_v33 = vld [vmem:[#allocation2 + $0x40] sm:$0xf0] }
  0xe6   : > { %v1942_v21 = vor.u32 %v1941_v27, %v1938_v20  ;;  %v2310_v14 = vrot.slane %v2308_v45, 5  ;;  %v799_v37 = vsel %vm6592_vm7, 0, %v798_v40  ;;  %v1600_v6 = vshrl.u32 %v1416_v1, 16  ;;  %v2222_v56 = vld [vmem:[#allocation2 + $0x58] sm:$0x1f] }
  0xe7   : > { %v1950_v19 = vor.u32 %v1949_v44, %v1946_v35  ;;  %v1603_v48 = vshll.u32 %v1416_v1, 16  ;;  %v2138_v3 = vsel %vm1315_vm0, %v2136_v8, %v2137_v17  ;;  %v1598_v22 = vsel %vm1428_vm5, %v1589_v10, %v1597_v38  ;;  %800 = vst [vmem:[#allocation2 + $0xa8] sm:$0x10] %v799_v37  ;;  %v801_v17 = vld [vmem:[#allocation2 + $0xb8] sm:$0x10] }
  0xe8   : > { %v2139_v5 = vrot.slane %v6885_v49, 4  ;;  %v6901_v54 = vmul.f32 %v6836_v0, %v369_v15  ;;  %v2295_v11 = vsel %vm1428_vm5, %v2286_v46, %v2294_v23  ;;  %v2140_v42 = vrot.slane %v2074_v55, 4  ;;  %v6022_v0 = vld [vmem:[%s8008_s4 + $0x200] sm:$0xff]   ;;  %v1418_v52 = vld [vmem:[#allocation2 + $0xb0] sm:$0xf0]  ;;  %v5884_v40 = vld [vmem:[%s8008_s4 + $0x218] sm:$0xff]  }
  0xe9   : > { %v1951_v30 = vsel %vm769_vm3, %v1942_v21, %v1950_v19  ;;  %v1953_v8 = vshrl.u32 %v1755_v18, 16  ;;  %v2311_v46 = vor.u32 %v2310_v14, %v2307_v13  ;;  %v1956_v50 = vshll.u32 %v1755_v18, 16  ;;  %v6923_v31 = vld [vmem:[#allocation2 + $0x50] sm:$0xf0]  ;;  %v6947_v19 = vld [vmem:[#allocation2 + $0x58] sm:$0xf] }
  0xea   : > { %4448 = vmatmul.mubr.bf16.vlgmr.msra.gmra.mrb[48].mxu0 %v6873_v2  ;;  %v2303_v2 = vor.u32 %v2302_v63, %v2299_v53  ;;  %v1961_v36 = vshrl.u32 %v1756_v62, 16  ;;  %4359 = vmatmul.mubr.bf16.gmra.mrb[52].mxu1 %v1598_v22  ;;  %v6917_v34 = vrot.slane %v1600_v6, 4  ;;  %v6919_v61 = vrot.slane %v1603_v48, 5  ;;  %v1757_v39 = vld [vmem:[#allocation2 + $0xd0] sm:$0xf8] }
  0xeb   : > { %4455 = vmatprep.mubr.bf16.mxu0 %v6876_v4  ;;  %5746 = vmatpush3.bf16.msra.mxu0 %v6022_v0  ;;  %v1964_v32 = vshll.u32 %v1756_v62, 16  ;;  %v2314_v16 = vshrl.u32 %v2221_v25, 16  ;;  %v1955_v4 = vrot.slane %v1953_v8, 3  ;;  %v1958_v24 = vrot.slane %v1956_v50, 4  ;;  %v1758_v53 = vld [vmem:[#allocation2 + $0xd8] sm:$0xf] }
  0xec   : > { %5747 = vmatprep.subr.bf16.mxu0 %v5878_v29  ;;  %4366 = vmatprep.mubr.bf16.mxu1 %v1951_v30  ;;  %v1963_v26 = vrot.slane %v1961_v36, 3  ;;  %v2317_v58 = vshll.u32 %v2221_v25, 16  ;;  %v2322_v9 = vshrl.u32 %v2222_v56, 16  ;;  %v2325_v10 = vshll.u32 %v2222_v56, 16  ;;  %v2223_v6 = vld [vmem:[#allocation2 + $0x60] sm:$0xf0] }
  0xed   : > { %v1966_v41 = vrot.slane %v1964_v32, 4  ;;  %v802_v20 = vsel %vm6592_vm7, 0, %v801_v17  ;;  %v6926_v38 = vsel %vm1315_vm0, %v2139_v5, %v2140_v42  ;;  %v6929_v49 = vsel %vm1428_vm5, %v2303_v2, %v2311_v46  ;;  %v804_v5 = vld [vmem:[#allocation2 + $0xc8] sm:$0x10]  ;;  %v5886_v25 = vld [vmem:[%s8008_s4 + $0x220] sm:$0xff]  }
  0xee   : > { %v2142_v51 = vrot.slane %v6906_v33, 4  ;;  %v2143_v7 = vrot.slane %v6908_v28, 4  ;;  %803 = vst [vmem:[#allocation2 + $0xb8] sm:$0x10] %v802_v20  ;;  %v1417_v27 = vld [vmem:[#allocation2 + $0xa8] sm:$0x1f]  ;;  %v1959_v35 = vor.u32 %v1958_v24, %v1955_v4  ;;  %v1606_v15 = vor.u32 %v6919_v61, %v6917_v34 }
  0xef   : > { %5748 = vmatpush3.bf16.msra.mxu0 %v5878_v29  ;;  %v6936_v43 = vrot.slane %v2314_v16, 4  ;;  %v6938_v60 = vrot.slane %v2317_v58, 5  ;;  %v1617_v45 = vshrl.u32 %v1418_v52, 16  ;;  %v1620_v1 = vshll.u32 %v1418_v52, 16  ;;  %v2224_v17 = vld [vmem:[#allocation2 + $0x68] sm:$0x1f] }
  0xf0   : > { %5749 = vmatprep.subr.bf16.mxu0 %v5881_v59  ;;  %v1608_v23 = vshrl.u32 %v1417_v27, 16  ;;  %v1611_v55 = vshll.u32 %v1417_v27, 16  ;;  %v1967_v44 = vor.u32 %v1966_v41, %v1963_v26  ;;  %v6942_v21 = vrot.slane %v2322_v9, 4  ;;  %v1420_v26 = vld [vmem:[#allocation2 + $0xc0] sm:$0xf0]  ;;  %v5887_v58 = vld [vmem:[%s8008_s4 + $0x228] sm:$0xff]  }
  0xf1   : > { %v6944_v63 = vrot.slane %v2325_v10, 5  ;;  %v2145_v13 = vrot.slane %v6923_v31, 4  ;;  %v1970_v29 = vshrl.u32 %v1757_v39, 16  ;;  %v1973_v37 = vshll.u32 %v1757_v39, 16  ;;  %v1759_v39 = vld [vmem:[#allocation2 + $0xe0] sm:$0xf8] }
  0xf2   : > { %4456 = vmatmul.mubr.bf16.gmra.mrb[52].mxu0 %v2138_v3  ;;  %v1610_v14 = vrot.slane %v1608_v23, 4  ;;  %v1613_v18 = vrot.slane %v1611_v55, 5  ;;  %v2320_v48 = vor.u32 %v6938_v60, %v6936_v43  ;;  %v1619_v62 = vrot.slane %v1617_v45, 4  ;;  %v1760_v55 = vld [vmem:[#allocation2 + $0xe8] sm:$0xf] }
  0xf3   : > { %4463 = vmatprep.mubr.bf16.mxu0 %v2295_v11  ;;  %5750 = vmatpush3.bf16.msra.mxu0 %v5881_v59  ;;  %v1622_v3 = vrot.slane %v1620_v1, 5  ;;  %v1978_v22 = vshrl.u32 %v1758_v53, 16  ;;  %v1968_v42 = vsel %vm769_vm3, %v1959_v35, %v1967_v44  ;;  %v1972_v30 = vrot.slane %v1970_v29, 3  ;;  %v6975_v35 = vld [vmem:[%s8006_s2] ss:$0 sm:$0xff]  ;;  %v5888_v44 = vld [vmem:[%s8008_s4 + $0x230] sm:$0xff]  }
  0xf4   : > { %5751 = vmatprep.subr.bf16.mxu0 %v5884_v40  ;;  %v1614_v11 = vor.u32 %v1613_v18, %v1610_v14  ;;  %v1981_v8 = vshll.u32 %v1758_v53, 16  ;;  %v1975_v2 = vrot.slane %v1973_v37, 4  ;;  %v2331_v50 = vshrl.u32 %v2223_v6, 16  ;;  %v7000_v28 = vld [vmem:[#allocation2 + $0x60] sm:$0xf0] }
  0xf5   : > { %v1419_v59 = vld [vmem:[#allocation2 + $0xb8] sm:$0x1f]  ;;  %v1980_v46 = vrot.slane %v1978_v22, 3  ;;  %v2334_v36 = vshll.u32 %v2223_v6, 16  ;;  %v2328_v52 = vor.u32 %v6944_v63, %v6942_v21  ;;  %v1623_v32 = vor.u32 %v1622_v3, %v1619_v62  ;;  %v2225_v29 = vld [vmem:[#allocation2 + $0x70] sm:$0xf0] }
  0xf6   : > { %v1615_v56 = vsel %vm1428_vm5, %v1606_v15, %v1614_v11  ;;  %v1625_v34 = vshrl.u32 %v1419_v59, 16  ;;  %v1628_v61 = vshll.u32 %v1419_v59, 16  ;;  %v2146_v16 = vrot.slane %v6947_v19, 4  ;;  %v2226_v62 = vld [vmem:[#allocation2 + $0x78] sm:$0x1f] }
  0xf7   : > { %5752 = vmatpush3.bf16.msra.mxu0 %v5884_v40  ;;  %4367 = vmatmul.mubr.bf16.gmra.mrb[56].mxu1 %v1615_v56  ;;  %v1983_v4 = vrot.slane %v1981_v8, 4  ;;  %v2339_v24 = vshrl.u32 %v2224_v17, 16  ;;  %v2342_v10 = vshll.u32 %v2224_v17, 16  ;;  %v805_v20 = vsel %vm6592_vm7, 0, %v804_v5  ;;  %v807_v3 = vld [vmem:[#allocation2 + $0xd8] sm:$0x10] }
  0xf8   : > { %5753 = vmatprep.subr.bf16.mxu0 %v5886_v25  ;;  %4374 = vmatprep.mubr.bf16.mxu1 %v1968_v42  ;;  %v1627_v41 = vrot.slane %v1625_v34, 4  ;;  %v1630_v9 = vrot.slane %v1628_v61, 5  ;;  %v1976_v40 = vor.u32 %v1975_v2, %v1972_v30  ;;  %v6967_v43 = vrot.slane %v2331_v50, 4  ;;  %806 = vst [vmem:[#allocation2 + $0xc8] sm:$0x10] %v805_v20  ;;  %v5889_v59 = vld [vmem:[%s8008_s4 + $0x238] sm:$0xff]  }
  0xf9   : > { %v1984_v27 = vor.u32 %v1983_v4, %v1980_v46  ;;  %v6969_v60 = vrot.slane %v2334_v36, 5  ;;  %v1634_v1 = vshrl.u32 %v1420_v26, 16  ;;  %v1637_v23 = vshll.u32 %v1420_v26, 16  ;;  %v7007_v5 = vld [vmem:[#allocation2 + $0x68] sm:$0xf] }
  0xfa   : > { %4464 = vmatmul.mubr.bf16.gmra.mrb[56].mxu0 %v6926_v38  ;;  %v1631_v45 = vor.u32 %v1630_v9, %v1627_v41  ;;  %v6979_v38 = vadd.f32 %v6975_v35, %v6839_v12  ;;  %v2341_v15 = vrot.slane %v2339_v24, 4  ;;  %v2344_v21 = vrot.slane %v2342_v10, 5  ;;  %v1422_v17 = vld [vmem:[#allocation2 + $0xd0] sm:$0xf0]  ;;  %v1762_v41 = vld [vmem:[#allocation2 + $0xf8] sm:$0xf] }
  0xfb   : > { %4471 = vmatprep.mubr.bf16.mxu0 %v6929_v49  ;;  %5754 = vmatpush3.bf16.msra.mxu0 %v5886_v25  ;;  %v2144_v49 = vsel %vm1315_vm0, %v2142_v51, %v2143_v7  ;;  %v1987_v63 = vshrl.u32 %v1759_v39, 16  ;;  %v2329_v12 = vsel %vm1428_vm5, %v2320_v48, %v2328_v52  ;;  %v6998_v19 = vsel %vm1315_vm0, %v2145_v13, %v2146_v16 }
  0xfc   : > { %5755 = vmatprep.subr.bf16.mxu0 %v5887_v58  ;;  %v1632_v18 = vsel %vm1428_vm5, %v1623_v32, %v1631_v45  ;;  %v1990_v33 = vshll.u32 %v1759_v39, 16  ;;  %v1985_v7 = vsel %vm769_vm3, %v1976_v40, %v1984_v27  ;;  %v2337_v37 = vor.u32 %v6969_v60, %v6967_v43  ;;  %v2227_v45 = vld [vmem:[#allocation2 + $0x80] sm:$0xf0] }
  0xfd   : > { %v1995_v6 = vshrl.u32 %v1760_v55, 16  ;;  %v1998_v48 = vshll.u32 %v1760_v55, 16  ;;  %v1636_v22 = vrot.slane %v1634_v1, 4  ;;  %v1639_v31 = vrot.slane %v1637_v23, 5 }
  0xfe   : > { %v1989_v13 = vrot.slane %v1987_v63, 3  ;;  %v1992_v25 = vrot.slane %v1990_v33, 4  ;;  %v2345_v11 = vor.u32 %v2344_v21, %v2341_v15  ;;  %v2348_v8 = vshrl.u32 %v2225_v29, 16  ;;  %v2228_v15 = vld [vmem:[#allocation2 + $0x88] sm:$0x1f] }
  0xff   : > { %5756 = vmatpush3.bf16.msra.mxu0 %v5887_v58  ;;  %4375 = vmatmul.mubr.bf16.gmra.mrb[60].mxu1 %v1632_v18  ;;  %v1997_v42 = vrot.slane %v1995_v6, 3  ;;  %v2000_v30 = vrot.slane %v1998_v48, 4  ;;  %v1421_v2 = vld [vmem:[#allocation2 + $0xc8] sm:$0x1f]  ;;  %v2351_v46 = vshll.u32 %v2225_v29, 16  ;;  %v2356_v50 = vshrl.u32 %v2226_v62, 16 }
 0x100   : > { %5757 = vmatprep.subr.bf16.mxu0 %v5888_v44  ;;  %4382 = vmatprep.mubr.bf16.mxu1 %v1985_v7  ;;  %v2359_v36 = vshll.u32 %v2226_v62, 16  ;;  %v808_v56 = vsel %vm6592_vm7, 0, %v807_v3  ;;  %v1642_v52 = vshrl.u32 %v1421_v2, 16  ;;  %v1645_v34 = vshll.u32 %v1421_v2, 16  ;;  %v1761_v58 = vld [vmem:[#allocation2 + $0xf0] sm:$0xf8] }
 0x101   : > { %v6955_v0 = vpop.f32.mrb[0].mxu0  ;;  %v2148_v61 = vrot.slane %v7000_v28, 4  ;;  %v2149_v32 = vrot.slane %v7007_v5, 4  ;;  %809 = vst [vmem:[#allocation2 + $0xd8] sm:$0x10] %v808_v56  ;;  %v1993_v16 = vor.u32 %v1992_v25, %v1989_v13  ;;  %v2001_v4 = vor.u32 %v2000_v30, %v1997_v42 }
 0x102   : > { %v6984_v53 = vpop.f32.mrb[1].mxu0  ;;  %4472 = vmatmul.mubr.bf16.gmra.mrb[60].mxu0 %v2144_v49  ;;  %v1651_v24 = vshrl.u32 %v1422_v17, 16  ;;  %v1654_v26 = vshll.u32 %v1422_v17, 16  ;;  %v2346_v9 = vsel %vm1428_vm5, %v2337_v37, %v2345_v11  ;;  %v1640_v10 = vor.u32 %v1639_v31, %v1636_v22  ;;  %v810_v7 = vld [vmem:[#allocation2 + $0xe8] sm:$0x10] }
 0x103   : > { %v6991_v14 = vpop.f32.mrb[2].mxu0  ;;  %4479 = vmatprep.mubr.bf16.mxu0 %v2329_v12  ;;  %5758 = vmatpush3.bf16.msra.mxu0 %v5888_v44  ;;  %v1644_v20 = vrot.slane %v1642_v52, 4  ;;  %v1647_v39 = vrot.slane %v1645_v34, 5  ;;  %v2350_v40 = vrot.slane %v2348_v8, 4  ;;  %v2353_v27 = vrot.slane %v2351_v46, 5 }
 0x104   : > { %v7002_v51 = vpop.f32.mrb[3].mxu0  ;;  %5759 = vmatprep.subr.bf16.mxu0 %v5889_v59  ;;  %v2358_v43 = vrot.slane %v2356_v50, 4  ;;  %v2361_v60 = vrot.slane %v2359_v36, 5  ;;  %v2004_v23 = vshrl.u32 %v1761_v58, 16  ;;  %v2007_v55 = vshll.u32 %v1761_v58, 16 }
 0x105   : > { %v1648_v1 = vor.u32 %v1647_v39, %v1644_v20  ;;  %v2012_v49 = vshrl.u32 %v1762_v41, 16  ;;  %v2002_v21 = vsel %vm769_vm3, %v1993_v16, %v2001_v4  ;;  %v1653_v63 = vrot.slane %v1651_v24, 4  ;;  %v2081_v50 = vld [vmem:[#allocation2 + $0x70] sm:$0xf0]  ;;  %v765_v52 = vld [vmem:[#allocation2 + $0x100] sm:$0x8] }
 0x106   : > { %v1656_v44 = vrot.slane %v1654_v26, 5  ;;  %v2015_v12 = vshll.u32 %v1762_v41, 16  ;;  %v2006_v28 = vrot.slane %v2004_v23, 3  ;;  %v2009_v33 = vrot.slane %v2007_v55, 4  ;;  %v2082_v16 = vld [vmem:[#allocation2 + $0x78] sm:$0xf] }
 0x107   : > { %5760 = vmatpush3.bf16.msra.mxu0 %v5889_v59  ;;  %v1649_v18 = vsel %vm1428_vm5, %v1640_v10, %v1648_v1  ;;  %v2014_v29 = vrot.slane %v2012_v49, 3  ;;  %v2365_v48 = vshrl.u32 %v2227_v45, 16  ;;  %v2368_v62 = vshll.u32 %v2227_v45, 16  ;;  %v813_v24 = vld [vmem:[#allocation2 + $0xf8] sm:$0x10] }
 0x108   : > { %4383 = vmatmul.mubr.bf16.gmra.mrb[64].mxu1 %v1649_v18  ;;  %v1423_v37 = vld [vmem:[#allocation2 + $0xd8] sm:$0x1f]  ;;  %v2017_v6 = vrot.slane %v2015_v12, 4  ;;  %v2373_v3 = vshrl.u32 %v2228_v15, 16  ;;  %v2010_v5 = vor.u32 %v2009_v33, %v2006_v28  ;;  %v2376_v13 = vshll.u32 %v2228_v15, 16 }
 0x109   : > { %4390 = vmatprep.mubr.bf16.mxu1 %v2002_v21  ;;  %v1659_v22 = vshrl.u32 %v1423_v37, 16  ;;  %v1662_v31 = vshll.u32 %v1423_v37, 16  ;;  %v2354_v25 = vor.u32 %v2353_v27, %v2350_v40  ;;  %v2362_v11 = vor.u32 %v2361_v60, %v2358_v43  ;;  %v2229_v20 = vld [vmem:[#allocation2 + $0x90] sm:$0xf0]  ;;  %v2230_v39 = vld [vmem:[#allocation2 + $0x98] sm:$0x1f] }
 0x10a   : > { %4480 = vmatmul.mubr.bf16.gmra.mrb[64].mxu0 %v6998_v19  ;;  %v2018_v42 = vor.u32 %v2017_v6, %v2014_v29  ;;  %v7022_v30 = vadd.f32 %v6975_v35, %v6901_v54  ;;  %v1657_v8 = vor.u32 %v1656_v44, %v1653_v63  ;;  %v811_v2 = vsel %vm6592_vm7, 0, %v810_v7  ;;  %v1424_v19 = vld [vmem:[#allocation2 + $0xe0] sm:$0xf0]  ;;  %v2232_v6 = vld [vmem:[#allocation2 + $0xa8] sm:$0x1f] }
 0x10b   : > { %4487 = vmatprep.mubr.bf16.mxu0 %v2346_v9  ;;  %v1661_v17 = vrot.slane %v1659_v22, 4  ;;  %v1664_v59 = vrot.slane %v1662_v31, 5  ;;  %v2150_v46 = vsel %vm1315_vm0, %v2148_v61, %v2149_v32  ;;  %v2367_v36 = vrot.slane %v2365_v48, 4  ;;  %812 = vst [vmem:[#allocation2 + $0xe8] sm:$0x10] %v811_v2 }
 0x10c   : > { %v2370_v56 = vrot.slane %v2368_v62, 5  ;;  %v2019_v4 = vsel %vm769_vm3, %v2010_v5, %v2018_v42  ;;  %v2375_v54 = vrot.slane %v2373_v3, 4  ;;  %v2378_v35 = vrot.slane %v2376_v13, 5  ;;  %v2231_v18 = vld [vmem:[#allocation2 + $0xa0] sm:$0xf0] }
 0x10d   : > { %v1665_v34 = vor.u32 %v1664_v59, %v1661_v17  ;;  %v1668_v26 = vshrl.u32 %v1424_v19, 16  ;;  %v1671_v58 = vshll.u32 %v1424_v19, 16  ;;  %v5193_v41 = vmul.f32 -1.442695, %v6979_v38  ;;  %v2083_v37 = vld [vmem:[#allocation2 + $0x80] sm:$0xf0] }
 0x10e   : > { %v5194_v9 = vmul.f32 -1.442695, %v7022_v30  ;;  %v2363_v61 = vsel %vm1428_vm5, %v2354_v25, %v2362_v11  ;;  %v766_v10 = vsel %vm6175_vm4, 0, %v765_v52  ;;  %v2151_v40 = vrot.slane %v2081_v50, 4  ;;  %v2084_v48 = vld [vmem:[#allocation2 + $0x88] sm:$0xf] }
 0x10f   : > { %v1666_v32 = vsel %vm1428_vm5, %v1657_v8, %v1665_v34  ;;  %6010 = vpow2.f32 %v5193_v41  ;;  %767 = vst [vmem:[#allocation2 + $0x100] sm:$0x8] %v766_v10  ;;  %v2152_v27 = vrot.slane %v2082_v16, 4  ;;  %v814_v43 = vsel %vm6592_vm7, 0, %v813_v24  ;;  %v1426_v25 = vld [vmem:[#allocation2 + $0xf0] sm:$0xf0] }
 0x110   : > { %4391 = vmatmul.mubr.bf16.gmra.mrb[68].mxu1 %v1666_v32  ;;  %6012 = vpow2.f32 %v5194_v9  ;;  %v2371_v60 = vor.u32 %v2370_v56, %v2367_v36  ;;  %v2379_v45 = vor.u32 %v2378_v35, %v2375_v54  ;;  %v1670_v1 = vrot.slane %v1668_v26, 4  ;;  %815 = vst [vmem:[#allocation2 + $0xf8] sm:$0x10] %v814_v43  ;;  %v2085_v34 = vld [vmem:[#allocation2 + $0x90] sm:$0xf0] }
 0x111   : > { %4398 = vmatprep.mubr.bf16.mxu1 %v2019_v4  ;;  %v1673_v23 = vrot.slane %v1671_v58, 5  ;;  %v2382_v55 = vshrl.u32 %v2229_v20, 16  ;;  %v2385_v49 = vshll.u32 %v2229_v20, 16  ;;  %v2390_v15 = vshrl.u32 %v2230_v39, 16  ;;  %v2086_v16 = vld [vmem:[#allocation2 + $0x98] sm:$0xf] }
 0x112   : > { %4488 = vmatmul.mubr.bf16.gmra.mrb[68].mxu0 %v2150_v46  ;;  %v1425_v47 = vld [vmem:[#allocation2 + $0xe8] sm:$0x1f]  ;;  %v2393_v21 = vshll.u32 %v2230_v39, 16  ;;  %v2153_v12 = vsel %vm1315_vm0, %v2151_v40, %v2152_v27  ;;  %v2380_v28 = vsel %vm1428_vm5, %v2371_v60, %v2379_v45  ;;  %v2399_v13 = vshrl.u32 %v2231_v18, 16  ;;  %v2886_v26 = vld [vmem:[#allocation2 + $0x20] sm:$0xf0] }
 0x113   : > { %4495 = vmatprep.mubr.bf16.mxu0 %v2363_v61  ;;  %v1676_v63 = vshrl.u32 %v1425_v47, 16  ;;  %v1679_v44 = vshll.u32 %v1425_v47, 16  ;;  %v1674_v33 = vor.u32 %v1673_v23, %v1670_v1  ;;  %v2384_v62 = vrot.slane %v2382_v55, 4  ;;  %v2887_v61 = vld [vmem:[#allocation2 + $0x28] sm:$0xf] }
 0x114   : > { %v2387_v3 = vrot.slane %v2385_v49, 5  ;;  %v2392_v22 = vrot.slane %v2390_v15, 4  ;;  %v2395_v31 = vrot.slane %v2393_v21, 5  ;;  %v2402_v11 = vshll.u32 %v2231_v18, 16  ;;  %v2550_v39 = vld [vmem:[#allocation2 + $0x20] sm:$0xf8] }
 0x115   : > { %v1678_v29 = vrot.slane %v1676_v63, 4  ;;  %v1681_v7 = vrot.slane %v1679_v44, 5  ;;  %v2407_v42 = vshrl.u32 %v2232_v6, 16  ;;  %v2410_v8 = vshll.u32 %v2232_v6, 16  ;;  %v2087_v43 = vld [vmem:[#allocation2 + $0xa0] sm:$0xf0] }
 0x116   : > { %v2154_v2 = vrot.slane %v2083_v37, 4  ;;  %v2155_v19 = vrot.slane %v2084_v48, 4  ;;  %v2388_v36 = vor.u32 %v2387_v3, %v2384_v62  ;;  %v2396_v56 = vor.u32 %v2395_v31, %v2392_v22  ;;  %v7043_v60 = vld [vmem:[#allocation2 + $0x28] sm:$0xf]  ;;  %v2233_v45 = vld [vmem:[#allocation2 + $0xb0] sm:$0xf0] }
 0x117   : > { %v1682_v5 = vor.u32 %v1681_v7, %v1678_v29  ;;  %v1427_v52 = vld [vmem:[#allocation2 + $0xf8] sm:$0x1f]  ;;  %v1685_v54 = vshrl.u32 %v1426_v25, 16  ;;  %v1688_v35 = vshll.u32 %v1426_v25, 16  ;;  %v2401_v24 = vrot.slane %v2399_v13, 4 }
 0x118   : > { %v2404_v58 = vrot.slane %v2402_v11, 5  ;;  %v2409_v41 = vrot.slane %v2407_v42, 4  ;;  %v2412_v9 = vrot.slane %v2410_v8, 5  ;;  %v2156_v32 = vsel %vm1315_vm0, %v2154_v2, %v2155_v19  ;;  %v2234_v1 = vld [vmem:[#allocation2 + $0xb8] sm:$0x1f] }
 0x119   : > { %v6011_v17 = vpop.eup %6010  ;;  %v1683_v59 = vsel %vm1428_vm5, %v1674_v33, %v1682_v5  ;;  %v1693_v10 = vshrl.u32 %v1427_v52, 16  ;;  %v1696_v20 = vshll.u32 %v1427_v52, 16  ;;  %v2397_v27 = vsel %vm1428_vm5, %v2388_v36, %v2396_v56 }
 0x11a   : > { %4496 = vmatmul.mubr.bf16.gmra.mrb[72].mxu0 %v2153_v12  ;;  %v6013_v46 = vpop.eup %6012  ;;  %4399 = vmatmul.mubr.bf16.gmra.mrb[72].mxu1 %v1683_v59  ;;  %v574_v50 = vadd.f32 1.0, %v6011_v17  ;;  %v1687_v47 = vrot.slane %v1685_v54, 4  ;;  %v1690_v55 = vrot.slane %v1688_v35, 5  ;;  %v2157_v49 = vrot.slane %v2085_v34, 4  ;;  %v2236_v34 = vld [vmem:[#allocation2 + $0xc8] sm:$0x1f] }
 0x11b   : > { %4503 = vmatprep.mubr.bf16.mxu0 %v2380_v28  ;;  %v575_v4 = vadd.f32 1.0, %v6013_v46  ;;  %v2158_v15 = vrot.slane %v2086_v16, 4  ;;  %v2405_v63 = vor.u32 %v2404_v58, %v2401_v24  ;;  %v2413_v44 = vor.u32 %v2412_v9, %v2409_v41  ;;  %v2088_v28 = vld [vmem:[#allocation2 + $0xa8] sm:$0xf]  ;;  %v2235_v46 = vld [vmem:[#allocation2 + $0xc0] sm:$0xf0] }
 0x11c   : > { %6014 = vrcp.f32 %v574_v50  ;;  %v2950_v12 = vrot.slane %v2886_v26, 4  ;;  %v2951_v18 = vrot.slane %v2887_v61, 4  ;;  %v1695_v7 = vrot.slane %v1693_v10, 4  ;;  %v2552_v61 = vld [vmem:[#allocation2 + $0x30] sm:$0xf8] }
 0x11d   : > { %6016 = vrcp.f32 %v575_v4  ;;  %v1698_v37 = vrot.slane %v1696_v20, 5  ;;  %v2583_v6 = vshrl.u32 %v2550_v39, 16  ;;  %v2586_v48 = vshll.u32 %v2550_v39, 16  ;;  %v2553_v20 = vld [vmem:[#allocation2 + $0x38] sm:$0xf] }
 0x11e   : > { %v2416_v3 = vshrl.u32 %v2233_v45, 16  ;;  %v2419_v22 = vshll.u32 %v2233_v45, 16  ;;  %v2424_v31 = vshrl.u32 %v2234_v1, 16  ;;  %v2427_v5 = vshll.u32 %v2234_v1, 16 }
 0x11f   : > { %v2160_v25 = vrot.slane %v2087_v43, 4  ;;  %v2161_v11 = vrot.slane %v2088_v28, 4  ;;  %v2591_v42 = vshrl.u32 %v7043_v60, 16  ;;  %v1691_v17 = vor.u32 %v1690_v55, %v1687_v47  ;;  %v7081_v55 = vld [vmem:[#allocation2 + $0x30] sm:$0xf0] }
 0x120   : > { %v7040_v40 = vpop.f32.mrb[4].mxu0  ;;  %v2159_v59 = vsel %vm1315_vm0, %v2157_v49, %v2158_v15  ;;  %v2414_v2 = vsel %vm1428_vm5, %v2405_v63, %v2413_v44  ;;  %v7063_v19 = vsel %vm1315_vm0, %v2950_v12, %v2951_v18  ;;  %v1699_v50 = vor.u32 %v1698_v37, %v1695_v7  ;;  %v2089_v63 = vld [vmem:[#allocation2 + $0xb0] sm:$0xf0]  ;;  %v2090_v44 = vld [vmem:[#allocation2 + $0xb8] sm:$0xf] }
 0x121   : > { %v7045_v23 = vpop.f32.mrb[5].mxu0  ;;  %v7065_v36 = vrot.slane %v2583_v6, 3  ;;  %v7067_v56 = vrot.slane %v2586_v48, 4  ;;  %v2594_v52 = vshll.u32 %v7043_v60, 16  ;;  %v2418_v4 = vrot.slane %v2416_v3, 4 }
 0x122   : > { %v7047_v21 = vpop.f32.mrb[6].mxu0  ;;  %4504 = vmatmul.mubr.bf16.gmra.mrb[76].mxu0 %v2156_v32  ;;  %v2421_v54 = vrot.slane %v2419_v22, 5  ;;  %v2426_v35 = vrot.slane %v2424_v31, 4  ;;  %v2429_v24 = vrot.slane %v2427_v5, 5  ;;  %v2162_v41 = vsel %vm1315_vm0, %v2160_v25, %v2161_v11  ;;  %v6024_v60 = vld [vmem:[%s6264_s21] ss:$0 sm:$0xff] }
 0x123   : > { %v7049_v33 = vpop.f32.mrb[0].mxu1  ;;  %v7051_v29 = vpop.f32.mrb[7].mxu0  ;;  %4511 = vmatprep.mubr.bf16.mxu0 %v2397_v27  ;;  %v7072_v9 = vrot.slane %v2591_v42, 3  ;;  %v2433_v32 = vshrl.u32 %v2235_v46, 16  ;;  %v2436_v39 = vshll.u32 %v2235_v46, 16  ;;  %v2441_v27 = vshrl.u32 %v2236_v34, 16 }
 0x124   : > { %v7053_v62 = vpop.f32.mrb[1].mxu1  ;;  %v2444_v43 = vshll.u32 %v2236_v34, 16  ;;  %v7077_v1 = vsel %vm1428_vm5, %v1691_v17, %v1699_v50  ;;  %v2596_v47 = vrot.slane %v2594_v52, 4  ;;  %v2422_v15 = vor.u32 %v2421_v54, %v2418_v4  ;;  %v2237_v6 = vld [vmem:[#allocation2 + $0xd0] sm:$0xf0] }
 0x125   : > { %v7055_v13 = vpop.f32.mrb[2].mxu1  ;;  %v2600_v12 = vshrl.u32 %v2552_v61, 16  ;;  %v2603_v18 = vshll.u32 %v2552_v61, 16  ;;  %v2608_v28 = vshrl.u32 %v2553_v20, 16  ;;  %v2611_v7 = vshll.u32 %v2553_v20, 16 }
 0x126   : > { %v7058_v8 = vpop.f32.mrb[3].mxu1  ;;  %v6015_v16 = vpop.eup %6014  ;;  %v2435_v37 = vrot.slane %v2433_v32, 4  ;;  %v2438_v3 = vrot.slane %v2436_v39, 5  ;;  %v2443_v22 = vrot.slane %v2441_v27, 4  ;;  %v2446_v31 = vrot.slane %v2444_v43, 5 }
 0x127   : > { %v6017_v26 = vpop.eup %6016  ;;  %v670_v58 = vmul.f32 %v6015_v16, %v6979_v38  ;;  %v2589_v38 = vor.u32 %v7067_v56, %v7065_v36  ;;  %v2091_v5 = vld [vmem:[#allocation2 + $0xc0] sm:$0xf0]  ;;  %v2092_v25 = vld [vmem:[#allocation2 + $0xc8] sm:$0xf]  ;;  %v2238_v11 = vld [vmem:[#allocation2 + $0xd8] sm:$0x1f]  ;;  %v2597_v42 = vor.u32 %v2596_v47, %v7072_v9 }
 0x128   : > { %v671_v10 = vmul.f32 %v6017_v26, %v7022_v30  ;;  %v2430_v30 = vor.u32 %v2429_v24, %v2426_v35  ;;  %v2554_v46 = vld [vmem:[#allocation2 + $0x40] sm:$0xf8]  ;;  %v7088_v52 = vld [vmem:[#allocation2 + $0x38] sm:$0xf]  ;;  %v2555_v34 = vld [vmem:[#allocation2 + $0x48] sm:$0xf]  ;;  %v2439_v20 = vor.u32 %v2438_v3, %v2435_v37  ;;  %v2447_v39 = vor.u32 %v2446_v31, %v2443_v22 }
 0x129   : > { %v709_v45 = vadd.f32 %v6024_v60, %v670_v58  ;;  %v2450_v16 = vshrl.u32 %v2237_v6, 16  ;;  %v2453_v4 = vshll.u32 %v2237_v6, 16  ;;  %v7092_v35 = vrot.slane %v2600_v12, 3  ;;  %v7096_v26 = vld [vmem:[#allocation2 + $0x40] sm:$0xf0] }
 0x12a   : > { %4512 = vmatmul.mubr.bf16.gmra.mrb[80].mxu0 %v2159_v59  ;;  %v710_v49 = vadd.f32 %v6024_v60, %v671_v10  ;;  %v2163_v59 = vrot.slane %v2089_v63, 4  ;;  %v2431_v56 = vsel %vm1428_vm5, %v2422_v15, %v2430_v30  ;;  %v7094_v24 = vrot.slane %v2603_v18, 4  ;;  %v7104_v27 = vld [vmem:[#allocation2 + $0x48] sm:$0xf] }
 0x12b   : > { %4519 = vmatprep.mubr.bf16.mxu0 %v2414_v2  ;;  %v2164_v2 = vrot.slane %v2090_v44, 4  ;;  %v2458_v58 = vshrl.u32 %v2238_v11, 16  ;;  %v2461_v9 = vshll.u32 %v2238_v11, 16  ;;  %v7100_v32 = vrot.slane %v2608_v28, 3 }
 0x12c   : > { %v834_v48 = vpack.c.bf16 %v710_v49, %v709_v45  ;;  %v7102_v10 = vrot.slane %v2611_v7, 4  ;;  %v2166_v45 = vrot.slane %v2091_v5, 4  ;;  %v2167_v47 = vrot.slane %v2092_v25, 4  ;;  %v2556_v25 = vld [vmem:[#allocation2 + $0x50] sm:$0xf8] }
 0x12d   : > { %v2617_v49 = vshrl.u32 %v2554_v46, 16  ;;  %v2620_v15 = vshll.u32 %v2554_v46, 16  ;;  %v2628_v63 = vshll.u32 %v2555_v34, 16  ;;  %v7112_v44 = vrot.slane %v2450_v16, 4 }
 0x12e   : > { %v866_v36 = vrot.slane %v834_v48, 4  ;;  %v7114_v12 = vrot.slane %v2453_v4, 5  ;;  %v7119_v28 = vsel %vm769_vm3, %v2589_v38, %v2597_v42  ;;  %v2460_v37 = vrot.slane %v2458_v58, 4  ;;  %v2240_v4 = vld [vmem:[#allocation2 + $0xe8] sm:$0x1f] }
 0x12f   : > { %v7085_v50 = vpop.f32.mrb[8].mxu0  ;;  %v2463_v6 = vrot.slane %v2461_v9, 5  ;;  %v2165_v3 = vsel %vm1315_vm0, %v2163_v59, %v2164_v2  ;;  %v2448_v38 = vsel %vm1428_vm5, %v2439_v20, %v2447_v39  ;;  %v7133_v42 = vsel %vm1315_vm0, %v2166_v45, %v2167_v47  ;;  %v7149_v45 = vld [vmem:[#allocation2 + $0xd0] sm:$0xf0] }
 0x130   : > { %8017 = vst [vmem:[#allocation4_spill] sm:$0xff] %v7085_v50  ;;  %v7090_v54 = vpop.f32.mrb[9].mxu0  ;;  %913 = vst [vmem:[#allocation2 + $0x108] ss:$-4 sps:$4 sm:$0xff] %v866_v36   ;;  %v7135_v46 = vrot.slane %v2617_v49, 3  ;;  %v7139_v2 = vrot.slane %v2620_v15, 4  ;;  %v2456_v16 = vor.u32 %v7114_v12, %v7112_v44  ;;  %v7153_v15 = vadd.f32 %v6984_v53, %v6955_v0 }
 0x131   : > { %8018 = vst [vmem:[#allocation5_spill] sm:$0xff] %v7090_v54  ;;  %v7098_v61 = vpop.f32.mrb[10].mxu0  ;;  %v2239_v36 = vld [vmem:[#allocation2 + $0xe0] sm:$0xf0]  ;;  %v2464_v39 = vor.u32 %v2463_v6, %v2460_v37  ;;  %v2634_v47 = vshrl.u32 %v2556_v25, 16  ;;  %v2637_v49 = vshll.u32 %v2556_v25, 16 }
 0x132   : > { %8019 = vst [vmem:[#allocation6_spill] sm:$0xff] %v7098_v61  ;;  %4520 = vmatmul.mubr.bf16.gmra.mrb[84].mxu0 %v2162_v41  ;;  %v7106_v43 = vpop.f32.mrb[4].mxu1  ;;  %v7108_v60 = vpop.f32.mrb[11].mxu0  ;;  %v2625_v41 = vshrl.u32 %v2555_v34, 16  ;;  %v7143_v34 = vrot.slane %v2628_v63, 4  ;;  %v2467_v22 = vshrl.u32 %v2239_v36, 16 }
 0x133   : > { %8020 = vst [vmem:[#allocation7_spill] sm:$0xff] %v7106_v43  ;;  %8021 = vst [vmem:[#allocation8_spill] sm:$0xff] %v7108_v60  ;;  %4527 = vmatprep.mubr.bf16.mxu0 %v2431_v56  ;;  %v7110_v30 = vpop.f32.mrb[5].mxu1  ;;  %v2557_v44 = vld [vmem:[#allocation2 + $0x58] sm:$0xf]  ;;  %v2470_v31 = vshll.u32 %v2239_v36, 16  ;;  %v2465_v53 = vsel %vm1428_vm5, %v2456_v16, %v2464_v39 }
 0x134   : > { %8022 = vst [vmem:[#allocation9_spill] sm:$0xff] %v7110_v30  ;;  %v7116_v18 = vpop.f32.mrb[6].mxu1  ;;  %v7141_v56 = vrot.slane %v2625_v41, 3  ;;  %v2094_v12 = vld [vmem:[#allocation2 + $0xd8] sm:$0xf]  ;;  %v2475_v17 = vshrl.u32 %v2240_v4, 16 }
 0x135   : > { %8023 = vst [vmem:[#allocation10_spill] sm:$0xff] %v7116_v18  ;;  %v7122_v48 = vpop.f32.mrb[7].mxu1  ;;  %v2478_v37 = vshll.u32 %v2240_v4, 16  ;;  %v2559_v60 = vld [vmem:[#allocation2 + $0x68] sm:$0xf]  ;;  %v2469_v54 = vrot.slane %v2467_v22, 4 }
 0x136   : > { %8024 = vst [vmem:[#allocation11_spill] sm:$0xff] %v7122_v48 }
 0x137   : > { %v7137_v59 = vpop.f32.mrb[12].mxu0  ;;  %v1763_v9 = vld [vmem:[#allocation2 + $0x100] sm:$0xf8]  ;;  %v1764_v20 = vld [vmem:[#allocation2 + $0x108] sm:$0xf] }
 0x138   : > { %8025 = vst [vmem:[#allocation12_spill] sm:$0xff] %v7137_v59  ;;  %v7147_v58 = vpop.f32.mrb[13].mxu0  ;;  %v2021_v41 = vshrl.u32 %v1763_v9, 16  ;;  %v2024_v63 = vshll.u32 %v1763_v9, 16  ;;  %v2029_v5 = vshrl.u32 %v1764_v20, 16  ;;  %v2032_v11 = vshll.u32 %v1764_v20, 16 }
 0x139   : > { %8026 = vst [vmem:[#allocation13_spill] sm:$0xff] %v7147_v58  ;;  %v7155_v59 = vld [vmem:[#allocation2 + $0x50] sm:$0xf0]  ;;  %v7157_v0 = vpop.f32.mrb[14].mxu0  ;;  %v2645_v9 = vshll.u32 %v2557_v44, 16 }
 0x13a   : > { %4528 = vmatmul.mubr.bf16.gmra.mrb[88].mxu0 %v2165_v3  ;;  %v2023_v6 = vrot.slane %v2021_v41, 3  ;;  %v2026_v7 = vrot.slane %v2024_v63, 4  ;;  %v2031_v58 = vrot.slane %v2029_v5, 3  ;;  %v2034_v25 = vrot.slane %v2032_v11, 4  ;;  %8027 = vst [vmem:[#allocation14_spill] sm:$0xff] %v7157_v0  ;;  %v7165_v4 = vpop.f32.mrb[15].mxu0 }
 0x13b   : > { %4535 = vmatprep.mubr.bf16.mxu0 %v2448_v38  ;;  %v2642_v38 = vshrl.u32 %v2557_v44, 16  ;;  %v2558_v20 = vld [vmem:[#allocation2 + $0x60] sm:$0xf8]  ;;  %8029 = vst [vmem:[#allocation16_spill] sm:$0xff] %v7165_v4  ;;  %v7167_v11 = vld [vmem:[#allocation2 + $0x58] sm:$0xf] }
 0x13c   : > { %v2027_v41 = vor.u32 %v2026_v7, %v2023_v6  ;;  %v2035_v5 = vor.u32 %v2034_v25, %v2031_v58  ;;  %v2169_v63 = vrot.slane %v7149_v45, 4  ;;  %v2170_v0 = vrot.slane %v2094_v12, 4  ;;  %v2894_v45 = vld [vmem:[#allocation2 + $0x60] sm:$0xf0]  ;;  %v2895_v12 = vld [vmem:[#allocation2 + $0x68] sm:$0xf] }
 0x13d   : > { %v7173_v3 = vrot.slane %v2634_v47, 3  ;;  %v7175_v44 = vrot.slane %v2637_v49, 4  ;;  %v2472_v58 = vrot.slane %v2470_v31, 5  ;;  %v2477_v6 = vrot.slane %v2475_v17, 4  ;;  %v2242_v4 = vld [vmem:[#allocation2 + $0xf8] sm:$0x1f] }
 0x13e   : > { %v7163_v36 = vpop.f32.mrb[8].mxu1  ;;  %v2036_v7 = vsel %vm769_vm3, %v2027_v41, %v2035_v5  ;;  %v2480_v25 = vrot.slane %v2478_v37, 5  ;;  %v2959_v16 = vrot.slane %v7155_v59, 4  ;;  %v2644_v39 = vrot.slane %v2642_v38, 3 }
 0x13f   : > { %8028 = vst [vmem:[#allocation15_spill] sm:$0xff] %v7163_v36  ;;  %v7170_v61 = vpop.f32.mrb[9].mxu1  ;;  %v2241_v36 = vld [vmem:[#allocation2 + $0xf0] sm:$0xf0]  ;;  %4406 = vmatprep.mubr.bf16.mxu1 %v2036_v7  ;;  %v2647_v47 = vrot.slane %v2645_v9, 4  ;;  %v2651_v49 = vshrl.u32 %v2558_v20, 16 }
 0x140   : > { %8030 = vst [vmem:[#allocation17_spill] sm:$0xff] %v7170_v61  ;;  %v7177_v50 = vpop.f32.mrb[10].mxu1  ;;  %4407 = vmatmul.mubr.bf16.gmra.mrb[76].mxu1 %v7077_v1  ;;  %v2654_v31 = vshll.u32 %v2558_v20, 16  ;;  %v2659_v17 = vshrl.u32 %v2559_v60, 16  ;;  %v2662_v37 = vshll.u32 %v2559_v60, 16  ;;  %v2484_v41 = vshrl.u32 %v2241_v36, 16 }
 0x141   : > { %8031 = vst [vmem:[#allocation18_spill] sm:$0xff] %v7177_v50  ;;  %v7180_v48 = vpop.f32.mrb[11].mxu1  ;;  %v7183_v22 = vpop.f32.mrb[16].mxu0  ;;  %4608 = vmatprep.mubr.bf16.mxu1 %v7063_v19  ;;  %v2960_v59 = vrot.slane %v7167_v11, 4  ;;  %v2487_v38 = vshll.u32 %v2241_v36, 16  ;;  %v2492_v9 = vshrl.u32 %v2242_v4, 16  ;;  %v2171_v1 = vsel %vm1315_vm0, %v2169_v63, %v2170_v0 }
 0x142   : > { %8032 = vst [vmem:[#allocation19_spill] sm:$0xff] %v7180_v48  ;;  %8033 = vst [vmem:[#allocation20_spill] sm:$0xff] %v7183_v22  ;;  %4536 = vmatmul.mubr.bf16.gmra.mrb[92].mxu0 %v7133_v42  ;;  %v7187_v5 = vpop.f32.mrb[17].mxu0  ;;  %v2495_v7 = vshll.u32 %v2242_v4, 16  ;;  %v2640_v42 = vor.u32 %v7175_v44, %v7173_v3  ;;  %v2473_v20 = vor.u32 %v2472_v58, %v2469_v54  ;;  %v2095_v22 = vld [vmem:[#allocation2 + $0xe0] sm:$0xf0] }
 0x143   : > { %8034 = vst [vmem:[#allocation21_spill] sm:$0xff] %v7187_v5  ;;  %4543 = vmatprep.mubr.bf16.mxu0 %v2465_v53  ;;  %v7191_v48 = vpop.f32.mrb[18].mxu0  ;;  %v2481_v60 = vor.u32 %v2480_v25, %v2477_v6  ;;  %v816_v50 = vld [vmem:[#allocation2 + $0x108] sm:$0x10]  ;;  %v2648_v19 = vor.u32 %v2647_v47, %v2644_v39  ;;  %v2962_v53 = vrot.slane %v2894_v45, 4  ;;  %v2963_v61 = vrot.slane %v2895_v12, 4 }
 0x144   : > { %8035 = vst [vmem:[#allocation22_spill] sm:$0xff] %v7191_v48  ;;  %v7196_v5 = vpop.f32.mrb[19].mxu0  ;;  %v2096_v11 = vld [vmem:[#allocation2 + $0xe8] sm:$0xf]  ;;  %v2653_v36 = vrot.slane %v2651_v49, 3  ;;  %v2656_v18 = vrot.slane %v2654_v31, 4  ;;  %v8038_v12 = vor.u32 %v7102_v10, %v7100_v32  ;;  %v8039_v39 = vor.u32 %v7094_v24, %v7092_v35 }
 0x145   : > { %v2661_v4 = vrot.slane %v2659_v17, 3  ;;  %v2664_v30 = vrot.slane %v2662_v37, 4  ;;  %v2486_v48 = vrot.slane %v2484_v41, 4  ;;  %v2489_v43 = vrot.slane %v2487_v38, 5  ;;  %v7232_v24 = vld [vmem:[#allocation2 + $0x70] sm:$0xf0] }
 0x146   : > { %v2494_v0 = vrot.slane %v2492_v9, 4  ;;  %v2497_v63 = vrot.slane %v2495_v7, 5  ;;  %v817_v54 = vsel %vm6592_vm7, 0, %v816_v50  ;;  %v8036_v3 = vrot.slane %v7088_v52, 4  ;;  %v2243_v10 = vld [vmem:[#allocation2 + $0x100] sm:$0xf0] }
 0x147   : > { %v8037_v44 = vrot.slane %v7081_v55, 4  ;;  %v2482_v6 = vsel %vm1428_vm5, %v2473_v20, %v2481_v60  ;;  %v2172_v25 = vrot.slane %v2095_v22, 4  ;;  %v2173_v45 = vrot.slane %v2096_v11, 4  ;;  %818 = vst [vmem:[#allocation2 + $0x108] sm:$0x10] %v817_v54 }
 0x148   : > { %v2615_v57 = vsel %vm769_vm3, %v8039_v39, %v8038_v12  ;;  %v8040_v50 = vrot.slane %v7104_v27, 4  ;;  %v8041_v52 = vrot.slane %v7096_v26, 4  ;;  %v8042_v47 = vor.u32 %v7143_v34, %v7141_v56  ;;  %4609 = vmatmul.mubr.bf16.vlgmr.msra.gmra.mrb[80].mxu1 %v7119_v28  ;;  %v7243_v17 = vld [vmem:[#allocation2 + $0x78] sm:$0xf]  ;;  %v7245_v28 = vld [vmem:[#allocation2 + $0xf0] sm:$0xf0] }
 0x149   : > { %v2955_v58 = vsel %vm1315_vm0, %v8037_v44, %v8036_v3  ;;  %v8043_v49 = vor.u32 %v7139_v2, %v7135_v46  ;;  %v7230_v35 = vsel %vm1315_vm0, %v2959_v16, %v2960_v59  ;;  %v7236_v26 = vsel %vm769_vm3, %v2640_v42, %v2648_v19  ;;  %v2560_v46 = vld [vmem:[#allocation2 + $0x70] sm:$0xf8]  ;;  %v2561_v2 = vld [vmem:[#allocation2 + $0x78] sm:$0xf]  ;;  %v7261_v19 = vld [vmem:[#allocation2 + $0x80] sm:$0xf0] }
 0x14a   : > { %v7218_v55 = vsel %vm1315_vm0, %v8041_v52, %v8040_v50  ;;  %4544 = vmatmul.mubr.bf16.gmra.mrb[96].mxu0 %v2171_v1  ;;  %v7239_v27 = vsel %vm1315_vm0, %v2962_v53, %v2963_v61  ;;  %v2657_v56 = vor.u32 %v2656_v18, %v2653_v36  ;;  %4616 = vmatprep.mubr.bf16.mxu1 %v2955_v58  ;;  %v2965_v61 = vrot.slane %v7232_v24, 4  ;;  %v7251_v18 = vld [vmem:[#allocation2 + $0xf8] sm:$0xf]  ;;  %v7263_v53 = vld [vmem:[#allocation2 + $0x88] sm:$0xf] }
 0x14b   : > { %v7227_v32 = vsel %vm769_vm3, %v8043_v49, %v8042_v47  ;;  %v7241_v34 = vpop.f32.mrb[12].mxu1  ;;  %4551 = vmatprep.mubr.bf16.mxu0 %v2482_v6  ;;  %v2665_v16 = vor.u32 %v2664_v30, %v2661_v4  ;;  %v2490_v22 = vor.u32 %v2489_v43, %v2486_v48  ;;  %v2498_v31 = vor.u32 %v2497_v63, %v2494_v0  ;;  %v3030_v4 = vld [vmem:[#allocation2 + $0x20] sm:$0xf0] }
 0x14c   : > { %v7247_v37 = vpop.f32.mrb[13].mxu1  ;;  %v2174_v41 = vsel %vm1315_vm0, %v2172_v25, %v2173_v45  ;;  %v2501_v59 = vshrl.u32 %v2243_v10, 16  ;;  %v2504_v38 = vshll.u32 %v2243_v10, 16  ;;  %v2668_v7 = vshrl.u32 %v2560_v46, 16  ;;  %v2562_v58 = vld [vmem:[#allocation2 + $0x80] sm:$0xf8] }
 0x14d   : > { %v7253_v9 = vpop.f32.mrb[14].mxu1  ;;  %v2671_v30 = vshll.u32 %v2560_v46, 16  ;;  %v2676_v43 = vshrl.u32 %v2561_v2, 16  ;;  %v2679_v48 = vshll.u32 %v2561_v2, 16  ;;  %v2966_v20 = vrot.slane %v7243_v17, 4 }
 0x14e   : > { %v7255_v1 = vpop.f32.mrb[15].mxu1  ;;  %v7257_v42 = vpop.f32.mrb[20].mxu0  ;;  %v2175_v60 = vrot.slane %v7245_v28, 4  ;;  %v7267_v11 = vadd.f32 %v7002_v51, %v6991_v14  ;;  %v7271_v36 = vadd.f32 %v7053_v62, %v7049_v33  ;;  %v7276_v63 = vsel %vm769_vm3, %v2657_v56, %v2665_v16  ;;  %v2244_v44 = vld [vmem:[#allocation2 + $0x108] sm:$0x1f] }
 0x14f   : > { %v7273_v0 = vpop.f32.mrb[21].mxu0  ;;  %v2499_v54 = vsel %vm1428_vm5, %v2490_v22, %v2498_v31  ;;  %v2176_v3 = vrot.slane %v7251_v18, 4  ;;  %v7282_v14 = vadd.f32 %v7058_v8, %v7055_v13  ;;  %v3031_v51 = vld [vmem:[#allocation2 + $0x28] sm:$0x1f]  ;;  %v2503_v33 = vrot.slane %v2501_v59, 4 }
 0x150   : > { %8044 = vst [vmem:[#allocation23_spill] sm:$0xff] %v7271_v36  ;;  %v7284_v6 = vpop.f32.mrb[22].mxu0  ;;  %v2506_v62 = vrot.slane %v2504_v38, 5  ;;  %v2509_v25 = vshrl.u32 %v2244_v44, 16  ;;  %v2512_v45 = vshll.u32 %v2244_v44, 16  ;;  %v2670_v50 = vrot.slane %v2668_v7, 3  ;;  %4617 = vmatmul.mubr.bf16.gmra.mrb[84].mxu1 %v2615_v57 }
 0x151   : > { %8045 = vst [vmem:[#allocation24_spill] sm:$0xff] %v7282_v14  ;;  %v2099_v12 = vld [vmem:[#allocation2 + $0x100] sm:$0xf0]  ;;  %v7286_v39 = vpop.f32.mrb[23].mxu0  ;;  %v2673_v52 = vrot.slane %v2671_v30, 4  ;;  %v2678_v47 = vrot.slane %v2676_v43, 3  ;;  %4624 = vmatprep.mubr.bf16.mxu1 %v7218_v55 }
 0x152   : > { %v2681_v49 = vrot.slane %v2679_v48, 4  ;;  %v2100_v10 = vld [vmem:[#allocation2 + $0x108] sm:$0xf]  ;;  %4552 = vmatmul.mubr.bf16.gmra.mrb[100].mxu0 %v2174_v41  ;;  %v2511_v56 = vrot.slane %v2509_v25, 4  ;;  %v2514_v13 = vrot.slane %v2512_v45, 5  ;;  %v3063_v8 = vshrl.u32 %v3030_v4, 16 }
 0x153   : > { %v3066_v46 = vshll.u32 %v3030_v4, 16  ;;  %v7288_v2 = vpop.f32.mrb[16].mxu1  ;;  %4559 = vmatprep.mubr.bf16.mxu0 %v2499_v54  ;;  %v2968_v16 = vrot.slane %v7261_v19, 4  ;;  %v2969_v22 = vrot.slane %v7263_v53, 4  ;;  %v3071_v31 = vshrl.u32 %v3031_v51, 16 }
 0x154   : > { %v3074_v17 = vshll.u32 %v3031_v51, 16  ;;  %v7293_v28 = vpop.f32.mrb[17].mxu1  ;;  %v2507_v18 = vor.u32 %v2506_v62, %v2503_v33  ;;  %v2515_v57 = vor.u32 %v2514_v13, %v2511_v56  ;;  %v2563_v41 = vld [vmem:[#allocation2 + $0x88] sm:$0xf]  ;;  %v2685_v59 = vshrl.u32 %v2562_v58, 16 }
 0x155   : > { %v2688_v38 = vshll.u32 %v2562_v58, 16  ;;  %v7295_v7 = vpop.f32.mrb[18].mxu1  ;;  %v2674_v30 = vor.u32 %v2673_v52, %v2670_v50  ;;  %v2682_v43 = vor.u32 %v2681_v49, %v2678_v47  ;;  %v2178_v48 = vrot.slane %v2099_v12, 4  ;;  %v7302_v19 = vld [vmem:[%s8009_s5] ss:$0 sm:$0xff] }
 0x156   : > { %v2179_v55 = vrot.slane %v2100_v10, 4  ;;  %v7297_v4 = vpop.f32.mrb[19].mxu1  ;;  %v3065_v53 = vrot.slane %v3063_v8, 4  ;;  %v3068_v54 = vrot.slane %v3066_v46, 5  ;;  %v3073_v44 = vrot.slane %v3071_v31, 4 }
 0x157   : > { %v3076_v51 = vrot.slane %v3074_v17, 5  ;;  %v7307_v58 = vsel %vm1315_vm0, %v2965_v61, %v2966_v20  ;;  %v2177_v33 = vsel %vm1315_vm0, %v2175_v60, %v2176_v3  ;;  %v2693_v62 = vshrl.u32 %v2563_v41, 16  ;;  %v3032_v45 = vld [vmem:[#allocation2 + $0x30] sm:$0xf0]  ;;  %v3033_v47 = vld [vmem:[#allocation2 + $0x38] sm:$0x1f] }
 0x158   : > { %v2696_v25 = vshll.u32 %v2563_v41, 16  ;;  %v2516_v12 = vsel %vm1428_vm5, %v2507_v18, %v2515_v57  ;;  %v7311_v50 = vrot.slane %v2685_v59, 3  ;;  %v7313_v52 = vrot.slane %v2688_v38, 4  ;;  %v2900_v3 = vld [vmem:[#allocation2 + $0x90] sm:$0xf0]  ;;  %4625 = vmatmul.mubr.bf16.gmra.mrb[88].mxu1 %v7227_v32  ;;  %v8046_v32 = vld [vmem:[#allocation7_spill] sm:$0xff] }
 0x159   : > { %v7317_v49 = vadd.f32 %v7045_v23, %v7040_v40  ;;  %v7320_v24 = vsel %vm769_vm3, %v2674_v30, %v2682_v43  ;;  %v7323_v61 = vsel %vm1315_vm0, %v2968_v16, %v2969_v22  ;;  %v2180_v20 = vsel %vm1315_vm0, %v2178_v48, %v2179_v55  ;;  %v2901_v10 = vld [vmem:[#allocation2 + $0x98] sm:$0xf]  ;;  %v3034_v8 = vld [vmem:[#allocation2 + $0x40] sm:$0xf0]  ;;  %v3035_v46 = vld [vmem:[#allocation2 + $0x48] sm:$0x1f]  ;;  %4632 = vmatprep.mubr.bf16.mxu1 %v7230_v35 }
 0x15a   : > { %v7328_v60 = vadd.f32 %v7153_v15, %v7302_v19  ;;  %4560 = vmatmul.mubr.bf16.gmra.mrb[104].mxu0 %v2177_v33  ;;  %v3069_v56 = vor.u32 %v3068_v54, %v3065_v53  ;;  %v3077_v40 = vor.u32 %v3076_v51, %v3073_v44  ;;  %v3080_v23 = vshrl.u32 %v3032_v45, 16  ;;  %v2564_v15 = vld [vmem:[#allocation2 + $0x90] sm:$0xf8]  ;;  %v8047_v18 = vld [vmem:[#allocation9_spill] sm:$0xff]  ;;  %v8050_v35 = vld [vmem:[#allocation11_spill] sm:$0xff] }
 0x15b   : > { %v7333_v13 = vadd.f32 %v7051_v29, %v7047_v21  ;;  %v7335_v16 = vpop.f32.mrb[20].mxu1  ;;  %4567 = vmatprep.mubr.bf16.mxu0 %v2516_v12  ;;  %v3083_v22 = vshll.u32 %v3032_v45, 16  ;;  %v3088_v31 = vshrl.u32 %v3033_v47, 16  ;;  %v3091_v17 = vshll.u32 %v3033_v47, 16  ;;  %v8049_v38 = vld [vmem:[#allocation10_spill] sm:$0xff] }
 0x15c   : > { %v7340_v57 = vadd.f32 %v8047_v18, %v8046_v32  ;;  %v7342_v41 = vpop.f32.mrb[21].mxu1  ;;  %v7346_v29 = vrot.slane %v2693_v62, 3  ;;  %v7348_v59 = vrot.slane %v2696_v25, 4  ;;  %v7352_v30 = vadd.f32 %v8050_v35, %v8049_v38  ;;  %v3036_v12 = vld [vmem:[#allocation2 + $0x50] sm:$0xf0] }
 0x15d   : > { %v7354_v43 = vpop.f32.mrb[22].mxu1  ;;  %v2971_v48 = vrot.slane %v2900_v3, 4  ;;  %v3097_v55 = vshrl.u32 %v3034_v8, 16  ;;  %v3100_v53 = vshll.u32 %v3034_v8, 16  ;;  %v3105_v54 = vshrl.u32 %v3035_v46, 16 }
 0x15e   : > { %8048 = vst [vmem:[#allocation7_spill] sm:$0xff] %v7340_v57  ;;  %8051 = vst [vmem:[#allocation9_spill] sm:$0xff] %v7352_v30  ;;  %v7356_v44 = vpop.f32.mrb[23].mxu1  ;;  %v2972_v51 = vrot.slane %v2901_v10, 4  ;;  %v3078_v33 = vsel %vm1428_vm5, %v3069_v56, %v3077_v40  ;;  %v2702_v45 = vshrl.u32 %v2564_v15, 16  ;;  %v3108_v62 = vshll.u32 %v3035_v46, 16 }
 0x15f   : > { %8052 = vst [vmem:[#allocation10_spill] sm:$0xff] %v7356_v44  ;;  %v2565_v25 = vld [vmem:[#allocation2 + $0x98] sm:$0xf]  ;;  %v3082_v47 = vrot.slane %v3080_v23, 4  ;;  %v3085_v32 = vrot.slane %v3083_v22, 5  ;;  %v3090_v18 = vrot.slane %v3088_v31, 4  ;;  %v2699_v8 = vor.u32 %v7348_v59, %v7346_v29 }
 0x160   : > { %v3093_v38 = vrot.slane %v3091_v17, 5  ;;  %v3099_v35 = vrot.slane %v3097_v55, 4  ;;  %v3102_v21 = vrot.slane %v3100_v53, 5  ;;  %v3107_v30 = vrot.slane %v3105_v54, 4  ;;  %v3037_v57 = vld [vmem:[#allocation2 + $0x58] sm:$0x1f]  ;;  %4633 = vmatmul.mubr.bf16.gmra.mrb[92].mxu1 %v7236_v26 }
 0x161   : > { %v3110_v3 = vrot.slane %v3108_v62, 5  ;;  %v2705_v14 = vshll.u32 %v2564_v15, 16  ;;  %v3114_v10 = vshrl.u32 %v3036_v12, 16  ;;  %v3117_v36 = vshll.u32 %v3036_v12, 16  ;;  %4640 = vmatprep.mubr.bf16.mxu1 %v7239_v27  ;;  %v2566_v55 = vld [vmem:[#allocation2 + $0xa0] sm:$0xf8] }
 0x162   : > { %4568 = vmatmul.mubr.bf16.gmra.mrb[108].mxu0 %v2180_v20  ;;  %v7364_v56 = vadd.f32 %v7267_v11, %v7302_v19  ;;  %v7367_v40 = vsel %vm1315_vm0, %v2971_v48, %v2972_v51  ;;  %v2710_v23 = vshrl.u32 %v2565_v25, 16  ;;  %v2713_v46 = vshll.u32 %v2565_v25, 16  ;;  %v8055_v48 = vld [vmem:[#allocation4_spill] sm:$0xff]  ;;  %v8056_v53 = vld [vmem:[#allocation5_spill] sm:$0xff]  ;;  %v8058_v12 = vld [vmem:[#allocation6_spill] sm:$0xff] }
 0x163   : > { %v7369_v22 = vpop.f32.mrb[24].mxu1  ;;  %5761 = vmatprep.mubr.bf16.mxu0 %v3078_v33  ;;  %v3086_v15 = vor.u32 %v3085_v32, %v3082_v47  ;;  %v3094_v31 = vor.u32 %v3093_v38, %v3090_v18  ;;  %v3122_v17 = vshrl.u32 %v3037_v57, 16  ;;  %v3125_v29 = vshll.u32 %v3037_v57, 16  ;;  %v8059_v25 = vld [vmem:[#allocation8_spill] sm:$0xff]  ;;  %v8061_v18 = vld [vmem:[#allocation15_spill] sm:$0xff]  ;;  %v8062_v38 = vld [vmem:[#allocation17_spill] sm:$0xff] }
 0x164   : > { %8053 = vst [vmem:[#allocation11_spill] sm:$0xff] %v7369_v22  ;;  %v7372_v26 = vpop.f32.mrb[25].mxu1  ;;  %v7374_v20 = vrot.slane %v2702_v45, 3  ;;  %v3103_v11 = vor.u32 %v3102_v21, %v3099_v35  ;;  %v3111_v59 = vor.u32 %v3110_v3, %v3107_v30  ;;  %v7378_v54 = vadd.f32 %v8056_v53, %v8055_v48  ;;  %v3038_v47 = vld [vmem:[#allocation2 + $0x60] sm:$0xf0]  ;;  %v8064_v3 = vld [vmem:[#allocation18_spill] sm:$0xff] }
 0x165   : > { %8054 = vst [vmem:[#allocation25_spill] sm:$0xff] %v7372_v26  ;;  %v7380_v51 = vpop.f32.mrb[26].mxu1  ;;  %v7382_v62 = vrot.slane %v2705_v14, 4  ;;  %v3116_v27 = vrot.slane %v3114_v10, 4  ;;  %v3119_v33 = vrot.slane %v3117_v36, 5  ;;  %v7386_v57 = vadd.f32 %v8059_v25, %v8058_v12  ;;  %v8065_v48 = vld [vmem:[#allocation19_spill] sm:$0xff] }
 0x166   : > { %8057 = vst [vmem:[#allocation4_spill] sm:$0xff] %v7380_v51  ;;  %v7388_v45 = vpop.f32.mrb[27].mxu1  ;;  %v2567_v21 = vld [vmem:[#allocation2 + $0xa8] sm:$0xf]  ;;  %v3124_v30 = vrot.slane %v3122_v17, 4  ;;  %v3127_v32 = vrot.slane %v3125_v29, 5  ;;  %v7392_v35 = vadd.f32 %v8062_v38, %v8061_v18  ;;  %v7396_v14 = vadd.f32 %v8065_v48, %v8064_v3 }
 0x167   : > { %8060 = vst [vmem:[#allocation5_spill] sm:$0xff] %v7388_v45  ;;  %v3039_v10 = vld [vmem:[#allocation2 + $0x68] sm:$0x1f]  ;;  %v2712_v36 = vrot.slane %v2710_v23, 3  ;;  %v2715_v53 = vrot.slane %v2713_v46, 4  ;;  %v3095_v12 = vsel %vm1428_vm5, %v3086_v15, %v3094_v31  ;;  %v2719_v25 = vshrl.u32 %v2566_v55, 16 }
 0x168   : > { %8063 = vst [vmem:[#allocation6_spill] sm:$0xff] %v7392_v35  ;;  %8066 = vst [vmem:[#allocation8_spill] sm:$0xff] %v7396_v14  ;;  %v3112_v51 = vsel %vm1428_vm5, %v3103_v11, %v3111_v59  ;;  %v2722_v45 = vshll.u32 %v2566_v55, 16  ;;  %v3131_v26 = vshrl.u32 %v3038_v47, 16  ;;  %v3134_v17 = vshll.u32 %v3038_v47, 16  ;;  %4641 = vmatmul.mubr.bf16.gmra.mrb[96].mxu1 %v7276_v63 }
 0x169   : > { %v2727_v29 = vshrl.u32 %v2567_v21, 16  ;;  %v2730_v22 = vshll.u32 %v2567_v21, 16  ;;  %v3139_v44 = vshrl.u32 %v3039_v10, 16  ;;  %v3142_v18 = vshll.u32 %v3039_v10, 16  ;;  %v3040_v38 = vld [vmem:[#allocation2 + $0x70] sm:$0xf0]  ;;  %4648 = vmatprep.mubr.bf16.mxu1 %v7307_v58 }
 0x16a   : > { %5762 = vmatmul.mubr.bf16.vlgmr.msra.gmra.mrb[112].mxu0 %v3095_v12  ;;  %v3120_v3 = vor.u32 %v3119_v33, %v3116_v27  ;;  %v3128_v48 = vor.u32 %v3127_v32, %v3124_v30  ;;  %v3133_v23 = vrot.slane %v3131_v26, 4  ;;  %v3136_v46 = vrot.slane %v3134_v17, 5  ;;  %v3041_v55 = vld [vmem:[#allocation2 + $0x78] sm:$0x1f]  ;;  %v2903_v12 = vld [vmem:[#allocation2 + $0xa8] sm:$0xf] }
 0x16b   : > { %v7401_v14 = vpop.f32.mrb[28].mxu1  ;;  %v8067_v15 = vor.u32 %v7313_v52, %v7311_v50  ;;  %v2708_v11 = vor.u32 %v7382_v62, %v7374_v20  ;;  %5765 = vmatprep.mubr.bf16.mxu0 %v3112_v51  ;;  %v3141_v63 = vrot.slane %v3139_v44, 4  ;;  %v3144_v59 = vrot.slane %v3142_v18, 5  ;;  %v2902_v20 = vld [vmem:[#allocation2 + $0xa0] sm:$0xf0] }
 0x16c   : > { %v7412_v27 = vpop.f32.mrb[29].mxu1  ;;  %v2716_v26 = vor.u32 %v2715_v53, %v2712_v36  ;;  %v7414_v33 = vrot.slane %v2719_v25, 3  ;;  %v3137_v47 = vor.u32 %v3136_v46, %v3133_v23  ;;  %v3148_v58 = vshrl.u32 %v3040_v38, 16  ;;  %v2568_v53 = vld [vmem:[#allocation2 + $0xb0] sm:$0xf8]  ;;  %v8068_v18 = vld [vmem:[#allocation12_spill] sm:$0xff] }
 0x16d   : > { %v7408_v31 = vsel %vm769_vm3, %v8067_v15, %v2699_v8  ;;  %v7416_v21 = vpop.f32.mrb[30].mxu1  ;;  %v2724_v50 = vrot.slane %v2722_v45, 4  ;;  %v2729_v52 = vrot.slane %v2727_v29, 3  ;;  %v3145_v8 = vor.u32 %v3144_v59, %v3141_v63  ;;  %v8069_v23 = vld [vmem:[#allocation13_spill] sm:$0xff]  ;;  %v8070_v46 = vld [vmem:[#allocation14_spill] sm:$0xff]  ;;  %v8071_v15 = vld [vmem:[#allocation16_spill] sm:$0xff] }
 0x16e   : > { %v3151_v30 = vshll.u32 %v3040_v38, 16  ;;  %v7418_v32 = vpop.f32.mrb[31].mxu1  ;;  %v2732_v51 = vrot.slane %v2730_v22, 4  ;;  %v3129_v44 = vsel %vm1428_vm5, %v3120_v3, %v3128_v48  ;;  %v3156_v62 = vshrl.u32 %v3041_v55, 16  ;;  %v3042_v3 = vld [vmem:[#allocation2 + $0x80] sm:$0xf0] }
 0x16f   : > { %v3159_v10 = vshll.u32 %v3041_v55, 16  ;;  %v3146_v36 = vsel %vm1428_vm5, %v3137_v47, %v3145_v8  ;;  %v3150_v25 = vrot.slane %v3148_v58, 4  ;;  %v7424_v45 = vadd.f32 %v8069_v23, %v8068_v18  ;;  %v3043_v8 = vld [vmem:[#allocation2 + $0x88] sm:$0x1f]  ;;  %v3044_v18 = vld [vmem:[#allocation2 + $0x90] sm:$0xf0] }
 0x170   : > { %v3153_v17 = vrot.slane %v3151_v30, 5  ;;  %v3158_v29 = vrot.slane %v3156_v62, 4  ;;  %v7428_v63 = vadd.f32 %v8071_v15, %v8070_v46  ;;  %v7432_v22 = vadd.f32 %v7247_v37, %v7241_v34  ;;  %4649 = vmatmul.mubr.bf16.gmra.mrb[100].mxu1 %v7320_v24 }
 0x171   : > { %v3161_v38 = vrot.slane %v3159_v10, 5  ;;  %v7434_v48 = vpop.f32.mrb[24].mxu0  ;;  %v7437_v59 = vsel %vm769_vm3, %v2708_v11, %v2716_v26  ;;  %v7441_v55 = vadd.f32 %v7317_v49, %v7302_v19  ;;  %v2974_v47 = vrot.slane %v2902_v20, 4  ;;  %v2569_v11 = vld [vmem:[#allocation2 + $0xb8] sm:$0xf]  ;;  %4656 = vmatprep.mubr.bf16.mxu1 %v7323_v61 }
 0x172   : > { %8072 = vst [vmem:[#allocation15_spill] sm:$0xff] %v7432_v22  ;;  %v7445_v58 = vadd.f32 %v7255_v1, %v7253_v9  ;;  %v7447_v30 = vpop.f32.mrb[25].mxu0  ;;  %v2975_v34 = vrot.slane %v2903_v12, 4  ;;  %v2725_v37 = vor.u32 %v2724_v50, %v7414_v33  ;;  %v2733_v62 = vor.u32 %v2732_v51, %v2729_v52  ;;  %5766 = vmatmul.mubr.bf16.gmra.mrb[116].mxu0 %v3129_v44  ;;  %v3045_v44 = vld [vmem:[#allocation2 + $0x98] sm:$0x1f] }
 0x173   : > { %v2736_v26 = vshrl.u32 %v2568_v53, 16  ;;  %v7451_v10 = vpop.f32.mrb[26].mxu0  ;;  %5769 = vmatprep.mubr.bf16.mxu0 %v3146_v36  ;;  %v3154_v49 = vor.u32 %v3153_v17, %v3150_v25  ;;  %v3162_v9 = vor.u32 %v3161_v38, %v3158_v29  ;;  %v3165_v1 = vshrl.u32 %v3042_v3, 16 }
 0x174   : > { %8073 = vst [vmem:[#allocation17_spill] sm:$0xff] %v7445_v58  ;;  %v3168_v20 = vshll.u32 %v3042_v3, 16  ;;  %v7454_v23 = vpop.f32.mrb[27].mxu0  ;;  %v7460_v33 = vadd.f32 %v7333_v13, %v7302_v19  ;;  %v2739_v50 = vshll.u32 %v2568_v53, 16  ;;  %v3173_v52 = vshrl.u32 %v3043_v8, 16 }
 0x175   : > { %v7456_v24 = vpop.f32.mrb[32].mxu1  ;;  %v3176_v51 = vshll.u32 %v3043_v8, 16  ;;  %v2744_v61 = vshrl.u32 %v2569_v11, 16  ;;  %v2747_v36 = vshll.u32 %v2569_v11, 16  ;;  %v3167_v25 = vrot.slane %v3165_v1, 4 }
 0x176   : > { %8074 = vst [vmem:[#allocation18_spill] sm:$0xff] %v7456_v24  ;;  %v7462_v12 = vpop.f32.mrb[33].mxu1  ;;  %v3170_v17 = vrot.slane %v3168_v20, 5  ;;  %v7467_v38 = vsel %vm1315_vm0, %v2974_v47, %v2975_v34  ;;  %v7470_v46 = vsel %vm769_vm3, %v2725_v37, %v2733_v62  ;;  %v3175_v13 = vrot.slane %v3173_v52, 4  ;;  %v2904_v11 = vld [vmem:[#allocation2 + $0xb0] sm:$0xf0] }
 0x177   : > { %8075 = vst [vmem:[#allocation19_spill] sm:$0xff] %v7462_v12  ;;  %v7464_v29 = vpop.f32.mrb[34].mxu1  ;;  %v3178_v15 = vrot.slane %v3176_v51, 5  ;;  %v2738_v3 = vrot.slane %v2736_v26, 3  ;;  %v3163_v8 = vsel %vm1428_vm5, %v3154_v49, %v3162_v9  ;;  %v3182_v22 = vshrl.u32 %v3044_v18, 16  ;;  %v8077_v49 = vld [vmem:[#allocation20_spill] sm:$0xff] }
 0x178   : > { %8076 = vst [vmem:[#allocation12_spill] sm:$0xff] %v7464_v29  ;;  %v7472_v53 = vpop.f32.mrb[35].mxu1  ;;  %v3171_v58 = vor.u32 %v3170_v17, %v3167_v25  ;;  %v2741_v1 = vrot.slane %v2739_v50, 4  ;;  %v3185_v35 = vshll.u32 %v3044_v18, 16  ;;  %v3190_v29 = vshrl.u32 %v3045_v44, 16  ;;  %4657 = vmatmul.mubr.bf16.gmra.mrb[104].mxu1 %v7408_v31  ;;  %v8078_v9 = vld [vmem:[#allocation21_spill] sm:$0xff] }
 0x179   : > { %v3179_v20 = vor.u32 %v3178_v15, %v3175_v13  ;;  %v2905_v12 = vld [vmem:[#allocation2 + $0xb8] sm:$0xf]  ;;  %v2746_v47 = vrot.slane %v2744_v61, 3  ;;  %v2749_v34 = vrot.slane %v2747_v36, 4  ;;  %v3184_v24 = vrot.slane %v3182_v22, 4  ;;  %4664 = vmatprep.mubr.bf16.mxu1 %v7367_v40 }
 0x17a   : > { %v3193_v37 = vshll.u32 %v3045_v44, 16  ;;  %5770 = vmatmul.mubr.bf16.gmra.mrb[120].mxu0 %v3163_v8  ;;  %v3187_v26 = vrot.slane %v3185_v35, 5  ;;  %v3192_v52 = vrot.slane %v3190_v29, 4  ;;  %v7479_v51 = vadd.f32 %v8078_v9, %v8077_v49  ;;  %v2570_v22 = vld [vmem:[#allocation2 + $0xc0] sm:$0xf8]  ;;  %v8079_v44 = vld [vmem:[#allocation22_spill] sm:$0xff] }
 0x17b   : > { %v3180_v62 = vsel %vm1428_vm5, %v3171_v58, %v3179_v20  ;;  %v7484_v18 = vadd.f32 %v7378_v54, %v7302_v19  ;;  %v7488_v31 = vadd.f32 %v7196_v5, %v8079_v44  ;;  %v5403_v35 = vadd.f32 %v7293_v28, %v7288_v2  ;;  %v3046_v58 = vld [vmem:[#allocation2 + $0xa0] sm:$0xf0]  ;;  %v3047_v17 = vld [vmem:[#allocation2 + $0xa8] sm:$0x1f] }
 0x17c   : > { %5773 = vmatprep.mubr.bf16.mxu0 %v3180_v62  ;;  %v3195_v50 = vrot.slane %v3193_v37, 5  ;;  %v2977_v61 = vrot.slane %v2904_v11, 4  ;;  %v2978_v36 = vrot.slane %v2905_v12, 4  ;;  %v3188_v25 = vor.u32 %v3187_v26, %v3184_v24  ;;  %v2571_v13 = vld [vmem:[#allocation2 + $0xc8] sm:$0xf] }
 0x17d   : > { %v5406_v40 = vadd.f32 %v7297_v4, %v7295_v7  ;;  %v2742_v54 = vor.u32 %v2741_v1, %v2738_v3  ;;  %v2750_v29 = vor.u32 %v2749_v34, %v2746_v47  ;;  %v7495_v8 = vadd.f32 %v5403_v35, %v7328_v60  ;;  %v3048_v11 = vld [vmem:[#allocation2 + $0xb0] sm:$0xf0]  ;;  %v3049_v4 = vld [vmem:[#allocation2 + $0xb8] sm:$0x1f] }
 0x17e   : > { %v3196_v15 = vor.u32 %v3195_v50, %v3192_v52  ;;  %v2753_v5 = vshrl.u32 %v2570_v22, 16  ;;  %v3199_v2 = vshrl.u32 %v3046_v58, 16  ;;  %v3202_v28 = vshll.u32 %v3046_v58, 16 }
 0x17f   : > { %v7498_v20 = vadd.f32 %v5406_v40, %v7364_v56  ;;  %v2756_v12 = vshll.u32 %v2570_v22, 16  ;;  %v3207_v37 = vshrl.u32 %v3047_v17, 16  ;;  %v3210_v7 = vshll.u32 %v3047_v17, 16  ;;  %v2907_v17 = vld [vmem:[#allocation2 + $0xc8] sm:$0xf] }
 0x180   : > { %v3197_v24 = vsel %vm1428_vm5, %v3188_v25, %v3196_v15  ;;  %v2761_v1 = vshrl.u32 %v2571_v13, 16  ;;  %v2764_v47 = vshll.u32 %v2571_v13, 16  ;;  %v3201_v34 = vrot.slane %v3199_v2, 4  ;;  %4665 = vmatmul.mubr.bf16.gmra.mrb[108].mxu1 %v7437_v59 }
 0x181   : > { %v7501_v3 = vpop.f32.mrb[28].mxu0  ;;  %v3204_v60 = vrot.slane %v3202_v28, 5  ;;  %v7507_v56 = vadd.f32 %v7386_v57, %v7302_v19  ;;  %v2979_v26 = vsel %vm1315_vm0, %v2977_v61, %v2978_v36  ;;  %v3209_v52 = vrot.slane %v3207_v37, 4  ;;  %4672 = vmatprep.mubr.bf16.mxu1 %v7467_v38  ;;  %v2906_v57 = vld [vmem:[#allocation2 + $0xc0] sm:$0xf0] }
 0x182   : > { %v7503_v62 = vpop.f32.mrb[29].mxu0  ;;  %v3212_v49 = vrot.slane %v3210_v7, 5  ;;  %v7514_v22 = vsel %vm769_vm3, %v2742_v54, %v2750_v29  ;;  %v7516_v50 = vrot.slane %v2753_v5, 3  ;;  %5774 = vmatmul.mubr.bf16.gmra.mrb[124].mxu0 %v3197_v24  ;;  %v3216_v35 = vshrl.u32 %v3048_v11, 16  ;;  %v3050_v7 = vld [vmem:[#allocation2 + $0xc0] sm:$0xf0] }
 0x183   : > { %v7510_v9 = vpop.f32.mrb[30].mxu0  ;;  %v3205_v44 = vor.u32 %v3204_v60, %v3201_v34  ;;  %v2758_v61 = vrot.slane %v2756_v12, 4  ;;  %v3219_v25 = vshll.u32 %v3048_v11, 16  ;;  %v3224_v40 = vshrl.u32 %v3049_v4, 16  ;;  %v2572_v11 = vld [vmem:[#allocation2 + $0xd0] sm:$0xf8] }
 0x184   : > { %v7518_v58 = vpop.f32.mrb[31].mxu0  ;;  %v3213_v36 = vor.u32 %v3212_v49, %v3209_v52  ;;  %v2763_v13 = vrot.slane %v2761_v1, 3  ;;  %v2766_v59 = vrot.slane %v2764_v47, 4  ;;  %v3218_v15 = vrot.slane %v3216_v35, 4  ;;  %v7536_v47 = vld [vmem:[#allocation2 + $0xd0] sm:$0xf0] }
 0x185   : > { %v3227_v54 = vshll.u32 %v3049_v4, 16  ;;  %v3221_v5 = vrot.slane %v3219_v25, 5  ;;  %v3226_v2 = vrot.slane %v3224_v40, 4  ;;  %v7524_v28 = vadd.f32 %v7273_v0, %v7257_v42  ;;  %v8080_v0 = vld [vmem:[#allocation10_spill] sm:$0xff]  ;;  %v3051_v34 = vld [vmem:[#allocation2 + $0xc8] sm:$0x1f] }
 0x186   : > { %v3214_v29 = vsel %vm1428_vm5, %v3205_v44, %v3213_v36  ;;  %v7528_v38 = vadd.f32 %v7424_v45, %v7302_v19  ;;  %v7532_v24 = vadd.f32 %v7286_v39, %v7284_v6  ;;  %v5409_v37 = vadd.f32 %v7342_v41, %v7335_v16  ;;  %v7543_v6 = vld [vmem:[#allocation2 + $0xd8] sm:$0xf]  ;;  %v3052_v36 = vld [vmem:[#allocation2 + $0xd0] sm:$0xf0] }
 0x187   : > { %5777 = vmatprep.mubr.bf16.mxu0 %v3214_v29  ;;  %v3229_v12 = vrot.slane %v3227_v54, 5  ;;  %v2980_v4 = vrot.slane %v2906_v57, 4  ;;  %v2981_v1 = vrot.slane %v2907_v17, 4  ;;  %v3222_v42 = vor.u32 %v3221_v5, %v3218_v15  ;;  %v2573_v39 = vld [vmem:[#allocation2 + $0xd8] sm:$0xf] }
 0x188   : > { %v5412_v45 = vadd.f32 %v8080_v0, %v7354_v43  ;;  %v2759_v52 = vor.u32 %v2758_v61, %v7516_v50  ;;  %v2767_v49 = vor.u32 %v2766_v59, %v2763_v13  ;;  %v7546_v16 = vadd.f32 %v5409_v37, %v7441_v55  ;;  %4673 = vmatmul.mubr.bf16.gmra.mrb[112].mxu1 %v7470_v46 }
 0x189   : > { %v7540_v60 = vpop.f32.mrb[32].mxu0  ;;  %v3230_v44 = vor.u32 %v3229_v12, %v3226_v2  ;;  %v7550_v35 = vpop.f32.mrb[36].mxu1  ;;  %v7554_v43 = vadd.f32 %v7428_v63, %v7302_v19  ;;  %v3233_v50 = vshrl.u32 %v3050_v7, 16  ;;  %v3236_v61 = vshll.u32 %v3050_v7, 16  ;;  %4680 = vmatprep.mubr.bf16.mxu1 %v2979_v26  ;;  %v3053_v2 = vld [vmem:[#allocation2 + $0xd8] sm:$0x1f] }
 0x18a   : > { %v7548_v41 = vpop.f32.mrb[33].mxu0  ;;  %v7557_v57 = vadd.f32 %v5412_v45, %v7460_v33  ;;  %v7561_v40 = vpop.f32.mrb[37].mxu1  ;;  %v2770_v55 = vshrl.u32 %v2572_v11, 16  ;;  %v3241_v13 = vshrl.u32 %v3051_v34, 16  ;;  %v3244_v59 = vshll.u32 %v3051_v34, 16 }
 0x18b   : > { %v7559_v25 = vpop.f32.mrb[34].mxu0  ;;  %v3231_v17 = vsel %vm1428_vm5, %v3222_v42, %v3230_v44  ;;  %v7567_v63 = vpop.f32.mrb[38].mxu1  ;;  %v2982_v33 = vsel %vm1315_vm0, %v2980_v4, %v2981_v1  ;;  %v2773_v54 = vshll.u32 %v2572_v11, 16  ;;  %v3235_v29 = vrot.slane %v3233_v50, 4 }
 0x18c   : > { %8081 = vst [vmem:[#allocation13_spill] sm:$0xff] %v7557_v57  ;;  %v7565_v15 = vpop.f32.mrb[35].mxu0  ;;  %5778 = vmatmul.mubr.bf16.gmra.mrb[128].mxu0 %v3231_v17  ;;  %v3238_v5 = vrot.slane %v3236_v61, 5  ;;  %v7570_v12 = vpop.f32.mrb[39].mxu1  ;;  %v7573_v46 = vsel %vm769_vm3, %v2759_v52, %v2767_v49  ;;  %v2983_v37 = vrot.slane %v7536_v47, 4  ;;  %v3243_v7 = vrot.slane %v3241_v13, 4 }
 0x18d   : > { %v3246_v42 = vrot.slane %v3244_v59, 5  ;;  %v2984_v0 = vrot.slane %v7543_v6, 4  ;;  %v2778_v45 = vshrl.u32 %v2573_v39, 16  ;;  %v3250_v34 = vshrl.u32 %v3052_v36, 16  ;;  %v2574_v17 = vld [vmem:[#allocation2 + $0xe0] sm:$0xf8] }
 0x18e   : > { %v3239_v26 = vor.u32 %v3238_v5, %v3235_v29  ;;  %v7577_v4 = vrot.slane %v2770_v55, 3  ;;  %v3253_v1 = vshll.u32 %v3052_v36, 16  ;;  %v3258_v44 = vshrl.u32 %v3053_v2, 16  ;;  %v2575_v13 = vld [vmem:[#allocation2 + $0xe8] sm:$0xf] }
 0x18f   : > { %v3247_v11 = vor.u32 %v3246_v42, %v3243_v7  ;;  %v7579_v50 = vrot.slane %v2773_v54, 4  ;;  %v2781_v61 = vshll.u32 %v2573_v39, 16  ;;  %v3252_v52 = vrot.slane %v3250_v34, 4  ;;  %v8082_v39 = vld [vmem:[#allocation11_spill] sm:$0xff]  ;;  %v8083_v29 = vld [vmem:[#allocation25_spill] sm:$0xff]  ;;  %v8084_v34 = vld [vmem:[#allocation4_spill] sm:$0xff] }
 0x190   : > { %v3261_v49 = vshll.u32 %v3053_v2, 16  ;;  %v3255_v59 = vrot.slane %v3253_v1, 5  ;;  %v3260_v57 = vrot.slane %v3258_v44, 4  ;;  %v7584_v6 = vadd.f32 %v7447_v30, %v7434_v48  ;;  %v3054_v2 = vld [vmem:[#allocation2 + $0xe0] sm:$0xf0]  ;;  %4681 = vmatmul.mubr.bf16.gmra.mrb[116].mxu1 %v7514_v22  ;;  %v8085_v48 = vld [vmem:[#allocation5_spill] sm:$0xff] }
 0x191   : > { %v3248_v47 = vsel %vm1428_vm5, %v3239_v26, %v3247_v11  ;;  %v7586_v55 = vrot.slane %v2778_v45, 3  ;;  %v7590_v54 = vadd.f32 %v7454_v23, %v7451_v10  ;;  %v5415_v5 = vadd.f32 %v8083_v29, %v8082_v39  ;;  %v3055_v45 = vld [vmem:[#allocation2 + $0xe8] sm:$0x1f]  ;;  %4688 = vmatprep.mubr.bf16.mxu1 %v2982_v33  ;;  %v7602_v23 = vld [vmem:[#allocation2 + $0xe0] sm:$0xf0] }
 0x192   : > { %5781 = vmatprep.mubr.bf16.mxu0 %v3248_v47  ;;  %v3263_v36 = vrot.slane %v3261_v49, 5  ;;  %v2787_v7 = vshrl.u32 %v2574_v17, 16  ;;  %v2790_v42 = vshll.u32 %v2574_v17, 16  ;;  %v3256_v26 = vor.u32 %v3255_v59, %v3252_v52  ;;  %v3056_v47 = vld [vmem:[#allocation2 + $0xf0] sm:$0xf0] }
 0x193   : > { %v5418_v30 = vadd.f32 %v8085_v48, %v8084_v34  ;;  %v7597_v11 = vrot.slane %v2781_v61, 4  ;;  %v2795_v1 = vshrl.u32 %v2575_v13, 16  ;;  %v7600_v10 = vadd.f32 %v5415_v5, %v7484_v18  ;;  %v3057_v29 = vld [vmem:[#allocation2 + $0xf8] sm:$0x1f] }
 0x194   : > { %v3264_v44 = vor.u32 %v3263_v36, %v3260_v57  ;;  %v2798_v49 = vshll.u32 %v2575_v13, 16  ;;  %v3267_v17 = vshrl.u32 %v3054_v2, 16  ;;  %v3270_v52 = vshll.u32 %v3054_v2, 16 }
 0x195   : > { %v7605_v22 = vadd.f32 %v5418_v30, %v7507_v56  ;;  %v2985_v59 = vsel %vm1315_vm0, %v2983_v37, %v2984_v0  ;;  %v3275_v61 = vshrl.u32 %v3055_v45, 16  ;;  %v3278_v39 = vshll.u32 %v3055_v45, 16  ;;  %v2911_v0 = vld [vmem:[#allocation2 + $0xe8] sm:$0xf] }
 0x196   : > { %v3265_v33 = vsel %vm1428_vm5, %v3256_v26, %v3264_v44  ;;  %v7609_v57 = vpop.f32.mrb[36].mxu0  ;;  %v7611_v18 = vrot.slane %v2787_v7, 3  ;;  %v7613_v36 = vrot.slane %v2790_v42, 4  ;;  %v3269_v13 = vrot.slane %v3267_v17, 4 }
 0x197   : > { %8086 = vst [vmem:[#allocation14_spill] sm:$0xff] %v7605_v22  ;;  %5782 = vmatmul.mubr.bf16.gmra.mrb[132].mxu0 %v3265_v33  ;;  %v3272_v56 = vrot.slane %v3270_v52, 5  ;;  %v7615_v5 = vpop.f32.mrb[37].mxu0  ;;  %v2776_v2 = vor.u32 %v7579_v50, %v7577_v4  ;;  %v2784_v37 = vor.u32 %v7597_v11, %v7586_v55  ;;  %v3277_v26 = vrot.slane %v3275_v61, 4  ;;  %v2912_v33 = vld [vmem:[#allocation2 + $0xf0] sm:$0xf0] }
 0x198   : > { %v3280_v34 = vrot.slane %v3278_v39, 5  ;;  %v7621_v48 = vpop.f32.mrb[38].mxu0  ;;  %v2797_v7 = vrot.slane %v2795_v1, 3  ;;  %v2800_v30 = vrot.slane %v2798_v49, 4  ;;  %v3284_v45 = vshrl.u32 %v3056_v47, 16  ;;  %v7625_v17 = vpop.f32.mrb[40].mxu1  ;;  %4689 = vmatmul.mubr.bf16.gmra.mrb[120].mxu1 %v7573_v46 }
 0x199   : > { %v3273_v42 = vor.u32 %v3272_v56, %v3269_v13  ;;  %v7623_v44 = vpop.f32.mrb[39].mxu0  ;;  %v2986_v52 = vrot.slane %v7602_v23, 4  ;;  %v3287_v50 = vshll.u32 %v3056_v47, 16  ;;  %v3292_v22 = vshrl.u32 %v3057_v29, 16  ;;  %v7628_v55 = vpop.f32.mrb[41].mxu1  ;;  %4696 = vmatprep.mubr.bf16.mxu1 %v2985_v59 }
 0x19a   : > { %v3281_v4 = vor.u32 %v3280_v34, %v3277_v26  ;;  %v2987_v11 = vrot.slane %v2911_v0, 4  ;;  %v2793_v1 = vor.u32 %v7613_v36, %v7611_v18  ;;  %v2913_v49 = vld [vmem:[#allocation2 + $0xf8] sm:$0xf]  ;;  %v3286_v61 = vrot.slane %v3284_v45, 4  ;;  %v7633_v13 = vpop.f32.mrb[42].mxu1 }
 0x19b   : > { %v3295_v39 = vshll.u32 %v3057_v29, 16  ;;  %v2576_v56 = vld [vmem:[#allocation2 + $0xf0] sm:$0xf8]  ;;  %v3289_v26 = vrot.slane %v3287_v50, 5  ;;  %v3294_v47 = vrot.slane %v3292_v22, 4  ;;  %v7638_v34 = vadd.f32 %v7503_v62, %v7501_v3  ;;  %v7640_v46 = vpop.f32.mrb[43].mxu1 }
 0x19c   : > { %v3282_v23 = vsel %vm1428_vm5, %v3273_v42, %v3281_v4  ;;  %v2801_v0 = vor.u32 %v2800_v30, %v2797_v7  ;;  %v2577_v18 = vld [vmem:[#allocation2 + $0xf8] sm:$0xf]  ;;  %v7644_v29 = vadd.f32 %v7518_v58, %v7510_v9  ;;  %v5421_v59 = vadd.f32 %v7412_v27, %v7401_v14  ;;  %v3058_v14 = vld [vmem:[#allocation2 + $0x100] sm:$0xf0] }
 0x19d   : > { %5785 = vmatprep.mubr.bf16.mxu0 %v3282_v23  ;;  %v3297_v36 = vrot.slane %v3295_v39, 5  ;;  %v2989_v42 = vrot.slane %v2912_v33, 4  ;;  %v2990_v45 = vrot.slane %v2913_v49, 4  ;;  %v3290_v22 = vor.u32 %v3289_v26, %v3286_v61  ;;  %v3060_v49 = vld [vmem:[#allocation2 + $0x110] sm:$0xf0] }
 0x19e   : > { %v5424_v3 = vadd.f32 %v7418_v32, %v7416_v21  ;;  %v2804_v62 = vshrl.u32 %v2576_v56, 16  ;;  %v2807_v4 = vshll.u32 %v2576_v56, 16  ;;  %v7651_v7 = vadd.f32 %v5421_v59, %v7528_v38  ;;  %v3059_v38 = vld [vmem:[#allocation2 + $0x108] sm:$0x1f]  ;;  %v3061_v56 = vld [vmem:[#allocation2 + $0x118] sm:$0x1f] }
 0x19f   : > { %v3298_v50 = vor.u32 %v3297_v36, %v3294_v47  ;;  %v2785_v30 = vsel %vm769_vm3, %v2776_v2, %v2784_v37  ;;  %v2812_v39 = vshrl.u32 %v2577_v18, 16  ;;  %v2815_v9 = vshll.u32 %v2577_v18, 16  ;;  %v8088_v47 = vld [vmem:[#allocation18_spill] sm:$0xff]  ;;  %v2579_v36 = vld [vmem:[#allocation2 + $0x108] sm:$0xf] }
 0x1a0   : > { %v7655_v58 = vadd.f32 %v5424_v3, %v7554_v43  ;;  %v4160_v27 = vadd.f32 %v7479_v51, %v7302_v19  ;;  %v2988_v33 = vsel %vm1315_vm0, %v2986_v52, %v2987_v11  ;;  %v7663_v32 = vadd.f32 %v7548_v41, %v7540_v60  ;;  %v2578_v51 = vld [vmem:[#allocation2 + $0x100] sm:$0xf8]  ;;  %4697 = vmatmul.mubr.bf16.gmra.mrb[124].mxu1 %v2785_v30 }
 0x1a1   : > { %v3299_v21 = vsel %vm1428_vm5, %v3290_v22, %v3298_v50  ;;  %v4163_v2 = vadd.f32 %v7488_v31, %v7302_v19  ;;  %v7669_v43 = vadd.f32 %v7524_v28, %v7302_v19  ;;  %v2802_v37 = vsel %vm769_vm3, %v2793_v1, %v2801_v0  ;;  %4704 = vmatprep.mubr.bf16.mxu1 %v2988_v33  ;;  %v8089_v0 = vld [vmem:[#allocation19_spill] sm:$0xff] }
 0x1a2   : > { %8087 = vst [vmem:[#allocation16_spill] sm:$0xff] %v7655_v58  ;;  %5786 = vmatmul.mubr.bf16.gmra.mrb[136].mxu0 %v3299_v21  ;;  %v7674_v52 = vadd.f32 %v7565_v15, %v7559_v25  ;;  %v2991_v60 = vsel %vm1315_vm0, %v2989_v42, %v2990_v45  ;;  %v7677_v41 = vrot.slane %v2804_v62, 3  ;;  %v7679_v11 = vrot.slane %v2807_v4, 4 }
 0x1a3   : > { %v3301_v31 = vshrl.u32 %v3058_v14, 16  ;;  %v7681_v28 = vrot.slane %v2812_v39, 3  ;;  %v7683_v61 = vrot.slane %v2815_v9, 4  ;;  %v3304_v1 = vshll.u32 %v3058_v14, 16  ;;  %v2914_v39 = vld [vmem:[#allocation2 + $0x100] sm:$0xf0] }
 0x1a4   : > { %v3309_v23 = vshrl.u32 %v3059_v38, 16  ;;  %v2821_v26 = vshrl.u32 %v2578_v51, 16  ;;  %v3312_v15 = vshll.u32 %v3059_v38, 16  ;;  %v5427_v18 = vadd.f32 %v8089_v0, %v8088_v47 }
 0x1a5   : > { %v3303_v25 = vrot.slane %v3301_v31, 4  ;;  %v3306_v59 = vrot.slane %v3304_v1, 5  ;;  %v3318_v45 = vshrl.u32 %v3060_v49, 16  ;;  %v3321_v22 = vshll.u32 %v3060_v49, 16  ;;  %v2915_v31 = vld [vmem:[#allocation2 + $0x108] sm:$0xf] }
 0x1a6   : > { %v3311_v42 = vrot.slane %v3309_v23, 4  ;;  %v2824_v3 = vshll.u32 %v2578_v51, 16  ;;  %v3314_v62 = vrot.slane %v3312_v15, 5  ;;  %v7687_v4 = vadd.f32 %v5427_v18, %v4160_v27  ;;  %v8091_v1 = vld [vmem:[#allocation12_spill] sm:$0xff]  ;;  %v5443_v51 = vpop.f32.mrb[44].mxu1 }
 0x1a7   : > { %v3326_v50 = vshrl.u32 %v3061_v56, 16  ;;  %v5349_v30 = vpop.f32.mrb[40].mxu0  ;;  %v3307_v9 = vor.u32 %v3306_v59, %v3303_v25  ;;  %v3320_v14 = vrot.slane %v3318_v45, 4  ;;  %v3323_v33 = vrot.slane %v3321_v22, 5  ;;  %v5444_v59 = vpop.f32.mrb[45].mxu1 }
 0x1a8   : > { %8090 = vst [vmem:[#allocation20_spill] sm:$0xff] %v7687_v4  ;;  %v3329_v21 = vshll.u32 %v3061_v56, 16  ;;  %v5350_v38 = vpop.f32.mrb[41].mxu0  ;;  %v2829_v58 = vshrl.u32 %v2579_v36, 16  ;;  %v3315_v47 = vor.u32 %v3314_v62, %v3311_v42  ;;  %v5430_v23 = vadd.f32 %v7472_v53, %v8091_v1  ;;  %4705 = vmatmul.mubr.bf16.gmra.mrb[128].mxu1 %v2802_v37  ;;  %v5446_v22 = vpop.f32.mrb[46].mxu1 }
 0x1a9   : > { %v3328_v0 = vrot.slane %v3326_v50, 4  ;;  %v5352_v49 = vpop.f32.mrb[42].mxu0  ;;  %v4171_v27 = vadd.f32 %v7532_v24, %v7302_v19  ;;  %v2832_v15 = vshll.u32 %v2579_v36, 16  ;;  %v3324_v18 = vor.u32 %v3323_v33, %v3320_v14  ;;  %4712 = vmatprep.mubr.bf16.mxu1 %v2991_v60  ;;  %v5447_v14 = vpop.f32.mrb[47].mxu1 }
 0x1aa   : > { %v3331_v4 = vrot.slane %v3329_v21, 5  ;;  %v5353_v25 = vpop.f32.mrb[43].mxu0  ;;  %v2810_v56 = vor.u32 %v7679_v11, %v7677_v41  ;;  %v2818_v42 = vor.u32 %v7683_v61, %v7681_v28  ;;  %v3316_v45 = vsel %vm1428_vm5, %v3307_v9, %v3315_v47  ;;  %v2917_v9 = vld [vmem:[#allocation2 + $0x118] sm:$0xf] }
 0x1ab   : > { %v7698_v53 = vadd.f32 %v5430_v23, %v4163_v2  ;;  %v2992_v62 = vrot.slane %v2914_v39, 4  ;;  %v2993_v24 = vrot.slane %v2915_v31, 4  ;;  %v2823_v36 = vrot.slane %v2821_v26, 3  ;;  %5789 = vmatprep.mubr.bf16.mxu0 %v3316_v45  ;;  %v2580_v26 = vld [vmem:[#allocation2 + $0x110] sm:$0xf8] }
 0x1ac   : > { %v3332_v50 = vor.u32 %v3331_v4, %v3328_v0  ;;  %v2826_v33 = vrot.slane %v2824_v3, 4  ;;  %v2831_v37 = vrot.slane %v2829_v58, 3  ;;  %v7702_v41 = vadd.f32 %v7615_v5, %v7609_v57  ;;  %v7737_v3 = vld [vmem:[%s8009_s5] ss:$0 sm:$0xff]  ;;  %v2916_v39 = vld [vmem:[#allocation2 + $0x110] sm:$0xf0] }
 0x1ad   : > { %v7706_v11 = vadd.f32 %v7623_v44, %v7621_v48  ;;  %v2834_v2 = vrot.slane %v2832_v15, 4  ;;  %v5433_v60 = vadd.f32 %v7561_v40, %v7550_v35  ;;  %v5436_v61 = vadd.f32 %v7570_v12, %v7567_v63 }
 0x1ae   : > { %v3333_v28 = vsel %vm1428_vm5, %v3324_v18, %v3332_v50  ;;  %v4176_v58 = vadd.f32 %v7584_v6, %v7302_v19  ;;  %v4179_v57 = vadd.f32 %v7590_v54, %v7302_v19  ;;  %v4184_v5 = vadd.f32 %v7638_v34, %v7302_v19  ;;  %v2581_v6 = vld [vmem:[#allocation2 + $0x118] sm:$0xf] }
 0x1af   : > { %5790 = vmatmul.mubr.bf16.gmra.mrb[140].mxu0 %v3333_v28  ;;  %v7719_v48 = vadd.f32 %v5350_v38, %v5349_v30  ;;  %v2819_v44 = vsel %vm769_vm3, %v2810_v56, %v2818_v42  ;;  %v7723_v35 = vadd.f32 %v5433_v60, %v7669_v43  ;;  %v7725_v40 = vadd.f32 %v5436_v61, %v4171_v27 }
 0x1b0   : > { %v7727_v63 = vadd.f32 %v5353_v25, %v5352_v49  ;;  %v2994_v12 = vsel %vm1315_vm0, %v2992_v62, %v2993_v24  ;;  %v5439_v54 = vadd.f32 %v7628_v55, %v7625_v17  ;;  %v5442_v19 = vadd.f32 %v7640_v46, %v7633_v13  ;;  %4713 = vmatmul.mubr.bf16.gmra.mrb[132].mxu1 %v2819_v44 }
 0x1b1   : > { %v5445_v34 = vadd.f32 %v5444_v59, %v5443_v51  ;;  %v4187_v43 = vadd.f32 %v7737_v3, %v7644_v29  ;;  %v2827_v4 = vor.u32 %v2826_v33, %v2823_v36  ;;  %v2835_v30 = vor.u32 %v2834_v2, %v2831_v37  ;;  %4720 = vmatprep.mubr.bf16.mxu1 %v2994_v12 }
 0x1b2   : > { %v5448_v21 = vadd.f32 %v5447_v14, %v5446_v22  ;;  %v2838_v38 = vshrl.u32 %v2580_v26, 16  ;;  %v7741_v17 = vadd.f32 %v5439_v54, %v4176_v58  ;;  %v7743_v55 = vadd.f32 %v5442_v19, %v4179_v57 }
 0x1b3   : > { %v7745_v13 = vadd.f32 %v5445_v34, %v4184_v5  ;;  %v2841_v46 = vshll.u32 %v2580_v26, 16  ;;  %v2846_v31 = vshrl.u32 %v2581_v6, 16  ;;  %v2849_v47 = vshll.u32 %v2581_v6, 16 }
 0x1b4   : > { %v7747_v0 = vadd.f32 %v5448_v21, %v4187_v43  ;;  %v2995_v29 = vrot.slane %v2916_v39, 4  ;;  %v2996_v1 = vrot.slane %v2917_v9, 4  ;;  %v2836_v49 = vsel %vm769_vm3, %v2827_v4, %v2835_v30 }
 0x1b5   : > { %v5355_v23 = vpop.f32.mrb[44].mxu0  ;;  %v2840_v51 = vrot.slane %v2838_v38, 3  ;;  %v2843_v15 = vrot.slane %v2841_v46, 4  ;;  %v2848_v18 = vrot.slane %v2846_v31, 3  ;;  %v2851_v25 = vrot.slane %v2849_v47, 4  ;;  %v5449_v42 = vpop.f32.mrb[48].mxu1 }
 0x1b6   : > { %v5356_v27 = vpop.f32.mrb[45].mxu0  ;;  %v2997_v45 = vsel %vm1315_vm0, %v2995_v29, %v2996_v1  ;;  %v5450_v62 = vpop.f32.mrb[49].mxu1  ;;  %v4192_v24 = vadd.f32 %v7737_v3, %v7663_v32  ;;  %v4195_v33 = vadd.f32 %v7737_v3, %v7674_v52  ;;  %v4200_v52 = vadd.f32 %v7737_v3, %v7702_v41 }
 0x1b7   : > { %v7750_v59 = vadd.f32 %v5356_v27, %v5355_v23  ;;  %v5358_v56 = vpop.f32.mrb[46].mxu0  ;;  %v5451_v50 = vadd.f32 %v5450_v62, %v5449_v42  ;;  %v5452_v14 = vpop.f32.mrb[50].mxu1  ;;  %v2844_v2 = vor.u32 %v2843_v15, %v2840_v51  ;;  %v2852_v28 = vor.u32 %v2851_v25, %v2848_v18 }
 0x1b8   : > { %v5359_v22 = vpop.f32.mrb[47].mxu0  ;;  %4721 = vmatmul.mubr.bf16.gmra.mrb[136].mxu1 %v2836_v49  ;;  %v5453_v37 = vpop.f32.mrb[51].mxu1  ;;  %v4203_v39 = vadd.f32 %v7737_v3, %v7706_v11  ;;  %v8092_v49 = vld [vmem:[#allocation13_spill] sm:$0xff]  ;;  %v4208_v27 = vadd.f32 %v7737_v3, %v7719_v48  ;;  %v8093_v48 = vld [vmem:[#allocation14_spill] sm:$0xff] }
 0x1b9   : > { %v7755_v36 = vadd.f32 %v5359_v22, %v5358_v56  ;;  %4728 = vmatprep.mubr.bf16.mxu1 %v2997_v45  ;;  %v7759_v60 = vadd.f32 %v5451_v50, %v4192_v24  ;;  %v5454_v61 = vadd.f32 %v5453_v37, %v5452_v14  ;;  %v2853_v32 = vsel %vm769_vm3, %v2844_v2, %v2852_v28 }
 0x1ba   : > { %v4211_v45 = vadd.f32 %v7737_v3, %v7727_v63  ;;  %v4216_v63 = vadd.f32 %v7737_v3, %v7750_v59  ;;  %v8094_v59 = vld [vmem:[#allocation16_spill] sm:$0xff] }
 0x1bb   : > { %v7761_v57 = vadd.f32 %v5454_v61, %v4195_v33 }
 0x1bd   : > { %v5513_v58 = vpop.f32.mrb[48].mxu0  ;;  %v5455_v12 = vpop.f32.mrb[52].mxu1 }
 0x1be   : > { %v5514_v5 = vpop.f32.mrb[49].mxu0  ;;  %v5456_v54 = vpop.f32.mrb[53].mxu1 }
 0x1bf   : > { %v5515_v44 = vadd.f32 %v5514_v5, %v5513_v58  ;;  %v5516_v26 = vpop.f32.mrb[50].mxu0  ;;  %v5457_v43 = vadd.f32 %v5456_v54, %v5455_v12  ;;  %v5458_v4 = vpop.f32.mrb[54].mxu1 }
 0x1c0   : > { %v5517_v6 = vpop.f32.mrb[51].mxu0  ;;  %4729 = vmatmul.mubr.bf16.gmra.mrb[140].mxu1 %v2853_v32  ;;  %v5459_v30 = vpop.f32.mrb[55].mxu1 }
 0x1c1   : > { %v7767_v19 = vadd.f32 %v5515_v44, %v7495_v8  ;;  %v5518_v34 = vadd.f32 %v5517_v6, %v5516_v26  ;;  %v7774_v21 = vadd.f32 %v5457_v43, %v4200_v52  ;;  %v5460_v38 = vadd.f32 %v5459_v30, %v5458_v4 }
 0x1c3   : > { %v7772_v9 = vadd.f32 %v5518_v34, %v7498_v20  ;;  %v7776_v31 = vadd.f32 %v5460_v38, %v4203_v39 }
 0x1c5   : > { %v5519_v46 = vpop.f32.mrb[52].mxu0 }
 0x1c6   : > { %v5520_v41 = vpop.f32.mrb[53].mxu0 }
 0x1c7   : > { %v5521_v8 = vadd.f32 %v5520_v41, %v5519_v46  ;;  %v5522_v47 = vpop.f32.mrb[54].mxu0 }
 0x1c8   : > { %v5523_v29 = vpop.f32.mrb[55].mxu0 }
 0x1c9   : > { %v7779_v1 = vadd.f32 %v5521_v8, %v7546_v16  ;;  %v5524_v23 = vadd.f32 %v5523_v29, %v5522_v47  ;;  %v8095_v8 = vld [vmem:[#allocation23_spill] sm:$0xff] }
 0x1ca   : > { %v5461_v11 = vpop.f32.mrb[56].mxu1 }
 0x1cb   : > { %v7782_v51 = vadd.f32 %v5524_v23, %v8092_v49  ;;  %v5462_v20 = vpop.f32.mrb[57].mxu1 }
 0x1cc   : > { %v5463_v18 = vadd.f32 %v5462_v20, %v5461_v11  ;;  %v5464_v25 = vpop.f32.mrb[58].mxu1 }
 0x1cd   : > { %v5525_v15 = vpop.f32.mrb[56].mxu0  ;;  %v5465_v42 = vpop.f32.mrb[59].mxu1 }
 0x1ce   : > { %v5526_v56 = vpop.f32.mrb[57].mxu0  ;;  %v7788_v62 = vadd.f32 %v5463_v18, %v4208_v27  ;;  %v5466_v24 = vadd.f32 %v5465_v42, %v5464_v25 }
 0x1cf   : > { %v5527_v22 = vadd.f32 %v5526_v56, %v5525_v15  ;;  %v5528_v16 = vpop.f32.mrb[58].mxu0  ;;  %v8097_v56 = vld [vmem:[#allocation20_spill] sm:$0xff] }
 0x1d0   : > { %v5529_v50 = vpop.f32.mrb[59].mxu0  ;;  %v7793_v37 = vadd.f32 %v5466_v24, %v4211_v45 }
 0x1d1   : > { %v7791_v14 = vadd.f32 %v5527_v22, %v7600_v10  ;;  %v5530_v33 = vadd.f32 %v5529_v50, %v5528_v16  ;;  %v4219_v10 = vadd.f32 %v7737_v3, %v7755_v36  ;;  %v4224_v36 = vadd.f32 %v7737_v3, %v8095_v8 }
 0x1d2   : > { %v5467_v28 = vpop.f32.mrb[60].mxu1 }
 0x1d3   : > { %v7796_v2 = vadd.f32 %v5530_v33, %v8093_v48  ;;  %v5468_v61 = vpop.f32.mrb[61].mxu1  ;;  %v8098_v48 = vld [vmem:[#allocation7_spill] sm:$0xff] }
 0x1d4   : > { %v5469_v5 = vadd.f32 %v5468_v61, %v5467_v28  ;;  %v5470_v32 = vpop.f32.mrb[62].mxu1  ;;  %v4232_v28 = vadd.f32 %v7737_v3, %v8098_v48 }
 0x1d5   : > { %v5531_v58 = vpop.f32.mrb[60].mxu0  ;;  %v5471_v26 = vpop.f32.mrb[63].mxu1 }
 0x1d6   : > { %v5532_v44 = vpop.f32.mrb[61].mxu0  ;;  %v7802_v54 = vadd.f32 %v5469_v5, %v4216_v63  ;;  %v5472_v52 = vadd.f32 %v5471_v26, %v5470_v32  ;;  %v8099_v26 = vld [vmem:[#allocation9_spill] sm:$0xff] }
 0x1d7   : > { %v5533_v12 = vadd.f32 %v5532_v44, %v5531_v58  ;;  %v5534_v6 = vpop.f32.mrb[62].mxu0 }
 0x1d8   : > { %v5535_v34 = vpop.f32.mrb[63].mxu0  ;;  %v7807_v30 = vadd.f32 %v5472_v52, %v4219_v10  ;;  %v4235_v10 = vadd.f32 %v7737_v3, %v8099_v26 }
 0x1d9   : > { %v7805_v43 = vadd.f32 %v5533_v12, %v7651_v7  ;;  %v5536_v4 = vadd.f32 %v5535_v34, %v5534_v6  ;;  %v8096_v7 = vld [vmem:[#allocation24_spill] sm:$0xff] }
 0x1da   : > { %v4227_v27 = vadd.f32 %v7737_v3, %v8096_v7 }
 0x1db   : > { %v7810_v39 = vadd.f32 %v5536_v4, %v8094_v59  ;;  %v5473_v38 = vpop.f32.mrb[64].mxu1 }
 0x1dc   : > { %v5474_v41 = vpop.f32.mrb[65].mxu1 }
 0x1dd   : > { %v5537_v46 = vpop.f32.mrb[64].mxu0  ;;  %v5475_v29 = vadd.f32 %v5474_v41, %v5473_v38  ;;  %v5476_v23 = vpop.f32.mrb[66].mxu1 }
 0x1de   : > { %v5538_v47 = vpop.f32.mrb[65].mxu0  ;;  %v5477_v20 = vpop.f32.mrb[67].mxu1 }
 0x1df   : > { %v5539_v49 = vadd.f32 %v5538_v47, %v5537_v46  ;;  %v5540_v11 = vpop.f32.mrb[66].mxu0  ;;  %v7816_v18 = vadd.f32 %v5475_v29, %v4224_v36  ;;  %v5478_v25 = vadd.f32 %v5477_v20, %v5476_v23  ;;  %v8100_v23 = vld [vmem:[#allocation6_spill] sm:$0xff] }
 0x1e0   : > { %v5541_v15 = vpop.f32.mrb[67].mxu0 }
 0x1e1   : > { %v7819_v42 = vadd.f32 %v5539_v49, %v8097_v56  ;;  %v5542_v45 = vadd.f32 %v5541_v15, %v5540_v11  ;;  %v7821_v22 = vadd.f32 %v5478_v25, %v4227_v27  ;;  %v4240_v49 = vadd.f32 %v7737_v3, %v8100_v23  ;;  %v8101_v15 = vld [vmem:[#allocation8_spill] sm:$0xff] }
 0x1e3   : > { %v7824_v16 = vadd.f32 %v5542_v45, %v7698_v53  ;;  %v5479_v24 = vpop.f32.mrb[68].mxu1 }
 0x1e4   : > { %v5480_v33 = vpop.f32.mrb[69].mxu1 }
 0x1e5   : > { %v5543_v50 = vpop.f32.mrb[68].mxu0  ;;  %v5481_v63 = vadd.f32 %v5480_v33, %v5479_v24  ;;  %v5482_v58 = vpop.f32.mrb[70].mxu1 }
 0x1e6   : > { %v5544_v61 = vpop.f32.mrb[69].mxu0  ;;  %v5483_v44 = vpop.f32.mrb[71].mxu1 }
 0x1e7   : > { %v5545_v5 = vadd.f32 %v5544_v61, %v5543_v50  ;;  %v5546_v32 = vpop.f32.mrb[70].mxu0  ;;  %v7830_v6 = vadd.f32 %v5481_v63, %v4232_v28  ;;  %v5484_v53 = vadd.f32 %v5483_v44, %v5482_v58 }
 0x1e8   : > { %v5547_v12 = vpop.f32.mrb[71].mxu0 }
 0x1e9   : > { %v7833_v52 = vadd.f32 %v5545_v5, %v7723_v35  ;;  %v5548_v34 = vadd.f32 %v5547_v12, %v5546_v32  ;;  %v7835_v4 = vadd.f32 %v5484_v53, %v4235_v10 }
 0x1eb   : > { %v7838_v59 = vadd.f32 %v5548_v34, %v7725_v40  ;;  %v4243_v40 = vadd.f32 %v7737_v3, %v8101_v15 }
 0x1ed   : > { %v5549_v38 = vpop.f32.mrb[72].mxu0  ;;  %v5485_v36 = vpop.f32.mrb[72].mxu1 }
 0x1ee   : > { %v5550_v46 = vpop.f32.mrb[73].mxu0  ;;  %v5486_v29 = vpop.f32.mrb[73].mxu1 }
 0x1ef   : > { %v5551_v41 = vadd.f32 %v5550_v46, %v5549_v38  ;;  %v5552_v8 = vpop.f32.mrb[74].mxu0  ;;  %v5487_v20 = vadd.f32 %v5486_v29, %v5485_v36  ;;  %v5488_v7 = vpop.f32.mrb[74].mxu1 }
 0x1f0   : > { %v5553_v47 = vpop.f32.mrb[75].mxu0  ;;  %v5489_v27 = vpop.f32.mrb[75].mxu1 }
 0x1f1   : > { %v7843_v11 = vadd.f32 %v5551_v41, %v7741_v17  ;;  %v5554_v35 = vadd.f32 %v5553_v47, %v5552_v8  ;;  %v7850_v56 = vadd.f32 %v5487_v20, %v4240_v49  ;;  %v5490_v45 = vadd.f32 %v5489_v27, %v5488_v7 }
 0x1f3   : > { %v7848_v25 = vadd.f32 %v5554_v35, %v7743_v55  ;;  %v7852_v50 = vadd.f32 %v5490_v45, %v4243_v40  ;;  %v8102_v40 = vld [vmem:[#allocation15_spill] sm:$0xff] }
 0x1f5   : > { %v5555_v24 = vpop.f32.mrb[76].mxu0 }
 0x1f6   : > { %v5556_v33 = vpop.f32.mrb[77].mxu0 }
 0x1f7   : > { %v5557_v48 = vadd.f32 %v5556_v33, %v5555_v24  ;;  %v5558_v17 = vpop.f32.mrb[78].mxu0 }
 0x1f8   : > { %v5559_v28 = vpop.f32.mrb[79].mxu0 }
 0x1f9   : > { %v7855_v61 = vadd.f32 %v5557_v48, %v7745_v13  ;;  %v5560_v63 = vadd.f32 %v5559_v28, %v5558_v17  ;;  %v8103_v17 = vld [vmem:[#allocation17_spill] sm:$0xff] }
 0x1fa   : > { %v4251_v28 = vadd.f32 %v7737_v3, %v8103_v17 }
 0x1fb   : > { %v7858_v58 = vadd.f32 %v5560_v63, %v7747_v0 }
 0x1fd   : > { %v5561_v5 = vpop.f32.mrb[80].mxu0 }
 0x1fe   : > { %v5562_v55 = vpop.f32.mrb[81].mxu0 }
 0x1ff   : > { %v5563_v32 = vadd.f32 %v5562_v55, %v5561_v5  ;;  %v5564_v44 = vpop.f32.mrb[82].mxu0 }
 0x200   : > { %v5565_v26 = vpop.f32.mrb[83].mxu0 }
 0x201   : > { %v7861_v10 = vadd.f32 %v5563_v32, %v7759_v60  ;;  %v5566_v12 = vadd.f32 %v5565_v26, %v5564_v44 }
 0x203   : > { %v7864_v53 = vadd.f32 %v5566_v12, %v7761_v57 }
 0x205   : > { %v5567_v34 = vpop.f32.mrb[84].mxu0 }
 0x206   : > { %v5568_v38 = vpop.f32.mrb[85].mxu0 }
 0x207   : > { %v5569_v13 = vadd.f32 %v5568_v38, %v5567_v34  ;;  %v5570_v46 = vpop.f32.mrb[86].mxu0 }
 0x208   : > { %v5571_v41 = vpop.f32.mrb[87].mxu0 }
 0x209   : > { %v7867_v0 = vadd.f32 %v5569_v13, %v7774_v21  ;;  %v5572_v8 = vadd.f32 %v5571_v41, %v5570_v46 }
 0x20b   : > { %v7870_v36 = vadd.f32 %v5572_v8, %v7776_v31  ;;  %v4248_v31 = vadd.f32 %v7737_v3, %v8102_v40 }
 0x20d   : > { %v5573_v47 = vpop.f32.mrb[88].mxu0 }
 0x20e   : > { %v5574_v29 = vpop.f32.mrb[89].mxu0 }
 0x20f   : > { %v5575_v60 = vadd.f32 %v5574_v29, %v5573_v47  ;;  %v5576_v23 = vpop.f32.mrb[90].mxu0 }
 0x210   : > { %v5577_v49 = vpop.f32.mrb[91].mxu0 }
 0x211   : > { %v7873_v57 = vadd.f32 %v5575_v60, %v7788_v62  ;;  %v5578_v35 = vadd.f32 %v5577_v49, %v5576_v23 }
 0x213   : > { %v7876_v20 = vadd.f32 %v5578_v35, %v7793_v37  ;;  %v5491_v7 = vpop.f32.mrb[76].mxu1 }
 0x214   : > { %v5492_v21 = vpop.f32.mrb[77].mxu1 }
 0x215   : > { %v5579_v27 = vpop.f32.mrb[92].mxu0  ;;  %v5493_v45 = vadd.f32 %v5492_v21, %v5491_v7  ;;  %v5494_v24 = vpop.f32.mrb[78].mxu1 }
 0x216   : > { %v5580_v15 = vpop.f32.mrb[93].mxu0  ;;  %v5495_v62 = vpop.f32.mrb[79].mxu1 }
 0x217   : > { %v5581_v33 = vadd.f32 %v5580_v15, %v5579_v27  ;;  %v5582_v48 = vpop.f32.mrb[94].mxu0  ;;  %v7882_v5 = vadd.f32 %v5493_v45, %v4248_v31  ;;  %v5496_v37 = vadd.f32 %v5495_v62, %v5494_v24 }
 0x218   : > { %v5583_v63 = vpop.f32.mrb[95].mxu0 }
 0x219   : > { %v7885_v55 = vadd.f32 %v5581_v33, %v7802_v54  ;;  %v5584_v32 = vadd.f32 %v5583_v63, %v5582_v48  ;;  %v7887_v44 = vadd.f32 %v5496_v37, %v4251_v28 }
 0x21b   : > { %v7890_v26 = vadd.f32 %v5584_v32, %v7807_v30  ;;  %v5625_v12 = vpop.f32.mrb[80].mxu1 }
 0x21c   : > { %v5626_v38 = vpop.f32.mrb[81].mxu1 }
 0x21d   : > { %v5585_v34 = vpop.f32.mrb[96].mxu0  ;;  %v5627_v46 = vadd.f32 %v5626_v38, %v5625_v12  ;;  %v5628_v3 = vpop.f32.mrb[82].mxu1 }
 0x21e   : > { %v5586_v13 = vpop.f32.mrb[97].mxu0  ;;  %v5629_v47 = vpop.f32.mrb[83].mxu1 }
 0x21f   : > { %v5587_v41 = vadd.f32 %v5586_v13, %v5585_v34  ;;  %v5588_v8 = vpop.f32.mrb[98].mxu0  ;;  %v5630_v60 = vadd.f32 %v5629_v47, %v5628_v3  ;;  %v4611_v49 = vadd.f32 %v5627_v46, %v7767_v19 }
 0x220   : > { %v5589_v29 = vpop.f32.mrb[99].mxu0 }
 0x221   : > { %v7893_v54 = vadd.f32 %v5587_v41, %v7816_v18  ;;  %v5590_v23 = vadd.f32 %v5589_v29, %v5588_v8  ;;  %v7900_v35 = vadd.f32 %v5630_v60, %v7772_v9 }
 0x223   : > { %v7897_v30 = vadd.f32 %v5590_v23, %v7821_v22  ;;  %v5631_v7 = vpop.f32.mrb[84].mxu1 }
 0x224   : > { %v5632_v21 = vpop.f32.mrb[85].mxu1 }
 0x225   : > { %v5591_v27 = vpop.f32.mrb[100].mxu0  ;;  %v5633_v40 = vadd.f32 %v5632_v21, %v5631_v7  ;;  %v5634_v31 = vpop.f32.mrb[86].mxu1 }
 0x226   : > { %v5592_v15 = vpop.f32.mrb[101].mxu0  ;;  %v5635_v33 = vpop.f32.mrb[87].mxu1 }
 0x227   : > { %v5593_v45 = vadd.f32 %v5592_v15, %v5591_v27  ;;  %v5594_v24 = vpop.f32.mrb[102].mxu0  ;;  %v5636_v48 = vadd.f32 %v5635_v33, %v5634_v31  ;;  %v4619_v22 = vadd.f32 %v5633_v40, %v7779_v1 }
 0x228   : > { %v5595_v18 = vpop.f32.mrb[103].mxu0 }
 0x229   : > { %v7903_v17 = vadd.f32 %v5593_v45, %v7830_v6  ;;  %v5596_v19 = vadd.f32 %v5595_v18, %v5594_v24  ;;  %v4622_v28 = vadd.f32 %v5636_v48, %v7782_v51 }
 0x22b   : > { %v7907_v9 = vadd.f32 %v5596_v19, %v7835_v4  ;;  %v5637_v62 = vpop.f32.mrb[88].mxu1 }
 0x22c   : > { %v5638_v37 = vpop.f32.mrb[89].mxu1 }
 0x22d   : > { %v5597_v63 = vpop.f32.mrb[104].mxu0  ;;  %v5639_v12 = vadd.f32 %v5638_v37, %v5637_v62  ;;  %v5640_v34 = vpop.f32.mrb[90].mxu1 }
 0x22e   : > { %v5598_v32 = vpop.f32.mrb[105].mxu0  ;;  %v5641_v46 = vpop.f32.mrb[91].mxu1 }
 0x22f   : > { %v5599_v38 = vadd.f32 %v5598_v32, %v5597_v63  ;;  %v5600_v13 = vpop.f32.mrb[106].mxu0  ;;  %v5642_v6 = vadd.f32 %v5641_v46, %v5640_v34  ;;  %v4627_v4 = vadd.f32 %v5639_v12, %v7791_v14 }
 0x230   : > { %v5601_v3 = vpop.f32.mrb[107].mxu0 }
 0x231   : > { %v7911_v41 = vadd.f32 %v5599_v38, %v7850_v56  ;;  %v5602_v1 = vadd.f32 %v5601_v3, %v5600_v13  ;;  %v7918_v51 = vadd.f32 %v5642_v6, %v7796_v2 }
 0x233   : > { %v7915_v8 = vadd.f32 %v5602_v1, %v7852_v50  ;;  %v5643_v47 = vpop.f32.mrb[92].mxu1 }
 0x234   : > { %v5644_v60 = vpop.f32.mrb[93].mxu1 }
 0x235   : > { %v5603_v29 = vpop.f32.mrb[108].mxu0  ;;  %v5645_v7 = vadd.f32 %v5644_v60, %v5643_v47  ;;  %v5646_v27 = vpop.f32.mrb[94].mxu1 }
 0x236   : > { %v5604_v23 = vpop.f32.mrb[109].mxu0  ;;  %v5647_v56 = vpop.f32.mrb[95].mxu1 }
 0x237   : > { %v5605_v21 = vadd.f32 %v5604_v23, %v5603_v29  ;;  %v5606_v15 = vpop.f32.mrb[110].mxu0  ;;  %v5648_v31 = vadd.f32 %v5647_v56, %v5646_v27  ;;  %v4635_v45 = vadd.f32 %v5645_v7, %v7805_v43 }
 0x238   : > { %v5607_v40 = vpop.f32.mrb[111].mxu0 }
 0x239   : > { %v7921_v14 = vadd.f32 %v5605_v21, %v7882_v5  ;;  %v5608_v50 = vadd.f32 %v5607_v40, %v5606_v15  ;;  %v4638_v24 = vadd.f32 %v5648_v31, %v7810_v39 }
 0x23b   : > { %v7925_v2 = vadd.f32 %v5608_v50, %v7887_v44  ;;  %v5649_v33 = vpop.f32.mrb[96].mxu1 }
 0x23c   : > { %v5650_v5 = vpop.f32.mrb[97].mxu1 }
 0x23d   : > { %v5763_v18 = vpop.f32.mrb[112].mxu0  ;;  %v5651_v19 = vadd.f32 %v5650_v5, %v5649_v33  ;;  %v5652_v44 = vpop.f32.mrb[98].mxu1 }
 0x23e   : > { %v4780_v48 = vadd.f32 %v5763_v18, %v4619_v22  ;;  %v4771_v43 = vpop.f32.mrb[113].mxu0  ;;  %v5653_v39 = vpop.f32.mrb[99].mxu1 }
 0x23f   : > { %v4772_v62 = vadd.f32 %v4771_v43, %v4611_v49  ;;  %v5764_v63 = vpop.f32.mrb[114].mxu0  ;;  %v5654_v12 = vadd.f32 %v5653_v39, %v5652_v44  ;;  %v4643_v38 = vadd.f32 %v5651_v19, %v7819_v42 }
 0x240   : > { %4900 = vst [vmem:[%s7933_s17 + $0x10] sm:$0xff] %v4780_v48  ;;  %v4783_v37 = vadd.f32 %v5764_v63, %v4622_v28  ;;  %v4774_v32 = vpop.f32.mrb[115].mxu0  ;;  %v4970_v49 = vmul.f32 %v4780_v48, %v4780_v48 }
 0x241   : > { %4898 = vst [vmem:[%s7933_s17] sm:$0xff] %v4772_v62  ;;  %v4775_v34 = vadd.f32 %v4774_v32, %v7900_v35  ;;  %v4968_v13 = vmul.f32 %v4772_v62, %v4772_v62  ;;  %v4646_v3 = vadd.f32 %v5654_v12, %v7824_v16 }
 0x242   : > { %4901 = vst [vmem:[%s7933_s17 + $0x18] sm:$0xff] %v4783_v37  ;;  %v4971_v60 = vmul.f32 %v4783_v37, %v4783_v37 }
 0x243   : > { %4899 = vst [vmem:[%s7933_s17 + $0x8] sm:$0xff] %v4775_v34  ;;  %v4930_v22 = vadd.f32 %v4775_v34, %v4772_v62  ;;  %v4969_v46 = vmul.f32 %v4775_v34, %v4775_v34  ;;  %v5655_v6 = vpop.f32.mrb[100].mxu1 }
 0x244   : > { %v5656_v29 = vpop.f32.mrb[101].mxu1 }
 0x245   : > { %v4931_v1 = vadd.f32 %v4930_v22, %v4780_v48  ;;  %v5000_v47 = vadd.f32 %v4969_v46, %v4968_v13  ;;  %v5767_v28 = vpop.f32.mrb[116].mxu0  ;;  %v5657_v42 = vadd.f32 %v5656_v29, %v5655_v6  ;;  %v5658_v7 = vpop.f32.mrb[102].mxu1 }
 0x246   : > { %v4796_v23 = vadd.f32 %v5767_v28, %v4635_v45  ;;  %v4787_v35 = vpop.f32.mrb[117].mxu0  ;;  %v5659_v16 = vpop.f32.mrb[103].mxu1 }
 0x247   : > { %v5001_v27 = vadd.f32 %v5000_v47, %v4970_v49  ;;  %v4788_v21 = vadd.f32 %v4787_v35, %v4627_v4  ;;  %v4932_v15 = vadd.f32 %v4931_v1, %v4783_v37  ;;  %v5768_v56 = vpop.f32.mrb[118].mxu0  ;;  %v5660_v50 = vadd.f32 %v5659_v16, %v5658_v7 }
 0x248   : > { %4904 = vst [vmem:[%s7933_s17 + $0x30] sm:$0xff] %v4796_v23  ;;  %v4799_v40 = vadd.f32 %v5768_v56, %v4638_v24  ;;  %v4790_v31 = vpop.f32.mrb[119].mxu0  ;;  %v4651_v48 = vadd.f32 %v5657_v42, %v7833_v52  ;;  %v4974_v39 = vmul.f32 %v4796_v23, %v4796_v23 }
 0x249   : > { %4902 = vst [vmem:[%s7933_s17 + $0x20] sm:$0xff] %v4788_v21  ;;  %v4933_v33 = vadd.f32 %v4932_v15, %v4788_v21  ;;  %v4972_v18 = vmul.f32 %v4788_v21, %v4788_v21  ;;  %v5002_v5 = vadd.f32 %v5001_v27, %v4971_v60  ;;  %v4791_v45 = vadd.f32 %v4790_v31, %v7918_v51 }
 0x24a   : > { %4905 = vst [vmem:[%s7933_s17 + $0x38] sm:$0xff] %v4799_v40  ;;  %v4654_v4 = vadd.f32 %v5660_v50, %v7838_v59  ;;  %v4975_v46 = vmul.f32 %v4799_v40, %v4799_v40 }
 0x24b   : > { %v5003_v43 = vadd.f32 %v5002_v5, %v4972_v18  ;;  %4903 = vst [vmem:[%s7933_s17 + $0x28] sm:$0xff] %v4791_v45  ;;  %v4934_v19 = vadd.f32 %v4933_v33, %v4791_v45  ;;  %v4973_v44 = vmul.f32 %v4791_v45, %v4791_v45  ;;  %v5661_v62 = vpop.f32.mrb[104].mxu1 }
 0x24c   : > { %v5662_v63 = vpop.f32.mrb[105].mxu1 }
 0x24d   : > { %v5771_v24 = vpop.f32.mrb[120].mxu0  ;;  %v4935_v37 = vadd.f32 %v4934_v19, %v4796_v23  ;;  %v5004_v32 = vadd.f32 %v5003_v43, %v4973_v44  ;;  %v5663_v13 = vadd.f32 %v5662_v63, %v5661_v62  ;;  %v5664_v51 = vpop.f32.mrb[106].mxu1 }
 0x24e   : > { %v4812_v12 = vadd.f32 %v5771_v24, %v4651_v48  ;;  %v4803_v34 = vpop.f32.mrb[121].mxu0  ;;  %v5665_v59 = vpop.f32.mrb[107].mxu1 }
 0x24f   : > { %v4804_v22 = vadd.f32 %v4803_v34, %v4643_v38  ;;  %v5772_v52 = vpop.f32.mrb[122].mxu0  ;;  %v5005_v6 = vadd.f32 %v5004_v32, %v4974_v39  ;;  %v4936_v49 = vadd.f32 %v4935_v37, %v4799_v40  ;;  %v5666_v28 = vadd.f32 %v5665_v59, %v5664_v51 }
 0x250   : > { %4908 = vst [vmem:[%s7933_s17 + $0x50] sm:$0xff] %v4812_v12  ;;  %v4815_v1 = vadd.f32 %v5772_v52, %v4654_v4  ;;  %v4806_v47 = vpop.f32.mrb[123].mxu0  ;;  %v4659_v23 = vadd.f32 %v5663_v13, %v7843_v11  ;;  %v4978_v40 = vmul.f32 %v4812_v12, %v4812_v12 }
 0x251   : > { %4906 = vst [vmem:[%s7933_s17 + $0x40] sm:$0xff] %v4804_v22  ;;  %v4976_v29 = vmul.f32 %v4804_v22, %v4804_v22  ;;  %v4807_v60 = vadd.f32 %v4806_v47, %v4646_v3  ;;  %v4937_v35 = vadd.f32 %v4936_v49, %v4804_v22  ;;  %v5006_v42 = vadd.f32 %v5005_v6, %v4975_v46 }
 0x252   : > { %4909 = vst [vmem:[%s7933_s17 + $0x58] sm:$0xff] %v4815_v1  ;;  %v4662_v7 = vadd.f32 %v5666_v28, %v7848_v25  ;;  %v4979_v48 = vmul.f32 %v4815_v1, %v4815_v1 }
 0x253   : > { %4907 = vst [vmem:[%s7933_s17 + $0x48] sm:$0xff] %v4807_v60  ;;  %v4977_v38 = vmul.f32 %v4807_v60, %v4807_v60  ;;  %v5007_v27 = vadd.f32 %v5006_v42, %v4976_v29  ;;  %v4938_v21 = vadd.f32 %v4937_v35, %v4807_v60  ;;  %v5667_v15 = vpop.f32.mrb[108].mxu1 }
 0x254   : > { %v5668_v16 = vpop.f32.mrb[109].mxu1 }
 0x255   : > { %v5775_v56 = vpop.f32.mrb[124].mxu0  ;;  %v4939_v31 = vadd.f32 %v4938_v21, %v4812_v12  ;;  %v5008_v50 = vadd.f32 %v5007_v27, %v4977_v38  ;;  %v5669_v3 = vadd.f32 %v5668_v16, %v5667_v15  ;;  %v5670_v18 = vpop.f32.mrb[110].mxu1 }
 0x256   : > { %v4819_v33 = vpop.f32.mrb[125].mxu0  ;;  %v5671_v45 = vpop.f32.mrb[111].mxu1 }
 0x257   : > { %v4820_v11 = vadd.f32 %v4819_v33, %v4659_v23  ;;  %v5776_v5 = vpop.f32.mrb[126].mxu0  ;;  %v5009_v43 = vadd.f32 %v5008_v50, %v4978_v40  ;;  %v4940_v4 = vadd.f32 %v4939_v31, %v4815_v1  ;;  %v5672_v19 = vadd.f32 %v5671_v45, %v5670_v18 }
 0x258   : > { %v4822_v25 = vpop.f32.mrb[127].mxu0  ;;  %v4667_v44 = vadd.f32 %v5669_v3, %v7855_v61 }
 0x259   : > { %4910 = vst [vmem:[%s7933_s17 + $0x60] sm:$0xff] %v4820_v11  ;;  %v4980_v62 = vmul.f32 %v4820_v11, %v4820_v11  ;;  %v4823_v24 = vadd.f32 %v4822_v25, %v4662_v7  ;;  %v4941_v63 = vadd.f32 %v4940_v4, %v4820_v11  ;;  %v5010_v39 = vadd.f32 %v5009_v43, %v4979_v48 }
 0x25a   : > { %v4828_v37 = vadd.f32 %v5775_v56, %v4667_v44  ;;  %v4670_v32 = vadd.f32 %v5672_v19, %v7858_v58 }
 0x25b   : > { %4911 = vst [vmem:[%s7933_s17 + $0x68] sm:$0xff] %v4823_v24  ;;  %v4981_v12 = vmul.f32 %v4823_v24, %v4823_v24  ;;  %v5011_v34 = vadd.f32 %v5010_v39, %v4980_v62  ;;  %v4942_v13 = vadd.f32 %v4941_v63, %v4823_v24  ;;  %v5673_v51 = vpop.f32.mrb[112].mxu1 }
 0x25c   : > { %4912 = vst [vmem:[%s7933_s17 + $0x70] sm:$0xff] %v4828_v37  ;;  %v4831_v22 = vadd.f32 %v5776_v5, %v4670_v32  ;;  %v5674_v52 = vpop.f32.mrb[113].mxu1  ;;  %v4982_v59 = vmul.f32 %v4828_v37, %v4828_v37 }
 0x25d   : > { %v4943_v46 = vadd.f32 %v4942_v13, %v4828_v37  ;;  %v5012_v61 = vadd.f32 %v5011_v34, %v4981_v12  ;;  %v5675_v49 = vadd.f32 %v5674_v52, %v5673_v51  ;;  %v5676_v1 = vpop.f32.mrb[114].mxu1 }
 0x25e   : > { %4913 = vst [vmem:[%s7933_s17 + $0x78] sm:$0xff] %v4831_v22  ;;  %v5677_v28 = vpop.f32.mrb[115].mxu1  ;;  %v4983_v29 = vmul.f32 %v4831_v22, %v4831_v22 }
 0x25f   : > { %v5779_v6 = vpop.f32.mrb[128].mxu0  ;;  %v5013_v58 = vadd.f32 %v5012_v61, %v4982_v59  ;;  %v4944_v60 = vadd.f32 %v4943_v46, %v4831_v22  ;;  %v5678_v35 = vadd.f32 %v5677_v28, %v5676_v1  ;;  %v4675_v42 = vadd.f32 %v5675_v49, %v7861_v10 }
 0x260   : > { %v4835_v47 = vpop.f32.mrb[129].mxu0 }
 0x261   : > { %v5780_v23 = vpop.f32.mrb[130].mxu0  ;;  %v5014_v7 = vadd.f32 %v5013_v58, %v4983_v29  ;;  %v4836_v27 = vadd.f32 %v4835_v47, %v4675_v42  ;;  %v4678_v21 = vadd.f32 %v5678_v35, %v7864_v53 }
 0x262   : > { %v4838_v38 = vpop.f32.mrb[131].mxu0 }
 0x263   : > { %v5679_v15 = vpop.f32.mrb[116].mxu1  ;;  %4914 = vst [vmem:[%s7933_s17 + $0x80] sm:$0xff] %v4836_v27  ;;  %v4945_v56 = vadd.f32 %v4944_v60, %v4836_v27  ;;  %v4984_v16 = vmul.f32 %v4836_v27, %v4836_v27  ;;  %v4839_v40 = vadd.f32 %v4838_v38, %v4678_v21 }
 0x264   : > { %v5680_v31 = vpop.f32.mrb[117].mxu1 }
 0x265   : > { %v5681_v50 = vadd.f32 %v5680_v31, %v5679_v15  ;;  %v5682_v33 = vpop.f32.mrb[118].mxu1  ;;  %v5015_v3 = vadd.f32 %v5014_v7, %v4984_v16  ;;  %4915 = vst [vmem:[%s7933_s17 + $0x88] sm:$0xff] %v4839_v40  ;;  %v4946_v18 = vadd.f32 %v4945_v56, %v4839_v40  ;;  %v4985_v11 = vmul.f32 %v4839_v40, %v4839_v40 }
 0x266   : > { %v5683_v5 = vpop.f32.mrb[119].mxu1 }
 0x267   : > { %v5684_v10 = vadd.f32 %v5683_v5, %v5682_v33  ;;  %v4683_v45 = vadd.f32 %v5681_v50, %v7867_v0  ;;  %v5016_v48 = vadd.f32 %v5015_v3, %v4985_v11 }
 0x269   : > { %v4844_v4 = vadd.f32 %v5779_v6, %v4683_v45  ;;  %v4686_v25 = vadd.f32 %v5684_v10, %v7870_v36 }
 0x26a   : > { %v5783_v53 = vpop.f32.mrb[132].mxu0 }
 0x26b   : > { %v4851_v43 = vpop.f32.mrb[133].mxu0  ;;  %v5685_v62 = vpop.f32.mrb[120].mxu1  ;;  %4916 = vst [vmem:[%s7933_s17 + $0x90] sm:$0xff] %v4844_v4  ;;  %v4986_v24 = vmul.f32 %v4844_v4, %v4844_v4  ;;  %v4847_v63 = vadd.f32 %v5780_v23, %v4686_v25  ;;  %v4947_v39 = vadd.f32 %v4946_v18, %v4844_v4 }
 0x26c   : > { %v5784_v19 = vpop.f32.mrb[134].mxu0  ;;  %v5686_v37 = vpop.f32.mrb[121].mxu1 }
 0x26d   : > { %v4854_v44 = vpop.f32.mrb[135].mxu0  ;;  %v5687_v32 = vadd.f32 %v5686_v37, %v5685_v62  ;;  %v5688_v12 = vpop.f32.mrb[122].mxu1  ;;  %4917 = vst [vmem:[%s7933_s17 + $0x98] sm:$0xff] %v4847_v63  ;;  %v4987_v0 = vmul.f32 %v4847_v63, %v4847_v63  ;;  %v5017_v34 = vadd.f32 %v5016_v48, %v4986_v24  ;;  %v4948_v13 = vadd.f32 %v4947_v39, %v4847_v63 }
 0x26e   : > { %v5689_v51 = vpop.f32.mrb[123].mxu1 }
 0x26f   : > { %v5690_v22 = vadd.f32 %v5689_v51, %v5688_v12  ;;  %v4691_v52 = vadd.f32 %v5687_v32, %v7873_v57  ;;  %v5018_v36 = vadd.f32 %v5017_v34, %v4987_v0 }
 0x271   : > { %v4852_v59 = vadd.f32 %v4851_v43, %v4691_v52  ;;  %v4694_v46 = vadd.f32 %v5690_v22, %v7876_v20 }
 0x273   : > { %v5691_v6 = vpop.f32.mrb[124].mxu1  ;;  %4918 = vst [vmem:[%s7933_s17 + $0xa0] sm:$0xff] %v4852_v59  ;;  %v4949_v49 = vadd.f32 %v4948_v13, %v4852_v59  ;;  %v4988_v1 = vmul.f32 %v4852_v59, %v4852_v59  ;;  %v4855_v47 = vadd.f32 %v4854_v44, %v4694_v46 }
 0x274   : > { %v5692_v29 = vpop.f32.mrb[125].mxu1 }
 0x275   : > { %v5787_v61 = vpop.f32.mrb[136].mxu0  ;;  %v5693_v60 = vadd.f32 %v5692_v29, %v5691_v6  ;;  %v5694_v23 = vpop.f32.mrb[126].mxu1  ;;  %v5019_v35 = vadd.f32 %v5018_v36, %v4988_v1  ;;  %4919 = vst [vmem:[%s7933_s17 + $0xa8] sm:$0xff] %v4855_v47  ;;  %v4950_v57 = vadd.f32 %v4949_v49, %v4855_v47  ;;  %v4989_v42 = vmul.f32 %v4855_v47, %v4855_v47 }
 0x276   : > { %v4867_v28 = vpop.f32.mrb[137].mxu0  ;;  %v5695_v7 = vpop.f32.mrb[127].mxu1 }
 0x277   : > { %v5788_v58 = vpop.f32.mrb[138].mxu0  ;;  %v5696_v20 = vadd.f32 %v5695_v7, %v5694_v23  ;;  %v4699_v27 = vadd.f32 %v5693_v60, %v7885_v55  ;;  %v5020_v21 = vadd.f32 %v5019_v35, %v4989_v42 }
 0x278   : > { %v4870_v38 = vpop.f32.mrb[139].mxu0 }
 0x279   : > { %v4860_v15 = vadd.f32 %v5783_v53, %v4699_v27  ;;  %v4702_v56 = vadd.f32 %v5696_v20, %v7890_v26 }
 0x27b   : > { %v5697_v16 = vpop.f32.mrb[128].mxu1  ;;  %4920 = vst [vmem:[%s7933_s17 + $0xb0] sm:$0xff] %v4860_v15  ;;  %v4990_v40 = vmul.f32 %v4860_v15, %v4860_v15  ;;  %v4863_v31 = vadd.f32 %v5784_v19, %v4702_v56  ;;  %v4951_v50 = vadd.f32 %v4950_v57, %v4860_v15 }
 0x27c   : > { %v5698_v33 = vpop.f32.mrb[129].mxu1 }
 0x27d   : > { %v5699_v3 = vadd.f32 %v5698_v33, %v5697_v16  ;;  %v5700_v18 = vpop.f32.mrb[130].mxu1  ;;  %4921 = vst [vmem:[%s7933_s17 + $0xb8] sm:$0xff] %v4863_v31  ;;  %v4991_v11 = vmul.f32 %v4863_v31, %v4863_v31  ;;  %v5021_v5 = vadd.f32 %v5020_v21, %v4990_v40  ;;  %v4952_v10 = vadd.f32 %v4951_v50, %v4863_v31 }
 0x27e   : > { %v5701_v45 = vpop.f32.mrb[131].mxu1 }
 0x27f   : > { %v5702_v48 = vadd.f32 %v5701_v45, %v5700_v18  ;;  %v4707_v55 = vadd.f32 %v5699_v3, %v7893_v54  ;;  %v5022_v53 = vadd.f32 %v5021_v5, %v4991_v11 }
 0x281   : > { %v4868_v4 = vadd.f32 %v4867_v28, %v4707_v55  ;;  %v4710_v25 = vadd.f32 %v5702_v48, %v7897_v30 }
 0x282   : > { %v5791_v26 = vpop.f32.mrb[140].mxu0 }
 0x283   : > { %v4883_v43 = vpop.f32.mrb[141].mxu0  ;;  %v5703_v62 = vpop.f32.mrb[132].mxu1  ;;  %4922 = vst [vmem:[%s7933_s17 + $0xc0] sm:$0xff] %v4868_v4  ;;  %v4953_v24 = vadd.f32 %v4952_v10, %v4868_v4  ;;  %v4992_v63 = vmul.f32 %v4868_v4, %v4868_v4  ;;  %v4871_v39 = vadd.f32 %v4870_v38, %v4710_v25 }
 0x284   : > { %v5792_v19 = vpop.f32.mrb[142].mxu0  ;;  %v5704_v37 = vpop.f32.mrb[133].mxu1 }
 0x285   : > { %v4886_v44 = vpop.f32.mrb[143].mxu0  ;;  %v5705_v32 = vadd.f32 %v5704_v37, %v5703_v62  ;;  %v5023_v12 = vadd.f32 %v5022_v53, %v4992_v63  ;;  %v5706_v0 = vpop.f32.mrb[134].mxu1  ;;  %4923 = vst [vmem:[%s7933_s17 + $0xc8] sm:$0xff] %v4871_v39  ;;  %v4954_v54 = vadd.f32 %v4953_v24, %v4871_v39  ;;  %v4993_v34 = vmul.f32 %v4871_v39, %v4871_v39 }
 0x286   : > { %v5707_v13 = vpop.f32.mrb[135].mxu1 }
 0x287   : > { %v4715_v51 = vadd.f32 %v5705_v32, %v7903_v17  ;;  %v5708_v30 = vadd.f32 %v5707_v13, %v5706_v0  ;;  %v5024_v22 = vadd.f32 %v5023_v12, %v4993_v34 }
 0x289   : > { %v4876_v52 = vadd.f32 %v5787_v61, %v4715_v51  ;;  %v4718_v36 = vadd.f32 %v5708_v30, %v7907_v9 }
 0x28b   : > { %4924 = vst [vmem:[%s7933_s17 + $0xd0] sm:$0xff] %v4876_v52  ;;  %v4994_v59 = vmul.f32 %v4876_v52, %v4876_v52  ;;  %v4879_v46 = vadd.f32 %v5788_v58, %v4718_v36  ;;  %v4955_v6 = vadd.f32 %v4954_v54, %v4876_v52  ;;  %v5709_v49 = vpop.f32.mrb[136].mxu1 }
 0x28c   : > { %v5710_v1 = vpop.f32.mrb[137].mxu1 }
 0x28d   : > { %4925 = vst [vmem:[%s7933_s17 + $0xd8] sm:$0xff] %v4879_v46  ;;  %v4995_v47 = vmul.f32 %v4879_v46, %v4879_v46  ;;  %v5025_v28 = vadd.f32 %v5024_v22, %v4994_v59  ;;  %v5711_v29 = vadd.f32 %v5710_v1, %v5709_v49  ;;  %v5712_v60 = vpop.f32.mrb[138].mxu1  ;;  %v4956_v23 = vadd.f32 %v4955_v6, %v4879_v46 }
 0x28e   : > { %v5713_v17 = vpop.f32.mrb[139].mxu1 }
 0x28f   : > { %v5714_v35 = vadd.f32 %v5713_v17, %v5712_v60  ;;  %v4723_v61 = vadd.f32 %v5711_v29, %v7911_v41  ;;  %v5026_v57 = vadd.f32 %v5025_v28, %v4995_v47 }
 0x291   : > { %v4884_v9 = vadd.f32 %v4883_v43, %v4723_v61  ;;  %v4726_v42 = vadd.f32 %v5714_v35, %v7915_v8 }
 0x293   : > { %4926 = vst [vmem:[%s7933_s17 + $0xe0] sm:$0xff] %v4884_v9  ;;  %v4957_v58 = vadd.f32 %v4956_v23, %v4884_v9  ;;  %v4996_v38 = vmul.f32 %v4884_v9, %v4884_v9  ;;  %v4887_v7 = vadd.f32 %v4886_v44, %v4726_v42  ;;  %v5715_v20 = vpop.f32.mrb[140].mxu1 }
 0x294   : > { %v5716_v27 = vpop.f32.mrb[141].mxu1 }
 0x295   : > { %v5027_v21 = vadd.f32 %v5026_v57, %v4996_v38  ;;  %4927 = vst [vmem:[%s7933_s17 + $0xe8] sm:$0xff] %v4887_v7  ;;  %v4958_v15 = vadd.f32 %v4957_v58, %v4887_v7  ;;  %v4997_v56 = vmul.f32 %v4887_v7, %v4887_v7  ;;  %v5717_v16 = vadd.f32 %v5716_v27, %v5715_v20  ;;  %v5718_v40 = vpop.f32.mrb[142].mxu1 }
 0x296   : > { %v5719_v31 = vpop.f32.mrb[143].mxu1 }
 0x297   : > { %v5028_v41 = vadd.f32 %v5027_v21, %v4997_v56  ;;  %v4731_v50 = vadd.f32 %v5717_v16, %v7921_v14  ;;  %v5720_v33 = vadd.f32 %v5719_v31, %v5718_v40 }
 0x299   : > { %v4892_v8 = vadd.f32 %v5791_v26, %v4731_v50  ;;  %v4734_v3 = vadd.f32 %v5720_v33, %v7925_v2 }
 0x29b   : > { %4928 = vst [vmem:[%s7933_s17 + $0xf0] sm:$0xff] %v4892_v8  ;;  %v4959_v18 = vadd.f32 %v4958_v15, %v4892_v8  ;;  %v4998_v11 = vmul.f32 %v4892_v8, %v4892_v8  ;;  %v4895_v5 = vadd.f32 %v5792_v19, %v4734_v3 }
 0x29d   : > { %v5029_v10 = vadd.f32 %v5028_v41, %v4998_v11  ;;  %4929 = vst [vmem:[%s7933_s17 + $0xf8] sm:$0xff] %v4895_v5  ;;  %v4960_v45 = vadd.f32 %v4959_v18, %v4895_v5  ;;  %v4999_v48 = vmul.f32 %v4895_v5, %v4895_v5 }
 0x29f   : > { %v4961_v55 = vrot.slane %v4960_v45, 4  ;;  %v5030_v53 = vadd.f32 %v5029_v10, %v4999_v48 }
 0x2a1   : > { %v4962_v43 = vadd.f32 %v4961_v55, %v4960_v45  ;;  %v5031_v4 = vrot.slane %v5030_v53, 4 }
 0x2a3   : > { %v4963_v25 = vrot.slane %v4962_v43, 2  ;;  %v5032_v14 = vadd.f32 %v5031_v4, %v5030_v53 }
 0x2a5   : > { %v4964_v44 = vadd.f32 %v4963_v25, %v4962_v43  ;;  %v5033_v26 = vrot.slane %v5032_v14, 2 }
 0x2a7   : > { %v4965_v62 = vrot.slane %v4964_v44, 1  ;;  %v5034_v2 = vadd.f32 %v5033_v26, %v5032_v14 }
 0x2a9   : > { %v4966_v19 = vadd.f32 %v4965_v62, %v4964_v44  ;;  %v5035_v24 = vrot.slane %v5034_v2, 1 }
 0x2ab   : > { %4967 = vst [vmem:[%s333_s19] sm:$0x1] %v4966_v19  ;;  %v5036_v63 = vadd.f32 %v5035_v24, %v5034_v2 }
 0x2ad   : > { %5037 = vst [vmem:[%s336_s23] sm:$0x1] %v5036_v63 }
 0x2ae PF: > { %s19_s27 = sadd.s32 1, %s6032_s27  }
 0x2af   : > { %p16_p4 = scmp.ge.s32.totalorder %s19_s27, 4  }
 0x2b1   :  { %18 = sbr.rel (!%p16_p4) target bundleno = 1 (0x1), region = 104 }

</bundles_post_ra>
